<compile_context>
chip_gen: v6e
topology: v6e:2x2x1
jax: 0.10.0
libtpu: 0.0.40
codegen_flags: <defaults>
</compile_context>

<pallas_src>
import jax
import jax.numpy as jnp
from jax.experimental import pallas as pl
from jax.experimental.pallas import tpu as pltpu

BN_EPS = 1e-5
NOISE_STD = 0.01
HID = 512


def _round_up_lanes(d):
    """Pad a feature width up to a lane-dense multiple of 128 (min 128)."""
    return max(128, ((d + 127) // 128) * 128)


def encoderz_kernel(x_ref,
                    w1_ref, g1_ref, be1_ref,
                    w2_ref, g2_ref, be2_ref,
                    w3_ref, b3_ref,
                    out_ref):
    n = x_ref.shape[0]
    inv_n = 1.0 / n
    ones_row = jnp.ones((1, n), jnp.float32)  # MXU-based batch reductions

    def bn_relu(h, gamma, beta):
        # Training-mode BatchNorm1d (biased batch variance); batch sums on the MXU.
        s1 = jnp.dot(ones_row, h, preferred_element_type=jnp.float32)       # [1, F] sum
        s2 = jnp.dot(ones_row, h * h, preferred_element_type=jnp.float32)   # [1, F] sum sq
        mu = s1 * inv_n
        var = jnp.maximum(s2 * inv_n - mu * mu, 0.0)
        scale = gamma * jax.lax.rsqrt(var + BN_EPS)      # [1, F]
        shift = beta - mu * scale                        # [1, F]
        return jnp.maximum(h * scale + shift, 0.0)       # fused BN affine + ReLU (f32)

    # layer 1: Linear(ze_pad, 512) [bias dropped: cancelled by BN mean] -> BN -> ReLU
    h = jnp.dot(x_ref[...], w1_ref[...], preferred_element_type=jnp.float32)
    h = bn_relu(h, g1_ref[...], be1_ref[...])

    # layer 2: Linear(512, 512) [bias dropped] -> BN -> ReLU (bf16 operands, f32 acc)
    h = jnp.dot(h.astype(jnp.bfloat16), w2_ref[...], preferred_element_type=jnp.float32)
    h = bn_relu(h, g2_ref[...], be2_ref[...])

    # layer 3: Linear(512, pad(3*z, 128)); >=128-lane output -> unmasked lane-dense stores
    out_ref[...] = (jnp.dot(h.astype(jnp.bfloat16), w3_ref[...],
                            preferred_element_type=jnp.float32) + b3_ref[...])


def init_params(key, ze, z):
    """Master f32 parameters (shapes match the PyTorch module, W stored [in, out]).

    Pre-BN linear biases (linear1/linear2 .bias) are omitted: they are exactly cancelled
    by the BatchNorm mean subtraction.
    """
    ks = jax.random.split(key, 4)

    def linear_w(kw, fan_in, fan_out):
        bound = 1.0 / (fan_in ** 0.5)
        return jax.random.uniform(kw, (fan_in, fan_out), jnp.float32, -bound, bound)

    def linear_b(kb, fan_in, fan_out):
        bound = 1.0 / (fan_in ** 0.5)
        return jax.random.uniform(kb, (1, fan_out), jnp.float32, -bound, bound)

    W1 = linear_w(ks[0], ze, HID)
    W2 = linear_w(ks[1], HID, HID)
    W3 = linear_w(ks[2], HID, 3 * z)
    b3 = linear_b(ks[3], HID, 3 * z)

    # BatchNorm1d affine params (default init: weight=1, bias=0)
    g1 = jnp.ones((1, HID), jnp.float32)
    be1 = jnp.zeros((1, HID), jnp.float32)
    g2 = jnp.ones((1, HID), jnp.float32)
    be2 = jnp.zeros((1, HID), jnp.float32)

    return (W1, W2, W3, b3, g1, be1, g2, be2)


def pack_params(master, ze, z):
    """Kernel-side params: bf16 weights, zero-padded to lane-dense widths."""
    W1, W2, W3, b3, g1, be1, g2, be2 = master
    in_pad = _round_up_lanes(ze)
    out_pad = _round_up_lanes(3 * z)

    W1p = jnp.pad(W1, ((0, in_pad - ze), (0, 0))).astype(jnp.bfloat16)     # [128, 512]
    W2p = W2.astype(jnp.bfloat16)                                           # [512, 512]
    W3p = jnp.pad(W3, ((0, 0), (0, out_pad - 3 * z))).astype(jnp.bfloat16)  # [512, 128]
    b3p = jnp.pad(b3, ((0, 0), (0, out_pad - 3 * z)))                       # [1, 128] f32

    return (W1p, g1, be1, W2p, g2, be2, W3p, b3p)


def encoderz_forward(x, noise_key, kernel_params, z):
    """x: [G, N, ze] f32 -- G independent BN batches (G=1 is exactly one module forward).

    Returns (w1, w2, w3), each [G, N, z].
    """
    G, N, ze = x.shape
    W1p, g1, be1, W2p, g2, be2, W3p, b3p = kernel_params
    in_pad = W1p.shape[0]
    out_pad = W3p.shape[1]
    out_dim = 3 * z

    # x + N(0, 0.01) noise (== torch.zeros_like(x).normal_(0, 0.01) + x), then lane-pad
    # and cast to bf16 for the layer-1 MXU dot.  Noise is generated here (not in-kernel)
    # so the kernel uses no TPU-only PRNG primitives.
    xn = x + NOISE_STD * jax.random.normal(noise_key, x.shape, jnp.float32)
    xp = jnp.pad(xn.reshape(G * N, ze), ((0, 0), (0, in_pad - ze))).astype(jnp.bfloat16)

    def const_spec(shape):
        # Whole-array block, constant index map -> DMAed once, VMEM-resident across grid.
        return pl.BlockSpec(shape, lambda b, _n=len(shape): (0,) * _n)

    grid_spec = pltpu.PrefetchScalarGridSpec(
        num_scalar_prefetch=0,
        grid=(G,),
        in_specs=[
            pl.BlockSpec((N, in_pad), lambda b: (b, 0)),     # per-step BN batch
            const_spec(W1p.shape), const_spec(g1.shape), const_spec(be1.shape),
            const_spec(W2p.shape), const_spec(g2.shape), const_spec(be2.shape),
            const_spec(W3p.shape), const_spec(b3p.shape),
        ],
        out_specs=pl.BlockSpec((N, out_pad), lambda b: (b, 0)),
    )

    out = pl.pallas_call(
        encoderz_kernel,
        out_shape=jax.ShapeDtypeStruct((G * N, out_pad), jnp.float32),
        grid_spec=grid_spec,
        compiler_params=pltpu.CompilerParams(
            dimension_semantics=("parallel",)),   # v7x: whole BN batches across the 2 TCs
    )(xp, W1p, g1, be1, W2p, g2, be2, W3p, b3p)

    # glue: drop lane padding, then y.view(N, 3, z); [:, 0], [:, 1], [:, 2]
    y = out[:, :out_dim].reshape(G, N, 3, z)
    return y[:, :, 0, :], y[:, :, 1, :], y[:, :, 2, :]


def encoderz_reference(xn, master, z):
    """Pure-JAX f32 reference of one module forward (xn already includes the noise)."""
    W1, W2, W3, b3, g1, be1, g2, be2 = master

    def bn_relu(h, g, b):
        mu = jnp.mean(h, axis=0, keepdims=True)
        var = jnp.mean(jnp.square(h - mu), axis=0, keepdims=True)  # biased, like torch BN
        return jnp.maximum((h - mu) * jax.lax.rsqrt(var + BN_EPS) * g + b, 0.0)

    h = bn_relu(xn @ W1, g1, be1)
    h = bn_relu(h @ W2, g2, be2)
    return h @ W3 + b3


if __name__ == "__main__":
    # shapes consistent with the module: args.ze = 32, args.z = 16.
    ze, z = 32, 16
    G, N = 2, 256            # two independent 256-row BN batches in one pallas_call

    key = jax.random.PRNGKey(0)
    kx, kparam, knoise = jax.random.split(key, 3)

    x = jax.random.normal(kx, (G, N, ze), jnp.float32)
    master = init_params(kparam, ze, z)
    kernel_params = pack_params(master, ze, z)

    w1, w2, w3 = encoderz_forward(x, knoise, kernel_params, z)
    jax.block_until_ready((w1, w2, w3))

    assert w1.shape == (G, N, z) and w2.shape == (G, N, z) and w3.shape == (G, N, z)
    for o in (w1, w2, w3):
        assert bool(jnp.all(jnp.isfinite(o)))

    # sanity vs. a pure-JAX f32 reference (bf16 MXU operands in the kernel -> loose tol).
    xn = x + NOISE_STD * jax.random.normal(knoise, x.shape, jnp.float32)
    y_kernel = jnp.concatenate([w1, w2, w3], axis=-1)          # [G, N, 3z]
    for g_idx in range(G):
        y_ref = encoderz_reference(xn[g_idx], master, z)       # [N, 3z]
        max_err = float(jnp.max(jnp.abs(y_kernel[g_idx] - y_ref)))
        assert max_err < 0.2, f"max |diff| vs f32 reference too large: {max_err}"

    print("KERNEL_OK")
</pallas_src>

<mosaic_0001>
module attributes {stable_mosaic.version = 11 : i64} {
  func.func @encoderz_kernel(%arg0: i32, %arg1: memref<256x128xbf16, #tpu.memory_space<vmem>>, %arg2: memref<128x512xbf16, #tpu.memory_space<vmem>>, %arg3: memref<1x512xf32, #tpu.memory_space<vmem>>, %arg4: memref<1x512xf32, #tpu.memory_space<vmem>>, %arg5: memref<512x512xbf16, #tpu.memory_space<vmem>>, %arg6: memref<1x512xf32, #tpu.memory_space<vmem>>, %arg7: memref<1x512xf32, #tpu.memory_space<vmem>>, %arg8: memref<512x128xbf16, #tpu.memory_space<vmem>>, %arg9: memref<1x128xf32, #tpu.memory_space<vmem>>, %arg10: memref<256x128xf32, #tpu.memory_space<vmem>>) attributes {dimension_semantics = [#tpu.dimension_semantics<parallel>], iteration_bounds = array<i64: 2>, scalar_prefetch = 0 : i64, scratch_operands = 0 : i64, tpu.core_type = #tpu.core_type<tc>, window_params = [{transform_indices = @transform_0, window_bounds = array<i64: 256, 128>}, {pipeline_mode = #tpu.pipeline_mode<synchronous>, transform_indices = @transform_1, window_bounds = array<i64: 128, 512>}, {pipeline_mode = #tpu.pipeline_mode<synchronous>, transform_indices = @transform_2, window_bounds = array<i64: 1, 512>}, {pipeline_mode = #tpu.pipeline_mode<synchronous>, transform_indices = @transform_3, window_bounds = array<i64: 1, 512>}, {pipeline_mode = #tpu.pipeline_mode<synchronous>, transform_indices = @transform_4, window_bounds = array<i64: 512, 512>}, {pipeline_mode = #tpu.pipeline_mode<synchronous>, transform_indices = @transform_5, window_bounds = array<i64: 1, 512>}, {pipeline_mode = #tpu.pipeline_mode<synchronous>, transform_indices = @transform_6, window_bounds = array<i64: 1, 512>}, {pipeline_mode = #tpu.pipeline_mode<synchronous>, transform_indices = @transform_7, window_bounds = array<i64: 512, 128>}, {pipeline_mode = #tpu.pipeline_mode<synchronous>, transform_indices = @transform_8, window_bounds = array<i64: 1, 128>}, {transform_indices = @transform_9, window_bounds = array<i64: 256, 128>}]} {
    %cst = arith.constant 1.000000e+00 : f32
    %0 = vector.broadcast %cst : f32 to vector<1x256xf32>
    %c0 = arith.constant 0 : index
    %c0_0 = arith.constant 0 : index
    %1 = vector.load %arg1[%c0, %c0_0] : memref<256x128xbf16, #tpu.memory_space<vmem>>, vector<256x128xbf16>
    %c0_1 = arith.constant 0 : index
    %c0_2 = arith.constant 0 : index
    %2 = vector.load %arg2[%c0_1, %c0_2] : memref<128x512xbf16, #tpu.memory_space<vmem>>, vector<128x512xbf16>
    %cst_3 = arith.constant dense<0.000000e+00> : vector<256x512xf32>
    %3 = tpu.matmul %1, %2, %cst_3 {dimension_numbers = #tpu.dot_dimension_numbers<[1], [0], [0], [1], [0, 0, 1, 1], [], []>} : vector<256x128xbf16>, vector<128x512xbf16>, vector<256x512xf32> -> vector<256x512xf32>
    %c0_4 = arith.constant 0 : index
    %c0_5 = arith.constant 0 : index
    %4 = vector.load %arg3[%c0_4, %c0_5] : memref<1x512xf32, #tpu.memory_space<vmem>>, vector<1x512xf32>
    %c0_6 = arith.constant 0 : index
    %c0_7 = arith.constant 0 : index
    %5 = vector.load %arg4[%c0_6, %c0_7] : memref<1x512xf32, #tpu.memory_space<vmem>>, vector<1x512xf32>
    %cst_8 = arith.constant dense<0.000000e+00> : vector<1x512xf32>
    %6 = tpu.matmul %0, %3, %cst_8 {dimension_numbers = #tpu.dot_dimension_numbers<[1], [0], [0], [1], [0, 0, 1, 1], [], []>} : vector<1x256xf32>, vector<256x512xf32>, vector<1x512xf32> -> vector<1x512xf32>
    %7 = arith.mulf %3, %3 : vector<256x512xf32>
    %cst_9 = arith.constant dense<0.000000e+00> : vector<1x512xf32>
    %8 = tpu.matmul %0, %7, %cst_9 {dimension_numbers = #tpu.dot_dimension_numbers<[1], [0], [0], [1], [0, 0, 1, 1], [], []>} : vector<1x256xf32>, vector<256x512xf32>, vector<1x512xf32> -> vector<1x512xf32>
    %cst_10 = arith.constant 3.906250e-03 : f32
    %9 = vector.broadcast %cst_10 : f32 to vector<1x512xf32>
    %10 = arith.mulf %6, %9 : vector<1x512xf32>
    %cst_11 = arith.constant 3.906250e-03 : f32
    %11 = vector.broadcast %cst_11 : f32 to vector<1x512xf32>
    %12 = arith.mulf %8, %11 : vector<1x512xf32>
    %13 = arith.mulf %10, %10 : vector<1x512xf32>
    %14 = arith.subf %12, %13 : vector<1x512xf32>
    %cst_12 = arith.constant 0.000000e+00 : f32
    %15 = vector.broadcast %cst_12 : f32 to vector<1x512xf32>
    %16 = arith.maximumf %14, %15 : vector<1x512xf32>
    %cst_13 = arith.constant 9.99999974E-6 : f32
    %17 = vector.broadcast %cst_13 : f32 to vector<1x512xf32>
    %18 = arith.addf %16, %17 : vector<1x512xf32>
    %19 = math.rsqrt %18 : vector<1x512xf32>
    %20 = arith.mulf %4, %19 : vector<1x512xf32>
    %21 = arith.mulf %10, %20 : vector<1x512xf32>
    %22 = arith.subf %5, %21 : vector<1x512xf32>
    %23 = vector.broadcast %20 : vector<1x512xf32> to vector<256x512xf32>
    %24 = arith.mulf %3, %23 : vector<256x512xf32>
    %25 = vector.broadcast %22 : vector<1x512xf32> to vector<256x512xf32>
    %26 = arith.addf %24, %25 : vector<256x512xf32>
    %cst_14 = arith.constant 0.000000e+00 : f32
    %27 = vector.broadcast %cst_14 : f32 to vector<256x512xf32>
    %28 = arith.maximumf %26, %27 : vector<256x512xf32>
    %29 = arith.truncf %28 : vector<256x512xf32> to vector<256x512xbf16>
    %c0_15 = arith.constant 0 : index
    %c0_16 = arith.constant 0 : index
    %30 = vector.load %arg5[%c0_15, %c0_16] : memref<512x512xbf16, #tpu.memory_space<vmem>>, vector<512x512xbf16>
    %cst_17 = arith.constant dense<0.000000e+00> : vector<256x512xf32>
    %31 = tpu.matmul %29, %30, %cst_17 {dimension_numbers = #tpu.dot_dimension_numbers<[1], [0], [0], [1], [0, 0, 1, 1], [], []>} : vector<256x512xbf16>, vector<512x512xbf16>, vector<256x512xf32> -> vector<256x512xf32>
    %c0_18 = arith.constant 0 : index
    %c0_19 = arith.constant 0 : index
    %32 = vector.load %arg6[%c0_18, %c0_19] : memref<1x512xf32, #tpu.memory_space<vmem>>, vector<1x512xf32>
    %c0_20 = arith.constant 0 : index
    %c0_21 = arith.constant 0 : index
    %33 = vector.load %arg7[%c0_20, %c0_21] : memref<1x512xf32, #tpu.memory_space<vmem>>, vector<1x512xf32>
    %cst_22 = arith.constant dense<0.000000e+00> : vector<1x512xf32>
    %34 = tpu.matmul %0, %31, %cst_22 {dimension_numbers = #tpu.dot_dimension_numbers<[1], [0], [0], [1], [0, 0, 1, 1], [], []>} : vector<1x256xf32>, vector<256x512xf32>, vector<1x512xf32> -> vector<1x512xf32>
    %35 = arith.mulf %31, %31 : vector<256x512xf32>
    %cst_23 = arith.constant dense<0.000000e+00> : vector<1x512xf32>
    %36 = tpu.matmul %0, %35, %cst_23 {dimension_numbers = #tpu.dot_dimension_numbers<[1], [0], [0], [1], [0, 0, 1, 1], [], []>} : vector<1x256xf32>, vector<256x512xf32>, vector<1x512xf32> -> vector<1x512xf32>
    %cst_24 = arith.constant 3.906250e-03 : f32
    %37 = vector.broadcast %cst_24 : f32 to vector<1x512xf32>
    %38 = arith.mulf %34, %37 : vector<1x512xf32>
    %cst_25 = arith.constant 3.906250e-03 : f32
    %39 = vector.broadcast %cst_25 : f32 to vector<1x512xf32>
    %40 = arith.mulf %36, %39 : vector<1x512xf32>
    %41 = arith.mulf %38, %38 : vector<1x512xf32>
    %42 = arith.subf %40, %41 : vector<1x512xf32>
    %cst_26 = arith.constant 0.000000e+00 : f32
    %43 = vector.broadcast %cst_26 : f32 to vector<1x512xf32>
    %44 = arith.maximumf %42, %43 : vector<1x512xf32>
    %cst_27 = arith.constant 9.99999974E-6 : f32
    %45 = vector.broadcast %cst_27 : f32 to vector<1x512xf32>
    %46 = arith.addf %44, %45 : vector<1x512xf32>
    %47 = math.rsqrt %46 : vector<1x512xf32>
    %48 = arith.mulf %32, %47 : vector<1x512xf32>
    %49 = arith.mulf %38, %48 : vector<1x512xf32>
    %50 = arith.subf %33, %49 : vector<1x512xf32>
    %51 = vector.broadcast %48 : vector<1x512xf32> to vector<256x512xf32>
    %52 = arith.mulf %31, %51 : vector<256x512xf32>
    %53 = vector.broadcast %50 : vector<1x512xf32> to vector<256x512xf32>
    %54 = arith.addf %52, %53 : vector<256x512xf32>
    %cst_28 = arith.constant 0.000000e+00 : f32
    %55 = vector.broadcast %cst_28 : f32 to vector<256x512xf32>
    %56 = arith.maximumf %54, %55 : vector<256x512xf32>
    %57 = arith.truncf %56 : vector<256x512xf32> to vector<256x512xbf16>
    %c0_29 = arith.constant 0 : index
    %c0_30 = arith.constant 0 : index
    %58 = vector.load %arg8[%c0_29, %c0_30] : memref<512x128xbf16, #tpu.memory_space<vmem>>, vector<512x128xbf16>
    %cst_31 = arith.constant dense<0.000000e+00> : vector<256x128xf32>
    %59 = tpu.matmul %57, %58, %cst_31 {dimension_numbers = #tpu.dot_dimension_numbers<[1], [0], [0], [1], [0, 0, 1, 1], [], []>} : vector<256x512xbf16>, vector<512x128xbf16>, vector<256x128xf32> -> vector<256x128xf32>
    %c0_32 = arith.constant 0 : index
    %c0_33 = arith.constant 0 : index
    %60 = vector.load %arg9[%c0_32, %c0_33] : memref<1x128xf32, #tpu.memory_space<vmem>>, vector<1x128xf32>
    %61 = vector.broadcast %60 : vector<1x128xf32> to vector<256x128xf32>
    %62 = arith.addf %59, %61 : vector<256x128xf32>
    %c0_34 = arith.constant 0 : index
    %c0_35 = arith.constant 0 : index
    %63 = vector.load %arg10[%c0_34, %c0_35] : memref<256x128xf32, #tpu.memory_space<vmem>>, vector<256x128xf32>
    tpu.vector_store %arg10[%c0_34, %c0_35], %62 {strides = array<i32>} : memref<256x128xf32, #tpu.memory_space<vmem>>, vector<256x128xf32>,
    return
  }
  func.func @transform_0(%arg0: i32) -> (i32, i32) {
    %c0_i32 = arith.constant 0 : i32
    %c0_i32_0 = arith.constant 0 : i32
    return %arg0, %c0_i32 : i32, i32
  }
  func.func @transform_1(%arg0: i32) -> (i32, i32) {
    %c0_i32 = arith.constant 0 : i32
    %c0_i32_0 = arith.constant 0 : i32
    %c0_i32_1 = arith.constant 0 : i32
    return %c0_i32, %c0_i32_0 : i32, i32
  }
  func.func @transform_2(%arg0: i32) -> (i32, i32) {
    %c0_i32 = arith.constant 0 : i32
    %c0_i32_0 = arith.constant 0 : i32
    %c0_i32_1 = arith.constant 0 : i32
    return %c0_i32, %c0_i32_0 : i32, i32
  }
  func.func @transform_3(%arg0: i32) -> (i32, i32) {
    %c0_i32 = arith.constant 0 : i32
    %c0_i32_0 = arith.constant 0 : i32
    %c0_i32_1 = arith.constant 0 : i32
    return %c0_i32, %c0_i32_0 : i32, i32
  }
  func.func @transform_4(%arg0: i32) -> (i32, i32) {
    %c0_i32 = arith.constant 0 : i32
    %c0_i32_0 = arith.constant 0 : i32
    %c0_i32_1 = arith.constant 0 : i32
    return %c0_i32, %c0_i32_0 : i32, i32
  }
  func.func @transform_5(%arg0: i32) -> (i32, i32) {
    %c0_i32 = arith.constant 0 : i32
    %c0_i32_0 = arith.constant 0 : i32
    %c0_i32_1 = arith.constant 0 : i32
    return %c0_i32, %c0_i32_0 : i32, i32
  }
  func.func @transform_6(%arg0: i32) -> (i32, i32) {
    %c0_i32 = arith.constant 0 : i32
    %c0_i32_0 = arith.constant 0 : i32
    %c0_i32_1 = arith.constant 0 : i32
    return %c0_i32, %c0_i32_0 : i32, i32
  }
  func.func @transform_7(%arg0: i32) -> (i32, i32) {
    %c0_i32 = arith.constant 0 : i32
    %c0_i32_0 = arith.constant 0 : i32
    %c0_i32_1 = arith.constant 0 : i32
    return %c0_i32, %c0_i32_0 : i32, i32
  }
  func.func @transform_8(%arg0: i32) -> (i32, i32) {
    %c0_i32 = arith.constant 0 : i32
    %c0_i32_0 = arith.constant 0 : i32
    %c0_i32_1 = arith.constant 0 : i32
    return %c0_i32, %c0_i32_0 : i32, i32
  }
  func.func @transform_9(%arg0: i32) -> (i32, i32) {
    %c0_i32 = arith.constant 0 : i32
    %c0_i32_0 = arith.constant 0 : i32
    return %arg0, %c0_i32 : i32, i32
  }
}

</mosaic_0001>

<bundles_post_ra>
// kernel: tpu_custom_call.1
= control target key start
LH: loop header
LB: loop body
LE: loop exit
PB: predicated region body
PF: predicated region fallthrough
CT: control target
= control target key end

     0   :  { %s10713_s0 = inlined_call_operand.hbm [shape: bf16[512,128], index: 0, kind: input, shape index: {}]   ;;  %s10714_s1 = inlined_call_operand.hbm [shape: bf16[128,512], index: 1, kind: input, shape index: {}]   ;;  %s10715_s2 = inlined_call_operand.hbm [shape: f32[1,512], index: 2, kind: input, shape index: {}]   ;;  %s10716_s3 = inlined_call_operand.vmem [shape: f32[1,512], index: 3, kind: input, shape index: {}]   ;;  %s10717_s4 = inlined_call_operand.hbm [shape: bf16[512,512], index: 4, kind: input, shape index: {}]   ;;  %s10718_s5 = inlined_call_operand.vmem [shape: f32[1,512], index: 5, kind: input, shape index: {}]   ;;  %s10719_s6 = inlined_call_operand.hbm [shape: f32[1,512], index: 6, kind: input, shape index: {}]   ;;  %s10720_s7 = inlined_call_operand.hbm [shape: bf16[512,128], index: 7, kind: input, shape index: {}]   ;;  %s10721_s8 = inlined_call_operand.vmem [shape: f32[1,128], index: 8, kind: input, shape index: {}]   ;;  %s10722_s9 = inlined_call_operand.hbm [shape: f32[512,128], index: 9, kind: output, shape index: {}]  }
   0x1   :  { %11161 = sst [smem:[#allocation139_spill]] %s10714_s1 }
   0x2   :  { %11162 = sst [smem:[#allocation140_spill]] %s10715_s2 }
   0x3   :  { %11163 = sst [smem:[#allocation141_spill]] %s10717_s4 }
   0x4   :  { %14 = vsyncpa [#allocation3], 0 }
   0x5   :  { %16 = vsyncpa [#allocation3 + $0x1], 0 }
   0x6   :  { %17 = vsyncpa [#allocation6], 0 }
   0x7   :  { %18 = vsyncpa [#allocation9], 0 }
   0x8   :  { %19 = vsyncpa [#allocation12], 0 }
   0x9   :  { %20 = vsyncpa [#allocation4], 0 }
   0xa   :  { %22 = vsyncpa [#allocation4 + $0x1], 0  ;;  %s6584_s30 = smov 0   ;;  %s6586_s10 = smov 0  }
   0xb   :  { %s6588_s11 = smov 0   ;;  %s6590_s12 = smov 0  }
   0xc LB: > { %s6518_s13 = smov [#allocation5]   ;;  %s6605_s15 = sadd.s32 4294967295, %s6516_s12   ;;  %s6516_s12 = sphi %s6590_s12, %s12217_s12   ;;  %s6512_s11 = sphi %s6588_s11, %s12216_s11   ;;  %s6508_s10 = sphi %s6586_s10, %s12215_s10   ;;  %s6504_s30 = sphi %s6584_s30, %s12214_s30  }
   0xd   : > { %s265_s14 = sshll.u32 %s6518_s13, 4  ;;  %p5414_p0 = scmp.ge.s32.totalorder %s6516_s12, 1  ;;  %s266_s14 = int_to_ptr.vmem [resolvable:$true] %s265_s14 }
   0xe   : > { %p10723_p1 = scmp.eq.s32.totalorder %s6605_s15, 0  ;;  %p253_p2 = scmp.lt.s32.totalorder %s6516_s12, 3 }
   0xf   : > { %s6519_s17 = smov [#allocation8]   ;;  %s6520_s20 = smov [#allocation7]  }
  0x10   : > { %p6610_p3 = pnand %p5414_p0, %p253_p2  ;;  %s292_s18 = sshll.u32 %s6519_s17, 4  ;;  %s6623_s18 = int_to_ptr.vmem [resolvable:$true] %s292_s18 }
  0x11   : > { %s279_s21 = sshll.u32 %s6520_s20, 4  ;;  %s6293_s23 = scalar_lea.vmem %s266_s14, 4096  ;;  %s6625_s21 = int_to_ptr.vmem [resolvable:$true] %s279_s21 }
  0x12   : > { %s11164_s16 = scalar_select %p6610_p3, 1, 0 }
  0x13   : > { %p5896_p5 = pneg %p6610_p3  ;;  %p6294_p8 = scmp.ne.s32.totalorder %s266_s14, %s6293_s23 }
  0x14   : > { %p6301_p11 = scmp.lt.s32.totalorder %s266_s14, %s266_s14  ;;  %p6302_p12 = scmp.lt.s32.totalorder %s6293_s23, %s6293_s23 }
  0x15   : > { %p6619_p6 = pnand %p5896_p5, %p10723_p1 }
  0x16   : > { %p6303_p13 = por %p6302_p12, %p6301_p11 }
  0x17   : > { %p6629_p7 = pneg %p6619_p6 }
  0x19   : > { %p6296_p9 = pnand %p6294_p8, %p6629_p7 }
  0x1b   : > { %p6297_p10 = pneg %p6296_p9 }
  0x1d   : > { %p6304_p0 = pnand %p6303_p13, %p6297_p10 }
  0x1f   : > { %6307 = shalt.err (!%p6304_p0)
}
  0x20   : > { %s6521_s24 = smov 256   ;;  %s6522_s25 = smov 16  }
  0x21   : > { %s11167_s1 = sld [smem:[#allocation139_spill]]  ;;  %s6319_s28 = scalar_lea.vmem %s6623_s18, 16384 }
  0x22   : > { %p6320_p2 = scmp.ne.s32.totalorder %s6623_s18, %s6319_s28  ;;  %p6327_p9 = scmp.lt.s32.totalorder %s6623_s18, %s6623_s18 }
  0x23   : > { %p6328_p10 = scmp.lt.s32.totalorder %s6319_s28, %s6319_s28 }
  0x24   : > { %p6322_p5 = pnand %p6320_p2, %p6629_p7 }
  0x25   : > { %p6329_p11 = por %p6328_p10, %p6327_p9 }
  0x26   : > { %p6323_p8 = pneg %p6322_p5 }
  0x27   : > { %5899 = dma.hbm_to_vmem [thread:$0]  (!%p6619_p6), %s11167_s1, 4096, %s266_s14, [#allocation6], %s6521_s24, %s6521_s24, %s6522_s25  }
  0x28   : > { %p6330_p12 = pnand %p6329_p11, %p6323_p8 }
  0x2a   : > { %6333 = shalt.err (!%p6330_p12)
}
  0x2b   : > { %s11168_s4 = sld [smem:[#allocation141_spill]]  ;;  %s6345_s14 = scalar_lea.vmem %s6625_s21, 64 }
  0x2c   : > { %p6346_p13 = scmp.ne.s32.totalorder %s6625_s21, %s6345_s14  ;;  %p6353_p5 = scmp.lt.s32.totalorder %s6625_s21, %s6625_s21 }
  0x2d   : > { %p6354_p8 = scmp.lt.s32.totalorder %s6345_s14, %s6345_s14 }
  0x2e   : > { %p6348_p0 = pnand %p6346_p13, %p6629_p7 }
  0x2f   : > { %p6355_p9 = por %p6354_p8, %p6353_p5 }
  0x30   : > { %p6349_p2 = pneg %p6348_p0 }
  0x31   : > { %5905 = dma.hbm_to_vmem [thread:$0]  (!%p6619_p6), %s11168_s4, 16384, %s6623_s18, [#allocation9], %s6521_s24, %s6521_s24, %s6522_s25  }
  0x32   : > { %p6356_p10 = pnand %p6355_p9, %p6349_p2 }
  0x34   : > { %6359 = shalt.err (!%p6356_p10)
}
  0x35   : > { %s11169_s2 = sld [smem:[#allocation140_spill]]  ;;  %s6523_s18 = smov [#allocation10]  }
  0x36   : > { %s309_s23 = sshll.u32 %s6523_s18, 4  ;;  %s6524_s24 = smov [#allocation11]   ;;  %s310_s23 = int_to_ptr.vmem [resolvable:$true] %s309_s23 }
  0x37   : > { %s319_s25 = sshll.u32 %s6524_s24, 4  ;;  %s6371_s26 = scalar_lea.vmem %s310_s23, 64  ;;  %s320_s25 = int_to_ptr.vmem [resolvable:$true] %s319_s25 }
  0x38   : > { %p6372_p11 = scmp.ne.s32.totalorder %s310_s23, %s6371_s26  ;;  %p6379_p0 = scmp.lt.s32.totalorder %s310_s23, %s310_s23 }
  0x39   : > { %p6380_p2 = scmp.lt.s32.totalorder %s6371_s26, %s6371_s26 }
  0x3a   : > { %p6374_p12 = pnand %p6372_p11, %p6629_p7 }
  0x3b   : > { %5902 = dma.hbm_to_vmem [thread:$0]  (!%p6619_p6), %s11169_s2, 64, %s6625_s21, [#allocation6]  }
  0x3c   : > { %p6375_p13 = pneg %p6374_p12  ;;  %p6381_p5 = por %p6380_p2, %p6379_p0 }
  0x3e   : > { %p6382_p8 = pnand %p6381_p5, %p6375_p13 }
  0x40   : > { %6385 = shalt.err (!%p6382_p8)
}
  0x41   : > { %5908 = dma.hbm_to_vmem [thread:$0]  (!%p6619_p6), %s10719_s6, 64, %s310_s23, [#allocation9]  }
  0x42   : > { %s6397_s21 = scalar_lea.vmem %s320_s25, 4096  ;;  %p6405_p11 = scmp.lt.s32.totalorder %s320_s25, %s320_s25 }
  0x43   : > { %p6398_p9 = scmp.ne.s32.totalorder %s320_s25, %s6397_s21  ;;  %p6406_p12 = scmp.lt.s32.totalorder %s6397_s21, %s6397_s21 }
  0x45   : > { %p6400_p10 = pnand %p6398_p9, %p6629_p7  ;;  %p6407_p1 = por %p6406_p12, %p6405_p11 }
  0x47   : > { %p6401_p4 = pneg %p6400_p10 }
  0x49   : > { %p6408_p3 = pnand %p6407_p1, %p6401_p4 }
  0x4b   : > { %6411 = shalt.err (!%p6408_p3)
}
  0x4c   : > { %s10725_s29 = smov 64   ;;  %s10726_s22 = smov 4  }
  0x4d   : > { %5911 = dma.hbm_to_vmem [thread:$0]  (!%p6619_p6), %s10720_s7, 4096, %s320_s25, [#allocation12], %s10725_s29, %s10725_s29, %s10726_s22  }
  0x4e   : > { %s5413_s17 = sadd.s32 4294967294, %s6516_s12   ;;  %s6683_s20 = sadd.s32 1, %s6516_s12  }
  0x4f   : > { %s35_s18 = sadd.s32 1, %s6512_s11  ;;  %s32_s23 = ssub.s32 %s6516_s12, %s6683_s20 }
  0x50   : > { %p42_p1 = scmp.ne.s32.totalorder %s6512_s11, %s6508_s10  ;;  %p33_p3 = scmp.eq.s32.totalorder %s32_s23, 0 }
  0x51   : > { %p43_p4 = scmp.eq.s32.totalorder %s6516_s12, 0  ;;  %p48_p7 = scmp.ne.s32.totalorder %s6508_s10, %s6504_s30 }
  0x52   : > { %p240_p13 = scmp.eq.s32.totalorder %s6605_s15, 1  ;;  %p11170_p2 = scmp.eq.s32.totalorder %s6605_s15, 0 }
  0x53   : > { %s6695_s19 = scalar_select %p33_p3, %s6512_s11, %s35_s18  }
  0x54   : > { %p44_p0 = por %p43_p4, %p42_p1  ;;  %p6699_p5 = por %p11170_p2, %p48_p7 }
  0x55   : > { %p6703_p6 = por %p240_p13, %p42_p1  ;;  %p246_p8 = scmp.eq.s32.totalorder %s5413_s17, 1 }
  0x56   : > { %s11171_s24 = scalar_select %p6699_p5, 1, 0 }
  0x57   : > { %s11172_s25 = scalar_select %p6703_p6, 1, 0 }
  0x58   : > { %p5925_p9 = scmp.lt.s32.totalorder %s6516_s12, 2  ;;  %s336_s26 = sand.u32 1, %s6512_s11  }
  0x59   : > { %p6709_p10 = por %p246_p8, %p48_p7  ;;  %s5421_s28 = sshll.u32 %s336_s26, 7 }
  0x5a   : > { %s5646_s21 = sshll.u32 %s6516_s12, 11  ;;  %s340_s23 = scalar_lea.vmem [#allocation2], %s5421_s28 }
  0x5b   : > { %s11173_s27 = scalar_select %p6709_p10, 1, 0 }
  0x5c   : > { %s6717_s18 = scalar_lea.hbm %s10713_s0, %s5646_s21  ;;  %s347_s29 = sshll.u32 %s340_s23, 4  ;;  %s6723_s29 = int_to_ptr.vmem [resolvable:$true] %s347_s29 }
  0x5d   : > { %p6719_p11 = pnand %p5925_p9, %p44_p0  ;;  %s6725_s22 = scalar_lea.sflag [#allocation3], %s336_s26 }
  0x5e   : > { %s6412_s1 = scalar_lea.hbm %s6717_s18, 2048  ;;  %s6417_s28 = scalar_lea.hbm %s10713_s0, 4096 }
  0x5f   : > { %p6413_p12 = scmp.ne.s32.totalorder %s6717_s18, %s6412_s1  ;;  %p6414_p1 = pneg %p6719_p11 }
  0x60   : > { %p6418_p7 = scmp.lt.s32.totalorder %s6717_s18, %s10713_s0  ;;  %p6419_p13 = scmp.lt.s32.totalorder %s6417_s28, %s6412_s1 }
  0x61   : > { %p6415_p3 = pnand %p6414_p1, %p6413_p12 }
  0x62   : > { %p6420_p0 = por %p6419_p13, %p6418_p7 }
  0x63   : > { %p6416_p4 = pneg %p6415_p3 }
  0x65   : > { %p6421_p2 = pnand %p6420_p0, %p6416_p4 }
  0x67   : > { %6424 = shalt.err (!%p6421_p2)
}
  0x68   : > { %s6425_s26 = scalar_lea.vmem %s6723_s29, 2048  ;;  %s6527_s2 = smov [#allocation2]  }
  0x69   : > { %p6426_p8 = scmp.ne.s32.totalorder %s6723_s29, %s6425_s26  ;;  %s6430_s4 = sshll.u32 %s6527_s2, 4  ;;  %s6431_s4 = int_to_ptr.vmem [resolvable:$false] %s6430_s4 }
  0x6a   : > { %s6432_s21 = scalar_lea.vmem %s6431_s4, 4096  ;;  %p6433_p3 = scmp.lt.s32.totalorder %s6723_s29, %s6431_s4 }
  0x6b   : > { %p6428_p9 = pnand %p6426_p8, %p6414_p1  ;;  %p6434_p10 = scmp.lt.s32.totalorder %s6432_s21, %s6425_s26 }
  0x6d   : > { %p6429_p12 = pneg %p6428_p9  ;;  %p6435_p6 = por %p6434_p10, %p6433_p3 }
  0x6f   : > { %p6436_p5 = pnand %p6435_p6, %p6429_p12 }
  0x71   : > { %6439 = shalt.err (!%p6436_p5)
}
  0x72   : > { %s11175_s1 = smov 4   ;;  %s11176_s13 = smov 64  }
  0x73   : > { %5915 = dma.hbm_to_vmem [thread:$0]  (!%p6719_p11), %s6717_s18, 2048, %s6723_s29, %s6725_s22, %s11176_s13, %s11176_s13, %s11175_s1  }
  0x74   : > { %p11177_p1 = scmp.ne.s32.totalorder %s11164_s16, 0 }
  0x76   : > { %359 = sbr.rel (%p11177_p1) target bundleno = 2068 (0x814), region = 56 }
  0x7b   : > { %s6752_s2 = sand.u32 1, %s6508_s10   ;;  %p11178_p5 = scmp.ne.s32.totalorder %s11171_s24, 0 }
  0x7c   : > { %s5425_s4 = sshll.u32 %s6752_s2, 7  ;;  %s362_s28 = scalar_lea.sflag [#allocation3], %s6752_s2 }
  0x7d   : > { %s6756_s14 = scalar_lea.vmem [#allocation2], %s5425_s4 }
  0x7e   : > { %6483 = dma.done.wait (%p11178_p5), %s362_s28, 2048  }
  0x7f   : > { %6485 = vsyncadd (%p11178_p5), %s362_s28, 4294965248  ;;  %p11179_p6 = scmp.eq.s32.totalorder %s6605_s15, 0 }
  0x81   : > { %6487 = dma.done.wait (%p11179_p6), [#allocation6], 4160   ;;  %p11180_p10 = pmov %p11179_p6 }
  0x82   : > { %p11181_p11 = pmov %p11179_p6 }
  0x83   : > { %6489 = vsyncadd (%p11180_p10), [#allocation6], 4294963136 }
  0x84   : > { %6491 = dma.done.wait (%p11181_p11), [#allocation9], 16448   ;;  %p11182_p4 = pmov %p11179_p6 }
  0x86   : > { %6493 = vsyncadd (%p11182_p4), [#allocation9], 4294950848  ;;  %p11183_p7 = pmov %p11182_p4 }
  0x87   : > { %p11184_p13 = pmov %p11182_p4 }
  0x88   : > { %6495 = dma.done.wait (%p11183_p7), [#allocation12], 4096  }
  0x89   : > { %6497 = vsyncadd (%p11184_p13), [#allocation12], 4294963200  ;;  %v6528_v0 = vmov 0   ;;  %v5978_v1 = vld [vmem:[#allocation5 + $0xe4] ss:$16 sps:$4 sm:$0xff]   ;;  %v6027_v34 = vld [vmem:[%s6756_s14 + $0x8] sm:$0xff]  }
  0x8a   : > { %775 = vmatprep.mubr.bf16.mxu0 %v6528_v0  ;;  %968 = vmatprep.mubr.bf16.mxu1 %v6528_v0  ;;  %v5980_v2 = vld [vmem:[#allocation5 + $0xec] ss:$16 sps:$4 sm:$0xff]   ;;  %v5982_v3 = vld [vmem:[#allocation5 + $0xe0] ss:$16 sps:$4 sm:$0xff]   ;;  %v5983_v4 = vld [vmem:[#allocation5 + $0xe8] ss:$16 sps:$4 sm:$0xff]  }
  0x8b   : > { %743 = vmatprep.subr.bf16.mxu0 %v5978_v1  ;;  %936 = vmatprep.subr.bf16.mxu1 %v5980_v2  ;;  %v5984_v5 = vld [vmem:[#allocation5 + $0xc4] ss:$16 sps:$4 sm:$0xff]   ;;  %v5986_v6 = vld [vmem:[#allocation5 + $0xcc] ss:$16 sps:$4 sm:$0xff]   ;;  %v5988_v7 = vld [vmem:[#allocation5 + $0xc0] ss:$16 sps:$4 sm:$0xff]  }
  0x8c   : > { %744 = vmatpush1.bf16.msra.mxu0 %v5982_v3  ;;  %937 = vmatpush1.bf16.msra.mxu1 %v5983_v4  ;;  %v5989_v8 = vld [vmem:[#allocation5 + $0xc8] ss:$16 sps:$4 sm:$0xff]   ;;  %v5990_v9 = vld [vmem:[#allocation5 + $0xa4] ss:$16 sps:$4 sm:$0xff]   ;;  %v5992_v10 = vld [vmem:[#allocation5 + $0xac] ss:$16 sps:$4 sm:$0xff]  }
  0x8d   : > { %745 = vmatprep.subr.bf16.mxu0 %v5984_v5  ;;  %938 = vmatprep.subr.bf16.mxu1 %v5986_v6  ;;  %v5994_v11 = vld [vmem:[#allocation5 + $0xa0] ss:$16 sps:$4 sm:$0xff]   ;;  %v5995_v12 = vld [vmem:[#allocation5 + $0xa8] ss:$16 sps:$4 sm:$0xff]   ;;  %v5996_v13 = vld [vmem:[#allocation5 + $0x84] ss:$16 sps:$4 sm:$0xff]  }
  0x8e   : > { %v5998_v14 = vld [vmem:[#allocation5 + $0x8c] ss:$16 sps:$4 sm:$0xff]   ;;  %v6000_v15 = vld [vmem:[#allocation5 + $0x80] ss:$16 sps:$4 sm:$0xff]   ;;  %v6001_v16 = vld [vmem:[#allocation5 + $0x88] ss:$16 sps:$4 sm:$0xff]  }
  0x8f   : > { %v6002_v17 = vld [vmem:[#allocation5 + $0x64] ss:$16 sps:$4 sm:$0xff]   ;;  %v6004_v18 = vld [vmem:[#allocation5 + $0x6c] ss:$16 sps:$4 sm:$0xff]   ;;  %v6006_v19 = vld [vmem:[#allocation5 + $0x60] ss:$16 sps:$4 sm:$0xff]  }
  0x90   : > { %746 = vmatpush1.bf16.msra.mxu0 %v5988_v7  ;;  %939 = vmatpush1.bf16.msra.mxu1 %v5989_v8  ;;  %v6007_v20 = vld [vmem:[#allocation5 + $0x68] ss:$16 sps:$4 sm:$0xff]   ;;  %v6008_v21 = vld [vmem:[#allocation5 + $0x44] ss:$16 sps:$4 sm:$0xff]   ;;  %v6010_v22 = vld [vmem:[#allocation5 + $0x4c] ss:$16 sps:$4 sm:$0xff]  }
  0x91   : > { %747 = vmatprep.subr.bf16.mxu0 %v5990_v9  ;;  %940 = vmatprep.subr.bf16.mxu1 %v5992_v10  ;;  %v6012_v23 = vld [vmem:[#allocation5 + $0x40] ss:$16 sps:$4 sm:$0xff]   ;;  %v6013_v24 = vld [vmem:[#allocation5 + $0x48] ss:$16 sps:$4 sm:$0xff]   ;;  %v6014_v25 = vld [vmem:[#allocation5 + $0x24] ss:$16 sps:$4 sm:$0xff]  }
  0x92   : > { %v6016_v26 = vld [vmem:[#allocation5 + $0x2c] ss:$16 sps:$4 sm:$0xff]   ;;  %v6018_v27 = vld [vmem:[#allocation5 + $0x20] ss:$16 sps:$4 sm:$0xff]   ;;  %v6019_v28 = vld [vmem:[#allocation5 + $0x28] ss:$16 sps:$4 sm:$0xff]  }
  0x93   : > { %v6020_v29 = vld [vmem:[#allocation5 + $0x4] ss:$16 sps:$4 sm:$0xff]   ;;  %v6022_v30 = vld [vmem:[#allocation5 + $0xc] ss:$16 sps:$4 sm:$0xff]   ;;  %v6024_v31 = vld [vmem:[#allocation5] ss:$16 sps:$4 sm:$0xff]  }
  0x94   : > { %748 = vmatpush1.bf16.msra.mxu0 %v5994_v11  ;;  %941 = vmatpush1.bf16.msra.mxu1 %v5995_v12  ;;  %v6025_v32 = vld [vmem:[#allocation5 + $0x8] ss:$16 sps:$4 sm:$0xff]   ;;  %v6026_v33 = vld [vmem:[%s6756_s14] sm:$0xff]   ;;  %v6028_v35 = vld [vmem:[%s6756_s14 + $0x10] sm:$0xff]   ;;  %s5431_s23 = sshll.u32 %s6752_s2, 8  ;;  %s5647_s21 = sshll.u32 %s6605_s15, 12 }
  0x95   : > { %749 = vmatprep.subr.bf16.mxu0 %v5996_v13  ;;  %942 = vmatprep.subr.bf16.mxu1 %v5998_v14  ;;  %v6029_v36 = vld [vmem:[%s6756_s14 + $0x18] sm:$0xff]   ;;  %v6030_v37 = vld [vmem:[%s6756_s14 + $0x20] sm:$0xff]   ;;  %v6031_v38 = vld [vmem:[%s6756_s14 + $0x28] sm:$0xff]   ;;  %s10598_s26 = scalar_lea.vmem [#allocation13], %s5431_s23  ;;  %s10667_s28 = scalar_lea.hbm %s10722_s9, %s5647_s21 }
  0x96   : > { %v6032_v39 = vld [vmem:[%s6756_s14 + $0x30] sm:$0xff]   ;;  %v6033_v40 = vld [vmem:[%s6756_s14 + $0x38] sm:$0xff]   ;;  %v6034_v41 = vld [vmem:[%s6756_s14 + $0x40] sm:$0xff]   ;;  %s5292_s1 = sshll.u32 %s10598_s26, 4  ;;  %p12211_p2 = scmp.ne.s32.totalorder %s11172_s25, 0  ;;  %s10669_s1 = int_to_ptr.vmem [resolvable:$true] %s5292_s1 }
  0x97   : > { %v6035_v42 = vld [vmem:[%s6756_s14 + $0x48] sm:$0xff]   ;;  %v6036_v43 = vld [vmem:[%s6756_s14 + $0x50] sm:$0xff]   ;;  %v6037_v44 = vld [vmem:[%s6756_s14 + $0x58] sm:$0xff]   ;;  %s6440_s16 = scalar_lea.vmem %s10669_s1, 4096  ;;  %s6531_s15 = smov [#allocation13]  }
  0x98   : > { %750 = vmatpush1.bf16.msra.mxu0 %v6000_v15  ;;  %943 = vmatpush1.bf16.msra.mxu1 %v6001_v16  ;;  %v6038_v45 = vld [vmem:[%s6756_s14 + $0x60] sm:$0xff]   ;;  %v6039_v46 = vld [vmem:[%s6756_s14 + $0x68] sm:$0xff]   ;;  %v6040_v47 = vld [vmem:[%s6756_s14 + $0x70] sm:$0xff]   ;;  %p6441_p0 = scmp.ne.s32.totalorder %s10669_s1, %s6440_s16  ;;  %s6444_s29 = sshll.u32 %s6531_s15, 4  ;;  %s6445_s29 = int_to_ptr.vmem [resolvable:$false] %s6444_s29 }
  0x99   : > { %751 = vmatprep.subr.bf16.mxu0 %v6002_v17  ;;  %944 = vmatprep.subr.bf16.mxu1 %v6004_v18  ;;  %v6041_v48 = vld [vmem:[%s6756_s14 + $0x78] sm:$0xff]   ;;  %v10729_v17 = vmov 1.0   ;;  %s5279_s14 = scalar_lea.sflag [#allocation4], %s6752_s2  ;;  %s6446_s22 = scalar_lea.vmem %s6445_s29, 8192 }
  0x9a   : > { %p6442_p8 = pnand %p6441_p0, %p12211_p2  ;;  %p6447_p12 = scmp.lt.s32.totalorder %s10669_s1, %s6445_s29 }
  0x9b   : > { %p6448_p3 = scmp.lt.s32.totalorder %s6446_s22, %s6440_s16 }
  0x9c   : > { %752 = vmatpush1.bf16.msra.mxu0 %v6006_v19  ;;  %945 = vmatpush1.bf16.msra.mxu1 %v6007_v20  ;;  %p6443_p9 = pneg %p6442_p8 }
  0x9d   : > { %753 = vmatprep.subr.bf16.mxu0 %v6008_v21  ;;  %946 = vmatprep.subr.bf16.mxu1 %v6010_v22  ;;  %p6449_p1 = por %p6448_p3, %p6447_p12 }
  0x9f   : > { %p6450_p5 = pnand %p6449_p1, %p6443_p9 }
  0xa0   : > { %754 = vmatpush1.bf16.msra.mxu0 %v6012_v23  ;;  %947 = vmatpush1.bf16.msra.mxu1 %v6013_v24 }
  0xa1   : > { %755 = vmatprep.subr.bf16.mxu0 %v6014_v25  ;;  %948 = vmatprep.subr.bf16.mxu1 %v6016_v26 }
  0xa4   : > { %756 = vmatpush1.bf16.msra.mxu0 %v6018_v27  ;;  %949 = vmatpush1.bf16.msra.mxu1 %v6019_v28 }
  0xa5   : > { %757 = vmatprep.subr.bf16.mxu0 %v6020_v29  ;;  %950 = vmatprep.subr.bf16.mxu1 %v6022_v30 }
  0xa8   : > { %758 = vmatpush1.bf16.msra.mxu0 %v6024_v31  ;;  %951 = vmatpush1.bf16.msra.mxu1 %v6025_v32 }
  0xab   : > { %776 = vmatmul.mubr.bf16.vlgmr.msra.gmra.mxu0 %v6026_v33  ;;  %969 = vmatmul.mubr.bf16.vlgmr.msra.gmra.mxu1 %v6026_v33 }
  0xac   : > { %785 = vmatprep.mubr.bf16.mxu0 %v6528_v0  ;;  %978 = vmatprep.mubr.bf16.mxu1 %v6528_v0 }
  0xb3   : > { %786 = vmatmul.mubr.bf16.gmra.mxu0 %v6027_v34  ;;  %979 = vmatmul.mubr.bf16.gmra.mxu1 %v6027_v34 }
  0xb4   : > { %795 = vmatprep.mubr.bf16.mxu0 %v6528_v0  ;;  %988 = vmatprep.mubr.bf16.mxu1 %v6528_v0 }
  0xbb   : > { %796 = vmatmul.mubr.bf16.gmra.mxu0 %v6028_v35  ;;  %989 = vmatmul.mubr.bf16.gmra.mxu1 %v6028_v35 }
  0xbc   : > { %805 = vmatprep.mubr.bf16.mxu0 %v6528_v0  ;;  %998 = vmatprep.mubr.bf16.mxu1 %v6528_v0 }
  0xc3   : > { %806 = vmatmul.mubr.bf16.gmra.mxu0 %v6029_v36  ;;  %999 = vmatmul.mubr.bf16.gmra.mxu1 %v6029_v36 }
  0xc4   : > { %815 = vmatprep.mubr.bf16.mxu0 %v6528_v0  ;;  %1008 = vmatprep.mubr.bf16.mxu1 %v6528_v0 }
  0xcb   : > { %816 = vmatmul.mubr.bf16.gmra.mxu0 %v6030_v37  ;;  %1009 = vmatmul.mubr.bf16.gmra.mxu1 %v6030_v37 }
  0xcc   : > { %825 = vmatprep.mubr.bf16.mxu0 %v6528_v0  ;;  %1018 = vmatprep.mubr.bf16.mxu1 %v6528_v0 }
  0xd3   : > { %826 = vmatmul.mubr.bf16.gmra.mxu0 %v6031_v38  ;;  %1019 = vmatmul.mubr.bf16.gmra.mxu1 %v6031_v38 }
  0xd4   : > { %835 = vmatprep.mubr.bf16.mxu0 %v6528_v0  ;;  %1028 = vmatprep.mubr.bf16.mxu1 %v6528_v0 }
  0xdb   : > { %836 = vmatmul.mubr.bf16.gmra.mxu0 %v6032_v39  ;;  %1029 = vmatmul.mubr.bf16.gmra.mxu1 %v6032_v39 }
  0xdc   : > { %845 = vmatprep.mubr.bf16.mxu0 %v6528_v0  ;;  %1038 = vmatprep.mubr.bf16.mxu1 %v6528_v0 }
  0xe3   : > { %846 = vmatmul.mubr.bf16.gmra.mxu0 %v6033_v40  ;;  %1039 = vmatmul.mubr.bf16.gmra.mxu1 %v6033_v40 }
  0xe4   : > { %855 = vmatprep.mubr.bf16.mxu0 %v6528_v0  ;;  %1048 = vmatprep.mubr.bf16.mxu1 %v6528_v0 }
  0xeb   : > { %856 = vmatmul.mubr.bf16.gmra.mxu0 %v6034_v41  ;;  %1049 = vmatmul.mubr.bf16.gmra.mxu1 %v6034_v41 }
  0xec   : > { %865 = vmatprep.mubr.bf16.mxu0 %v6528_v0  ;;  %1058 = vmatprep.mubr.bf16.mxu1 %v6528_v0 }
  0xf3   : > { %866 = vmatmul.mubr.bf16.gmra.mxu0 %v6035_v42  ;;  %1059 = vmatmul.mubr.bf16.gmra.mxu1 %v6035_v42 }
  0xf4   : > { %875 = vmatprep.mubr.bf16.mxu0 %v6528_v0  ;;  %1068 = vmatprep.mubr.bf16.mxu1 %v6528_v0 }
  0xfb   : > { %876 = vmatmul.mubr.bf16.gmra.mxu0 %v6036_v43  ;;  %1069 = vmatmul.mubr.bf16.gmra.mxu1 %v6036_v43 }
  0xfc   : > { %885 = vmatprep.mubr.bf16.mxu0 %v6528_v0  ;;  %1078 = vmatprep.mubr.bf16.mxu1 %v6528_v0 }
 0x103   : > { %886 = vmatmul.mubr.bf16.gmra.mxu0 %v6037_v44  ;;  %1079 = vmatmul.mubr.bf16.gmra.mxu1 %v6037_v44 }
 0x104   : > { %895 = vmatprep.mubr.bf16.mxu0 %v6528_v0  ;;  %1088 = vmatprep.mubr.bf16.mxu1 %v6528_v0 }
 0x10b   : > { %896 = vmatmul.mubr.bf16.gmra.mxu0 %v6038_v45  ;;  %1089 = vmatmul.mubr.bf16.gmra.mxu1 %v6038_v45 }
 0x10c   : > { %905 = vmatprep.mubr.bf16.mxu0 %v6528_v0  ;;  %1098 = vmatprep.mubr.bf16.mxu1 %v6528_v0 }
 0x113   : > { %906 = vmatmul.mubr.bf16.gmra.mxu0 %v6039_v46  ;;  %1099 = vmatmul.mubr.bf16.gmra.mxu1 %v6039_v46 }
 0x114   : > { %915 = vmatprep.mubr.bf16.mxu0 %v6528_v0  ;;  %1108 = vmatprep.mubr.bf16.mxu1 %v6528_v0 }
 0x11b   : > { %916 = vmatmul.mubr.bf16.gmra.mxu0 %v6040_v47  ;;  %1109 = vmatmul.mubr.bf16.gmra.mxu1 %v6040_v47 }
 0x11c   : > { %925 = vmatprep.mubr.bf16.mxu0 %v6528_v0  ;;  %1118 = vmatprep.mubr.bf16.mxu1 %v6528_v0 }
 0x123   : > { %926 = vmatmul.mubr.bf16.gmra.mxu0 %v6041_v48  ;;  %1119 = vmatmul.mubr.bf16.gmra.mxu1 %v6041_v48 }
 0x124   : > { %1195 = vmatprep.mubr.f32.mxu0 %v10729_v17  ;;  %1266 = vmatprep.mubr.f32.mxu1 %v10729_v17 }
 0x16b   : > { %v6822_v49 = vpop.f32.mrf.mxu0  ;;  %v6824_v50 = vpop.f32.mrf.mxu1 }
 0x16c   : > { %11185 = vst [vmem:[#allocation19_spill] sm:$0xff] %v6822_v49  ;;  %11186 = vst [vmem:[#allocation20_spill] sm:$0xff] %v6824_v50 }
 0x16d   : > { %v6826_v51 = vpop.f32.mrf.mxu0  ;;  %v6828_v52 = vpop.f32.mrf.mxu1 }
 0x16e   : > { %11187 = vst [vmem:[#allocation21_spill] sm:$0xff] %v6826_v51  ;;  %11188 = vst [vmem:[#allocation22_spill] sm:$0xff] %v6828_v52 }
 0x16f   : > { %v6830_v53 = vpop.f32.mrf.mxu0  ;;  %v6832_v54 = vpop.f32.mrf.mxu1 }
 0x170   : > { %11189 = vst [vmem:[#allocation23_spill] sm:$0xff] %v6830_v53  ;;  %11190 = vst [vmem:[#allocation24_spill] sm:$0xff] %v6832_v54 }
 0x171   : > { %v6834_v55 = vpop.f32.mrf.mxu0  ;;  %v6836_v56 = vpop.f32.mrf.mxu1 }
 0x172   : > { %11191 = vst [vmem:[#allocation25_spill] sm:$0xff] %v6834_v55  ;;  %11192 = vst [vmem:[#allocation26_spill] sm:$0xff] %v6836_v56 }
 0x173   : > { %v6838_v57 = vpop.f32.mrf.mxu0  ;;  %v6840_v58 = vpop.f32.mrf.mxu1 }
 0x174   : > { %11193 = vst [vmem:[#allocation27_spill] sm:$0xff] %v6838_v57  ;;  %11194 = vst [vmem:[#allocation28_spill] sm:$0xff] %v6840_v58 }
 0x175   : > { %v6842_v59 = vpop.f32.mrf.mxu0  ;;  %v6844_v60 = vpop.f32.mrf.mxu1 }
 0x176   : > { %11195 = vst [vmem:[#allocation29_spill] sm:$0xff] %v6842_v59  ;;  %11196 = vst [vmem:[#allocation30_spill] sm:$0xff] %v6844_v60 }
 0x177   : > { %v6846_v61 = vpop.f32.mrf.mxu0  ;;  %v6848_v62 = vpop.f32.mrf.mxu1 }
 0x178   : > { %11197 = vst [vmem:[#allocation31_spill] sm:$0xff] %v6846_v61  ;;  %11198 = vst [vmem:[#allocation32_spill] sm:$0xff] %v6848_v62 }
 0x179   : > { %v6850_v63 = vpop.f32.mrf.mxu0  ;;  %v6852_v0 = vpop.f32.mrf.mxu1 }
 0x17a   : > { %11199 = vst [vmem:[#allocation33_spill] sm:$0xff] %v6850_v63  ;;  %11200 = vst [vmem:[#allocation34_spill] sm:$0xff] %v6852_v0 }
 0x17b   : > { %v6854_v1 = vpop.f32.mrf.mxu0  ;;  %v6856_v2 = vpop.f32.mrf.mxu1 }
 0x17c   : > { %11201 = vst [vmem:[#allocation35_spill] sm:$0xff] %v6854_v1  ;;  %11202 = vst [vmem:[#allocation36_spill] sm:$0xff] %v6856_v2 }
 0x17d   : > { %v6858_v3 = vpop.f32.mrf.mxu0  ;;  %v6860_v4 = vpop.f32.mrf.mxu1 }
 0x17e   : > { %11203 = vst [vmem:[#allocation37_spill] sm:$0xff] %v6858_v3  ;;  %11204 = vst [vmem:[#allocation38_spill] sm:$0xff] %v6860_v4 }
 0x17f   : > { %v6862_v5 = vpop.f32.mrf.mxu0  ;;  %v6864_v6 = vpop.f32.mrf.mxu1 }
 0x180   : > { %11205 = vst [vmem:[#allocation39_spill] sm:$0xff] %v6862_v5  ;;  %11206 = vst [vmem:[#allocation40_spill] sm:$0xff] %v6864_v6 }
 0x181   : > { %v6866_v7 = vpop.f32.mrf.mxu0  ;;  %v6868_v8 = vpop.f32.mrf.mxu1 }
 0x182   : > { %11207 = vst [vmem:[#allocation41_spill] sm:$0xff] %v6866_v7  ;;  %11208 = vst [vmem:[#allocation42_spill] sm:$0xff] %v6868_v8 }
 0x183   : > { %v6870_v9 = vpop.f32.mrf.mxu0  ;;  %v6872_v10 = vpop.f32.mrf.mxu1 }
 0x184   : > { %11209 = vst [vmem:[#allocation43_spill] sm:$0xff] %v6870_v9  ;;  %11210 = vst [vmem:[#allocation44_spill] sm:$0xff] %v6872_v10 }
 0x185   : > { %v6874_v11 = vpop.f32.mrf.mxu0  ;;  %v6876_v12 = vpop.f32.mrf.mxu1 }
 0x186   : > { %11211 = vst [vmem:[#allocation45_spill] sm:$0xff] %v6874_v11  ;;  %11212 = vst [vmem:[#allocation46_spill] sm:$0xff] %v6876_v12 }
 0x187   : > { %v6878_v13 = vpop.f32.mrf.mxu0  ;;  %v6880_v14 = vpop.f32.mrf.mxu1 }
 0x188   : > { %11213 = vst [vmem:[#allocation47_spill] sm:$0xff] %v6878_v13  ;;  %11214 = vst [vmem:[#allocation48_spill] sm:$0xff] %v6880_v14 }
 0x189   : > { %v6882_v15 = vpop.f32.mrf.mxu0  ;;  %v6884_v16 = vpop.f32.mrf.mxu1 }
 0x18a   : > { %11215 = vst [vmem:[#allocation49_spill] sm:$0xff] %v6882_v15  ;;  %11216 = vst [vmem:[#allocation50_spill] sm:$0xff] %v6884_v16 }
 0x18b   : > { %v6888_v18 = vpop.f32.mrf.mxu0  ;;  %v6890_v19 = vpop.f32.mrf.mxu1 }
 0x18c   : > { %11217 = vst [vmem:[#allocation51_spill] sm:$0xff] %v6888_v18  ;;  %11218 = vst [vmem:[#allocation52_spill] sm:$0xff] %v6890_v19 }
 0x18d   : > { %v6892_v20 = vpop.f32.mrf.mxu0  ;;  %v6894_v21 = vpop.f32.mrf.mxu1 }
 0x18e   : > { %11219 = vst [vmem:[#allocation53_spill] sm:$0xff] %v6892_v20  ;;  %11220 = vst [vmem:[#allocation54_spill] sm:$0xff] %v6894_v21 }
 0x18f   : > { %v6896_v22 = vpop.f32.mrf.mxu0  ;;  %v6898_v23 = vpop.f32.mrf.mxu1 }
 0x190   : > { %11221 = vst [vmem:[#allocation55_spill] sm:$0xff] %v6896_v22  ;;  %11222 = vst [vmem:[#allocation56_spill] sm:$0xff] %v6898_v23 }
 0x191   : > { %v6900_v24 = vpop.f32.mrf.mxu0  ;;  %v6902_v25 = vpop.f32.mrf.mxu1 }
 0x192   : > { %11223 = vst [vmem:[#allocation57_spill] sm:$0xff] %v6900_v24  ;;  %11224 = vst [vmem:[#allocation58_spill] sm:$0xff] %v6902_v25 }
 0x193   : > { %v6904_v26 = vpop.f32.mrf.mxu0  ;;  %v6906_v27 = vpop.f32.mrf.mxu1 }
 0x194   : > { %11225 = vst [vmem:[#allocation59_spill] sm:$0xff] %v6904_v26  ;;  %11226 = vst [vmem:[#allocation60_spill] sm:$0xff] %v6906_v27 }
 0x195   : > { %v6908_v28 = vpop.f32.mrf.mxu0  ;;  %v6910_v29 = vpop.f32.mrf.mxu1 }
 0x196   : > { %11227 = vst [vmem:[#allocation61_spill] sm:$0xff] %v6908_v28  ;;  %11228 = vst [vmem:[#allocation62_spill] sm:$0xff] %v6910_v29 }
 0x197   : > { %v6912_v30 = vpop.f32.mrf.mxu0  ;;  %v6914_v31 = vpop.f32.mrf.mxu1 }
 0x198   : > { %11229 = vst [vmem:[#allocation63_spill] sm:$0xff] %v6912_v30  ;;  %11230 = vst [vmem:[#allocation64_spill] sm:$0xff] %v6914_v31 }
 0x199   : > { %v6916_v32 = vpop.f32.mrf.mxu0  ;;  %v6918_v33 = vpop.f32.mrf.mxu1 }
 0x19a   : > { %11231 = vst [vmem:[#allocation65_spill] sm:$0xff] %v6916_v32  ;;  %11232 = vst [vmem:[#allocation66_spill] sm:$0xff] %v6918_v33 }
 0x19b   : > { %v6920_v34 = vpop.f32.mrf.mxu0  ;;  %v6922_v35 = vpop.f32.mrf.mxu1 }
 0x19c   : > { %11233 = vst [vmem:[#allocation67_spill] sm:$0xff] %v6920_v34  ;;  %11234 = vst [vmem:[#allocation68_spill] sm:$0xff] %v6922_v35 }
 0x19d   : > { %v6924_v36 = vpop.f32.mrf.mxu0  ;;  %v6926_v37 = vpop.f32.mrf.mxu1 }
 0x19e   : > { %11235 = vst [vmem:[#allocation69_spill] sm:$0xff] %v6924_v36  ;;  %11236 = vst [vmem:[#allocation70_spill] sm:$0xff] %v6926_v37 }
 0x19f   : > { %v6928_v38 = vpop.f32.mrf.mxu0  ;;  %v6930_v39 = vpop.f32.mrf.mxu1 }
 0x1a0   : > { %11237 = vst [vmem:[#allocation71_spill] sm:$0xff] %v6928_v38  ;;  %11238 = vst [vmem:[#allocation72_spill] sm:$0xff] %v6930_v39 }
 0x1a1   : > { %v6932_v40 = vpop.f32.mrf.mxu0  ;;  %v6934_v41 = vpop.f32.mrf.mxu1 }
 0x1a2   : > { %11239 = vst [vmem:[#allocation73_spill] sm:$0xff] %v6932_v40  ;;  %11240 = vst [vmem:[#allocation74_spill] sm:$0xff] %v6934_v41 }
 0x1a3   : > { %v6936_v42 = vpop.f32.mrf.mxu0  ;;  %v6938_v43 = vpop.f32.mrf.mxu1 }
 0x1a4   : > { %11241 = vst [vmem:[#allocation75_spill] sm:$0xff] %v6936_v42  ;;  %11242 = vst [vmem:[#allocation76_spill] sm:$0xff] %v6938_v43 }
 0x1a5   : > { %v6940_v44 = vpop.f32.mrf.mxu0  ;;  %v6942_v45 = vpop.f32.mrf.mxu1 }
 0x1a6   : > { %11243 = vst [vmem:[#allocation77_spill] sm:$0xff] %v6940_v44  ;;  %11244 = vst [vmem:[#allocation78_spill] sm:$0xff] %v6942_v45 }
 0x1a7   : > { %v6944_v46 = vpop.f32.mrf.mxu0  ;;  %v6946_v47 = vpop.f32.mrf.mxu1 }
 0x1a8   : > { %11245 = vst [vmem:[#allocation79_spill] sm:$0xff] %v6944_v46  ;;  %11246 = vst [vmem:[#allocation80_spill] sm:$0xff] %v6946_v47 }
 0x1a9   : > { %v6948_v48 = vpop.f32.mrf.mxu0  ;;  %v6950_v17 = vpop.f32.mrf.mxu1 }
 0x1aa   : > { %11247 = vst [vmem:[#allocation81_spill] sm:$0xff] %v6948_v48  ;;  %11248 = vst [vmem:[#allocation82_spill] sm:$0xff] %v6950_v17  ;;  %1131 = vmatprep.subr.mxu0 %v6948_v48  ;;  %1202 = vmatprep.subr.mxu1 %v6950_v17 }
 0x1ab   : > { %v6954_v50 = vpop.f32.mrf.mxu0  ;;  %v6956_v49 = vpop.f32.mrf.mxu1  ;;  %1132 = vmatpush1.msra.mxu0 %v6944_v46  ;;  %1203 = vmatpush1.msra.mxu1 %v6946_v47 }
 0x1ac   : > { %11249 = vst [vmem:[#allocation83_spill] sm:$0xff] %v6954_v50  ;;  %11250 = vst [vmem:[#allocation84_spill] sm:$0xff] %v6956_v49  ;;  %1133 = vmatprep.subr.mxu0 %v6940_v44  ;;  %1204 = vmatprep.subr.mxu1 %v6942_v45 }
 0x1ad   : > { %v6962_v52 = vpop.f32.mrf.mxu0  ;;  %v6964_v51 = vpop.f32.mrf.mxu1  ;;  %1134 = vmatpush1.msra.mxu0 %v6936_v42  ;;  %1205 = vmatpush1.msra.mxu1 %v6938_v43 }
 0x1ae   : > { %11251 = vst [vmem:[#allocation85_spill] sm:$0xff] %v6962_v52  ;;  %11252 = vst [vmem:[#allocation86_spill] sm:$0xff] %v6964_v51  ;;  %1135 = vmatprep.subr.mxu0 %v6932_v40  ;;  %1206 = vmatprep.subr.mxu1 %v6934_v41 }
 0x1af   : > { %v6970_v17 = vpop.f32.mrf.mxu0  ;;  %v6972_v46 = vpop.f32.mrf.mxu1  ;;  %1136 = vmatpush1.msra.mxu0 %v6928_v38  ;;  %1207 = vmatpush1.msra.mxu1 %v6930_v39 }
 0x1b0   : > { %11253 = vst [vmem:[#allocation87_spill] sm:$0xff] %v6970_v17  ;;  %11254 = vst [vmem:[#allocation88_spill] sm:$0xff] %v6972_v46  ;;  %1137 = vmatprep.subr.mxu0 %v6924_v36  ;;  %1208 = vmatprep.subr.mxu1 %v6926_v37 }
 0x1b1   : > { %v6978_v45 = vpop.f32.mrf.mxu0  ;;  %v6980_v42 = vpop.f32.mrf.mxu1  ;;  %1138 = vmatpush1.msra.mxu0 %v6920_v34  ;;  %1209 = vmatpush1.msra.mxu1 %v6922_v35 }
 0x1b2   : > { %11255 = vst [vmem:[#allocation89_spill] sm:$0xff] %v6978_v45  ;;  %11256 = vst [vmem:[#allocation90_spill] sm:$0xff] %v6980_v42  ;;  %1139 = vmatprep.subr.mxu0 %v6916_v32  ;;  %1210 = vmatprep.subr.mxu1 %v6918_v33 }
 0x1b3   : > { %v6986_v41 = vpop.f32.mrf.mxu0  ;;  %v6988_v38 = vpop.f32.mrf.mxu1  ;;  %1140 = vmatpush1.msra.mxu0 %v6912_v30  ;;  %1211 = vmatpush1.msra.mxu1 %v6914_v31 }
 0x1b4   : > { %11257 = vst [vmem:[#allocation91_spill] sm:$0xff] %v6986_v41  ;;  %11258 = vst [vmem:[#allocation92_spill] sm:$0xff] %v6988_v38  ;;  %1141 = vmatprep.subr.mxu0 %v6908_v28  ;;  %1212 = vmatprep.subr.mxu1 %v6910_v29 }
 0x1b5   : > { %v6994_v37 = vpop.f32.mrf.mxu0  ;;  %v6996_v34 = vpop.f32.mrf.mxu1  ;;  %1142 = vmatpush1.msra.mxu0 %v6904_v26  ;;  %1213 = vmatpush1.msra.mxu1 %v6906_v27 }
 0x1b6   : > { %11259 = vst [vmem:[#allocation93_spill] sm:$0xff] %v6994_v37  ;;  %11260 = vst [vmem:[#allocation94_spill] sm:$0xff] %v6996_v34  ;;  %1143 = vmatprep.subr.mxu0 %v6900_v24  ;;  %1214 = vmatprep.subr.mxu1 %v6902_v25 }
 0x1b7   : > { %v7002_v33 = vpop.f32.mrf.mxu0  ;;  %v7004_v30 = vpop.f32.mrf.mxu1  ;;  %1144 = vmatpush1.msra.mxu0 %v6896_v22  ;;  %1215 = vmatpush1.msra.mxu1 %v6898_v23 }
 0x1b8   : > { %11261 = vst [vmem:[#allocation95_spill] sm:$0xff] %v7002_v33  ;;  %11262 = vst [vmem:[#allocation96_spill] sm:$0xff] %v7004_v30  ;;  %1145 = vmatprep.subr.mxu0 %v6892_v20  ;;  %1216 = vmatprep.subr.mxu1 %v6894_v21 }
 0x1b9   : > { %v7010_v29 = vpop.f32.mrf.mxu0  ;;  %v7012_v26 = vpop.f32.mrf.mxu1  ;;  %1146 = vmatpush1.msra.mxu0 %v6888_v18  ;;  %1217 = vmatpush1.msra.mxu1 %v6890_v19 }
 0x1ba   : > { %11263 = vst [vmem:[#allocation97_spill] sm:$0xff] %v7010_v29  ;;  %11264 = vst [vmem:[#allocation98_spill] sm:$0xff] %v7012_v26  ;;  %1147 = vmatprep.subr.mxu0 %v6882_v15  ;;  %1218 = vmatprep.subr.mxu1 %v6884_v16 }
 0x1bb   : > { %v7018_v25 = vpop.f32.mrf.mxu0  ;;  %v7020_v22 = vpop.f32.mrf.mxu1  ;;  %1148 = vmatpush1.msra.mxu0 %v6878_v13  ;;  %1219 = vmatpush1.msra.mxu1 %v6880_v14 }
 0x1bc   : > { %1149 = vmatprep.subr.mxu0 %v6874_v11  ;;  %1220 = vmatprep.subr.mxu1 %v6876_v12 }
 0x1bd   : > { %v7026_v21 = vpop.f32.mrf.mxu0  ;;  %v7028_v18 = vpop.f32.mrf.mxu1  ;;  %1150 = vmatpush1.msra.mxu0 %v6870_v9  ;;  %1221 = vmatpush1.msra.mxu1 %v6872_v10 }
 0x1be   : > { %11265 = vst [vmem:[#allocation99_spill] sm:$0xff] %v7026_v21  ;;  %11266 = vst [vmem:[#allocation100_spill] sm:$0xff] %v7028_v18  ;;  %1151 = vmatprep.subr.mxu0 %v6866_v7  ;;  %1222 = vmatprep.subr.mxu1 %v6868_v8 }
 0x1bf   : > { %v7034_v16 = vpop.f32.mrf.mxu0  ;;  %v7036_v13 = vpop.f32.mrf.mxu1  ;;  %1152 = vmatpush1.msra.mxu0 %v6862_v5  ;;  %1223 = vmatpush1.msra.mxu1 %v6864_v6 }
 0x1c0   : > { %1153 = vmatprep.subr.mxu0 %v6858_v3  ;;  %1224 = vmatprep.subr.mxu1 %v6860_v4 }
 0x1c1   : > { %v7042_v12 = vpop.f32.mrf.mxu0  ;;  %v7044_v9 = vpop.f32.mrf.mxu1  ;;  %1154 = vmatpush1.msra.mxu0 %v6854_v1  ;;  %1225 = vmatpush1.msra.mxu1 %v6856_v2 }
 0x1c2   : > { %11267 = vst [vmem:[#allocation101_spill] sm:$0xff] %v7042_v12  ;;  %11268 = vst [vmem:[#allocation102_spill] sm:$0xff] %v7044_v9  ;;  %1155 = vmatprep.subr.mxu0 %v6850_v63  ;;  %1226 = vmatprep.subr.mxu1 %v6852_v0 }
 0x1c3   : > { %v7050_v8 = vpop.f32.mrf.mxu0  ;;  %v7052_v5 = vpop.f32.mrf.mxu1  ;;  %1156 = vmatpush1.msra.mxu0 %v6846_v61  ;;  %1227 = vmatpush1.msra.mxu1 %v6848_v62 }
 0x1c4   : > { %1157 = vmatprep.subr.mxu0 %v6842_v59  ;;  %1228 = vmatprep.subr.mxu1 %v6844_v60  ;;  %v11271_v60 = vld [vmem:[#allocation21_spill] sm:$0xff]  ;;  %v11272_v59 = vld [vmem:[#allocation22_spill] sm:$0xff] }
 0x1c5   : > { %v7058_v4 = vpop.f32.mrf.mxu0  ;;  %v7060_v1 = vpop.f32.mrf.mxu1  ;;  %1158 = vmatpush1.msra.mxu0 %v6838_v57  ;;  %1229 = vmatpush1.msra.mxu1 %v6840_v58  ;;  %v11275_v58 = vld [vmem:[#allocation19_spill] sm:$0xff] }
 0x1c6   : > { %11269 = vst [vmem:[#allocation103_spill] sm:$0xff] %v7058_v4  ;;  %11270 = vst [vmem:[#allocation104_spill] sm:$0xff] %v7060_v1  ;;  %1159 = vmatprep.subr.mxu0 %v6834_v55  ;;  %1230 = vmatprep.subr.mxu1 %v6836_v56  ;;  %v11276_v55 = vld [vmem:[#allocation20_spill] sm:$0xff] }
 0x1c7   : > { %v7066_v0 = vpop.f32.mrf.mxu0  ;;  %v7068_v61 = vpop.f32.mrf.mxu1  ;;  %1160 = vmatpush1.msra.mxu0 %v6830_v53  ;;  %1231 = vmatpush1.msra.mxu1 %v6832_v54 }
 0x1c8   : > { %1161 = vmatprep.subr.mxu0 %v11271_v60  ;;  %1232 = vmatprep.subr.mxu1 %v11272_v59 }
 0x1c9   : > { %v7074_v62 = vpop.f32.mrf.mxu0  ;;  %v7076_v57 = vpop.f32.mrf.mxu1  ;;  %1162 = vmatpush1.msra.mxu0 %v11275_v58  ;;  %1233 = vmatpush1.msra.mxu1 %v11276_v55 }
 0x1ca   : > { %11273 = vst [vmem:[#allocation105_spill] sm:$0xff] %v7074_v62  ;;  %11274 = vst [vmem:[#allocation106_spill] sm:$0xff] %v7076_v57 }
 0x1cb   : > { %v7080_v56 = vpop.f32.mrf.mxu0  ;;  %v7082_v63 = vpop.f32.mrf.mxu1 }
 0x1cd   : > { %v7084_v2 = vpop.f32.mrf.mxu0  ;;  %v7086_v53 = vpop.f32.mrf.mxu1 }
 0x1ce   : > { %11277 = vst [vmem:[#allocation107_spill] sm:$0xff] %v7084_v2  ;;  %11278 = vst [vmem:[#allocation108_spill] sm:$0xff] %v7086_v53 }
 0x1cf   : > { %v7088_v54 = vpop.f32.mrf.mxu0  ;;  %v7090_v60 = vpop.f32.mrf.mxu1 }
 0x1d1   : > { %v7092_v59 = vpop.f32.mrf.mxu0  ;;  %v7094_v3 = vpop.f32.mrf.mxu1 }
 0x1d2   : > { %11279 = vst [vmem:[#allocation109_spill] sm:$0xff] %v7092_v59  ;;  %11280 = vst [vmem:[#allocation110_spill] sm:$0xff] %v7094_v3 }
 0x1d3   : > { %v7096_v6 = vpop.f32.mrf.mxu0  ;;  %v7098_v58 = vpop.f32.mrf.mxu1 }
 0x1d5   : > { %v7100_v55 = vpop.f32.mrf.mxu0  ;;  %v7102_v7 = vpop.f32.mrf.mxu1 }
 0x1d6   : > { %11281 = vst [vmem:[#allocation111_spill] sm:$0xff] %v7100_v55  ;;  %11282 = vst [vmem:[#allocation112_spill] sm:$0xff] %v7102_v7 }
 0x1d7   : > { %v7104_v10 = vpop.f32.mrf.mxu0  ;;  %v7106_v11 = vpop.f32.mrf.mxu1 }
 0x1d9   : > { %v7108_v14 = vpop.f32.mrf.mxu0  ;;  %v7110_v15 = vpop.f32.mrf.mxu1 }
 0x1da   : > { %11283 = vst [vmem:[#allocation113_spill] sm:$0xff] %v7108_v14  ;;  %11284 = vst [vmem:[#allocation114_spill] sm:$0xff] %v7110_v15 }
 0x1db   : > { %v7112_v19 = vpop.f32.mrf.mxu0  ;;  %v7114_v20 = vpop.f32.mrf.mxu1 }
 0x1dd   : > { %v7116_v23 = vpop.f32.mrf.mxu0  ;;  %v7118_v24 = vpop.f32.mrf.mxu1 }
 0x1de   : > { %11285 = vst [vmem:[#allocation115_spill] sm:$0xff] %v7116_v23  ;;  %11286 = vst [vmem:[#allocation116_spill] sm:$0xff] %v7118_v24 }
 0x1df   : > { %v7120_v27 = vpop.f32.mrf.mxu0  ;;  %v7122_v28 = vpop.f32.mrf.mxu1 }
 0x1e1   : > { %v7124_v31 = vpop.f32.mrf.mxu0  ;;  %v7126_v32 = vpop.f32.mrf.mxu1 }
 0x1e2   : > { %11287 = vst [vmem:[#allocation117_spill] sm:$0xff] %v7124_v31  ;;  %11288 = vst [vmem:[#allocation118_spill] sm:$0xff] %v7126_v32 }
 0x1e3   : > { %v7128_v35 = vpop.f32.mrf.mxu0  ;;  %v7130_v36 = vpop.f32.mrf.mxu1 }
 0x1e5   : > { %v7132_v39 = vpop.f32.mrf.mxu0  ;;  %v7134_v40 = vpop.f32.mrf.mxu1 }
 0x1e6   : > { %11289 = vst [vmem:[#allocation119_spill] sm:$0xff] %v7132_v39  ;;  %11290 = vst [vmem:[#allocation120_spill] sm:$0xff] %v7134_v40 }
 0x1e7   : > { %v7136_v43 = vpop.f32.mrf.mxu0  ;;  %v7138_v44 = vpop.f32.mrf.mxu1 }
 0x1e8   : > { %11291 = vst [vmem:[#allocation121_spill] sm:$0xff] %v7138_v44 }
 0x1e9   : > { %v7140_v47 = vpop.f32.mrf.mxu0  ;;  %v7142_v48 = vpop.f32.mrf.mxu1 }
 0x1ea   : > { %11292 = vst [vmem:[#allocation122_spill] sm:$0xff] %v7140_v47  ;;  %11293 = vst [vmem:[#allocation123_spill] sm:$0xff] %v7142_v48  ;;  %1163 = vmatprep.subr.mxu0 %v7140_v47  ;;  %1234 = vmatprep.subr.mxu1 %v7142_v48 }
 0x1eb   : > { %1164 = vmatpush2.msra.mxu0 %v7136_v43  ;;  %1235 = vmatpush2.msra.mxu1 %v7138_v44 }
 0x1ec   : > { %1165 = vmatprep.subr.mxu0 %v7132_v39  ;;  %1236 = vmatprep.subr.mxu1 %v7134_v40 }
 0x1ed   : > { %1166 = vmatpush2.msra.mxu0 %v7128_v35  ;;  %1237 = vmatpush2.msra.mxu1 %v7130_v36 }
 0x1ee   : > { %1167 = vmatprep.subr.mxu0 %v7124_v31  ;;  %1238 = vmatprep.subr.mxu1 %v7126_v32 }
 0x1ef   : > { %1168 = vmatpush2.msra.mxu0 %v7120_v27  ;;  %1239 = vmatpush2.msra.mxu1 %v7122_v28 }
 0x1f0   : > { %1169 = vmatprep.subr.mxu0 %v7116_v23  ;;  %1240 = vmatprep.subr.mxu1 %v7118_v24 }
 0x1f1   : > { %1170 = vmatpush2.msra.mxu0 %v7112_v19  ;;  %1241 = vmatpush2.msra.mxu1 %v7114_v20 }
 0x1f2   : > { %1171 = vmatprep.subr.mxu0 %v7108_v14  ;;  %1242 = vmatprep.subr.mxu1 %v7110_v15 }
 0x1f3   : > { %1172 = vmatpush2.msra.mxu0 %v7104_v10  ;;  %1243 = vmatpush2.msra.mxu1 %v7106_v11 }
 0x1f4   : > { %1173 = vmatprep.subr.mxu0 %v7100_v55  ;;  %1244 = vmatprep.subr.mxu1 %v7102_v7 }
 0x1f5   : > { %1174 = vmatpush2.msra.mxu0 %v7096_v6  ;;  %1245 = vmatpush2.msra.mxu1 %v7098_v58 }
 0x1f6   : > { %1175 = vmatprep.subr.mxu0 %v7092_v59  ;;  %1246 = vmatprep.subr.mxu1 %v7094_v3 }
 0x1f7   : > { %1176 = vmatpush2.msra.mxu0 %v7088_v54  ;;  %1247 = vmatpush2.msra.mxu1 %v7090_v60 }
 0x1f8   : > { %1177 = vmatprep.subr.mxu0 %v7084_v2  ;;  %1248 = vmatprep.subr.mxu1 %v7086_v53 }
 0x1f9   : > { %1178 = vmatpush2.msra.mxu0 %v7080_v56  ;;  %1249 = vmatpush2.msra.mxu1 %v7082_v63 }
 0x1fa   : > { %1179 = vmatprep.subr.mxu0 %v7074_v62  ;;  %1250 = vmatprep.subr.mxu1 %v7076_v57 }
 0x1fb   : > { %1180 = vmatpush2.msra.mxu0 %v7066_v0  ;;  %1251 = vmatpush2.msra.mxu1 %v7068_v61 }
 0x1fc   : > { %1181 = vmatprep.subr.mxu0 %v7058_v4  ;;  %1252 = vmatprep.subr.mxu1 %v7060_v1 }
 0x1fd   : > { %1182 = vmatpush2.msra.mxu0 %v7050_v8  ;;  %1253 = vmatpush2.msra.mxu1 %v7052_v5 }
 0x1fe   : > { %1183 = vmatprep.subr.mxu0 %v7042_v12  ;;  %1254 = vmatprep.subr.mxu1 %v7044_v9 }
 0x1ff   : > { %1184 = vmatpush2.msra.mxu0 %v7034_v16  ;;  %1255 = vmatpush2.msra.mxu1 %v7036_v13 }
 0x200   : > { %1185 = vmatprep.subr.mxu0 %v7026_v21  ;;  %1256 = vmatprep.subr.mxu1 %v7028_v18 }
 0x201   : > { %1186 = vmatpush2.msra.mxu0 %v7018_v25  ;;  %1257 = vmatpush2.msra.mxu1 %v7020_v22 }
 0x202   : > { %1187 = vmatprep.subr.mxu0 %v7010_v29  ;;  %1258 = vmatprep.subr.mxu1 %v7012_v26  ;;  %v11304_v26 = vld [vmem:[#allocation74_spill] sm:$0xff]  ;;  %v11305_v29 = vld [vmem:[#allocation71_spill] sm:$0xff] }
 0x203   : > { %1188 = vmatpush2.msra.mxu0 %v7002_v33  ;;  %1259 = vmatpush2.msra.mxu1 %v7004_v30  ;;  %v11298_v30 = vmov 1.0   ;;  %v11302_v33 = vld [vmem:[#allocation76_spill] sm:$0xff] }
 0x204   : > { %1189 = vmatprep.subr.mxu0 %v6994_v37  ;;  %1260 = vmatprep.subr.mxu1 %v6996_v34  ;;  %v11294_v34 = vld [vmem:[#allocation81_spill] sm:$0xff]  ;;  %v11296_v37 = vld [vmem:[#allocation79_spill] sm:$0xff] }
 0x205   : > { %1190 = vmatpush2.msra.mxu0 %v6986_v41  ;;  %1261 = vmatpush2.msra.mxu1 %v6988_v38  ;;  %v1334_v41 = vmul.f32 %v11294_v34, %v11294_v34  ;;  %v11295_v38 = vld [vmem:[#allocation82_spill] sm:$0xff]  ;;  %v11301_v34 = vld [vmem:[#allocation75_spill] sm:$0xff] }
 0x206   : > { %1191 = vmatprep.subr.mxu0 %v6978_v45  ;;  %1262 = vmatprep.subr.mxu1 %v6980_v42  ;;  %v1336_v45 = vmul.f32 %v11295_v38, %v11295_v38  ;;  %v1333_v42 = vmul.f32 %v11296_v37, %v11296_v37  ;;  %v1329_v38 = vmul.f32 %v11301_v34, %v11301_v34  ;;  %v11307_v34 = vld [vmem:[#allocation69_spill] sm:$0xff] }
 0x207   : > { %1192 = vmatpush2.msra.mxu0 %v6970_v17  ;;  %1263 = vmatpush2.msra.mxu1 %v6972_v46  ;;  %v11297_v17 = vld [vmem:[#allocation80_spill] sm:$0xff]  ;;  %v1331_v37 = vmul.f32 %v11302_v33, %v11302_v33 }
 0x208   : > { %1193 = vmatprep.subr.mxu0 %v6962_v52  ;;  %1264 = vmatprep.subr.mxu1 %v6964_v51  ;;  %v1335_v46 = vmul.f32 %v11297_v17, %v11297_v17  ;;  %v11299_v51 = vld [vmem:[#allocation77_spill] sm:$0xff] }
 0x209   : > { %1194 = vmatpush2.msra.mxu0 %v6954_v50  ;;  %1265 = vmatpush2.msra.mxu1 %v6956_v49  ;;  %v1330_v50 = vmul.f32 %v11299_v51, %v11299_v51  ;;  %v11300_v49 = vld [vmem:[#allocation78_spill] sm:$0xff]  ;;  %v11303_v17 = vld [vmem:[#allocation73_spill] sm:$0xff]  ;;  %v1328_v51 = vmul.f32 %v11304_v26, %v11304_v26  ;;  %v11310_v26 = vld [vmem:[#allocation68_spill] sm:$0xff] }
 0x20a   : > { %1196 = vmatmul.mubr.f32.vlgmr.msra.gmra.mxu0 %v11298_v30  ;;  %1267 = vmatmul.mubr.f32.vlgmr.msra.gmra.mxu1 %v11298_v30  ;;  %v1332_v52 = vmul.f32 %v11300_v49, %v11300_v49  ;;  %v1326_v30 = vmul.f32 %v11303_v17, %v11303_v17  ;;  %v1323_v17 = vmul.f32 %v11310_v26, %v11310_v26 }
 0x20b   : > { %1401 = vmatprep.subr.mxu0 %v1334_v41  ;;  %1472 = vmatprep.subr.mxu1 %v1336_v45  ;;  %v1325_v41 = vmul.f32 %v11305_v29, %v11305_v29  ;;  %v11306_v45 = vld [vmem:[#allocation72_spill] sm:$0xff] }
 0x20c   : > { %1402 = vmatpush1.msra.mxu0 %v1333_v42  ;;  %1473 = vmatpush1.msra.mxu1 %v1335_v46  ;;  %v1327_v49 = vmul.f32 %v11306_v45, %v11306_v45  ;;  %v1322_v42 = vmul.f32 %v11307_v34, %v11307_v34  ;;  %v11308_v46 = vld [vmem:[#allocation70_spill] sm:$0xff]  ;;  %v11313_v34 = vld [vmem:[#allocation63_spill] sm:$0xff] }
 0x20d   : > { %1403 = vmatprep.subr.mxu0 %v1330_v50  ;;  %1474 = vmatprep.subr.mxu1 %v1332_v52  ;;  %v1324_v50 = vmul.f32 %v11308_v46, %v11308_v46  ;;  %v11309_v52 = vld [vmem:[#allocation67_spill] sm:$0xff]  ;;  %v11312_v45 = vld [vmem:[#allocation66_spill] sm:$0xff] }
 0x20e   : > { %1404 = vmatpush1.msra.mxu0 %v1329_v38  ;;  %1475 = vmatpush1.msra.mxu1 %v1331_v37  ;;  %v1321_v33 = vmul.f32 %v11309_v52, %v11309_v52  ;;  %v11311_v38 = vld [vmem:[#allocation65_spill] sm:$0xff]  ;;  %v1320_v29 = vmul.f32 %v11312_v45, %v11312_v45  ;;  %v11318_v45 = vld [vmem:[#allocation60_spill] sm:$0xff] }
 0x20f   : > { %1405 = vmatprep.subr.mxu0 %v1326_v30  ;;  %1476 = vmatprep.subr.mxu1 %v1328_v51  ;;  %v1318_v37 = vmul.f32 %v11311_v38, %v11311_v38  ;;  %v1317_v30 = vmul.f32 %v11313_v34, %v11313_v34  ;;  %v11314_v51 = vld [vmem:[#allocation64_spill] sm:$0xff]  ;;  %v11315_v52 = vld [vmem:[#allocation61_spill] sm:$0xff]  ;;  %v1315_v38 = vmul.f32 %v11318_v45, %v11318_v45 }
 0x210   : > { %1406 = vmatpush1.msra.mxu0 %v1325_v41  ;;  %1477 = vmatpush1.msra.mxu1 %v1327_v49  ;;  %v1319_v46 = vmul.f32 %v11314_v51, %v11314_v51  ;;  %v1314_v41 = vmul.f32 %v11315_v52, %v11315_v52  ;;  %v11316_v49 = vld [vmem:[#allocation62_spill] sm:$0xff]  ;;  %v11321_v52 = vld [vmem:[#allocation55_spill] sm:$0xff] }
 0x211   : > { %1407 = vmatprep.subr.mxu0 %v1322_v42  ;;  %1478 = vmatprep.subr.mxu1 %v1324_v50  ;;  %v1316_v42 = vmul.f32 %v11316_v49, %v11316_v49  ;;  %v11317_v50 = vld [vmem:[#allocation59_spill] sm:$0xff]  ;;  %v11320_v51 = vld [vmem:[#allocation58_spill] sm:$0xff] }
 0x212   : > { %1408 = vmatpush1.msra.mxu0 %v1321_v33  ;;  %1479 = vmatpush1.msra.mxu1 %v1323_v17  ;;  %v1313_v26 = vmul.f32 %v11317_v50, %v11317_v50  ;;  %v11319_v33 = vld [vmem:[#allocation57_spill] sm:$0xff]  ;;  %v1312_v34 = vmul.f32 %v11320_v51, %v11320_v51  ;;  %v11326_v51 = vld [vmem:[#allocation52_spill] sm:$0xff] }
 0x213   : > { %1409 = vmatprep.subr.mxu0 %v1318_v37  ;;  %1480 = vmatprep.subr.mxu1 %v1320_v29  ;;  %v1310_v17 = vmul.f32 %v11319_v33, %v11319_v33  ;;  %v1309_v37 = vmul.f32 %v11321_v52, %v11321_v52  ;;  %v11322_v29 = vld [vmem:[#allocation56_spill] sm:$0xff]  ;;  %v11323_v50 = vld [vmem:[#allocation53_spill] sm:$0xff]  ;;  %v1307_v33 = vmul.f32 %v11326_v51, %v11326_v51 }
 0x214   : > { %1410 = vmatpush1.msra.mxu0 %v1317_v30  ;;  %1481 = vmatpush1.msra.mxu1 %v1319_v46  ;;  %v1311_v49 = vmul.f32 %v11322_v29, %v11322_v29  ;;  %v1306_v30 = vmul.f32 %v11323_v50, %v11323_v50  ;;  %v11324_v46 = vld [vmem:[#allocation54_spill] sm:$0xff]  ;;  %v11329_v50 = vld [vmem:[#allocation47_spill] sm:$0xff] }
 0x215   : > { %1411 = vmatprep.subr.mxu0 %v1314_v41  ;;  %1482 = vmatprep.subr.mxu1 %v1316_v42  ;;  %v1308_v41 = vmul.f32 %v11324_v46, %v11324_v46  ;;  %v11325_v42 = vld [vmem:[#allocation51_spill] sm:$0xff]  ;;  %v11328_v29 = vld [vmem:[#allocation50_spill] sm:$0xff] }
 0x216   : > { %1412 = vmatpush1.msra.mxu0 %v1313_v26  ;;  %1483 = vmatpush1.msra.mxu1 %v1315_v38  ;;  %v1305_v45 = vmul.f32 %v11325_v42, %v11325_v42  ;;  %v11327_v26 = vld [vmem:[#allocation49_spill] sm:$0xff]  ;;  %v1304_v52 = vmul.f32 %v11328_v29, %v11328_v29  ;;  %v11334_v29 = vld [vmem:[#allocation44_spill] sm:$0xff] }
 0x217   : > { %1413 = vmatprep.subr.mxu0 %v1310_v17  ;;  %1484 = vmatprep.subr.mxu1 %v1312_v34  ;;  %v1302_v38 = vmul.f32 %v11327_v26, %v11327_v26  ;;  %v1301_v17 = vmul.f32 %v11329_v50, %v11329_v50  ;;  %v11330_v34 = vld [vmem:[#allocation48_spill] sm:$0xff]  ;;  %v11331_v42 = vld [vmem:[#allocation45_spill] sm:$0xff]  ;;  %v1299_v26 = vmul.f32 %v11334_v29, %v11334_v29 }
 0x218   : > { %1414 = vmatpush1.msra.mxu0 %v1309_v37  ;;  %1485 = vmatpush1.msra.mxu1 %v1311_v49  ;;  %v1303_v46 = vmul.f32 %v11330_v34, %v11330_v34  ;;  %v1298_v37 = vmul.f32 %v11331_v42, %v11331_v42  ;;  %v11332_v49 = vld [vmem:[#allocation46_spill] sm:$0xff]  ;;  %v11337_v42 = vld [vmem:[#allocation39_spill] sm:$0xff] }
 0x219   : > { %1415 = vmatprep.subr.mxu0 %v1306_v30  ;;  %1486 = vmatprep.subr.mxu1 %v1308_v41  ;;  %v1300_v30 = vmul.f32 %v11332_v49, %v11332_v49  ;;  %v11333_v41 = vld [vmem:[#allocation43_spill] sm:$0xff]  ;;  %v11336_v34 = vld [vmem:[#allocation42_spill] sm:$0xff] }
 0x21a   : > { %1416 = vmatpush1.msra.mxu0 %v1305_v45  ;;  %1487 = vmatpush1.msra.mxu1 %v1307_v33  ;;  %v1297_v51 = vmul.f32 %v11333_v41, %v11333_v41  ;;  %v11335_v45 = vld [vmem:[#allocation41_spill] sm:$0xff]  ;;  %v1296_v50 = vmul.f32 %v11336_v34, %v11336_v34  ;;  %v11342_v34 = vld [vmem:[#allocation36_spill] sm:$0xff] }
 0x21b   : > { %1417 = vmatprep.subr.mxu0 %v1302_v38  ;;  %1488 = vmatprep.subr.mxu1 %v1304_v52  ;;  %v1294_v33 = vmul.f32 %v11335_v45, %v11335_v45  ;;  %v1293_v38 = vmul.f32 %v11337_v42, %v11337_v42  ;;  %v11338_v52 = vld [vmem:[#allocation40_spill] sm:$0xff]  ;;  %v11339_v41 = vld [vmem:[#allocation37_spill] sm:$0xff]  ;;  %v1291_v45 = vmul.f32 %v11342_v34, %v11342_v34 }
 0x21c   : > { %1418 = vmatpush1.msra.mxu0 %v1301_v17  ;;  %1489 = vmatpush1.msra.mxu1 %v1303_v46  ;;  %v1295_v49 = vmul.f32 %v11338_v52, %v11338_v52  ;;  %v1290_v17 = vmul.f32 %v11339_v41, %v11339_v41  ;;  %v11340_v46 = vld [vmem:[#allocation38_spill] sm:$0xff]  ;;  %v11345_v41 = vld [vmem:[#allocation31_spill] sm:$0xff] }
 0x21d   : > { %1419 = vmatprep.subr.mxu0 %v1298_v37  ;;  %1490 = vmatprep.subr.mxu1 %v1300_v30  ;;  %v1292_v37 = vmul.f32 %v11340_v46, %v11340_v46  ;;  %v11341_v30 = vld [vmem:[#allocation35_spill] sm:$0xff]  ;;  %v11344_v52 = vld [vmem:[#allocation34_spill] sm:$0xff] }
 0x21e   : > { %1420 = vmatpush1.msra.mxu0 %v1297_v51  ;;  %1491 = vmatpush1.msra.mxu1 %v1299_v26  ;;  %v1289_v29 = vmul.f32 %v11341_v30, %v11341_v30  ;;  %v11343_v51 = vld [vmem:[#allocation33_spill] sm:$0xff]  ;;  %v1288_v42 = vmul.f32 %v11344_v52, %v11344_v52  ;;  %v11350_v52 = vld [vmem:[#allocation28_spill] sm:$0xff] }
 0x21f   : > { %1421 = vmatprep.subr.mxu0 %v1294_v33  ;;  %1492 = vmatprep.subr.mxu1 %v1296_v50  ;;  %v1286_v26 = vmul.f32 %v11343_v51, %v11343_v51  ;;  %v1285_v33 = vmul.f32 %v11345_v41, %v11345_v41  ;;  %v11346_v50 = vld [vmem:[#allocation32_spill] sm:$0xff]  ;;  %v11347_v30 = vld [vmem:[#allocation29_spill] sm:$0xff]  ;;  %v1283_v51 = vmul.f32 %v11350_v52, %v11350_v52 }
 0x220   : > { %1422 = vmatpush1.msra.mxu0 %v1293_v38  ;;  %1493 = vmatpush1.msra.mxu1 %v1295_v49  ;;  %v1287_v46 = vmul.f32 %v11346_v50, %v11346_v50  ;;  %v1282_v38 = vmul.f32 %v11347_v30, %v11347_v30  ;;  %v11348_v49 = vld [vmem:[#allocation30_spill] sm:$0xff]  ;;  %v11353_v30 = vld [vmem:[#allocation23_spill] sm:$0xff] }
 0x221   : > { %1423 = vmatprep.subr.mxu0 %v1290_v17  ;;  %1494 = vmatprep.subr.mxu1 %v1292_v37  ;;  %v1284_v17 = vmul.f32 %v11348_v49, %v11348_v49  ;;  %v11349_v37 = vld [vmem:[#allocation27_spill] sm:$0xff]  ;;  %v11352_v50 = vld [vmem:[#allocation26_spill] sm:$0xff] }
 0x222   : > { %1424 = vmatpush1.msra.mxu0 %v1289_v29  ;;  %1495 = vmatpush1.msra.mxu1 %v1291_v45  ;;  %v1281_v34 = vmul.f32 %v11349_v37, %v11349_v37  ;;  %v11351_v29 = vld [vmem:[#allocation25_spill] sm:$0xff]  ;;  %v1280_v41 = vmul.f32 %v11352_v50, %v11352_v50  ;;  %v11358_v50 = vld [vmem:[#allocation20_spill] sm:$0xff] }
 0x223   : > { %1425 = vmatprep.subr.mxu0 %v1286_v26  ;;  %1496 = vmatprep.subr.mxu1 %v1288_v42  ;;  %v1278_v45 = vmul.f32 %v11351_v29, %v11351_v29  ;;  %v1277_v26 = vmul.f32 %v11353_v30, %v11353_v30  ;;  %v11354_v42 = vld [vmem:[#allocation24_spill] sm:$0xff]  ;;  %v11355_v37 = vld [vmem:[#allocation21_spill] sm:$0xff]  ;;  %v1275_v29 = vmul.f32 %v11358_v50, %v11358_v50 }
 0x224   : > { %1426 = vmatpush1.msra.mxu0 %v1285_v33  ;;  %1497 = vmatpush1.msra.mxu1 %v1287_v46  ;;  %v1279_v49 = vmul.f32 %v11354_v42, %v11354_v42  ;;  %v1274_v33 = vmul.f32 %v11355_v37, %v11355_v37  ;;  %v11356_v46 = vld [vmem:[#allocation22_spill] sm:$0xff] }
 0x225   : > { %1427 = vmatprep.subr.mxu0 %v1282_v38  ;;  %1498 = vmatprep.subr.mxu1 %v1284_v17  ;;  %v1276_v38 = vmul.f32 %v11356_v46, %v11356_v46  ;;  %v11357_v17 = vld [vmem:[#allocation19_spill] sm:$0xff] }
 0x226   : > { %1428 = vmatpush1.msra.mxu0 %v1281_v34  ;;  %1499 = vmatpush1.msra.mxu1 %v1283_v51  ;;  %v1273_v52 = vmul.f32 %v11357_v17, %v11357_v17  ;;  %v1398_v34 = vmul.f32 %v7140_v47, %v7140_v47  ;;  %v1400_v51 = vmul.f32 %v7142_v48, %v7142_v48  ;;  %v11360_v48 = vld [vmem:[#allocation98_spill] sm:$0xff] }
 0x227   : > { %1429 = vmatprep.subr.mxu0 %v1278_v45  ;;  %1500 = vmatprep.subr.mxu1 %v1280_v41  ;;  %v1397_v45 = vmul.f32 %v7136_v43, %v7136_v43  ;;  %v1399_v41 = vmul.f32 %v7138_v44, %v7138_v44  ;;  %v1352_v47 = vmul.f32 %v11360_v48, %v11360_v48  ;;  %v6143_v44 = vld [vmem:[#allocation8 + $0x2ec] ss:$16 sps:$4 sm:$0xff]  }
 0x228   : > { %1430 = vmatpush1.msra.mxu0 %v1277_v26  ;;  %1501 = vmatpush1.msra.mxu1 %v1279_v49  ;;  %v1394_v26 = vmul.f32 %v7132_v39, %v7132_v39  ;;  %v1396_v49 = vmul.f32 %v7134_v40, %v7134_v40  ;;  %v11361_v40 = vld [vmem:[#allocation95_spill] sm:$0xff] }
 0x229   : > { %1431 = vmatprep.subr.mxu0 %v1274_v33  ;;  %1502 = vmatprep.subr.mxu1 %v1276_v38  ;;  %v1393_v33 = vmul.f32 %v7128_v35, %v7128_v35  ;;  %v1395_v38 = vmul.f32 %v7130_v36, %v7130_v36 }
 0x22a   : > { %1432 = vmatpush1.msra.mxu0 %v1273_v52  ;;  %1503 = vmatpush1.msra.mxu1 %v1275_v29  ;;  %v1390_v52 = vmul.f32 %v7124_v31, %v7124_v31  ;;  %v1392_v29 = vmul.f32 %v7126_v32, %v7126_v32  ;;  %v11363_v32 = vld [vmem:[#allocation93_spill] sm:$0xff] }
 0x22b   : > { %1433 = vmatprep.subr.mxu0 %v1398_v34  ;;  %1504 = vmatprep.subr.mxu1 %v1400_v51  ;;  %v1389_v34 = vmul.f32 %v7120_v27, %v7120_v27  ;;  %v1391_v51 = vmul.f32 %v7122_v28, %v7122_v28 }
 0x22c   : > { %1434 = vmatpush2.msra.mxu0 %v1397_v45  ;;  %1505 = vmatpush2.msra.mxu1 %v1399_v41  ;;  %v1386_v45 = vmul.f32 %v7116_v23, %v7116_v23  ;;  %v1388_v41 = vmul.f32 %v7118_v24, %v7118_v24  ;;  %v11366_v24 = vld [vmem:[#allocation92_spill] sm:$0xff] }
 0x22d   : > { %1435 = vmatprep.subr.mxu0 %v1394_v26  ;;  %1506 = vmatprep.subr.mxu1 %v1396_v49  ;;  %v1385_v26 = vmul.f32 %v7112_v19, %v7112_v19  ;;  %v1387_v49 = vmul.f32 %v7114_v20, %v7114_v20  ;;  %v1347_v23 = vmul.f32 %v11366_v24, %v11366_v24 }
 0x22e   : > { %1436 = vmatpush2.msra.mxu0 %v1393_v33  ;;  %1507 = vmatpush2.msra.mxu1 %v1395_v38  ;;  %v1382_v33 = vmul.f32 %v7108_v14, %v7108_v14  ;;  %v1384_v38 = vmul.f32 %v7110_v15, %v7110_v15  ;;  %v11368_v15 = vld [vmem:[#allocation90_spill] sm:$0xff] }
 0x22f   : > { %1437 = vmatprep.subr.mxu0 %v1390_v52  ;;  %1508 = vmatprep.subr.mxu1 %v1392_v29  ;;  %v1381_v52 = vmul.f32 %v7104_v10, %v7104_v10  ;;  %v1383_v29 = vmul.f32 %v7106_v11, %v7106_v11  ;;  %v1344_v14 = vmul.f32 %v11368_v15, %v11368_v15 }
 0x230   : > { %1438 = vmatpush2.msra.mxu0 %v1389_v34  ;;  %1509 = vmatpush2.msra.mxu1 %v1391_v51  ;;  %v1378_v34 = vmul.f32 %v7100_v55, %v7100_v55  ;;  %v1380_v51 = vmul.f32 %v7102_v7, %v7102_v7  ;;  %v11369_v7 = vld [vmem:[#allocation87_spill] sm:$0xff] }
 0x231   : > { %1439 = vmatprep.subr.mxu0 %v1386_v45  ;;  %1510 = vmatprep.subr.mxu1 %v1388_v41  ;;  %v1377_v45 = vmul.f32 %v7096_v6, %v7096_v6  ;;  %v1379_v41 = vmul.f32 %v7098_v58, %v7098_v58 }
 0x232   : > { %1440 = vmatpush2.msra.mxu0 %v1385_v26  ;;  %1511 = vmatpush2.msra.mxu1 %v1387_v49  ;;  %v1374_v26 = vmul.f32 %v7092_v59, %v7092_v59  ;;  %v1376_v49 = vmul.f32 %v7094_v3, %v7094_v3  ;;  %v11371_v3 = vld [vmem:[#allocation85_spill] sm:$0xff] }
 0x233   : > { %1441 = vmatprep.subr.mxu0 %v1382_v33  ;;  %1512 = vmatprep.subr.mxu1 %v1384_v38  ;;  %v1373_v33 = vmul.f32 %v7088_v54, %v7088_v54  ;;  %v1375_v38 = vmul.f32 %v7090_v60, %v7090_v60 }
 0x234   : > { %1442 = vmatpush2.msra.mxu0 %v1381_v52  ;;  %1513 = vmatpush2.msra.mxu1 %v1383_v29  ;;  %v1370_v52 = vmul.f32 %v7084_v2, %v7084_v2  ;;  %v1372_v29 = vmul.f32 %v7086_v53, %v7086_v53  ;;  %v11374_v53 = vld [vmem:[#allocation84_spill] sm:$0xff] }
 0x235   : > { %1443 = vmatprep.subr.mxu0 %v1378_v34  ;;  %1514 = vmatprep.subr.mxu1 %v1380_v51  ;;  %v1369_v34 = vmul.f32 %v7080_v56, %v7080_v56  ;;  %v1371_v51 = vmul.f32 %v7082_v63, %v7082_v63  ;;  %v1339_v2 = vmul.f32 %v11374_v53, %v11374_v53 }
 0x236   : > { %1444 = vmatpush2.msra.mxu0 %v1377_v45  ;;  %1515 = vmatpush2.msra.mxu1 %v1379_v41  ;;  %v1366_v45 = vmul.f32 %v7074_v62, %v7074_v62  ;;  %v1368_v41 = vmul.f32 %v7076_v57, %v7076_v57  ;;  %v6053_v57 = vld [vmem:[#allocation8 + $0x2c4] ss:$16 sps:$4 sm:$0xff]   ;;  %v6054_v62 = vld [vmem:[#allocation8 + $0xa0] ss:$16 sps:$4 sm:$0xff]  }
 0x237   : > { %1445 = vmatprep.subr.mxu0 %v1374_v26  ;;  %1516 = vmatprep.subr.mxu1 %v1376_v49  ;;  %v1365_v26 = vmul.f32 %v7066_v0, %v7066_v0  ;;  %v1367_v49 = vmul.f32 %v7068_v61, %v7068_v61 }
 0x238   : > { %1446 = vmatpush2.msra.mxu0 %v1373_v33  ;;  %1517 = vmatpush2.msra.mxu1 %v1375_v38  ;;  %v1362_v33 = vmul.f32 %v7058_v4, %v7058_v4  ;;  %v1364_v38 = vmul.f32 %v7060_v1, %v7060_v1  ;;  %v6062_v1 = vld [vmem:[#allocation8 + $0x84] ss:$16 sps:$4 sm:$0xff]   ;;  %v6063_v4 = vld [vmem:[#allocation8 + $0x280] ss:$16 sps:$4 sm:$0xff]  }
 0x239   : > { %1447 = vmatprep.subr.mxu0 %v1370_v52  ;;  %1518 = vmatprep.subr.mxu1 %v1372_v29  ;;  %v1361_v52 = vmul.f32 %v7050_v8, %v7050_v8  ;;  %v1363_v29 = vmul.f32 %v7052_v5, %v7052_v5 }
 0x23a   : > { %1448 = vmatpush2.msra.mxu0 %v1369_v34  ;;  %1519 = vmatpush2.msra.mxu1 %v1371_v51  ;;  %v1358_v34 = vmul.f32 %v7042_v12, %v7042_v12  ;;  %v1360_v51 = vmul.f32 %v7044_v9, %v7044_v9 }
 0x23b   : > { %1449 = vmatprep.subr.mxu0 %v1366_v45  ;;  %1520 = vmatprep.subr.mxu1 %v1368_v41  ;;  %v1357_v45 = vmul.f32 %v7034_v16, %v7034_v16  ;;  %v1359_v41 = vmul.f32 %v7036_v13, %v7036_v13 }
 0x23c   : > { %1450 = vmatpush2.msra.mxu0 %v1365_v26  ;;  %1521 = vmatpush2.msra.mxu1 %v1367_v49  ;;  %v1354_v26 = vmul.f32 %v7026_v21, %v7026_v21  ;;  %v1356_v49 = vmul.f32 %v7028_v18, %v7028_v18 }
 0x23d   : > { %1451 = vmatprep.subr.mxu0 %v1362_v33  ;;  %1522 = vmatprep.subr.mxu1 %v1364_v38  ;;  %v1353_v33 = vmul.f32 %v7018_v25, %v7018_v25  ;;  %v1355_v38 = vmul.f32 %v7020_v22, %v7020_v22 }
 0x23e   : > { %1452 = vmatpush2.msra.mxu0 %v1361_v52  ;;  %1523 = vmatpush2.msra.mxu1 %v1363_v29  ;;  %v11359_v52 = vld [vmem:[#allocation97_spill] sm:$0xff] }
 0x23f   : > { %1453 = vmatprep.subr.mxu0 %v1358_v34  ;;  %1524 = vmatprep.subr.mxu1 %v1360_v51  ;;  %v1350_v29 = vmul.f32 %v11359_v52, %v11359_v52  ;;  %v1349_v34 = vmul.f32 %v11361_v40, %v11361_v40  ;;  %v11362_v51 = vld [vmem:[#allocation96_spill] sm:$0xff] }
 0x240   : > { %1454 = vmatpush2.msra.mxu0 %v1357_v45  ;;  %1525 = vmatpush2.msra.mxu1 %v1359_v41  ;;  %v1351_v39 = vmul.f32 %v11362_v51, %v11362_v51  ;;  %v1346_v45 = vmul.f32 %v11363_v32, %v11363_v32  ;;  %v11364_v41 = vld [vmem:[#allocation94_spill] sm:$0xff] }
 0x241   : > { %1455 = vmatprep.subr.mxu0 %v1354_v26  ;;  %1526 = vmatprep.subr.mxu1 %v1356_v49  ;;  %v1348_v26 = vmul.f32 %v11364_v41, %v11364_v41  ;;  %v11365_v49 = vld [vmem:[#allocation91_spill] sm:$0xff] }
 0x242   : > { %1456 = vmatpush2.msra.mxu0 %v1353_v33  ;;  %1527 = vmatpush2.msra.mxu1 %v1355_v38  ;;  %v1345_v31 = vmul.f32 %v11365_v49, %v11365_v49  ;;  %v11367_v33 = vld [vmem:[#allocation89_spill] sm:$0xff] }
 0x243   : > { %1457 = vmatprep.subr.mxu0 %v1350_v29  ;;  %1528 = vmatprep.subr.mxu1 %v1352_v47  ;;  %v1342_v38 = vmul.f32 %v11367_v33, %v11367_v33  ;;  %v1341_v29 = vmul.f32 %v11369_v7, %v11369_v7  ;;  %v11370_v47 = vld [vmem:[#allocation88_spill] sm:$0xff] }
 0x244   : > { %1458 = vmatpush2.msra.mxu0 %v1349_v34  ;;  %1529 = vmatpush2.msra.mxu1 %v1351_v39  ;;  %v1343_v55 = vmul.f32 %v11370_v47, %v11370_v47  ;;  %v1338_v34 = vmul.f32 %v11371_v3, %v11371_v3  ;;  %v11372_v39 = vld [vmem:[#allocation86_spill] sm:$0xff] }
 0x245   : > { %1459 = vmatprep.subr.mxu0 %v1346_v45  ;;  %1530 = vmatprep.subr.mxu1 %v1348_v26  ;;  %v1340_v45 = vmul.f32 %v11372_v39, %v11372_v39  ;;  %v11373_v26 = vld [vmem:[#allocation83_spill] sm:$0xff]  ;;  %v6140_v39 = vld [vmem:[#allocation8 + $0xec] ss:$16 sps:$4 sm:$0xff]  }
 0x246   : > { %1460 = vmatpush2.msra.mxu0 %v1345_v31  ;;  %1531 = vmatpush2.msra.mxu1 %v1347_v23  ;;  %v1337_v59 = vmul.f32 %v11373_v26, %v11373_v26  ;;  %v11375_v23 = vmov 1.0   ;;  %v6044_v31 = vld [vmem:[#allocation8 + $0xe4] ss:$16 sps:$4 sm:$0xff]  }
 0x247   : > { %1461 = vmatprep.subr.mxu0 %v1342_v38  ;;  %1532 = vmatprep.subr.mxu1 %v1344_v14  ;;  %v6042_v14 = vld [vmem:[#allocation8 + $0xe0] ss:$16 sps:$4 sm:$0xff]  }
 0x248   : > { %1462 = vmatpush2.msra.mxu0 %v1341_v29  ;;  %1533 = vmatpush2.msra.mxu1 %v1343_v55  ;;  %v6045_v38 = vld [vmem:[#allocation8 + $0x2e0] ss:$16 sps:$4 sm:$0xff]   ;;  %v6047_v29 = vld [vmem:[#allocation8 + $0x2e4] ss:$16 sps:$4 sm:$0xff]  }
 0x249   : > { %1463 = vmatprep.subr.mxu0 %v1338_v34  ;;  %1534 = vmatprep.subr.mxu1 %v1340_v45  ;;  %v6050_v55 = vld [vmem:[#allocation8 + $0xc4] ss:$16 sps:$4 sm:$0xff]   ;;  %v6051_v34 = vld [vmem:[#allocation8 + $0x2c0] ss:$16 sps:$4 sm:$0xff]  }
 0x24a   : > { %1464 = vmatpush2.msra.mxu0 %v1337_v59  ;;  %1465 = vmatprep.mubr.f32.mxu0 %v11375_v23  ;;  %v6048_v59 = vld [vmem:[#allocation8 + $0xc0] ss:$16 sps:$4 sm:$0xff]   ;;  %v6059_v45 = vld [vmem:[#allocation8 + $0x2a4] ss:$16 sps:$4 sm:$0xff]  }
 0x24b   : > { %1535 = vmatpush2.msra.mxu1 %v1339_v2  ;;  %1536 = vmatprep.mubr.f32.mxu1 %v11375_v23  ;;  %v6056_v2 = vld [vmem:[#allocation8 + $0xa4] ss:$16 sps:$4 sm:$0xff]  }
 0x24c   : > { %1466 = vmatmul.mubr.f32.vlgmr.msra.gmra.mxu0 %v11375_v23  ;;  %1537 = vmatmul.mubr.f32.vlgmr.msra.gmra.mxu1 %v11375_v23  ;;  %v6057_v23 = vld [vmem:[#allocation8 + $0x2a0] ss:$16 sps:$4 sm:$0xff]  }
 0x24d   : > { %2893 = vmatprep.subr.bf16.mxu0 %v6044_v31  ;;  %3086 = vmatprep.subr.bf16.mxu1 %v6047_v29  ;;  %v6065_v31 = vld [vmem:[#allocation8 + $0x284] ss:$16 sps:$4 sm:$0xff]   ;;  %v6060_v29 = vld [vmem:[#allocation8 + $0x80] ss:$16 sps:$4 sm:$0xff]  }
 0x24e   : > { %2894 = vmatpush1.bf16.msra.mxu0 %v6042_v14  ;;  %3087 = vmatpush1.bf16.msra.mxu1 %v6045_v38  ;;  %v6068_v14 = vld [vmem:[#allocation8 + $0x64] ss:$16 sps:$4 sm:$0xff]   ;;  %v6066_v38 = vld [vmem:[#allocation8 + $0x60] ss:$16 sps:$4 sm:$0xff]  }
 0x24f   : > { %2895 = vmatprep.subr.bf16.mxu0 %v6050_v55  ;;  %3088 = vmatprep.subr.bf16.mxu1 %v6053_v57  ;;  %v6071_v57 = vld [vmem:[#allocation8 + $0x264] ss:$16 sps:$4 sm:$0xff]   ;;  %v6069_v55 = vld [vmem:[#allocation8 + $0x260] ss:$16 sps:$4 sm:$0xff]  }
 0x252   : > { %2896 = vmatpush1.bf16.msra.mxu0 %v6048_v59  ;;  %3089 = vmatpush1.bf16.msra.mxu1 %v6051_v34  ;;  %v6074_v59 = vld [vmem:[#allocation8 + $0x44] ss:$16 sps:$4 sm:$0xff]  }
 0x253   : > { %2897 = vmatprep.subr.bf16.mxu0 %v6056_v2  ;;  %3090 = vmatprep.subr.bf16.mxu1 %v6059_v45  ;;  %v6077_v34 = vld [vmem:[#allocation8 + $0x244] ss:$16 sps:$4 sm:$0xff]   ;;  %v6078_v45 = vld [vmem:[#allocation8 + $0x20] ss:$16 sps:$4 sm:$0xff]  }
 0x254   : > { %v6083_v2 = vld [vmem:[#allocation8 + $0x224] ss:$16 sps:$4 sm:$0xff]  }
 0x256   : > { %2898 = vmatpush1.bf16.msra.mxu0 %v6054_v62  ;;  %3091 = vmatpush1.bf16.msra.mxu1 %v6057_v23  ;;  %v6072_v62 = vld [vmem:[#allocation8 + $0x40] ss:$16 sps:$4 sm:$0xff]  }
 0x257   : > { %2899 = vmatprep.subr.bf16.mxu0 %v6062_v1  ;;  %3092 = vmatprep.subr.bf16.mxu1 %v6065_v31  ;;  %v6075_v23 = vld [vmem:[#allocation8 + $0x240] ss:$16 sps:$4 sm:$0xff]   ;;  %v6080_v1 = vld [vmem:[#allocation8 + $0x24] ss:$16 sps:$4 sm:$0xff]  }
 0x258   : > { %v6086_v31 = vld [vmem:[#allocation8 + $0x4] ss:$16 sps:$4 sm:$0xff]  }
 0x25a   : > { %2900 = vmatpush1.bf16.msra.mxu0 %v6060_v29  ;;  %3093 = vmatpush1.bf16.msra.mxu1 %v6063_v4  ;;  %v6081_v4 = vld [vmem:[#allocation8 + $0x220] ss:$16 sps:$4 sm:$0xff]   ;;  %v6089_v29 = vld [vmem:[#allocation8 + $0x204] ss:$16 sps:$4 sm:$0xff]  }
 0x25b   : > { %2901 = vmatprep.subr.bf16.mxu0 %v6068_v14  ;;  %3094 = vmatprep.subr.bf16.mxu1 %v6071_v57  ;;  %v6084_v14 = vld [vmem:[#allocation8] ss:$16 sps:$4 sm:$0xff]  }
 0x25c   : > { %v6087_v57 = vld [vmem:[#allocation8 + $0x200] ss:$16 sps:$4 sm:$0xff]  }
 0x25e   : > { %2902 = vmatpush1.bf16.msra.mxu0 %v6066_v38  ;;  %3095 = vmatpush1.bf16.msra.mxu1 %v6069_v55  ;;  %v6092_v38 = vld [vmem:[#allocation8 + $0x1e4] ss:$16 sps:$4 sm:$0xff]  }
 0x25f   : > { %2903 = vmatprep.subr.bf16.mxu0 %v6074_v59  ;;  %3096 = vmatprep.subr.bf16.mxu1 %v6077_v34  ;;  %v6095_v55 = vld [vmem:[#allocation8 + $0x3e4] ss:$16 sps:$4 sm:$0xff]   ;;  %v6090_v59 = vld [vmem:[#allocation8 + $0x1e0] ss:$16 sps:$4 sm:$0xff]  }
 0x260   : > { %v6093_v34 = vld [vmem:[#allocation8 + $0x3e0] ss:$16 sps:$4 sm:$0xff]  }
 0x262   : > { %2904 = vmatpush1.bf16.msra.mxu0 %v6072_v62  ;;  %3097 = vmatpush1.bf16.msra.mxu1 %v6075_v23  ;;  %v6098_v62 = vld [vmem:[#allocation8 + $0x1c4] ss:$16 sps:$4 sm:$0xff]  }
 0x263   : > { %2905 = vmatprep.subr.bf16.mxu0 %v6080_v1  ;;  %3098 = vmatprep.subr.bf16.mxu1 %v6083_v2  ;;  %v6101_v23 = vld [vmem:[#allocation8 + $0x3c4] ss:$16 sps:$4 sm:$0xff]   ;;  %v6096_v1 = vld [vmem:[#allocation8 + $0x1c0] ss:$16 sps:$4 sm:$0xff]  }
 0x264   : > { %v6099_v2 = vld [vmem:[#allocation8 + $0x3c0] ss:$16 sps:$4 sm:$0xff]  }
 0x266   : > { %2906 = vmatpush1.bf16.msra.mxu0 %v6078_v45  ;;  %3099 = vmatpush1.bf16.msra.mxu1 %v6081_v4  ;;  %v6104_v45 = vld [vmem:[#allocation8 + $0x1a4] ss:$16 sps:$4 sm:$0xff]  }
 0x267   : > { %2907 = vmatprep.subr.bf16.mxu0 %v6086_v31  ;;  %3100 = vmatprep.subr.bf16.mxu1 %v6089_v29  ;;  %v6107_v4 = vld [vmem:[#allocation8 + $0x3a4] ss:$16 sps:$4 sm:$0xff]   ;;  %v6102_v31 = vld [vmem:[#allocation8 + $0x1a0] ss:$16 sps:$4 sm:$0xff]  }
 0x268   : > { %v6105_v29 = vld [vmem:[#allocation8 + $0x3a0] ss:$16 sps:$4 sm:$0xff]  }
 0x26a   : > { %2908 = vmatpush1.bf16.msra.mxu0 %v6084_v14  ;;  %3101 = vmatpush1.bf16.msra.mxu1 %v6087_v57  ;;  %v6110_v14 = vld [vmem:[#allocation8 + $0x184] ss:$16 sps:$4 sm:$0xff]  }
 0x26b   : > { %2909 = vmatprep.subr.bf16.mxu0 %v6092_v38  ;;  %3102 = vmatprep.subr.bf16.mxu1 %v6095_v55  ;;  %v6113_v57 = vld [vmem:[#allocation8 + $0x384] ss:$16 sps:$4 sm:$0xff]   ;;  %v6108_v38 = vld [vmem:[#allocation8 + $0x180] ss:$16 sps:$4 sm:$0xff]  }
 0x26c   : > { %v6111_v55 = vld [vmem:[#allocation8 + $0x380] ss:$16 sps:$4 sm:$0xff]  }
 0x26e   : > { %2910 = vmatpush2.bf16.msra.mxu0 %v6090_v59  ;;  %3103 = vmatpush2.bf16.msra.mxu1 %v6093_v34  ;;  %v6116_v59 = vld [vmem:[#allocation8 + $0x164] ss:$16 sps:$4 sm:$0xff]  }
 0x26f   : > { %2911 = vmatprep.subr.bf16.mxu0 %v6098_v62  ;;  %3104 = vmatprep.subr.bf16.mxu1 %v6101_v23  ;;  %v6119_v34 = vld [vmem:[#allocation8 + $0x364] ss:$16 sps:$4 sm:$0xff]   ;;  %v6114_v62 = vld [vmem:[#allocation8 + $0x160] ss:$16 sps:$4 sm:$0xff]  }
 0x270   : > { %v6117_v23 = vld [vmem:[#allocation8 + $0x360] ss:$16 sps:$4 sm:$0xff]  }
 0x272   : > { %2912 = vmatpush2.bf16.msra.mxu0 %v6096_v1  ;;  %3105 = vmatpush2.bf16.msra.mxu1 %v6099_v2  ;;  %v6122_v1 = vld [vmem:[#allocation8 + $0x144] ss:$16 sps:$4 sm:$0xff]  }
 0x273   : > { %2913 = vmatprep.subr.bf16.mxu0 %v6104_v45  ;;  %3106 = vmatprep.subr.bf16.mxu1 %v6107_v4  ;;  %v6125_v2 = vld [vmem:[#allocation8 + $0x344] ss:$16 sps:$4 sm:$0xff]   ;;  %v6120_v45 = vld [vmem:[#allocation8 + $0x140] ss:$16 sps:$4 sm:$0xff]  }
 0x274   : > { %v6123_v4 = vld [vmem:[#allocation8 + $0x340] ss:$16 sps:$4 sm:$0xff]  }
 0x276   : > { %2914 = vmatpush2.bf16.msra.mxu0 %v6102_v31  ;;  %3107 = vmatpush2.bf16.msra.mxu1 %v6105_v29  ;;  %v6128_v31 = vld [vmem:[#allocation8 + $0x124] ss:$16 sps:$4 sm:$0xff]  }
 0x277   : > { %2915 = vmatprep.subr.bf16.mxu0 %v6110_v14  ;;  %3108 = vmatprep.subr.bf16.mxu1 %v6113_v57  ;;  %v6131_v29 = vld [vmem:[#allocation8 + $0x324] ss:$16 sps:$4 sm:$0xff]   ;;  %v6126_v14 = vld [vmem:[#allocation8 + $0x120] ss:$16 sps:$4 sm:$0xff]  }
 0x278   : > { %v6129_v57 = vld [vmem:[#allocation8 + $0x320] ss:$16 sps:$4 sm:$0xff]  }
 0x27a   : > { %2916 = vmatpush2.bf16.msra.mxu0 %v6108_v38  ;;  %3109 = vmatpush2.bf16.msra.mxu1 %v6111_v55  ;;  %v6134_v38 = vld [vmem:[#allocation8 + $0x104] ss:$16 sps:$4 sm:$0xff]  }
 0x27b   : > { %2917 = vmatprep.subr.bf16.mxu0 %v6116_v59  ;;  %3110 = vmatprep.subr.bf16.mxu1 %v6119_v34  ;;  %v6137_v55 = vld [vmem:[#allocation8 + $0x304] ss:$16 sps:$4 sm:$0xff]   ;;  %v6132_v59 = vld [vmem:[#allocation8 + $0x100] ss:$16 sps:$4 sm:$0xff]  }
 0x27c   : > { %v6135_v34 = vld [vmem:[#allocation8 + $0x300] ss:$16 sps:$4 sm:$0xff]  }
 0x27e   : > { %2918 = vmatpush2.bf16.msra.mxu0 %v6114_v62  ;;  %3111 = vmatpush2.bf16.msra.mxu1 %v6117_v23 }
 0x27f   : > { %2919 = vmatprep.subr.bf16.mxu0 %v6122_v1  ;;  %3112 = vmatprep.subr.bf16.mxu1 %v6125_v2 }
 0x282   : > { %2920 = vmatpush2.bf16.msra.mxu0 %v6120_v45  ;;  %3113 = vmatpush2.bf16.msra.mxu1 %v6123_v4 }
 0x283   : > { %2921 = vmatprep.subr.bf16.mxu0 %v6128_v31  ;;  %3114 = vmatprep.subr.bf16.mxu1 %v6131_v29 }
 0x286   : > { %2922 = vmatpush2.bf16.msra.mxu0 %v6126_v14  ;;  %3115 = vmatpush2.bf16.msra.mxu1 %v6129_v57 }
 0x287   : > { %2923 = vmatprep.subr.bf16.mxu0 %v6134_v38  ;;  %3116 = vmatprep.subr.bf16.mxu1 %v6137_v55 }
 0x28a   : > { %2924 = vmatpush2.bf16.msra.mxu0 %v6132_v59  ;;  %3117 = vmatpush2.bf16.msra.mxu1 %v6135_v34 }
 0x28b   : > { %3279 = vmatprep.subr.bf16.mxu0 %v6140_v39  ;;  %3472 = vmatprep.subr.bf16.mxu1 %v6143_v44 }
 0x2ca   : > { %v1197_v62 = vpop.f32.mrf.mxu0  ;;  %v1268_v23 = vpop.f32.mrf.mxu1 }
 0x2cb   : > { %v1543_v14 = vmul.f32 0.00390625, %v1197_v62  ;;  %v1545_v18 = vmul.f32 0.00390625, %v1268_v23 }
 0x2cc   : > { %v1199_v1 = vpop.f32.mrf.mxu0  ;;  %v1270_v2 = vpop.f32.mrf.mxu1 }
 0x2cd   : > { %v1544_v12 = vmul.f32 0.00390625, %v1199_v1  ;;  %v1546_v29 = vmul.f32 0.00390625, %v1270_v2  ;;  %v1551_v59 = vmul.f32 %v1543_v14, %v1543_v14  ;;  %v1553_v41 = vmul.f32 %v1545_v18, %v1545_v18 }
 0x2cf   : > { %v1552_v48 = vmul.f32 %v1544_v12, %v1544_v12  ;;  %v1554_v38 = vmul.f32 %v1546_v29, %v1546_v29 }
 0x30c   : > { %v1467_v45 = vpop.f32.mrf.mxu0  ;;  %v1538_v4 = vpop.f32.mrf.mxu1 }
 0x30d   : > { %v1547_v52 = vmul.f32 0.00390625, %v1467_v45  ;;  %v1549_v55 = vmul.f32 0.00390625, %v1538_v4 }
 0x30e   : > { %v1469_v9 = vpop.f32.mrf.mxu0  ;;  %v1540_v31 = vpop.f32.mrf.mxu1 }
 0x30f   : > { %v1548_v57 = vmul.f32 0.00390625, %v1469_v9  ;;  %v1550_v21 = vmul.f32 0.00390625, %v1540_v31  ;;  %v1555_v15 = vsub.f32 %v1547_v52, %v1551_v59  ;;  %v1557_v33 = vsub.f32 %v1549_v55, %v1553_v41 }
 0x310   : > { %v1580_v52 = vlaneseq }
 0x311   : > { %v1556_v34 = vsub.f32 %v1548_v57, %v1552_v48  ;;  %v1558_v32 = vsub.f32 %v1550_v21, %v1554_v38  ;;  %v1559_v2 = vmax.f32 %v1555_v15, 0.0  ;;  %v1561_v9 = vmax.f32 %v1557_v33, 0.0 }
 0x312   : > { %v6530_v48 = vmov 1966171168   ;;  %v1581_v57 = vshrl.u32 %v1580_v52, 7 }
 0x313   : > { %v1560_v3 = vmax.f32 %v1556_v34, 0.0  ;;  %v1562_v1 = vmax.f32 %v1558_v32, 0.0  ;;  %v1563_v31 = vadd.f32 1e-05, %v1559_v2  ;;  %v1565_v45 = vadd.f32 1e-05, %v1561_v9 }
 0x314   : > { %v1578_v21 = vunpack.c.l.s4 %v6530_v48  ;;  %v7475_v2 = vsub.s32 0, %v1581_v57  ;;  %v7477_v9 = vsub.s32 1, %v1581_v57 }
 0x315   : > { %v1564_v62 = vadd.f32 1e-05, %v1560_v3  ;;  %v1566_v23 = vadd.f32 1e-05, %v1562_v1  ;;  %v1129_v1 = vld [vmem:[#allocation7] sm:$0xf] }
 0x316   : > { %v1579_v4 = vunpack.c.0.s8 %v1578_v21  ;;  %11377 = vst [vmem:[#allocation24_spill] sm:$0xff] %v7475_v2  ;;  %11378 = vst [vmem:[#allocation21_spill] sm:$0xff] %v7477_v9 }
 0x317   : > { %6266 = vrsqrt.f32 %v1564_v62  ;;  %v7479_v62 = vsub.s32 2, %v1581_v57 }
 0x318   : > { %6268 = vrsqrt.f32 %v1566_v23  ;;  %v7470_v15 = vsub.s32 %v1579_v4, %v1581_v57  ;;  %v7481_v23 = vsub.s32 3, %v1581_v57 }
 0x319   : > { %6270 = vrsqrt.f32 %v1563_v31  ;;  %11379 = vst [vmem:[#allocation22_spill] sm:$0xff] %v7479_v62 }
 0x31a   : > { %6272 = vrsqrt.f32 %v1565_v45  ;;  %11376 = vst [vmem:[#allocation23_spill] sm:$0xff] %v7470_v15  ;;  %11380 = vst [vmem:[#allocation19_spill] sm:$0xff] %v7481_v23 }
 0x324   : > { %v6267_v41 = vpop.eup %6266 }
 0x325   : > { %v6269_v38 = vpop.eup %6268 }
 0x326   : > { %v6271_v32 = vpop.eup %6270 }
 0x327   : > { %v6273_v39 = vpop.eup %6272  ;;  %v1575_v44 = vcombine.low %v6271_v32, %v6267_v41 }
 0x328   : > { %v1576_v3 = vcombine.low %v6273_v39, %v6269_v38 }
 0x329   : > { %v1583_v33 = vrot.slane %v1575_v44, %v7470_v15 }
 0x32a   : > { %v1590_v55 = vrot.slane %v1576_v3, %v7470_v15 }
 0x32c   : > { %v1591_v59 = vcombine.low %v1583_v33, %v1590_v55 }
 0x32e   : > { %v1598_v34 = vrot.slane %v1591_v59, %v7470_v15  ;;  %v11385_v59 = vld [vmem:[#allocation25_spill] sm:$0xff] }
 0x330   : > { %v1600_v31 = vmul.f32 %v1598_v34, %v1129_v1  ;;  %v11386_v34 = vld [vmem:[#allocation26_spill] sm:$0xff]  ;;  %v11387_v1 = vld [vmem:[#allocation27_spill] sm:$0xff] }
 0x332   : > { %v7484_v45 = vrot.slane %v1600_v31, %v7475_v2  ;;  %v7487_v48 = vrot.slane %v1600_v31, %v7477_v9  ;;  %v7490_v21 = vrot.slane %v1600_v31, %v7479_v62  ;;  %v7493_v52 = vrot.slane %v1600_v31, %v7481_v23  ;;  %v11388_v31 = vld [vmem:[#allocation29_spill] sm:$0xff] }
 0x334   : > { %11381 = vst [vmem:[#allocation20_spill] sm:$0xff] %v7484_v45  ;;  %11382 = vst [vmem:[#allocation95_spill] sm:$0xff] %v7487_v48  ;;  %v1622_v41 = vmul.f32 %v7484_v45, %v1543_v14  ;;  %v1623_v4 = vmul.f32 %v7487_v48, %v1544_v12  ;;  %v1624_v57 = vmul.f32 %v7490_v21, %v1545_v18 }
 0x335   : > { %11383 = vst [vmem:[#allocation96_spill] sm:$0xff] %v7490_v21  ;;  %11384 = vst [vmem:[#allocation91_spill] sm:$0xff] %v7493_v52  ;;  %v1625_v38 = vmul.f32 %v7493_v52, %v1546_v29  ;;  %v7503_v33 = vmul.f32 %v7484_v45, %v11357_v17  ;;  %v7507_v55 = vmul.f32 %v7487_v48, %v11355_v37 }
 0x336   : > { %v1630_v32 = vcombine.low %v1622_v41, %v1623_v4  ;;  %v7511_v12 = vmul.f32 %v7490_v21, %v11358_v50  ;;  %v7515_v18 = vmul.f32 %v7493_v52, %v11356_v46  ;;  %v7519_v14 = vmul.f32 %v7484_v45, %v11353_v30  ;;  %v11389_v41 = vld [vmem:[#allocation28_spill] sm:$0xff] }
 0x337   : > { %v1631_v39 = vcombine.low %v1624_v57, %v1625_v38  ;;  %v7523_v17 = vmul.f32 %v7487_v48, %v11385_v59  ;;  %v7527_v37 = vmul.f32 %v7490_v21, %v11354_v42  ;;  %v7531_v50 = vmul.f32 %v7493_v52, %v11386_v34  ;;  %v11391_v57 = vld [vmem:[#allocation30_spill] sm:$0xff]  ;;  %v11392_v38 = vld [vmem:[#allocation31_spill] sm:$0xff] }
 0x338   : > { %v1638_v44 = vrot.slane %v1630_v32, %v7470_v15  ;;  %v7535_v46 = vmul.f32 %v7484_v45, %v11387_v1  ;;  %v7539_v30 = vmul.f32 %v7487_v48, %v11388_v31  ;;  %v7543_v4 = vmul.f32 %v7490_v21, %v11389_v41  ;;  %v11397_v34 = vld [vmem:[#allocation34_spill] sm:$0xff]  ;;  %v11399_v31 = vld [vmem:[#allocation35_spill] sm:$0xff] }
 0x339   : > { %v1645_v3 = vrot.slane %v1631_v39, %v7470_v15  ;;  %v7547_v42 = vmul.f32 %v7493_v52, %v11391_v57  ;;  %v7551_v32 = vmul.f32 %v7484_v45, %v11392_v38  ;;  %v11394_v39 = vld [vmem:[#allocation33_spill] sm:$0xff]  ;;  %v7563_v1 = vmul.f32 %v7493_v52, %v11397_v34  ;;  %v11405_v34 = vld [vmem:[#allocation38_spill] sm:$0xff] }
 0x33a   : > { %11390 = vst [vmem:[#allocation92_spill] sm:$0xff] %v7543_v4  ;;  %v7567_v41 = vmul.f32 %v7484_v45, %v11399_v31  ;;  %v11401_v57 = vld [vmem:[#allocation37_spill] sm:$0xff]  ;;  %v11407_v31 = vld [vmem:[#allocation39_spill] sm:$0xff] }
 0x33b   : > { %v1646_v29 = vcombine.low %v1638_v44, %v1645_v3  ;;  %11393 = vst [vmem:[#allocation87_spill] sm:$0xff] %v7551_v32  ;;  %v7555_v44 = vmul.f32 %v7487_v48, %v11394_v39  ;;  %v11395_v3 = vld [vmem:[#allocation32_spill] sm:$0xff]  ;;  %11398 = vst [vmem:[#allocation83_spill] sm:$0xff] %v7563_v1  ;;  %v7571_v38 = vmul.f32 %v7487_v48, %v11401_v57  ;;  %v11409_v57 = vld [vmem:[#allocation41_spill] sm:$0xff] }
 0x33c   : > { %v7559_v59 = vmul.f32 %v7490_v21, %v11395_v3  ;;  %11400 = vst [vmem:[#allocation84_spill] sm:$0xff] %v7567_v41  ;;  %v11403_v32 = vld [vmem:[#allocation36_spill] sm:$0xff]  ;;  %v1130_v3 = vld [vmem:[%s10716_s3] sm:$0xf]  ;;  %v7587_v41 = vmul.f32 %v7484_v45, %v11407_v31  ;;  %v11415_v1 = vld [vmem:[#allocation43_spill] sm:$0xff] }
 0x33d   : > { %11402 = vst [vmem:[#allocation25_spill] sm:$0xff] %v7571_v38  ;;  %v7575_v39 = vmul.f32 %v7490_v21, %v11403_v32  ;;  %v1653_v4 = vrot.slane %v1646_v29, %v7470_v15  ;;  %v7591_v38 = vmul.f32 %v7487_v48, %v11409_v57  ;;  %v11411_v32 = vld [vmem:[#allocation40_spill] sm:$0xff]  ;;  %v11413_v29 = vld [vmem:[#allocation42_spill] sm:$0xff] }
 0x33e   : > { %11396 = vst [vmem:[#allocation88_spill] sm:$0xff] %v7559_v59  ;;  %v7583_v59 = vmul.f32 %v7493_v52, %v11405_v34  ;;  %11408 = vst [vmem:[#allocation29_spill] sm:$0xff] %v7587_v41  ;;  %v7599_v15 = vmul.f32 %v7493_v52, %v11413_v29  ;;  %v7603_v34 = vmul.f32 %v7484_v45, %v11415_v1  ;;  %v11419_v41 = vld [vmem:[#allocation44_spill] sm:$0xff] }
 0x33f   : > { %11404 = vst [vmem:[#allocation26_spill] sm:$0xff] %v7575_v39  ;;  %11410 = vst [vmem:[#allocation28_spill] sm:$0xff] %v7591_v38  ;;  %v7595_v39 = vmul.f32 %v7490_v21, %v11411_v32  ;;  %v7611_v57 = vmul.f32 %v7490_v21, %v11419_v41  ;;  %v11421_v38 = vld [vmem:[#allocation46_spill] sm:$0xff] }
 0x340   : > { %11406 = vst [vmem:[#allocation27_spill] sm:$0xff] %v7583_v59  ;;  %11414 = vst [vmem:[#allocation31_spill] sm:$0xff] %v7599_v15  ;;  %v11417_v59 = vld [vmem:[#allocation45_spill] sm:$0xff]  ;;  %v7615_v32 = vmul.f32 %v7493_v52, %v11421_v38 }
 0x341   : > { %11412 = vst [vmem:[#allocation30_spill] sm:$0xff] %v7595_v39  ;;  %11416 = vst [vmem:[#allocation33_spill] sm:$0xff] %v7603_v34  ;;  %v7607_v31 = vmul.f32 %v7487_v48, %v11417_v59  ;;  %v11423_v39 = vld [vmem:[#allocation47_spill] sm:$0xff]  ;;  %v11425_v15 = vld [vmem:[#allocation49_spill] sm:$0xff] }
 0x342   : > { %11420 = vst [vmem:[#allocation34_spill] sm:$0xff] %v7611_v57  ;;  %11422 = vst [vmem:[#allocation35_spill] sm:$0xff] %v7615_v32  ;;  %v7619_v29 = vmul.f32 %v7484_v45, %v11423_v39  ;;  %v7623_v1 = vmul.f32 %v7487_v48, %v11425_v15  ;;  %v11427_v34 = vld [vmem:[#allocation48_spill] sm:$0xff]  ;;  %v11431_v57 = vld [vmem:[#allocation51_spill] sm:$0xff] }
 0x343   : > { %11418 = vst [vmem:[#allocation32_spill] sm:$0xff] %v7607_v31  ;;  %v7627_v59 = vmul.f32 %v7490_v21, %v11427_v34  ;;  %v11429_v31 = vld [vmem:[#allocation50_spill] sm:$0xff]  ;;  %v7635_v38 = vmul.f32 %v7484_v45, %v11431_v57  ;;  %v11433_v32 = vld [vmem:[#allocation53_spill] sm:$0xff]  ;;  %v11434_v15 = vld [vmem:[#allocation52_spill] sm:$0xff] }
 0x344   : > { %11424 = vst [vmem:[#allocation37_spill] sm:$0xff] %v7619_v29  ;;  %11426 = vst [vmem:[#allocation36_spill] sm:$0xff] %v7623_v1  ;;  %v7631_v41 = vmul.f32 %v7493_v52, %v11429_v31  ;;  %v7639_v39 = vmul.f32 %v7487_v48, %v11433_v32  ;;  %v7641_v29 = vsub.f32 %v1130_v3, %v1653_v4  ;;  %v11436_v34 = vld [vmem:[#allocation54_spill] sm:$0xff]  ;;  %v11437_v31 = vld [vmem:[#allocation55_spill] sm:$0xff] }
 0x345   : > { %11428 = vst [vmem:[#allocation38_spill] sm:$0xff] %v7627_v59  ;;  %11432 = vst [vmem:[#allocation41_spill] sm:$0xff] %v7635_v38  ;;  %v7645_v1 = vmul.f32 %v7490_v21, %v11434_v15  ;;  %v7649_v59 = vmul.f32 %v7493_v52, %v11436_v34  ;;  %v11439_v57 = vld [vmem:[#allocation57_spill] sm:$0xff]  ;;  %v11440_v32 = vld [vmem:[#allocation56_spill] sm:$0xff] }
 0x346   : > { %11430 = vst [vmem:[#allocation39_spill] sm:$0xff] %v7631_v41  ;;  %v7653_v41 = vmul.f32 %v7484_v45, %v11437_v31  ;;  %v7657_v38 = vmul.f32 %v7487_v48, %v11439_v57  ;;  %v7661_v4 = vmul.f32 %v7490_v21, %v11440_v32  ;;  %v11441_v3 = vld [vmem:[#allocation58_spill] sm:$0xff]  ;;  %v1720_v31 = vmul.f32 %v7484_v45, %v11373_v26 }
 0x347   : > { %11435 = vst [vmem:[#allocation40_spill] sm:$0xff] %v7645_v1  ;;  %v7665_v15 = vmul.f32 %v7493_v52, %v11441_v3  ;;  %v11443_v1 = vld [vmem:[#allocation59_spill] sm:$0xff]  ;;  %v1724_v57 = vmul.f32 %v7484_v45, %v11369_v7  ;;  %v1726_v32 = vmul.f32 %v7490_v21, %v11370_v47  ;;  %v1728_v3 = vmul.f32 %v7484_v45, %v11365_v49 }
 0x348   : > { %11438 = vst [vmem:[#allocation42_spill] sm:$0xff] %v7653_v41  ;;  %v7669_v34 = vmul.f32 %v7484_v45, %v11443_v1  ;;  %v1722_v41 = vmul.f32 %v7490_v21, %v11374_v53  ;;  %v1732_v1 = vmul.f32 %v7484_v45, %v11361_v40  ;;  %v7687_v26 = vrot.slane %v7641_v29, %v7475_v2 }
 0x349   : > { %11442 = vst [vmem:[#allocation43_spill] sm:$0xff] %v7665_v15  ;;  %v1730_v15 = vmul.f32 %v7490_v21, %v11366_v24  ;;  %v7691_v53 = vrot.slane %v7641_v29, %v7479_v62  ;;  %v1734_v7 = vmul.f32 %v7490_v21, %v11362_v51  ;;  %v1736_v49 = vmul.f32 %v7484_v45, %v7018_v25 }
 0x34a   : > { %v1738_v24 = vmul.f32 %v7490_v21, %v7020_v22  ;;  %v1740_v40 = vmul.f32 %v7484_v45, %v7034_v16  ;;  %v1742_v47 = vmul.f32 %v7490_v21, %v7036_v13  ;;  %v1744_v2 = vmul.f32 %v7484_v45, %v7050_v8 }
 0x34b   : > { %v1746_v62 = vmul.f32 %v7490_v21, %v7052_v5  ;;  %v1748_v51 = vmul.f32 %v7484_v45, %v7066_v0  ;;  %v1750_v25 = vmul.f32 %v7490_v21, %v7068_v61  ;;  %v1752_v22 = vmul.f32 %v7484_v45, %v7080_v56 }
 0x34c   : > { %v1754_v16 = vmul.f32 %v7490_v21, %v7082_v63  ;;  %v1756_v13 = vmul.f32 %v7484_v45, %v7088_v54  ;;  %v1758_v8 = vmul.f32 %v7490_v21, %v7090_v60  ;;  %v1760_v5 = vmul.f32 %v7484_v45, %v7096_v6 }
 0x34d   : > { %v7722_v0 = vadd.f32 %v7687_v26, %v1720_v31  ;;  %v7725_v61 = vadd.f32 %v7691_v53, %v1722_v41  ;;  %v1762_v56 = vmul.f32 %v7490_v21, %v7098_v58  ;;  %v7730_v63 = vadd.f32 %v7687_v26, %v1724_v57 }
 0x34e   : > { %v7733_v54 = vadd.f32 %v7691_v53, %v1726_v32  ;;  %v7736_v60 = vadd.f32 %v7687_v26, %v1728_v3  ;;  %v1764_v6 = vmul.f32 %v7484_v45, %v7104_v10  ;;  %v7741_v31 = vadd.f32 %v7691_v53, %v1730_v15 }
 0x34f   : > { %v7744_v41 = vadd.f32 %v7687_v26, %v1732_v1  ;;  %v7747_v58 = vadd.f32 %v7691_v53, %v1734_v7  ;;  %v1766_v57 = vmul.f32 %v7490_v21, %v7106_v11  ;;  %v1768_v32 = vmul.f32 %v7484_v45, %v7112_v19 }
 0x350   : > { %11444 = vst [vmem:[#allocation45_spill] sm:$0xff] %v7736_v60  ;;  %11445 = vst [vmem:[#allocation44_spill] sm:$0xff] %v7741_v31  ;;  %v7754_v3 = vadd.f32 %v7687_v26, %v1736_v49  ;;  %v7757_v10 = vadd.f32 %v7691_v53, %v1738_v24  ;;  %v1770_v15 = vmul.f32 %v7490_v21, %v7114_v20 }
 0x351   : > { %11446 = vst [vmem:[#allocation46_spill] sm:$0xff] %v7744_v41  ;;  %11447 = vst [vmem:[#allocation47_spill] sm:$0xff] %v7747_v58  ;;  %v7762_v1 = vadd.f32 %v7687_v26, %v1740_v40  ;;  %v7765_v7 = vadd.f32 %v7691_v53, %v1742_v47  ;;  %v7768_v11 = vadd.f32 %v7687_v26, %v1744_v2  ;;  %v6153_v41 = vld [vmem:[#allocation8 + $0x2a8] ss:$16 sps:$4 sm:$0xff]  }
 0x352   : > { %11448 = vst [vmem:[#allocation49_spill] sm:$0xff] %v7754_v3  ;;  %11449 = vst [vmem:[#allocation48_spill] sm:$0xff] %v7757_v10  ;;  %v1772_v19 = vmul.f32 %v7484_v45, %v7120_v27  ;;  %v7773_v49 = vadd.f32 %v7691_v53, %v1746_v62  ;;  %v7776_v24 = vadd.f32 %v7687_v26, %v1748_v51 }
 0x353   : > { %11450 = vst [vmem:[#allocation50_spill] sm:$0xff] %v7762_v1  ;;  %11451 = vst [vmem:[#allocation51_spill] sm:$0xff] %v7765_v7  ;;  %v7779_v20 = vadd.f32 %v7691_v53, %v1750_v25  ;;  %v1774_v40 = vmul.f32 %v7490_v21, %v7122_v28  ;;  %v1776_v47 = vmul.f32 %v7484_v45, %v7128_v35 }
 0x354   : > { %v7786_v2 = vadd.f32 %v7687_v26, %v1752_v22  ;;  %v7789_v27 = vadd.f32 %v7691_v53, %v1754_v16  ;;  %v1778_v62 = vmul.f32 %v7490_v21, %v7130_v36  ;;  %v7794_v51 = vadd.f32 %v7687_v26, %v1756_v13  ;;  %v11458_v13 = vld [vmem:[#allocation121_spill] sm:$0xff] }
 0x355   : > { %v7797_v25 = vadd.f32 %v7691_v53, %v1758_v8  ;;  %v7800_v28 = vadd.f32 %v7687_v26, %v1760_v5  ;;  %v1780_v35 = vmul.f32 %v7484_v45, %v7136_v43  ;;  %v7805_v22 = vadd.f32 %v7691_v53, %v1762_v56 }
 0x356   : > { %11452 = vst [vmem:[#allocation53_spill] sm:$0xff] %v7794_v51  ;;  %v7808_v16 = vadd.f32 %v7687_v26, %v1764_v6  ;;  %v7811_v36 = vadd.f32 %v7691_v53, %v1766_v57  ;;  %v1782_v7 = vmul.f32 %v7490_v21, %v11458_v13  ;;  %v7817_v8 = vrot.slane %v7641_v29, %v7477_v9  ;;  %v11464_v9 = vld [vmem:[#allocation61_spill] sm:$0xff] }
 0x357   : > { %11453 = vst [vmem:[#allocation52_spill] sm:$0xff] %v7797_v25  ;;  %11454 = vst [vmem:[#allocation54_spill] sm:$0xff] %v7800_v28  ;;  %v7820_v5 = vadd.f32 %v7687_v26, %v1768_v32  ;;  %v7823_v43 = vadd.f32 %v7691_v53, %v1770_v15  ;;  %v7827_v56 = vrot.slane %v7641_v29, %v7481_v23  ;;  %v11469_v23 = vld [vmem:[#allocation62_spill] sm:$0xff] }
 0x358   : > { %11455 = vst [vmem:[#allocation55_spill] sm:$0xff] %v7805_v22  ;;  %11456 = vst [vmem:[#allocation57_spill] sm:$0xff] %v7808_v16  ;;  %v7830_v6 = vadd.f32 %v7687_v26, %v1772_v19  ;;  %v7833_v57 = vadd.f32 %v7691_v53, %v1774_v40  ;;  %v7836_v13 = vadd.f32 %v7687_v26, %v1776_v47  ;;  %v11468_v19 = vld [vmem:[#allocation60_spill] sm:$0xff] }
 0x359   : > { %11457 = vst [vmem:[#allocation56_spill] sm:$0xff] %v7811_v36  ;;  %11459 = vst [vmem:[#allocation58_spill] sm:$0xff] %v7820_v5  ;;  %v7840_v32 = vmul.f32 %v7487_v48, %v11464_v9  ;;  %v7843_v15 = vadd.f32 %v7691_v53, %v1778_v62  ;;  %v7849_v29 = vadd.f32 %v7691_v53, %v1782_v7  ;;  %v11471_v62 = vld [vmem:[#allocation65_spill] sm:$0xff]  ;;  %v11478_v36 = vld [vmem:[#allocation70_spill] sm:$0xff] }
 0x35a   : > { %11460 = vst [vmem:[#allocation59_spill] sm:$0xff] %v7823_v43  ;;  %11461 = vst [vmem:[#allocation121_spill] sm:$0xff] %v7830_v6  ;;  %v7846_v43 = vadd.f32 %v7687_v26, %v1780_v35  ;;  %v7853_v40 = vmul.f32 %v7490_v21, %v11468_v19  ;;  %v7857_v47 = vmul.f32 %v7493_v52, %v11469_v23  ;;  %v11476_v6 = vld [vmem:[#allocation69_spill] sm:$0xff] }
 0x35b   : > { %11462 = vst [vmem:[#allocation124_spill] sm:$0xff] %v7833_v57  ;;  %11463 = vst [vmem:[#allocation125_spill] sm:$0xff] %v7836_v13  ;;  %v11470_v13 = vld [vmem:[#allocation63_spill] sm:$0xff]  ;;  %v1805_v7 = vadd.f32 %v7687_v26, %v7503_v33  ;;  %v1807_v35 = vadd.f32 %v7691_v53, %v7511_v12  ;;  %v1809_v19 = vadd.f32 %v7687_v26, %v7519_v14 }
 0x35c   : > { %11465 = vst [vmem:[#allocation61_spill] sm:$0xff] %v7843_v15  ;;  %11466 = vst [vmem:[#allocation126_spill] sm:$0xff] %v7846_v43  ;;  %v7861_v9 = vmul.f32 %v7484_v45, %v11470_v13  ;;  %v7865_v15 = vmul.f32 %v7487_v48, %v11471_v62  ;;  %v1811_v23 = vadd.f32 %v7691_v53, %v7527_v37  ;;  %v11473_v43 = vld [vmem:[#allocation66_spill] sm:$0xff]  ;;  %v11475_v57 = vld [vmem:[#allocation67_spill] sm:$0xff] }
 0x35d   : > { %11467 = vst [vmem:[#allocation127_spill] sm:$0xff] %v7849_v29  ;;  %v11472_v29 = vld [vmem:[#allocation64_spill] sm:$0xff]  ;;  %v7881_v62 = vmul.f32 %v7493_v52, %v11473_v43  ;;  %v1806_v33 = vadd.f32 %v7817_v8, %v7507_v55  ;;  %v1808_v12 = vadd.f32 %v7827_v56, %v7515_v18  ;;  %v7889_v14 = vmul.f32 %v7484_v45, %v11475_v57  ;;  %v11479_v18 = vld [vmem:[#allocation71_spill] sm:$0xff]  ;;  %v11480_v57 = vld [vmem:[#allocation73_spill] sm:$0xff] }
 0x35e   : > { %v7877_v13 = vmul.f32 %v7490_v21, %v11472_v29  ;;  %v7893_v37 = vmul.f32 %v7487_v48, %v11476_v6  ;;  %v11477_v29 = vld [vmem:[#allocation68_spill] sm:$0xff]  ;;  %v1814_v43 = vadd.f32 %v7817_v8, %v7539_v30  ;;  %v7903_v55 = vmul.f32 %v7493_v52, %v11478_v36 }
 0x35f   : > { %11474 = vst [vmem:[#allocation60_spill] sm:$0xff] %v7881_v62  ;;  %v7897_v5 = vmul.f32 %v7490_v21, %v11477_v29  ;;  %v7907_v16 = vmul.f32 %v7484_v45, %v11479_v18  ;;  %v7911_v10 = vmul.f32 %v7487_v48, %v11480_v57  ;;  %v1816_v6 = vadd.f32 %v7827_v56, %v7547_v42  ;;  %v11482_v45 = vld [vmem:[#allocation72_spill] sm:$0xff] }
 0x360   : > { %v1933_v29 = vmax.f32 %v1805_v7, 0.0  ;;  %v1935_v1 = vmax.f32 %v1807_v35, 0.0  ;;  %v1937_v3 = vmax.f32 %v1809_v19, 0.0  ;;  %v1939_v22 = vmax.f32 %v1811_v23, 0.0 }
 0x361   : > { %11481 = vst [vmem:[#allocation62_spill] sm:$0xff] %v7911_v10  ;;  %v1810_v30 = vadd.f32 %v7817_v8, %v7523_v17  ;;  %v1934_v36 = vmax.f32 %v1806_v33, 0.0  ;;  %v1812_v28 = vadd.f32 %v7827_v56, %v7531_v50  ;;  %v1936_v18 = vmax.f32 %v1808_v12, 0.0  ;;  %v11483_v17 = vld [vmem:[#allocation83_spill] sm:$0xff]  ;;  %v11484_v50 = vld [vmem:[#allocation92_spill] sm:$0xff] }
 0x362   : > { %v7921_v25 = vmul.f32 %v7490_v21, %v11482_v45  ;;  %v7925_v57 = vadd.f32 %v7687_v26, %v7535_v46  ;;  %v1818_v42 = vadd.f32 %v7817_v8, %v7555_v44  ;;  %v1942_v7 = vmax.f32 %v1814_v43, 0.0  ;;  %v11487_v46 = vld [vmem:[#allocation87_spill] sm:$0xff]  ;;  %v11490_v43 = vld [vmem:[#allocation88_spill] sm:$0xff] }
 0x363   : > { %v1938_v35 = vmax.f32 %v1810_v30, 0.0  ;;  %v1940_v19 = vmax.f32 %v1812_v28, 0.0  ;;  %v1820_v23 = vadd.f32 %v7827_v56, %v11483_v17  ;;  %v1944_v33 = vmax.f32 %v1816_v6, 0.0  ;;  %v11491_v6 = vld [vmem:[#allocation25_spill] sm:$0xff] }
 0x364   : > { %v1815_v12 = vadd.f32 %v7691_v53, %v11484_v50  ;;  %v7933_v10 = vpack.c.bf16 %v1937_v3, %v1933_v29  ;;  %v7935_v45 = vpack.c.bf16 %v1939_v22, %v1935_v1  ;;  %v1946_v21 = vmax.f32 %v1818_v42, 0.0  ;;  %v11492_v50 = vld [vmem:[#allocation27_spill] sm:$0xff] }
 0x365   : > { %v1817_v51 = vadd.f32 %v7687_v26, %v11487_v46  ;;  %v7939_v58 = vpack.c.bf16 %v1938_v35, %v1934_v36  ;;  %v7941_v44 = vpack.c.bf16 %v1940_v19, %v1936_v18  ;;  %v1948_v28 = vmax.f32 %v1820_v23, 0.0  ;;  %v6138_v22 = vld [vmem:[#allocation8 + $0xe8] ss:$16 sps:$4 sm:$0xff]   ;;  %v11495_v18 = vld [vmem:[#allocation28_spill] sm:$0xff] }
 0x366   : > { %11485 = vst [vmem:[#allocation63_spill] sm:$0xff] %v7933_v10  ;;  %11486 = vst [vmem:[#allocation65_spill] sm:$0xff] %v7935_v45  ;;  %v1819_v30 = vadd.f32 %v7691_v53, %v11490_v43  ;;  %v1822_v17 = vadd.f32 %v7817_v8, %v11491_v6  ;;  %v1824_v3 = vadd.f32 %v7827_v56, %v11492_v50  ;;  %v6141_v29 = vld [vmem:[#allocation8 + $0x2e8] ss:$16 sps:$4 sm:$0xff]   ;;  %v6146_v23 = vld [vmem:[#allocation8 + $0xcc] ss:$16 sps:$4 sm:$0xff]  }
 0x367   : > { %11488 = vst [vmem:[#allocation64_spill] sm:$0xff] %v7939_v58  ;;  %11489 = vst [vmem:[#allocation66_spill] sm:$0xff] %v7941_v44  ;;  %v7949_v1 = vpack.c.bf16 %v1946_v21, %v1942_v7  ;;  %2925 = vmatprep.mubr.bf16.mxu0 %v7939_v58  ;;  %3118 = vmatprep.mubr.bf16.mxu1 %v7941_v44  ;;  %v7953_v36 = vpack.c.bf16 %v1948_v28, %v1944_v33  ;;  %v11496_v35 = vld [vmem:[#allocation31_spill] sm:$0xff]  ;;  %v6149_v46 = vld [vmem:[#allocation8 + $0x2cc] ss:$16 sps:$4 sm:$0xff]   ;;  %v1945_v58 = vmax.f32 %v1817_v51, 0.0 }
 0x368   : > { %v1826_v42 = vadd.f32 %v7817_v8, %v11495_v18  ;;  %v1828_v19 = vadd.f32 %v7827_v56, %v11496_v35  ;;  %v11497_v43 = vld [vmem:[#allocation74_spill] sm:$0xff]  ;;  %v11499_v7 = vld [vmem:[#allocation77_spill] sm:$0xff]  ;;  %2926 = vmatmul.mubr.bf16.vlgmr.msra.gmra.mxu0 %v7933_v10  ;;  %3119 = vmatmul.mubr.bf16.vlgmr.msra.gmra.mxu1 %v7935_v45  ;;  %v11506_v44 = vld [vmem:[#allocation84_spill] sm:$0xff]  ;;  %v1941_v45 = vmax.f32 %v7925_v57, 0.0 }
 0x369   : > { %11493 = vst [vmem:[#allocation67_spill] sm:$0xff] %v7949_v1  ;;  %11494 = vst [vmem:[#allocation69_spill] sm:$0xff] %v7953_v36  ;;  %v7961_v21 = vmul.f32 %v7493_v52, %v11497_v43  ;;  %v7965_v6 = vmul.f32 %v7487_v48, %v11499_v7  ;;  %v11500_v50 = vld [vmem:[#allocation78_spill] sm:$0xff]  ;;  %v11502_v28 = vld [vmem:[#allocation81_spill] sm:$0xff]  ;;  %v7983_v7 = vadd.f32 %v7687_v26, %v11506_v44  ;;  %2935 = vmatprep.mubr.bf16.mxu0 %v7949_v1 }
 0x36a   : > { %v7969_v33 = vmul.f32 %v7493_v52, %v11500_v50  ;;  %v7975_v18 = vmul.f32 %v7487_v48, %v11502_v28  ;;  %v11504_v35 = vld [vmem:[#allocation82_spill] sm:$0xff]  ;;  %3128 = vmatprep.mubr.bf16.mxu1 %v7953_v36  ;;  %v6144_v50 = vld [vmem:[#allocation8 + $0xc8] ss:$16 sps:$4 sm:$0xff]   ;;  %v1947_v28 = vmax.f32 %v1819_v30, 0.0  ;;  %3280 = vmatpush1.bf16.msra.mxu0 %v6138_v22 }
 0x36b   : > { %11498 = vst [vmem:[#allocation68_spill] sm:$0xff] %v7961_v21  ;;  %v7979_v43 = vmul.f32 %v7493_v52, %v11504_v35  ;;  %v6147_v10 = vld [vmem:[#allocation8 + $0x2c8] ss:$16 sps:$4 sm:$0xff]   ;;  %3473 = vmatpush1.bf16.msra.mxu1 %v6141_v29  ;;  %v6152_v48 = vld [vmem:[#allocation8 + $0xac] ss:$16 sps:$4 sm:$0xff]   ;;  %v1950_v35 = vmax.f32 %v1822_v17, 0.0  ;;  %3281 = vmatprep.subr.bf16.mxu0 %v6146_v23 }
 0x36c   : > { %11501 = vst [vmem:[#allocation70_spill] sm:$0xff] %v7969_v33  ;;  %11503 = vst [vmem:[#allocation71_spill] sm:$0xff] %v7975_v18  ;;  %v1943_v33 = vmax.f32 %v1815_v12, 0.0  ;;  %v1954_v52 = vmax.f32 %v1826_v42, 0.0  ;;  %v1956_v18 = vmax.f32 %v1828_v19, 0.0  ;;  %3474 = vmatprep.subr.bf16.mxu1 %v6149_v46  ;;  %v11507_v1 = vld [vmem:[#allocation26_spill] sm:$0xff]  ;;  %v8010_v46 = vpack.c.bf16 %v1945_v58, %v1941_v45 }
 0x36d   : > { %11505 = vst [vmem:[#allocation73_spill] sm:$0xff] %v7979_v43  ;;  %v1952_v43 = vmax.f32 %v1824_v3, 0.0  ;;  %v6155_v44 = vld [vmem:[#allocation8 + $0x2ac] ss:$16 sps:$4 sm:$0xff]   ;;  %v1823_v36 = vadd.f32 %v7691_v53, %v11507_v1  ;;  %v11508_v21 = vld [vmem:[#allocation29_spill] sm:$0xff]  ;;  %v11513_v42 = vld [vmem:[#allocation35_spill] sm:$0xff] }
 0x36e   : > { %v1825_v31 = vadd.f32 %v7687_v26, %v11508_v21  ;;  %v11509_v57 = vld [vmem:[#allocation30_spill] sm:$0xff]  ;;  %v11510_v12 = vld [vmem:[#allocation33_spill] sm:$0xff]  ;;  %v11511_v17 = vld [vmem:[#allocation32_spill] sm:$0xff]  ;;  %v1832_v1 = vadd.f32 %v7827_v56, %v11513_v42  ;;  %v8012_v21 = vpack.c.bf16 %v1947_v28, %v1943_v33  ;;  %3282 = vmatpush1.bf16.msra.mxu0 %v6144_v50  ;;  %v1949_v50 = vmax.f32 %v7983_v7, 0.0 }
 0x36f   : > { %v1827_v51 = vadd.f32 %v7691_v53, %v11509_v57  ;;  %v7996_v30 = vadd.f32 %v7687_v26, %v11510_v12  ;;  %v1830_v3 = vadd.f32 %v7817_v8, %v11511_v17  ;;  %v11512_v22 = vld [vmem:[#allocation34_spill] sm:$0xff]  ;;  %v11514_v19 = vld [vmem:[#allocation37_spill] sm:$0xff]  ;;  %v11516_v57 = vld [vmem:[#allocation36_spill] sm:$0xff]  ;;  %3475 = vmatpush1.bf16.msra.mxu1 %v6147_v10  ;;  %v8018_v60 = vpack.c.bf16 %v1956_v18, %v1952_v43 }
 0x370   : > { %v8002_v29 = vadd.f32 %v7691_v53, %v11512_v22  ;;  %v8008_v23 = vadd.f32 %v7687_v26, %v11514_v19  ;;  %11515 = vst [vmem:[#allocation72_spill] sm:$0xff] %v8012_v21  ;;  %v1834_v12 = vadd.f32 %v7817_v8, %v11516_v57  ;;  %v6150_v17 = vld [vmem:[#allocation8 + $0xa8] ss:$16 sps:$4 sm:$0xff]   ;;  %v8016_v22 = vpack.c.bf16 %v1954_v52, %v1950_v35  ;;  %v6158_v58 = vld [vmem:[#allocation8 + $0x8c] ss:$16 sps:$4 sm:$0xff]  }
 0x371   : > { %11518 = vst [vmem:[#allocation92_spill] sm:$0xff] %v8018_v60  ;;  %v11519_v42 = vld [vmem:[#allocation39_spill] sm:$0xff]  ;;  %3283 = vmatprep.subr.bf16.mxu0 %v6152_v48  ;;  %3476 = vmatprep.subr.bf16.mxu1 %v6155_v44  ;;  %v6161_v45 = vld [vmem:[#allocation8 + $0x28c] ss:$16 sps:$4 sm:$0xff]   ;;  %v11521_v19 = vld [vmem:[#allocation41_spill] sm:$0xff]  ;;  %v8032_v52 = vadd.f32 %v7817_v8, %v7639_v39  ;;  %v8042_v43 = vadd.f32 %v7827_v56, %v7649_v59  ;;  %v1953_v39 = vmax.f32 %v1825_v31, 0.0 }
 0x372   : > { %11517 = vst [vmem:[#allocation83_spill] sm:$0xff] %v8016_v22  ;;  %v1836_v62 = vadd.f32 %v7827_v56, %v11519_v42  ;;  %v11520_v33 = vld [vmem:[#allocation38_spill] sm:$0xff]  ;;  %v8028_v10 = vadd.f32 %v7687_v26, %v11521_v19  ;;  %2936 = vmatmul.mubr.bf16.gmra.mxu0 %v8010_v46  ;;  %3129 = vmatmul.mubr.bf16.gmra.mxu1 %v8012_v21  ;;  %v11522_v48 = vld [vmem:[#allocation40_spill] sm:$0xff]  ;;  %v6156_v35 = vld [vmem:[#allocation8 + $0x88] ss:$16 sps:$4 sm:$0xff]   ;;  %v1951_v44 = vmax.f32 %v1823_v36, 0.0 }
 0x373   : > { %v8024_v28 = vadd.f32 %v7691_v53, %v11520_v33  ;;  %v8038_v18 = vadd.f32 %v7691_v53, %v11522_v48  ;;  %2945 = vmatprep.mubr.bf16.mxu0 %v8016_v22  ;;  %3138 = vmatprep.mubr.bf16.mxu1 %v8018_v60  ;;  %v1955_v57 = vmax.f32 %v1827_v51, 0.0  ;;  %v1958_v42 = vmax.f32 %v1830_v3, 0.0  ;;  %v6159_v19 = vld [vmem:[#allocation8 + $0x288] ss:$16 sps:$4 sm:$0xff]   ;;  %v11523_v48 = vld [vmem:[#allocation42_spill] sm:$0xff] }
 0x374   : > { %v1962_v33 = vmax.f32 %v1834_v12, 0.0  ;;  %3284 = vmatpush1.bf16.msra.mxu0 %v6150_v17  ;;  %3477 = vmatpush1.bf16.msra.mxu1 %v6153_v41  ;;  %v8049_v21 = vadd.f32 %v7687_v26, %v11523_v48  ;;  %v8053_v59 = vadd.f32 %v7691_v53, %v7661_v4  ;;  %v1960_v60 = vmax.f32 %v1832_v1, 0.0  ;;  %v6164_v31 = vld [vmem:[#allocation8 + $0x6c] ss:$16 sps:$4 sm:$0xff]   ;;  %v6165_v12 = vld [vmem:[#allocation8 + $0x268] ss:$16 sps:$4 sm:$0xff]  }
 0x375   : > { %v1964_v22 = vmax.f32 %v1836_v62, 0.0  ;;  %3285 = vmatprep.subr.bf16.mxu0 %v6158_v58  ;;  %3478 = vmatprep.subr.bf16.mxu1 %v6161_v45  ;;  %v6167_v36 = vld [vmem:[#allocation8 + $0x26c] ss:$16 sps:$4 sm:$0xff]   ;;  %v8057_v7 = vadd.f32 %v7687_v26, %v7669_v34  ;;  %v8061_v41 = vadd.f32 %v7817_v8, %v7840_v32  ;;  %v8065_v51 = vadd.f32 %v7691_v53, %v7853_v40  ;;  %v11524_v17 = vld [vmem:[#allocation43_spill] sm:$0xff] }
 0x376   : > { %v8069_v4 = vadd.f32 %v7827_v56, %v7857_v47  ;;  %v8073_v62 = vadd.f32 %v7687_v26, %v7861_v9  ;;  %v8077_v34 = vadd.f32 %v7691_v53, %v7877_v13  ;;  %v8081_v32 = vadd.f32 %v7687_v26, %v7889_v14  ;;  %v6162_v9 = vld [vmem:[#allocation8 + $0x68] ss:$16 sps:$4 sm:$0xff]   ;;  %v6173_v45 = vld [vmem:[#allocation8 + $0x24c] ss:$16 sps:$4 sm:$0xff]  }
 0x377   : > { %v8085_v40 = vadd.f32 %v7817_v8, %v7893_v37  ;;  %v8087_v3 = vpack.c.bf16 %v1953_v39, %v1949_v50  ;;  %v8089_v47 = vpack.c.bf16 %v1955_v57, %v1951_v44  ;;  %v8091_v1 = vpack.c.bf16 %v1962_v33, %v1958_v42  ;;  %v6170_v37 = vld [vmem:[#allocation8 + $0x4c] ss:$16 sps:$4 sm:$0xff]   ;;  %v6180_v48 = vld [vmem:[#allocation8 + $0x8] ss:$16 sps:$4 sm:$0xff]  }
 0x378   : > { %3286 = vmatpush1.bf16.msra.mxu0 %v6156_v35  ;;  %3479 = vmatpush1.bf16.msra.mxu1 %v6159_v19  ;;  %v8093_v13 = vpack.c.bf16 %v1964_v22, %v1960_v60  ;;  %v1842_v14 = vadd.f32 %v7817_v8, %v7657_v38  ;;  %v1844_v58 = vadd.f32 %v7827_v56, %v11524_v17  ;;  %v1957_v38 = vmax.f32 %v7996_v30, 0.0  ;;  %v6168_v30 = vld [vmem:[#allocation8 + $0x48] ss:$16 sps:$4 sm:$0xff]  }
 0x379   : > { %3287 = vmatprep.subr.bf16.mxu0 %v6164_v31  ;;  %3480 = vmatprep.subr.bf16.mxu1 %v6167_v36  ;;  %v8101_v50 = vadd.f32 %v7691_v53, %v7897_v5  ;;  %v8105_v39 = vadd.f32 %v7827_v56, %v7903_v55  ;;  %v8109_v60 = vadd.f32 %v7687_v26, %v7907_v16  ;;  %v1961_v5 = vmax.f32 %v8008_v23, 0.0  ;;  %v6171_v23 = vld [vmem:[#allocation8 + $0x248] ss:$16 sps:$4 sm:$0xff]  }
 0x37a   : > { %2946 = vmatmul.mubr.bf16.gmra.mxu0 %v8087_v3  ;;  %3139 = vmatmul.mubr.bf16.gmra.mxu1 %v8089_v47  ;;  %v1959_v22 = vmax.f32 %v8002_v29, 0.0  ;;  %v1963_v55 = vmax.f32 %v8024_v28, 0.0  ;;  %v8121_v16 = vadd.f32 %v7691_v53, %v7921_v25  ;;  %v8125_v35 = vadd.f32 %v7817_v8, %v7965_v6  ;;  %v6176_v25 = vld [vmem:[#allocation8 + $0x2c] ss:$16 sps:$4 sm:$0xff]  }
 0x37b   : > { %2955 = vmatprep.mubr.bf16.mxu0 %v8091_v1  ;;  %3148 = vmatprep.mubr.bf16.mxu1 %v8093_v13  ;;  %v1966_v29 = vmax.f32 %v8032_v52, 0.0  ;;  %v1970_v42 = vmax.f32 %v1842_v14, 0.0  ;;  %v1968_v28 = vmax.f32 %v8042_v43, 0.0  ;;  %v1972_v33 = vmax.f32 %v1844_v58, 0.0 }
 0x37c   : > { %3288 = vmatpush1.bf16.msra.mxu0 %v6162_v9  ;;  %3481 = vmatpush1.bf16.msra.mxu1 %v6165_v12  ;;  %v8135_v36 = vpack.c.bf16 %v1961_v5, %v1957_v38  ;;  %v8137_v9 = vpack.c.bf16 %v1963_v55, %v1959_v22  ;;  %v1997_v52 = vmax.f32 %v7722_v0, 0.0  ;;  %v2001_v43 = vmax.f32 %v7730_v63, 0.0  ;;  %v6174_v12 = vld [vmem:[#allocation8 + $0x28] ss:$16 sps:$4 sm:$0xff]   ;;  %v11527_v0 = vld [vmem:[#allocation60_spill] sm:$0xff] }
 0x37d   : > { %3289 = vmatprep.subr.bf16.mxu0 %v6170_v37  ;;  %3482 = vmatprep.subr.bf16.mxu1 %v6173_v45  ;;  %v1965_v14 = vmax.f32 %v8028_v10, 0.0  ;;  %v1850_v17 = vadd.f32 %v7817_v8, %v7865_v15  ;;  %v1999_v58 = vmax.f32 %v7725_v61, 0.0  ;;  %v2003_v37 = vmax.f32 %v7733_v54, 0.0  ;;  %v6179_v45 = vld [vmem:[#allocation8 + $0x22c] ss:$16 sps:$4 sm:$0xff]  }
 0x37e   : > { %v8146_v38 = vpack.c.bf16 %v1970_v42, %v1966_v29  ;;  %v8148_v5 = vpack.c.bf16 %v1972_v33, %v1968_v28  ;;  %v1852_v63 = vadd.f32 %v7827_v56, %v11527_v0  ;;  %v8152_v22 = vpack.c.bf16 %v2001_v43, %v1997_v52  ;;  %v6177_v10 = vld [vmem:[#allocation8 + $0x228] ss:$16 sps:$4 sm:$0xff]   ;;  %v6182_v55 = vld [vmem:[#allocation8 + $0xc] ss:$16 sps:$4 sm:$0xff]  }
 0x37f   : > { %v1969_v61 = vmax.f32 %v8049_v21, 0.0  ;;  %v1967_v54 = vmax.f32 %v8038_v18, 0.0  ;;  %v8158_v15 = vpack.c.bf16 %v2003_v37, %v1999_v58  ;;  %v6185_v29 = vld [vmem:[#allocation8 + $0x20c] ss:$16 sps:$4 sm:$0xff]   ;;  %v1971_v42 = vmax.f32 %v8053_v59, 0.0  ;;  %v11531_v43 = vld [vmem:[#allocation47_spill] sm:$0xff] }
 0x380   : > { %3290 = vmatpush1.bf16.msra.mxu0 %v6168_v30  ;;  %3483 = vmatpush1.bf16.msra.mxu1 %v6171_v23  ;;  %11525 = vst [vmem:[#allocation87_spill] sm:$0xff] %v8146_v38  ;;  %11526 = vst [vmem:[#allocation88_spill] sm:$0xff] %v8148_v5  ;;  %v11528_v30 = vld [vmem:[#allocation45_spill] sm:$0xff]  ;;  %v11529_v28 = vld [vmem:[#allocation46_spill] sm:$0xff]  ;;  %v2011_v0 = vmax.f32 %v11531_v43, 0.0  ;;  %v1974_v37 = vmax.f32 %v8061_v41, 0.0 }
 0x381   : > { %3291 = vmatprep.subr.bf16.mxu0 %v6176_v25  ;;  %v2005_v23 = vmax.f32 %v11528_v30, 0.0  ;;  %v2009_v33 = vmax.f32 %v11529_v28, 0.0  ;;  %v11530_v25 = vld [vmem:[#allocation44_spill] sm:$0xff]  ;;  %v11532_v21 = vld [vmem:[#allocation53_spill] sm:$0xff]  ;;  %v1978_v30 = vmax.f32 %v1850_v17, 0.0  ;;  %3484 = vmatprep.subr.bf16.mxu1 %v6179_v45  ;;  %v1976_v19 = vmax.f32 %v8069_v4, 0.0 }
 0x382   : > { %2956 = vmatmul.mubr.bf16.gmra.mxu0 %v8135_v36  ;;  %3149 = vmatmul.mubr.bf16.gmra.mxu1 %v8137_v9  ;;  %v2007_v52 = vmax.f32 %v11530_v25, 0.0  ;;  %v2033_v31 = vmax.f32 %v11532_v21, 0.0  ;;  %v11533_v18 = vld [vmem:[#allocation52_spill] sm:$0xff]  ;;  %v1980_v57 = vmax.f32 %v1852_v63, 0.0  ;;  %v6183_v25 = vld [vmem:[#allocation8 + $0x208] ss:$16 sps:$4 sm:$0xff]   ;;  %v8181_v4 = vpack.c.bf16 %v1971_v42, %v1967_v54 }
 0x383   : > { %2965 = vmatprep.mubr.bf16.mxu0 %v8146_v38  ;;  %3158 = vmatprep.mubr.bf16.mxu1 %v8148_v5  ;;  %v2035_v58 = vmax.f32 %v11533_v18, 0.0  ;;  %v8171_v59 = vpack.c.bf16 %v2009_v33, %v2005_v23  ;;  %v6188_v43 = vld [vmem:[#allocation8 + $0x1ec] ss:$16 sps:$4 sm:$0xff]   ;;  %v11535_v18 = vld [vmem:[#allocation55_spill] sm:$0xff]  ;;  %v11536_v41 = vld [vmem:[#allocation49_spill] sm:$0xff]  ;;  %v8179_v5 = vpack.c.bf16 %v1969_v61, %v1965_v14 }
 0x384   : > { %3292 = vmatpush1.bf16.msra.mxu0 %v6174_v12  ;;  %v8173_v28 = vpack.c.bf16 %v2011_v0, %v2007_v52  ;;  %3485 = vmatpush1.bf16.msra.mxu1 %v6177_v10  ;;  %v11534_v21 = vld [vmem:[#allocation54_spill] sm:$0xff]  ;;  %v2039_v44 = vmax.f32 %v11535_v18, 0.0  ;;  %v2013_v17 = vmax.f32 %v11536_v41, 0.0  ;;  %v11538_v63 = vld [vmem:[#allocation48_spill] sm:$0xff]  ;;  %v11539_v33 = vld [vmem:[#allocation51_spill] sm:$0xff]  ;;  %v8194_v42 = vpack.c.bf16 %v1980_v57, %v1976_v19 }
 0x385   : > { %3293 = vmatprep.subr.bf16.mxu0 %v6182_v55  ;;  %v2037_v6 = vmax.f32 %v11534_v21, 0.0  ;;  %v11537_v45 = vld [vmem:[#allocation50_spill] sm:$0xff]  ;;  %3486 = vmatprep.subr.bf16.mxu1 %v6185_v29  ;;  %v2015_v23 = vmax.f32 %v11538_v63, 0.0  ;;  %v2019_v10 = vmax.f32 %v11539_v33, 0.0  ;;  %v8185_v55 = vpack.c.bf16 %v1978_v30, %v1974_v37  ;;  %v11541_v21 = vld [vmem:[#allocation68_spill] sm:$0xff]  ;;  %v11542_v61 = vld [vmem:[#allocation57_spill] sm:$0xff] }
 0x386   : > { %v2017_v12 = vmax.f32 %v11537_v45, 0.0  ;;  %v11540_v52 = vld [vmem:[#allocation62_spill] sm:$0xff]  ;;  %v1860_v18 = vadd.f32 %v7827_v56, %v11541_v21  ;;  %v6186_v29 = vld [vmem:[#allocation8 + $0x1e8] ss:$16 sps:$4 sm:$0xff]   ;;  %v2041_v54 = vmax.f32 %v11542_v61, 0.0  ;;  %11543 = vst [vmem:[#allocation25_spill] sm:$0xff] %v8194_v42 }
 0x387   : > { %v1858_v0 = vadd.f32 %v7817_v8, %v11540_v52  ;;  %v6191_v14 = vld [vmem:[#allocation8 + $0x3ec] ss:$16 sps:$4 sm:$0xff]   ;;  %v8196_v45 = vpack.c.bf16 %v2019_v10, %v2015_v23  ;;  %v11544_v37 = vmax.f32 %v7768_v11, 0.0  ;;  %v11545_v30 = vmax.f32 %v7776_v24, 0.0  ;;  %v6189_v33 = vld [vmem:[#allocation8 + $0x3e8] ss:$16 sps:$4 sm:$0xff]  }
 0x388   : > { %v8191_v41 = vpack.c.bf16 %v2017_v12, %v2013_v17  ;;  %3294 = vmatpush1.bf16.msra.mxu0 %v6180_v48  ;;  %3487 = vmatpush1.bf16.msra.mxu1 %v6183_v25  ;;  %v6194_v17 = vld [vmem:[#allocation8 + $0x1cc] ss:$16 sps:$4 sm:$0xff]   ;;  %v11548_v38 = vld [vmem:[#allocation121_spill] sm:$0xff]  ;;  %v11549_v11 = vmax.f32 %v7773_v49, 0.0  ;;  %v11550_v24 = vmax.f32 %v7779_v20, 0.0  ;;  %v1973_v25 = vmax.f32 %v8057_v7, 0.0 }
 0x389   : > { %v8202_v63 = vpack.c.bf16 %v11545_v30, %v11544_v37  ;;  %3295 = vmatprep.subr.bf16.mxu0 %v6188_v43  ;;  %v11546_v12 = vld [vmem:[#allocation56_spill] sm:$0xff]  ;;  %v11547_v52 = vld [vmem:[#allocation58_spill] sm:$0xff]  ;;  %v2049_v61 = vmax.f32 %v11548_v38, 0.0  ;;  %v1977_v43 = vmax.f32 %v8073_v62, 0.0  ;;  %v1975_v38 = vmax.f32 %v8065_v51, 0.0  ;;  %3488 = vmatprep.subr.bf16.mxu1 %v6191_v14  ;;  %v11553_v62 = vld [vmem:[#allocation59_spill] sm:$0xff] }
 0x38a   : > { %v2043_v48 = vmax.f32 %v11546_v12, 0.0  ;;  %v2045_v21 = vmax.f32 %v11547_v52, 0.0  ;;  %2966 = vmatmul.mubr.bf16.gmra.mxu0 %v8179_v5  ;;  %3159 = vmatmul.mubr.bf16.gmra.mxu1 %v8181_v4  ;;  %v8213_v57 = vpack.c.bf16 %v11550_v24, %v11549_v11  ;;  %v6197_v19 = vld [vmem:[#allocation8 + $0x3cc] ss:$16 sps:$4 sm:$0xff]   ;;  %v11551_v23 = vmax.f32 %v7786_v2, 0.0  ;;  %v11557_v14 = vld [vmem:[#allocation61_spill] sm:$0xff] }
 0x38b   : > { %2975 = vmatprep.mubr.bf16.mxu0 %v8185_v55  ;;  %3168 = vmatprep.mubr.bf16.mxu1 %v8194_v42  ;;  %v6192_v49 = vld [vmem:[#allocation8 + $0x1c8] ss:$16 sps:$4 sm:$0xff]   ;;  %v1979_v20 = vmax.f32 %v8077_v34, 0.0  ;;  %v1982_v37 = vmax.f32 %v8085_v40, 0.0  ;;  %v1986_v30 = vmax.f32 %v1858_v0, 0.0  ;;  %v11552_v12 = vmax.f32 %v7789_v27, 0.0 }
 0x38c   : > { %v8222_v10 = vpack.c.bf16 %v2033_v31, %v11551_v23  ;;  %3296 = vmatpush2.bf16.msra.mxu0 %v6186_v29  ;;  %v6195_v7 = vld [vmem:[#allocation8 + $0x3c8] ss:$16 sps:$4 sm:$0xff]   ;;  %v2047_v11 = vmax.f32 %v11553_v62, 0.0  ;;  %v11554_v51 = vld [vmem:[#allocation124_spill] sm:$0xff]  ;;  %v1984_v2 = vmax.f32 %v8105_v39, 0.0  ;;  %v1988_v31 = vmax.f32 %v1860_v18, 0.0  ;;  %3489 = vmatpush2.bf16.msra.mxu1 %v6189_v33 }
 0x38d   : > { %v8228_v52 = vpack.c.bf16 %v2035_v58, %v11552_v12  ;;  %v2051_v24 = vmax.f32 %v11554_v51, 0.0  ;;  %3297 = vmatprep.subr.bf16.mxu0 %v6194_v17  ;;  %v6200_v34 = vld [vmem:[#allocation8 + $0x1ac] ss:$16 sps:$4 sm:$0xff]   ;;  %v11556_v0 = vld [vmem:[#allocation125_spill] sm:$0xff]  ;;  %3490 = vmatprep.subr.bf16.mxu1 %v6197_v19  ;;  %v8238_v58 = vpack.c.bf16 %v2041_v54, %v2037_v6  ;;  %v8240_v29 = vpack.c.bf16 %v2043_v48, %v2039_v44  ;;  %v11559_v39 = vld [vmem:[#allocation127_spill] sm:$0xff] }
 0x38e   : > { %v11555_v23 = vld [vmem:[#allocation70_spill] sm:$0xff]  ;;  %v2053_v27 = vmax.f32 %v11556_v0, 0.0  ;;  %v2055_v12 = vmax.f32 %v11557_v14, 0.0  ;;  %v2059_v18 = vmax.f32 %v11559_v39, 0.0  ;;  %v8245_v33 = vpack.c.bf16 %v1977_v43, %v1973_v25  ;;  %v6198_v6 = vld [vmem:[#allocation8 + $0x1a8] ss:$16 sps:$4 sm:$0xff]  }
 0x38f   : > { %v8235_v40 = vadd.f32 %v7827_v56, %v11555_v23  ;;  %v11558_v62 = vld [vmem:[#allocation126_spill] sm:$0xff]  ;;  %v8247_v17 = vpack.c.bf16 %v1979_v20, %v1975_v38  ;;  %v8249_v42 = vpack.c.bf16 %v1986_v30, %v1982_v37  ;;  %v11561_v23 = vld [vmem:[#allocation71_spill] sm:$0xff]  ;;  %v8253_v44 = vpack.c.bf16 %v2049_v61, %v2045_v21  ;;  %v11563_v19 = vld [vmem:[#allocation73_spill] sm:$0xff] }
 0x390   : > { %v2057_v51 = vmax.f32 %v11558_v62, 0.0  ;;  %v1866_v0 = vadd.f32 %v7817_v8, %v11561_v23  ;;  %3298 = vmatpush2.bf16.msra.mxu0 %v6192_v49  ;;  %v6203_v54 = vld [vmem:[#allocation8 + $0x3ac] ss:$16 sps:$4 sm:$0xff]   ;;  %v8255_v48 = vpack.c.bf16 %v1988_v31, %v1984_v2  ;;  %v1868_v14 = vadd.f32 %v7827_v56, %v11563_v19  ;;  %3491 = vmatpush2.bf16.msra.mxu1 %v6195_v7  ;;  %v6201_v25 = vld [vmem:[#allocation8 + $0x3a8] ss:$16 sps:$4 sm:$0xff]  }
 0x391   : > { %11560 = vst [vmem:[#allocation27_spill] sm:$0xff] %v8249_v42  ;;  %3299 = vmatprep.subr.bf16.mxu0 %v6200_v34  ;;  %v6206_v43 = vld [vmem:[#allocation8 + $0x18c] ss:$16 sps:$4 sm:$0xff]   ;;  %v8259_v38 = vpack.c.bf16 %v2051_v24, %v2047_v11  ;;  %v11564_v20 = vld [vmem:[#allocation75_spill] sm:$0xff]  ;;  %v1981_v7 = vmax.f32 %v8081_v32, 0.0  ;;  %v1985_v11 = vmax.f32 %v8109_v60, 0.0  ;;  %v8275_v2 = vpack.c.bf16 %v2059_v18, %v2055_v12  ;;  %3492 = vmatprep.subr.bf16.mxu1 %v6203_v54 }
 0x392   : > { %11562 = vst [vmem:[#allocation28_spill] sm:$0xff] %v8255_v48  ;;  %v11565_v37 = vld [vmem:[#allocation20_spill] sm:$0xff]  ;;  %v11568_v23 = vld [vmem:[#allocation79_spill] sm:$0xff]  ;;  %2976 = vmatmul.mubr.bf16.gmra.mxu0 %v8245_v33  ;;  %3169 = vmatmul.mubr.bf16.gmra.mxu1 %v8247_v17  ;;  %v8273_v24 = vpack.c.bf16 %v2057_v51, %v2053_v27  ;;  %v1983_v31 = vmax.f32 %v8101_v50, 0.0  ;;  %v1987_v34 = vmax.f32 %v8121_v16, 0.0  ;;  %v1990_v19 = vmax.f32 %v8125_v35, 0.0 }
 0x393   : > { %v1712_v30 = vmul.f32 %v11565_v37, %v11564_v20  ;;  %v11566_v62 = vld [vmem:[#allocation76_spill] sm:$0xff]  ;;  %v1716_v21 = vmul.f32 %v11565_v37, %v11568_v23  ;;  %2985 = vmatprep.mubr.bf16.mxu0 %v8249_v42  ;;  %3178 = vmatprep.mubr.bf16.mxu1 %v8255_v48  ;;  %v1994_v20 = vmax.f32 %v1866_v0, 0.0  ;;  %v6204_v37 = vld [vmem:[#allocation8 + $0x188] ss:$16 sps:$4 sm:$0xff]   ;;  %v1992_v27 = vmax.f32 %v8235_v40, 0.0  ;;  %v11572_v16 = vld [vmem:[#allocation86_spill] sm:$0xff] }
 0x394   : > { %v11567_v49 = vld [vmem:[#allocation96_spill] sm:$0xff]  ;;  %3300 = vmatpush2.bf16.msra.mxu0 %v6198_v6  ;;  %v11570_v32 = vld [vmem:[#allocation85_spill] sm:$0xff]  ;;  %v11571_v48 = vld [vmem:[#allocation95_spill] sm:$0xff]  ;;  %v1996_v12 = vmax.f32 %v1868_v14, 0.0  ;;  %3493 = vmatpush2.bf16.msra.mxu1 %v6201_v25 }
 0x395   : > { %v1714_v39 = vmul.f32 %v11567_v49, %v11566_v62  ;;  %v6209_v61 = vld [vmem:[#allocation8 + $0x38c] ss:$16 sps:$4 sm:$0xff]   ;;  %v1721_v60 = vmul.f32 %v11571_v48, %v11570_v32  ;;  %3301 = vmatprep.subr.bf16.mxu0 %v6206_v43  ;;  %v6207_v50 = vld [vmem:[#allocation8 + $0x388] ss:$16 sps:$4 sm:$0xff]   ;;  %v1865_v40 = vadd.f32 %v7687_v26, %v1716_v21  ;;  %v8297_v32 = vpack.c.bf16 %v1985_v11, %v1981_v7 }
 0x396   : > { %v11569_v62 = vld [vmem:[#allocation80_spill] sm:$0xff]  ;;  %v11573_v18 = vld [vmem:[#allocation91_spill] sm:$0xff]  ;;  %v11574_v0 = vld [vmem:[#allocation89_spill] sm:$0xff]  ;;  %3494 = vmatprep.subr.bf16.mxu1 %v6209_v61  ;;  %v8303_v61 = vpack.c.bf16 %v1996_v12, %v1992_v27 }
 0x397   : > { %v1718_v23 = vmul.f32 %v11567_v49, %v11569_v62  ;;  %v6212_v51 = vld [vmem:[#allocation8 + $0x16c] ss:$16 sps:$4 sm:$0xff]   ;;  %v1723_v35 = vmul.f32 %v11573_v18, %v11572_v16  ;;  %v1725_v6 = vmul.f32 %v11571_v48, %v11574_v0  ;;  %v1861_v49 = vadd.f32 %v7687_v26, %v1712_v30  ;;  %v11577_v11 = vld [vmem:[#allocation93_spill] sm:$0xff] }
 0x398   : > { %v11575_v54 = vld [vmem:[#allocation90_spill] sm:$0xff]  ;;  %v1863_v62 = vadd.f32 %v7691_v53, %v1714_v39  ;;  %v1870_v25 = vadd.f32 %v7817_v8, %v1721_v60  ;;  %v8299_v16 = vpack.c.bf16 %v1987_v34, %v1983_v31  ;;  %v8301_v0 = vpack.c.bf16 %v1994_v20, %v1990_v19  ;;  %3302 = vmatpush2.bf16.msra.mxu0 %v6204_v37  ;;  %v6216_v34 = vld [vmem:[#allocation8 + $0x148] ss:$16 sps:$4 sm:$0xff]  }
 0x399   : > { %v1727_v42 = vmul.f32 %v11573_v18, %v11575_v54  ;;  %v1867_v14 = vadd.f32 %v7691_v53, %v1718_v23  ;;  %v1872_v43 = vadd.f32 %v7827_v56, %v1723_v35  ;;  %v6210_v54 = vld [vmem:[#allocation8 + $0x168] ss:$16 sps:$4 sm:$0xff]   ;;  %v6215_v30 = vld [vmem:[#allocation8 + $0x36c] ss:$16 sps:$4 sm:$0xff]   ;;  %11576 = vst [vmem:[#allocation31_spill] sm:$0xff] %v8303_v61  ;;  %v1874_v39 = vadd.f32 %v7817_v8, %v1725_v6 }
 0x39a   : > { %3495 = vmatpush2.bf16.msra.mxu1 %v6207_v50  ;;  %3303 = vmatprep.subr.bf16.mxu0 %v6212_v51  ;;  %v6213_v53 = vld [vmem:[#allocation8 + $0x368] ss:$16 sps:$4 sm:$0xff]   ;;  %v6218_v21 = vld [vmem:[#allocation8 + $0x14c] ss:$16 sps:$4 sm:$0xff]   ;;  %v1729_v31 = vmul.f32 %v11571_v48, %v11577_v11  ;;  %v1989_v19 = vmax.f32 %v1861_v49, 0.0  ;;  %v1993_v20 = vmax.f32 %v1865_v40, 0.0 }
 0x39b   : > { %v1876_v26 = vadd.f32 %v7827_v56, %v1727_v42  ;;  %2986 = vmatmul.mubr.bf16.gmra.mxu0 %v8297_v32  ;;  %3179 = vmatmul.mubr.bf16.gmra.mxu1 %v8299_v16  ;;  %v6221_v7 = vld [vmem:[#allocation8 + $0x34c] ss:$16 sps:$4 sm:$0xff]   ;;  %v1991_v42 = vmax.f32 %v1863_v62, 0.0  ;;  %v1995_v37 = vmax.f32 %v1867_v14, 0.0  ;;  %v6219_v23 = vld [vmem:[#allocation8 + $0x348] ss:$16 sps:$4 sm:$0xff]  }
 0x39c   : > { %2995 = vmatprep.mubr.bf16.mxu0 %v8301_v0  ;;  %3188 = vmatprep.mubr.bf16.mxu1 %v8303_v61  ;;  %v1998_v60 = vmax.f32 %v1870_v25, 0.0  ;;  %v2002_v27 = vmax.f32 %v1874_v39, 0.0  ;;  %v2000_v12 = vmax.f32 %v1872_v43, 0.0  ;;  %v6224_v51 = vld [vmem:[#allocation8 + $0x12c] ss:$16 sps:$4 sm:$0xff]   ;;  %v11579_v11 = vld [vmem:[#allocation97_spill] sm:$0xff]  ;;  %v1878_v40 = vadd.f32 %v7817_v8, %v1729_v31 }
 0x39d   : > { %3496 = vmatprep.subr.bf16.mxu1 %v6215_v30  ;;  %3304 = vmatpush2.bf16.msra.mxu0 %v6210_v54  ;;  %v2004_v50 = vmax.f32 %v1876_v26, 0.0  ;;  %v11578_v35 = vld [vmem:[#allocation94_spill] sm:$0xff]  ;;  %v1733_v61 = vmul.f32 %v11571_v48, %v11579_v11  ;;  %v8321_v25 = vpack.c.bf16 %v1993_v20, %v1989_v19  ;;  %v8323_v43 = vpack.c.bf16 %v1995_v37, %v1991_v42  ;;  %v6222_v30 = vld [vmem:[#allocation8 + $0x128] ss:$16 sps:$4 sm:$0xff]  }
 0x39e   : > { %3497 = vmatpush2.bf16.msra.mxu1 %v6213_v53  ;;  %3305 = vmatprep.subr.bf16.mxu0 %v6218_v21  ;;  %v1731_v6 = vmul.f32 %v11573_v18, %v11578_v35  ;;  %v11580_v49 = vld [vmem:[#allocation98_spill] sm:$0xff]  ;;  %v8326_v26 = vpack.c.bf16 %v2002_v27, %v1998_v60  ;;  %v11581_v60 = vld [vmem:[#allocation99_spill] sm:$0xff] }
 0x39f   : > { %3498 = vmatprep.subr.bf16.mxu1 %v6221_v7  ;;  %v1735_v62 = vmul.f32 %v11573_v18, %v11580_v49  ;;  %v1882_v54 = vadd.f32 %v7817_v8, %v1733_v61  ;;  %v6227_v39 = vld [vmem:[#allocation8 + $0x32c] ss:$16 sps:$4 sm:$0xff]   ;;  %v8328_v53 = vpack.c.bf16 %v2004_v50, %v2000_v12  ;;  %v6225_v7 = vld [vmem:[#allocation8 + $0x328] ss:$16 sps:$4 sm:$0xff]   ;;  %v1737_v27 = vmul.f32 %v11571_v48, %v11581_v60 }
 0x3a0   : > { %v1880_v14 = vadd.f32 %v7827_v56, %v1731_v6  ;;  %v6230_v31 = vld [vmem:[#allocation8 + $0x10c] ss:$16 sps:$4 sm:$0xff]   ;;  %v6228_v61 = vld [vmem:[#allocation8 + $0x108] ss:$16 sps:$4 sm:$0xff]  }
 0x3a1   : > { %3306 = vmatpush2.bf16.msra.mxu0 %v6216_v34  ;;  %v1884_v21 = vadd.f32 %v7827_v56, %v1735_v62  ;;  %v6233_v19 = vld [vmem:[#allocation8 + $0x30c] ss:$16 sps:$4 sm:$0xff]   ;;  %v2006_v34 = vmax.f32 %v1878_v40, 0.0  ;;  %v2010_v20 = vmax.f32 %v1882_v54, 0.0  ;;  %v1886_v49 = vadd.f32 %v7817_v8, %v1737_v27 }
 0x3a2   : > { %3499 = vmatpush2.bf16.msra.mxu1 %v6219_v23  ;;  %3307 = vmatprep.subr.bf16.mxu0 %v6224_v51  ;;  %v2008_v42 = vmax.f32 %v1880_v14, 0.0  ;;  %v6231_v23 = vld [vmem:[#allocation8 + $0x308] ss:$16 sps:$4 sm:$0xff]   ;;  %v11582_v12 = vld [vmem:[#allocation100_spill] sm:$0xff]  ;;  %v11584_v6 = vld [vmem:[#allocation102_spill] sm:$0xff] }
 0x3a3   : > { %2996 = vmatmul.mubr.bf16.gmra.mxu0 %v8321_v25  ;;  %3189 = vmatmul.mubr.bf16.gmra.mxu1 %v8323_v43  ;;  %v2012_v37 = vmax.f32 %v1884_v21, 0.0  ;;  %v1739_v50 = vmul.f32 %v11573_v18, %v11582_v12  ;;  %v11583_v51 = vld [vmem:[#allocation101_spill] sm:$0xff]  ;;  %v1743_v11 = vmul.f32 %v11573_v18, %v11584_v6  ;;  %v8345_v40 = vpack.c.bf16 %v2010_v20, %v2006_v34  ;;  %v11586_v34 = vld [vmem:[#allocation104_spill] sm:$0xff] }
 0x3a4   : > { %3005 = vmatprep.mubr.bf16.mxu0 %v8326_v26  ;;  %3198 = vmatprep.mubr.bf16.mxu1 %v8328_v53  ;;  %v1741_v35 = vmul.f32 %v11571_v48, %v11583_v51  ;;  %v1747_v20 = vmul.f32 %v11573_v18, %v11586_v34 }
 0x3a5   : > { %3500 = vmatprep.subr.bf16.mxu1 %v6227_v39  ;;  %3308 = vmatpush2.bf16.msra.mxu0 %v6222_v30  ;;  %v1888_v62 = vadd.f32 %v7827_v56, %v1739_v50  ;;  %v8347_v14 = vpack.c.bf16 %v2012_v37, %v2008_v42  ;;  %v1892_v30 = vadd.f32 %v7827_v56, %v1743_v11  ;;  %v2014_v39 = vmax.f32 %v1886_v49, 0.0  ;;  %v11587_v42 = vld [vmem:[#allocation105_spill] sm:$0xff] }
 0x3a6   : > { %3501 = vmatpush2.bf16.msra.mxu1 %v6225_v7  ;;  %3309 = vmatprep.subr.bf16.mxu0 %v6230_v31  ;;  %v1890_v54 = vadd.f32 %v7817_v8, %v1741_v35  ;;  %v1749_v37 = vmul.f32 %v11571_v48, %v11587_v42  ;;  %v1896_v12 = vadd.f32 %v7827_v56, %v1747_v20 }
 0x3a7   : > { %3502 = vmatprep.subr.bf16.mxu1 %v6233_v19  ;;  %v2016_v7 = vmax.f32 %v1888_v62, 0.0  ;;  %v2020_v31 = vmax.f32 %v1892_v30, 0.0  ;;  %v11585_v19 = vld [vmem:[#allocation103_spill] sm:$0xff] }
 0x3a8   : > { %v2018_v21 = vmax.f32 %v1890_v54, 0.0  ;;  %v1898_v35 = vadd.f32 %v7817_v8, %v1749_v37  ;;  %v2024_v62 = vmax.f32 %v1896_v12, 0.0  ;;  %v11589_v30 = vld [vmem:[#allocation107_spill] sm:$0xff] }
 0x3a9   : > { %3310 = vmatpush2.bf16.msra.mxu0 %v6228_v61  ;;  %v1745_v61 = vmul.f32 %v11571_v48, %v11585_v19  ;;  %v8367_v51 = vpack.c.bf16 %v2020_v31, %v2016_v7  ;;  %v11591_v31 = vld [vmem:[#allocation109_spill] sm:$0xff] }
 0x3aa   : > { %3503 = vmatpush2.bf16.msra.mxu1 %v6231_v23  ;;  %v11588_v23 = vld [vmem:[#allocation106_spill] sm:$0xff]  ;;  %v8365_v50 = vpack.c.bf16 %v2018_v21, %v2014_v39  ;;  %v2026_v49 = vmax.f32 %v1898_v35, 0.0  ;;  %v1753_v39 = vmul.f32 %v11571_v48, %v11589_v30  ;;  %v11590_v21 = vld [vmem:[#allocation108_spill] sm:$0xff]  ;;  %v1757_v19 = vmul.f32 %v11571_v48, %v11591_v31 }
 0x3ab   : > { %3006 = vmatmul.mubr.bf16.gmra.mxu0 %v8152_v22  ;;  %3199 = vmatmul.mubr.bf16.gmra.mxu1 %v8158_v15  ;;  %v1751_v60 = vmul.f32 %v11573_v18, %v11588_v23  ;;  %v1894_v27 = vadd.f32 %v7817_v8, %v1745_v61  ;;  %v1755_v7 = vmul.f32 %v11573_v18, %v11590_v21  ;;  %v11592_v61 = vld [vmem:[#allocation110_spill] sm:$0xff] }
 0x3ac   : > { %3015 = vmatprep.mubr.bf16.mxu0 %v8345_v40  ;;  %3208 = vmatprep.mubr.bf16.mxu1 %v8347_v14  ;;  %v1759_v34 = vmul.f32 %v11573_v18, %v11592_v61  ;;  %v1902_v20 = vadd.f32 %v7817_v8, %v1753_v39  ;;  %v11595_v39 = vld [vmem:[#allocation113_spill] sm:$0xff] }
 0x3ad   : > { %v1900_v6 = vadd.f32 %v7827_v56, %v1751_v60  ;;  %v2022_v11 = vmax.f32 %v1894_v27, 0.0  ;;  %v1904_v42 = vadd.f32 %v7827_v56, %v1755_v7  ;;  %v1906_v60 = vadd.f32 %v7817_v8, %v1757_v19  ;;  %v11596_v7 = vld [vmem:[#allocation114_spill] sm:$0xff] }
 0x3ae   : > { %v1908_v27 = vadd.f32 %v7827_v56, %v1759_v34  ;;  %v2030_v12 = vmax.f32 %v1902_v20, 0.0  ;;  %v1765_v21 = vmul.f32 %v11571_v48, %v11595_v39  ;;  %v1767_v31 = vmul.f32 %v11573_v18, %v11596_v7 }
 0x3af   : > { %v2028_v54 = vmax.f32 %v1900_v6, 0.0  ;;  %v8385_v37 = vpack.c.bf16 %v2026_v49, %v2022_v11  ;;  %v2034_v35 = vmax.f32 %v1906_v60, 0.0  ;;  %v2032_v6 = vmax.f32 %v1904_v42, 0.0  ;;  %v11593_v11 = vld [vmem:[#allocation111_spill] sm:$0xff] }
 0x3b0   : > { %v2036_v30 = vmax.f32 %v1908_v27, 0.0  ;;  %v1761_v49 = vmul.f32 %v11571_v48, %v11593_v11  ;;  %v1914_v42 = vadd.f32 %v7817_v8, %v1765_v21  ;;  %v1916_v60 = vadd.f32 %v7827_v56, %v1767_v31  ;;  %v11601_v21 = vld [vmem:[#allocation118_spill] sm:$0xff] }
 0x3b1   : > { %v8387_v23 = vpack.c.bf16 %v2028_v54, %v2024_v62  ;;  %v11594_v62 = vld [vmem:[#allocation112_spill] sm:$0xff]  ;;  %v8405_v34 = vpack.c.bf16 %v2034_v35, %v2030_v12  ;;  %v11598_v12 = vld [vmem:[#allocation115_spill] sm:$0xff]  ;;  %v1775_v7 = vmul.f32 %v11573_v18, %v11601_v21 }
 0x3b2   : > { %v1763_v54 = vmul.f32 %v11573_v18, %v11594_v62  ;;  %v1910_v19 = vadd.f32 %v7817_v8, %v1761_v49  ;;  %v8407_v20 = vpack.c.bf16 %v2036_v30, %v2032_v6  ;;  %v2042_v11 = vmax.f32 %v1914_v42, 0.0  ;;  %v11599_v6 = vld [vmem:[#allocation116_spill] sm:$0xff]  ;;  %v11607_v21 = vld [vmem:[#allocation123_spill] sm:$0xff] }
 0x3b3   : > { %3016 = vmatmul.mubr.bf16.gmra.mxu0 %v8171_v59  ;;  %3209 = vmatmul.mubr.bf16.gmra.mxu1 %v8173_v28  ;;  %v2044_v62 = vmax.f32 %v1916_v60, 0.0  ;;  %v1769_v35 = vmul.f32 %v11571_v48, %v11598_v12  ;;  %v1771_v30 = vmul.f32 %v11573_v18, %v11599_v6  ;;  %v1924_v60 = vadd.f32 %v7827_v56, %v1775_v7 }
 0x3b4   : > { %3025 = vmatprep.mubr.bf16.mxu0 %v8365_v50  ;;  %3218 = vmatprep.mubr.bf16.mxu1 %v8367_v51  ;;  %v1912_v61 = vadd.f32 %v7827_v56, %v1763_v54  ;;  %11597 = vst [vmem:[#allocation74_spill] sm:$0xff] %v8407_v20  ;;  %v2038_v27 = vmax.f32 %v1910_v19, 0.0  ;;  %v11600_v54 = vld [vmem:[#allocation117_spill] sm:$0xff]  ;;  %v1783_v7 = vmul.f32 %v11573_v18, %v11607_v21 }
 0x3b5   : > { %v1773_v39 = vmul.f32 %v11571_v48, %v11600_v54  ;;  %v1918_v31 = vadd.f32 %v7817_v8, %v1769_v35  ;;  %v11606_v54 = vld [vmem:[#allocation122_spill] sm:$0xff] }
 0x3b6   : > { %v2040_v49 = vmax.f32 %v1912_v61, 0.0  ;;  %v8425_v19 = vpack.c.bf16 %v2042_v11, %v2038_v27  ;;  %v11604_v27 = vld [vmem:[#allocation119_spill] sm:$0xff] }
 0x3b7   : > { %v1922_v42 = vadd.f32 %v7817_v8, %v1773_v39  ;;  %v2046_v12 = vmax.f32 %v1918_v31, 0.0  ;;  %v1777_v11 = vmul.f32 %v11571_v48, %v11604_v27  ;;  %v1781_v39 = vmul.f32 %v11571_v48, %v11606_v54  ;;  %v11616_v54 = vld [vmem:[#allocation92_spill] sm:$0xff] }
 0x3b8   : > { %11602 = vst [vmem:[#allocation77_spill] sm:$0xff] %v8425_v19  ;;  %v8427_v61 = vpack.c.bf16 %v2044_v62, %v2040_v49  ;;  %v11605_v49 = vld [vmem:[#allocation120_spill] sm:$0xff] }
 0x3b9   : > { %v2050_v35 = vmax.f32 %v1922_v42, 0.0  ;;  %v1779_v62 = vmul.f32 %v11573_v18, %v11605_v49  ;;  %v1930_v42 = vadd.f32 %v7817_v8, %v1781_v39  ;;  %v11614_v49 = vld [vmem:[#allocation72_spill] sm:$0xff]  ;;  %v11617_v39 = vld [vmem:[#allocation87_spill] sm:$0xff] }
 0x3ba   : > { %11603 = vst [vmem:[#allocation78_spill] sm:$0xff] %v8427_v61 }
 0x3bb   : > { %3026 = vmatmul.mubr.bf16.gmra.mxu0 %v8191_v41  ;;  %3219 = vmatmul.mubr.bf16.gmra.mxu1 %v8196_v45  ;;  %v8445_v31 = vpack.c.bf16 %v2050_v35, %v2046_v12  ;;  %v2058_v18 = vmax.f32 %v1930_v42, 0.0 }
 0x3bc   : > { %3035 = vmatprep.mubr.bf16.mxu0 %v8385_v37  ;;  %3228 = vmatprep.mubr.bf16.mxu1 %v8387_v23 }
 0x3c3   : > { %3036 = vmatmul.mubr.bf16.gmra.mxu0 %v8202_v63  ;;  %3229 = vmatmul.mubr.bf16.gmra.mxu1 %v8213_v57 }
 0x3c4   : > { %3045 = vmatprep.mubr.bf16.mxu0 %v8405_v34  ;;  %3238 = vmatprep.mubr.bf16.mxu1 %v8407_v20  ;;  %v1920_v20 = vadd.f32 %v7827_v56, %v1771_v30  ;;  %v2052_v30 = vmax.f32 %v1924_v60, 0.0  ;;  %v1932_v60 = vadd.f32 %v7827_v56, %v1783_v7 }
 0x3c6   : > { %v2048_v6 = vmax.f32 %v1920_v20, 0.0 }
 0x3c8   : > { %v8447_v20 = vpack.c.bf16 %v2052_v30, %v2048_v6  ;;  %v11612_v6 = vld [vmem:[#allocation67_spill] sm:$0xff]  ;;  %v11613_v30 = vld [vmem:[#allocation69_spill] sm:$0xff] }
 0x3cb   : > { %3046 = vmatmul.mubr.bf16.gmra.mxu0 %v8222_v10  ;;  %3239 = vmatmul.mubr.bf16.gmra.mxu1 %v8228_v52 }
 0x3cc   : > { %3055 = vmatprep.mubr.bf16.mxu0 %v8425_v19  ;;  %3248 = vmatprep.mubr.bf16.mxu1 %v8427_v61  ;;  %v1926_v19 = vadd.f32 %v7817_v8, %v1777_v11  ;;  %v1928_v61 = vadd.f32 %v7827_v56, %v1779_v62  ;;  %v2060_v11 = vmax.f32 %v1932_v60, 0.0  ;;  %v11608_v8 = vld [vmem:[#allocation64_spill] sm:$0xff]  ;;  %v11609_v56 = vld [vmem:[#allocation66_spill] sm:$0xff]  ;;  %v11615_v62 = vld [vmem:[#allocation83_spill] sm:$0xff] }
 0x3ce   : > { %v2054_v48 = vmax.f32 %v1926_v19, 0.0  ;;  %v2056_v27 = vmax.f32 %v1928_v61, 0.0  ;;  %v11610_v19 = vld [vmem:[#allocation63_spill] sm:$0xff]  ;;  %v11611_v61 = vld [vmem:[#allocation65_spill] sm:$0xff] }
 0x3d0   : > { %v8455_v12 = vpack.c.bf16 %v2058_v18, %v2054_v48  ;;  %v8457_v35 = vpack.c.bf16 %v2060_v11, %v2056_v27 }
 0x3d3   : > { %3056 = vmatmul.mubr.bf16.gmra.mxu0 %v8238_v58  ;;  %3249 = vmatmul.mubr.bf16.gmra.mxu1 %v8240_v29 }
 0x3d4   : > { %3065 = vmatprep.mubr.bf16.mxu0 %v8445_v31  ;;  %3258 = vmatprep.mubr.bf16.mxu1 %v8447_v20 }
 0x3db   : > { %3066 = vmatmul.mubr.bf16.gmra.mxu0 %v8253_v44  ;;  %3259 = vmatmul.mubr.bf16.gmra.mxu1 %v8259_v38 }
 0x3dc   : > { %3075 = vmatprep.mubr.bf16.mxu0 %v8455_v12  ;;  %3268 = vmatprep.mubr.bf16.mxu1 %v8457_v35 }
 0x3e3   : > { %3076 = vmatmul.mubr.bf16.gmra.mxu0 %v8273_v24  ;;  %3269 = vmatmul.mubr.bf16.gmra.mxu1 %v8275_v2 }
 0x3e4   : > { %3311 = vmatprep.mubr.bf16.mxu0 %v11608_v8  ;;  %3504 = vmatprep.mubr.bf16.mxu1 %v11609_v56 }
 0x3eb   : > { %3312 = vmatmul.mubr.bf16.vlgmr.msra.gmra.mxu0 %v11610_v19  ;;  %3505 = vmatmul.mubr.bf16.vlgmr.msra.gmra.mxu1 %v11611_v61 }
 0x3ec   : > { %3321 = vmatprep.mubr.bf16.mxu0 %v11612_v6  ;;  %3514 = vmatprep.mubr.bf16.mxu1 %v11613_v30 }
 0x3f3   : > { %3322 = vmatmul.mubr.bf16.gmra.mxu0 %v8010_v46  ;;  %3515 = vmatmul.mubr.bf16.gmra.mxu1 %v11614_v49  ;;  %v11618_v46 = vld [vmem:[#allocation88_spill] sm:$0xff] }
 0x3f4   : > { %3331 = vmatprep.mubr.bf16.mxu0 %v11615_v62  ;;  %3524 = vmatprep.mubr.bf16.mxu1 %v11616_v54 }
 0x3fb   : > { %3332 = vmatmul.mubr.bf16.gmra.mxu0 %v8087_v3  ;;  %3525 = vmatmul.mubr.bf16.gmra.mxu1 %v8089_v47  ;;  %v11619_v3 = vld [vmem:[#allocation25_spill] sm:$0xff]  ;;  %v11620_v47 = vld [vmem:[#allocation27_spill] sm:$0xff] }
 0x3fc   : > { %3341 = vmatprep.mubr.bf16.mxu0 %v8091_v1  ;;  %3534 = vmatprep.mubr.bf16.mxu1 %v8093_v13  ;;  %v11621_v1 = vld [vmem:[#allocation28_spill] sm:$0xff]  ;;  %v11622_v13 = vld [vmem:[#allocation31_spill] sm:$0xff] }
 0x403   : > { %3342 = vmatmul.mubr.bf16.gmra.mxu0 %v8135_v36  ;;  %3535 = vmatmul.mubr.bf16.gmra.mxu1 %v8137_v9 }
 0x404   : > { %3351 = vmatprep.mubr.bf16.mxu0 %v11617_v39  ;;  %3544 = vmatprep.mubr.bf16.mxu1 %v11618_v46 }
 0x40b   : > { %3352 = vmatmul.mubr.bf16.gmra.mxu0 %v8179_v5  ;;  %3545 = vmatmul.mubr.bf16.gmra.mxu1 %v8181_v4 }
 0x40c   : > { %3361 = vmatprep.mubr.bf16.mxu0 %v8185_v55  ;;  %3554 = vmatprep.mubr.bf16.mxu1 %v11619_v3 }
 0x413   : > { %3362 = vmatmul.mubr.bf16.gmra.mxu0 %v8245_v33  ;;  %3555 = vmatmul.mubr.bf16.gmra.mxu1 %v8247_v17 }
 0x414   : > { %3371 = vmatprep.mubr.bf16.mxu0 %v11620_v47  ;;  %3564 = vmatprep.mubr.bf16.mxu1 %v11621_v1 }
 0x41b   : > { %3372 = vmatmul.mubr.bf16.gmra.mxu0 %v8297_v32  ;;  %3565 = vmatmul.mubr.bf16.gmra.mxu1 %v8299_v16 }
 0x41c   : > { %3381 = vmatprep.mubr.bf16.mxu0 %v8301_v0  ;;  %3574 = vmatprep.mubr.bf16.mxu1 %v11622_v13 }
 0x423   : > { %3382 = vmatmul.mubr.bf16.gmra.mxu0 %v8321_v25  ;;  %3575 = vmatmul.mubr.bf16.gmra.mxu1 %v8323_v43 }
 0x424   : > { %3391 = vmatprep.mubr.bf16.mxu0 %v8326_v26  ;;  %3584 = vmatprep.mubr.bf16.mxu1 %v8328_v53 }
 0x428   : > { %v2927_v36 = vpop.f32.mrf.mxu0  ;;  %v3120_v9 = vpop.f32.mrf.mxu1 }
 0x429   : > { %v8501_v5 = vadd.f32 %v3120_v9, %v2927_v36 }
 0x42a   : > { %v2929_v4 = vpop.f32.mrf.mxu0  ;;  %v3122_v55 = vpop.f32.mrf.mxu1 }
 0x42b   : > { %3392 = vmatmul.mubr.bf16.gmra.mxu0 %v8152_v22  ;;  %3585 = vmatmul.mubr.bf16.gmra.mxu1 %v8158_v15  ;;  %11623 = vst [vmem:[#allocation81_spill] sm:$0xff] %v8501_v5  ;;  %v8505_v33 = vadd.f32 %v3122_v55, %v2929_v4 }
 0x42c   : > { %3401 = vmatprep.mubr.bf16.mxu0 %v8345_v40  ;;  %3594 = vmatprep.mubr.bf16.mxu1 %v8347_v14  ;;  %v2931_v17 = vpop.f32.mrf.mxu0  ;;  %v3124_v32 = vpop.f32.mrf.mxu1 }
 0x42d   : > { %11624 = vst [vmem:[#allocation82_spill] sm:$0xff] %v8505_v33  ;;  %v8507_v16 = vadd.f32 %v3124_v32, %v2931_v17 }
 0x42e   : > { %v2933_v0 = vpop.f32.mrf.mxu0  ;;  %v3126_v25 = vpop.f32.mrf.mxu1 }
 0x42f   : > { %11625 = vst [vmem:[#allocation84_spill] sm:$0xff] %v8507_v16  ;;  %v8509_v43 = vadd.f32 %v3126_v25, %v2933_v0 }
 0x431   : > { %11626 = vst [vmem:[#allocation26_spill] sm:$0xff] %v8509_v43 }
 0x432   : > { %v2937_v22 = vpop.f32.mrf.mxu0  ;;  %v3130_v15 = vpop.f32.mrf.mxu1 }
 0x433   : > { %3402 = vmatmul.mubr.bf16.gmra.mxu0 %v8171_v59  ;;  %3595 = vmatmul.mubr.bf16.gmra.mxu1 %v8173_v28  ;;  %v8513_v26 = vadd.f32 %v3130_v15, %v2937_v22 }
 0x434   : > { %3411 = vmatprep.mubr.bf16.mxu0 %v8365_v50  ;;  %3604 = vmatprep.mubr.bf16.mxu1 %v8367_v51  ;;  %v2939_v53 = vpop.f32.mrf.mxu0  ;;  %v3132_v40 = vpop.f32.mrf.mxu1 }
 0x435   : > { %11627 = vst [vmem:[#allocation29_spill] sm:$0xff] %v8513_v26  ;;  %v8517_v14 = vadd.f32 %v3132_v40, %v2939_v53 }
 0x436   : > { %v2941_v21 = vpop.f32.mrf.mxu0  ;;  %v3134_v7 = vpop.f32.mrf.mxu1 }
 0x437   : > { %11628 = vst [vmem:[#allocation30_spill] sm:$0xff] %v8517_v14  ;;  %v8519_v42 = vadd.f32 %v3134_v7, %v2941_v21  ;;  %v11636_v7 = vmov 1.0  }
 0x438   : > { %v2943_v60 = vpop.f32.mrf.mxu0  ;;  %v3136_v48 = vpop.f32.mrf.mxu1 }
 0x439   : > { %11629 = vst [vmem:[#allocation33_spill] sm:$0xff] %v8519_v42  ;;  %v8521_v18 = vadd.f32 %v3136_v48, %v2943_v60 }
 0x43a   : > { %v2947_v59 = vpop.f32.mrf.mxu0  ;;  %v3140_v28 = vpop.f32.mrf.mxu1 }
 0x43b   : > { %11630 = vst [vmem:[#allocation32_spill] sm:$0xff] %v8521_v18  ;;  %3412 = vmatmul.mubr.bf16.gmra.mxu0 %v8191_v41  ;;  %3605 = vmatmul.mubr.bf16.gmra.mxu1 %v8196_v45  ;;  %v8525_v50 = vadd.f32 %v3140_v28, %v2947_v59 }
 0x43c   : > { %3421 = vmatprep.mubr.bf16.mxu0 %v8385_v37  ;;  %3614 = vmatprep.mubr.bf16.mxu1 %v8387_v23  ;;  %v2949_v51 = vpop.f32.mrf.mxu0  ;;  %v3142_v27 = vpop.f32.mrf.mxu1  ;;  %v11633_v37 = vld [vmem:[#allocation74_spill] sm:$0xff] }
 0x43d   : > { %11631 = vst [vmem:[#allocation34_spill] sm:$0xff] %v8525_v50  ;;  %v8529_v11 = vadd.f32 %v3142_v27, %v2949_v51 }
 0x43e   : > { %v8531_v8 = vpop.f32.mrf.mxu0  ;;  %v8533_v56 = vpop.f32.mrf.mxu1 }
 0x43f   : > { %11632 = vst [vmem:[#allocation35_spill] sm:$0xff] %v8529_v11 }
 0x440   : > { %v8535_v19 = vpop.f32.mrf.mxu0  ;;  %v8537_v61 = vpop.f32.mrf.mxu1 }
 0x442   : > { %v8539_v41 = vpop.f32.mrf.mxu0  ;;  %v8541_v45 = vpop.f32.mrf.mxu1 }
 0x443   : > { %3422 = vmatmul.mubr.bf16.gmra.mxu0 %v8202_v63  ;;  %3615 = vmatmul.mubr.bf16.gmra.mxu1 %v8213_v57  ;;  %v11634_v57 = vld [vmem:[#allocation77_spill] sm:$0xff] }
 0x444   : > { %3431 = vmatprep.mubr.bf16.mxu0 %v8405_v34  ;;  %3624 = vmatprep.mubr.bf16.mxu1 %v11633_v37  ;;  %v8547_v23 = vpop.f32.mrf.mxu0  ;;  %v8549_v6 = vpop.f32.mrf.mxu1  ;;  %v11635_v34 = vld [vmem:[#allocation78_spill] sm:$0xff] }
 0x446   : > { %v8551_v30 = vpop.f32.mrf.mxu0  ;;  %v8553_v49 = vpop.f32.mrf.mxu1 }
 0x448   : > { %v8555_v62 = vpop.f32.mrf.mxu0  ;;  %v8557_v54 = vpop.f32.mrf.mxu1 }
 0x44a   : > { %v8559_v39 = vpop.f32.mrf.mxu0  ;;  %v8561_v63 = vpop.f32.mrf.mxu1 }
 0x44b   : > { %3432 = vmatmul.mubr.bf16.gmra.mxu0 %v8222_v10  ;;  %3625 = vmatmul.mubr.bf16.gmra.mxu1 %v8228_v52 }
 0x44c   : > { %3441 = vmatprep.mubr.bf16.mxu0 %v11634_v57  ;;  %3634 = vmatprep.mubr.bf16.mxu1 %v11635_v34  ;;  %v8567_v46 = vpop.f32.mrf.mxu0  ;;  %v8569_v3 = vpop.f32.mrf.mxu1 }
 0x44e   : > { %v8571_v47 = vpop.f32.mrf.mxu0  ;;  %v8573_v1 = vpop.f32.mrf.mxu1 }
 0x450   : > { %v8575_v13 = vpop.f32.mrf.mxu0  ;;  %v8577_v36 = vpop.f32.mrf.mxu1 }
 0x452   : > { %v8579_v9 = vpop.f32.mrf.mxu0  ;;  %v8581_v10 = vpop.f32.mrf.mxu1 }
 0x453   : > { %3442 = vmatmul.mubr.bf16.gmra.mxu0 %v8238_v58  ;;  %3635 = vmatmul.mubr.bf16.gmra.mxu1 %v8240_v29 }
 0x454   : > { %3451 = vmatprep.mubr.bf16.mxu0 %v8445_v31  ;;  %3644 = vmatprep.mubr.bf16.mxu1 %v8447_v20  ;;  %v2979_v52 = vpop.f32.mrf.mxu0  ;;  %v3172_v4 = vpop.f32.mrf.mxu1 }
 0x456   : > { %v2981_v55 = vpop.f32.mrf.mxu0  ;;  %v3174_v17 = vpop.f32.mrf.mxu1 }
 0x458   : > { %v2983_v32 = vpop.f32.mrf.mxu0  ;;  %v3176_v0 = vpop.f32.mrf.mxu1 }
 0x45b   : > { %v2987_v25 = vpop.f32.mrf.mxu0  ;;  %v3180_v22 = vpop.f32.mrf.mxu1  ;;  %3452 = vmatmul.mubr.bf16.gmra.mxu0 %v8253_v44  ;;  %3645 = vmatmul.mubr.bf16.gmra.mxu1 %v8259_v38 }
 0x45c   : > { %3461 = vmatprep.mubr.bf16.mxu0 %v8455_v12  ;;  %3654 = vmatprep.mubr.bf16.mxu1 %v8457_v35 }
 0x45d   : > { %v2989_v58 = vpop.f32.mrf.mxu0  ;;  %v3182_v29 = vpop.f32.mrf.mxu1 }
 0x45f   : > { %v2991_v31 = vpop.f32.mrf.mxu0  ;;  %v3184_v20 = vpop.f32.mrf.mxu1 }
 0x461   : > { %v2993_v15 = vpop.f32.mrf.mxu0  ;;  %v3186_v53 = vpop.f32.mrf.mxu1 }
 0x463   : > { %v2997_v40 = vpop.f32.mrf.mxu0  ;;  %v3190_v21 = vpop.f32.mrf.mxu1  ;;  %3462 = vmatmul.mubr.bf16.gmra.mxu0 %v8273_v24  ;;  %3655 = vmatmul.mubr.bf16.gmra.mxu1 %v8275_v2 }
 0x464   : > { %3731 = vmatprep.mubr.f32.mxu0 %v11636_v7  ;;  %3802 = vmatprep.mubr.f32.mxu1 %v11636_v7  ;;  %v8604_v2 = vadd.f32 %v3190_v21, %v2997_v40  ;;  %v8607_v7 = vadd.f32 %v3186_v53, %v2993_v15  ;;  %v8620_v21 = vadd.f32 %v3180_v22, %v2987_v25 }
 0x465   : > { %v2999_v44 = vpop.f32.mrf.mxu0  ;;  %v3192_v38 = vpop.f32.mrf.mxu1  ;;  %v8640_v22 = vadd.f32 %v8581_v10, %v8579_v9  ;;  %v8657_v9 = vadd.f32 %v8569_v3, %v8567_v46  ;;  %v8678_v46 = vadd.f32 %v8553_v49, %v8551_v30  ;;  %v8695_v30 = vadd.f32 %v8537_v61, %v8535_v19 }
 0x466   : > { %v8599_v37 = vadd.f32 %v3192_v38, %v2999_v44  ;;  %11641 = vst [vmem:[#allocation41_spill] sm:$0xff] %v8604_v2  ;;  %11642 = vst [vmem:[#allocation40_spill] sm:$0xff] %v8607_v7 }
 0x467   : > { %v3001_v12 = vpop.f32.mrf.mxu0  ;;  %v3194_v35 = vpop.f32.mrf.mxu1  ;;  %11647 = vst [vmem:[#allocation46_spill] sm:$0xff] %v8620_v21  ;;  %11652 = vst [vmem:[#allocation54_spill] sm:$0xff] %v8640_v22 }
 0x468   : > { %v8597_v28 = vadd.f32 %v3194_v35, %v3001_v12  ;;  %11639 = vst [vmem:[#allocation39_spill] sm:$0xff] %v8599_v37  ;;  %v8612_v12 = vadd.f32 %v3184_v20, %v2991_v31  ;;  %v8615_v35 = vadd.f32 %v3182_v29, %v2989_v58  ;;  %v8627_v31 = vadd.f32 %v3176_v0, %v2983_v32 }
 0x469   : > { %v3003_v60 = vpop.f32.mrf.mxu0  ;;  %v3196_v48 = vpop.f32.mrf.mxu1  ;;  %v8630_v20 = vadd.f32 %v3174_v17, %v2981_v55  ;;  %v8645_v55 = vadd.f32 %v8577_v36, %v8575_v13  ;;  %11656 = vst [vmem:[#allocation48_spill] sm:$0xff] %v8657_v9  ;;  %v8664_v13 = vadd.f32 %v8561_v63, %v8559_v39  ;;  %11660 = vst [vmem:[#allocation57_spill] sm:$0xff] %v8678_v46 }
 0x46a   : > { %v8595_v59 = vadd.f32 %v3196_v48, %v3003_v60  ;;  %11638 = vst [vmem:[#allocation36_spill] sm:$0xff] %v8597_v28  ;;  %11644 = vst [vmem:[#allocation43_spill] sm:$0xff] %v8612_v12  ;;  %v8633_v48 = vadd.f32 %v3172_v4, %v2979_v52  ;;  %v8652_v52 = vadd.f32 %v8573_v1, %v8571_v47 }
 0x46b   : > { %v3007_v51 = vpop.f32.mrf.mxu0  ;;  %v3200_v27 = vpop.f32.mrf.mxu1  ;;  %11645 = vst [vmem:[#allocation60_spill] sm:$0xff] %v8615_v35  ;;  %11648 = vst [vmem:[#allocation44_spill] sm:$0xff] %v8627_v31  ;;  %v8673_v1 = vadd.f32 %v8557_v54, %v8555_v62  ;;  %v8683_v39 = vadd.f32 %v8549_v6, %v8547_v23  ;;  %v8690_v62 = vadd.f32 %v8541_v45, %v8539_v41 }
 0x46c   : > { %11637 = vst [vmem:[#allocation37_spill] sm:$0xff] %v8595_v59  ;;  %v8601_v24 = vadd.f32 %v3200_v27, %v3007_v51  ;;  %3667 = vmatprep.subr.mxu0 %v8595_v59  ;;  %11649 = vst [vmem:[#allocation47_spill] sm:$0xff] %v8630_v20  ;;  %v8702_v23 = vadd.f32 %v8533_v56, %v8531_v8 }
 0x46d   : > { %v3009_v57 = vpop.f32.mrf.mxu0  ;;  %v3202_v34 = vpop.f32.mrf.mxu1  ;;  %3668 = vmatpush1.msra.mxu0 %v8597_v28  ;;  %11650 = vst [vmem:[#allocation53_spill] sm:$0xff] %v8633_v48  ;;  %11653 = vst [vmem:[#allocation55_spill] sm:$0xff] %v8645_v55 }
 0x46e   : > { %11640 = vst [vmem:[#allocation38_spill] sm:$0xff] %v8601_v24  ;;  %v8609_v60 = vadd.f32 %v3202_v34, %v3009_v57  ;;  %3669 = vmatprep.subr.mxu0 %v8599_v37  ;;  %11655 = vst [vmem:[#allocation50_spill] sm:$0xff] %v8652_v52 }
 0x46f   : > { %v3011_v44 = vpop.f32.mrf.mxu0  ;;  %v3204_v38 = vpop.f32.mrf.mxu1  ;;  %3670 = vmatpush1.msra.mxu0 %v8604_v2  ;;  %11658 = vst [vmem:[#allocation62_spill] sm:$0xff] %v8664_v13  ;;  %11659 = vst [vmem:[#allocation68_spill] sm:$0xff] %v8673_v1 }
 0x470   : > { %11643 = vst [vmem:[#allocation42_spill] sm:$0xff] %v8609_v60  ;;  %v8617_v40 = vadd.f32 %v3204_v38, %v3011_v44  ;;  %3671 = vmatprep.subr.mxu0 %v8607_v7  ;;  %11661 = vst [vmem:[#allocation56_spill] sm:$0xff] %v8683_v39 }
 0x471   : > { %v8622_v15 = vpop.f32.mrf.mxu0  ;;  %v8624_v53 = vpop.f32.mrf.mxu1  ;;  %3672 = vmatpush1.msra.mxu0 %v8612_v12  ;;  %11663 = vst [vmem:[#allocation121_spill] sm:$0xff] %v8690_v62  ;;  %11664 = vst [vmem:[#allocation59_spill] sm:$0xff] %v8695_v30 }
 0x472   : > { %11646 = vst [vmem:[#allocation45_spill] sm:$0xff] %v8617_v40  ;;  %3673 = vmatprep.subr.mxu0 %v8615_v35  ;;  %11666 = vst [vmem:[#allocation70_spill] sm:$0xff] %v8702_v23 }
 0x473   : > { %v3017_v58 = vpop.f32.mrf.mxu0  ;;  %v3210_v29 = vpop.f32.mrf.mxu1  ;;  %3674 = vmatpush1.msra.mxu0 %v8620_v21 }
 0x474   : > { %v8635_v25 = vadd.f32 %v3210_v29, %v3017_v58  ;;  %3675 = vmatprep.subr.mxu0 %v8627_v31 }
 0x475   : > { %v3019_v32 = vpop.f32.mrf.mxu0  ;;  %v3212_v0 = vpop.f32.mrf.mxu1  ;;  %3676 = vmatpush1.msra.mxu0 %v8630_v20 }
 0x476   : > { %11651 = vst [vmem:[#allocation52_spill] sm:$0xff] %v8635_v25  ;;  %v8647_v17 = vadd.f32 %v3212_v0, %v3019_v32  ;;  %3677 = vmatprep.subr.mxu0 %v8633_v48 }
 0x477   : > { %v3021_v4 = vpop.f32.mrf.mxu0  ;;  %v3214_v51 = vpop.f32.mrf.mxu1  ;;  %3678 = vmatpush1.msra.mxu0 %v8640_v22 }
 0x478   : > { %11654 = vst [vmem:[#allocation49_spill] sm:$0xff] %v8647_v17  ;;  %v8659_v10 = vadd.f32 %v3214_v51, %v3021_v4  ;;  %3679 = vmatprep.subr.mxu0 %v8645_v55 }
 0x479   : > { %v8666_v36 = vpop.f32.mrf.mxu0  ;;  %v8668_v47 = vpop.f32.mrf.mxu1  ;;  %3680 = vmatpush1.msra.mxu0 %v8652_v52 }
 0x47a   : > { %11657 = vst [vmem:[#allocation51_spill] sm:$0xff] %v8659_v10  ;;  %3681 = vmatprep.subr.mxu0 %v8657_v9 }
 0x47b   : > { %v3027_v3 = vpop.f32.mrf.mxu0  ;;  %v3220_v27 = vpop.f32.mrf.mxu1  ;;  %3682 = vmatpush1.msra.mxu0 %v8664_v13 }
 0x47c   : > { %v8685_v63 = vadd.f32 %v3220_v27, %v3027_v3  ;;  %3683 = vmatprep.subr.mxu0 %v8673_v1 }
 0x47d   : > { %v3029_v54 = vpop.f32.mrf.mxu0  ;;  %v3222_v57 = vpop.f32.mrf.mxu1  ;;  %3684 = vmatpush1.msra.mxu0 %v8678_v46 }
 0x47e   : > { %11662 = vst [vmem:[#allocation58_spill] sm:$0xff] %v8685_v63  ;;  %v8697_v49 = vadd.f32 %v3222_v57, %v3029_v54  ;;  %3685 = vmatprep.subr.mxu0 %v8683_v39 }
 0x47f   : > { %v8704_v6 = vpop.f32.mrf.mxu0  ;;  %v8706_v41 = vpop.f32.mrf.mxu1  ;;  %3686 = vmatpush1.msra.mxu0 %v8690_v62 }
 0x480   : > { %11665 = vst [vmem:[#allocation124_spill] sm:$0xff] %v8697_v49  ;;  %3687 = vmatprep.subr.mxu0 %v8695_v30 }
 0x481   : > { %v8710_v45 = vpop.f32.mrf.mxu0  ;;  %v8712_v19 = vpop.f32.mrf.mxu1  ;;  %3688 = vmatpush1.msra.mxu0 %v8702_v23 }
 0x482   : > { %3689 = vmatprep.subr.mxu0 %v8529_v11 }
 0x483   : > { %v8716_v61 = vpop.f32.mrf.mxu0  ;;  %v8718_v8 = vpop.f32.mrf.mxu1  ;;  %3690 = vmatpush1.msra.mxu0 %v8525_v50 }
 0x484   : > { %3691 = vmatprep.subr.mxu0 %v8521_v18 }
 0x485   : > { %v8722_v56 = vpop.f32.mrf.mxu0  ;;  %v8724_v34 = vpop.f32.mrf.mxu1  ;;  %3692 = vmatpush1.msra.mxu0 %v8519_v42 }
 0x486   : > { %3693 = vmatprep.subr.mxu0 %v8517_v14 }
 0x487   : > { %v8728_v44 = vpop.f32.mrf.mxu0  ;;  %v8730_v38 = vpop.f32.mrf.mxu1  ;;  %3694 = vmatpush1.msra.mxu0 %v8513_v26 }
 0x488   : > { %3695 = vmatprep.subr.mxu0 %v8509_v43 }
 0x489   : > { %v8734_v58 = vpop.f32.mrf.mxu0  ;;  %v8736_v29 = vpop.f32.mrf.mxu1  ;;  %3696 = vmatpush1.msra.mxu0 %v8507_v16 }
 0x48a   : > { %3697 = vmatprep.subr.mxu0 %v8505_v33 }
 0x48b   : > { %v8740_v32 = vpop.f32.mrf.mxu0  ;;  %v8742_v0 = vpop.f32.mrf.mxu1  ;;  %3698 = vmatpush1.msra.mxu0 %v8501_v5 }
 0x48d   : > { %v8745_v4 = vpop.f32.mrf.mxu0  ;;  %v8747_v51 = vpop.f32.mrf.mxu1 }
 0x48f   : > { %v8749_v3 = vpop.f32.mrf.mxu0  ;;  %v8751_v27 = vpop.f32.mrf.mxu1 }
 0x491   : > { %v8753_v54 = vpop.f32.mrf.mxu0  ;;  %v8755_v57 = vpop.f32.mrf.mxu1 }
 0x493   : > { %v3057_v16 = vpop.f32.mrf.mxu0  ;;  %v3250_v33 = vpop.f32.mrf.mxu1 }
 0x495   : > { %v3059_v43 = vpop.f32.mrf.mxu0  ;;  %v3252_v26 = vpop.f32.mrf.mxu1 }
 0x497   : > { %v3061_v14 = vpop.f32.mrf.mxu0  ;;  %v3254_v42 = vpop.f32.mrf.mxu1 }
 0x499   : > { %v3063_v18 = vpop.f32.mrf.mxu0  ;;  %v3256_v5 = vpop.f32.mrf.mxu1 }
 0x49b   : > { %v3067_v50 = vpop.f32.mrf.mxu0  ;;  %v3260_v11 = vpop.f32.mrf.mxu1 }
 0x49d   : > { %v3069_v23 = vpop.f32.mrf.mxu0  ;;  %v3262_v30 = vpop.f32.mrf.mxu1 }
 0x49f   : > { %v3071_v62 = vpop.f32.mrf.mxu0  ;;  %v3264_v39 = vpop.f32.mrf.mxu1 }
 0x4a1   : > { %v3073_v46 = vpop.f32.mrf.mxu0  ;;  %v3266_v1 = vpop.f32.mrf.mxu1 }
 0x4a2   : > { %v8769_v60 = vadd.f32 %v3266_v1, %v3073_v46  ;;  %v8795_v46 = vadd.f32 %v3252_v26, %v3059_v43  ;;  %v8812_v43 = vadd.f32 %v8751_v27, %v8749_v3  ;;  %v8833_v3 = vadd.f32 %v8736_v29, %v8734_v58 }
 0x4a3   : > { %v3077_v13 = vpop.f32.mrf.mxu0  ;;  %v3270_v9 = vpop.f32.mrf.mxu1  ;;  %v8850_v58 = vadd.f32 %v8718_v8, %v8716_v61 }
 0x4a4   : > { %v8766_v24 = vadd.f32 %v3270_v9, %v3077_v13  ;;  %11672 = vst [vmem:[#allocation73_spill] sm:$0xff] %v8769_v60  ;;  %v8792_v9 = vadd.f32 %v3254_v42, %v3061_v14  ;;  %11682 = vst [vmem:[#allocation91_spill] sm:$0xff] %v8795_v46 }
 0x4a5   : > { %v3079_v52 = vpop.f32.mrf.mxu0  ;;  %v3272_v55 = vpop.f32.mrf.mxu1  ;;  %11687 = vst [vmem:[#allocation97_spill] sm:$0xff] %v8812_v43  ;;  %11693 = vst [vmem:[#allocation103_spill] sm:$0xff] %v8833_v3 }
 0x4a6   : > { %v8761_v2 = vadd.f32 %v3272_v55, %v3079_v52  ;;  %11671 = vst [vmem:[#allocation71_spill] sm:$0xff] %v8766_v24  ;;  %v8782_v55 = vadd.f32 %v3260_v11, %v3067_v50  ;;  %11681 = vst [vmem:[#allocation86_spill] sm:$0xff] %v8792_v9  ;;  %v8800_v11 = vadd.f32 %v3250_v33, %v3057_v16 }
 0x4a7   : > { %v3081_v22 = vpop.f32.mrf.mxu0  ;;  %v3274_v48 = vpop.f32.mrf.mxu1  ;;  %v8817_v33 = vadd.f32 %v8747_v51, %v8745_v4  ;;  %v8838_v4 = vadd.f32 %v8730_v38, %v8728_v44  ;;  %11697 = vst [vmem:[#allocation107_spill] sm:$0xff] %v8850_v58  ;;  %v8855_v44 = vadd.f32 %v8712_v19, %v8710_v45  ;;  %v8877_v19 = vadd.f32 %v8668_v47, %v8666_v36 }
 0x4a8   : > { %v8759_v35 = vadd.f32 %v3274_v48, %v3081_v22  ;;  %11669 = vst [vmem:[#allocation126_spill] sm:$0xff] %v8761_v2  ;;  %11677 = vst [vmem:[#allocation79_spill] sm:$0xff] %v8782_v55  ;;  %v8893_v36 = vadd.f32 %v8624_v53, %v8622_v15  ;;  %v11713_v15 = vld [vmem:[#allocation37_spill] sm:$0xff] }
 0x4a9   : > { %v3083_v20 = vpop.f32.mrf.mxu0  ;;  %v3276_v31 = vpop.f32.mrf.mxu1  ;;  %11684 = vst [vmem:[#allocation90_spill] sm:$0xff] %v8800_v11  ;;  %11688 = vst [vmem:[#allocation98_spill] sm:$0xff] %v8817_v33  ;;  %v3870_v53 = vmul.f32 %v11713_v15, %v11713_v15 }
 0x4aa   : > { %v8757_v21 = vadd.f32 %v3276_v31, %v3083_v20  ;;  %11668 = vst [vmem:[#allocation61_spill] sm:$0xff] %v8759_v35  ;;  %v8774_v20 = vadd.f32 %v3264_v39, %v3071_v62  ;;  %11694 = vst [vmem:[#allocation104_spill] sm:$0xff] %v8838_v4 }
 0x4ab   : > { %v3313_v12 = vpop.f32.mrf.mxu0  ;;  %v3506_v7 = vpop.f32.mrf.mxu1  ;;  %11698 = vst [vmem:[#allocation108_spill] sm:$0xff] %v8855_v44  ;;  %11705 = vst [vmem:[#allocation115_spill] sm:$0xff] %v8877_v19 }
 0x4ac   : > { %11667 = vst [vmem:[#allocation125_spill] sm:$0xff] %v8757_v21  ;;  %v8763_v37 = vadd.f32 %v3506_v7, %v3313_v12  ;;  %3699 = vmatprep.subr.mxu0 %v8757_v21  ;;  %11674 = vst [vmem:[#allocation20_spill] sm:$0xff] %v8774_v20  ;;  %v8777_v7 = vadd.f32 %v3262_v30, %v3069_v23 }
 0x4ad   : > { %v3315_v28 = vpop.f32.mrf.mxu0  ;;  %v3508_v59 = vpop.f32.mrf.mxu1  ;;  %3700 = vmatpush2.msra.mxu0 %v8759_v35  ;;  %11710 = vst [vmem:[#allocation120_spill] sm:$0xff] %v8893_v36 }
 0x4ae   : > { %11670 = vst [vmem:[#allocation127_spill] sm:$0xff] %v8763_v37  ;;  %v8771_v31 = vadd.f32 %v3508_v59, %v3315_v28  ;;  %3701 = vmatprep.subr.mxu0 %v8761_v2  ;;  %11675 = vst [vmem:[#allocation76_spill] sm:$0xff] %v8777_v7  ;;  %v8789_v28 = vadd.f32 %v3256_v5, %v3063_v18  ;;  %v8805_v5 = vadd.f32 %v8755_v57, %v8753_v54 }
 0x4af   : > { %v3317_v48 = vpop.f32.mrf.mxu0  ;;  %v3510_v22 = vpop.f32.mrf.mxu1  ;;  %3702 = vmatpush2.msra.mxu0 %v8766_v24  ;;  %v8824_v18 = vadd.f32 %v8742_v0, %v8740_v32  ;;  %v8843_v32 = vadd.f32 %v8724_v34, %v8722_v56  ;;  %v8862_v56 = vadd.f32 %v8706_v41, %v8704_v6 }
 0x4b0   : > { %11673 = vst [vmem:[#allocation75_spill] sm:$0xff] %v8771_v31  ;;  %v8779_v12 = vadd.f32 %v3510_v22, %v3317_v48  ;;  %3703 = vmatprep.subr.mxu0 %v8769_v60  ;;  %11680 = vst [vmem:[#allocation95_spill] sm:$0xff] %v8789_v28  ;;  %v11718_v31 = vld [vmem:[#allocation41_spill] sm:$0xff] }
 0x4b1   : > { %v8784_v52 = vpop.f32.mrf.mxu0  ;;  %v8786_v59 = vpop.f32.mrf.mxu1  ;;  %3704 = vmatpush2.msra.mxu0 %v8774_v20  ;;  %11685 = vst [vmem:[#allocation93_spill] sm:$0xff] %v8805_v5  ;;  %11690 = vst [vmem:[#allocation100_spill] sm:$0xff] %v8824_v18 }
 0x4b2   : > { %11676 = vst [vmem:[#allocation96_spill] sm:$0xff] %v8779_v12  ;;  %11678 = vst [vmem:[#allocation80_spill] sm:$0xff] %v8784_v52  ;;  %3705 = vmatprep.subr.mxu0 %v8777_v7  ;;  %v3865_v12 = vmul.f32 %v11718_v31, %v11718_v31  ;;  %v11721_v31 = vld [vmem:[#allocation60_spill] sm:$0xff] }
 0x4b3   : > { %11679 = vst [vmem:[#allocation85_spill] sm:$0xff] %v8786_v59  ;;  %v3323_v13 = vpop.f32.mrf.mxu0  ;;  %v3516_v1 = vpop.f32.mrf.mxu1  ;;  %3706 = vmatpush2.msra.mxu0 %v8782_v55  ;;  %11695 = vst [vmem:[#allocation105_spill] sm:$0xff] %v8843_v32  ;;  %v11724_v59 = vld [vmem:[#allocation47_spill] sm:$0xff] }
 0x4b4   : > { %v8797_v50 = vadd.f32 %v3516_v1, %v3323_v13  ;;  %3707 = vmatprep.subr.mxu0 %v8789_v28  ;;  %11700 = vst [vmem:[#allocation110_spill] sm:$0xff] %v8862_v56  ;;  %v3853_v52 = vmul.f32 %v11724_v59, %v11724_v59 }
 0x4b5   : > { %v3325_v39 = vpop.f32.mrf.mxu0  ;;  %v3518_v62 = vpop.f32.mrf.mxu1  ;;  %3708 = vmatpush2.msra.mxu0 %v8792_v9 }
 0x4b6   : > { %11683 = vst [vmem:[#allocation89_spill] sm:$0xff] %v8797_v50  ;;  %v8807_v14 = vadd.f32 %v3518_v62, %v3325_v39  ;;  %3709 = vmatprep.subr.mxu0 %v8795_v46  ;;  %v11712_v39 = vld [vmem:[#allocation42_spill] sm:$0xff]  ;;  %v11714_v62 = vld [vmem:[#allocation36_spill] sm:$0xff] }
 0x4b7   : > { %v3327_v26 = vpop.f32.mrf.mxu0  ;;  %v3520_v42 = vpop.f32.mrf.mxu1  ;;  %3710 = vmatpush2.msra.mxu0 %v8800_v11 }
 0x4b8   : > { %11686 = vst [vmem:[#allocation94_spill] sm:$0xff] %v8807_v14  ;;  %v8819_v16 = vadd.f32 %v3520_v42, %v3327_v26  ;;  %3711 = vmatprep.subr.mxu0 %v8805_v5  ;;  %v3869_v26 = vmul.f32 %v11714_v62, %v11714_v62  ;;  %v11719_v62 = vld [vmem:[#allocation40_spill] sm:$0xff]  ;;  %v11722_v14 = vld [vmem:[#allocation46_spill] sm:$0xff] }
 0x4b9   : > { %v8826_v30 = vpop.f32.mrf.mxu0  ;;  %v8828_v23 = vpop.f32.mrf.mxu1  ;;  %3712 = vmatpush2.msra.mxu0 %v8812_v43 }
 0x4ba   : > { %11689 = vst [vmem:[#allocation99_spill] sm:$0xff] %v8819_v16  ;;  %11691 = vst [vmem:[#allocation101_spill] sm:$0xff] %v8826_v30  ;;  %3713 = vmatprep.subr.mxu0 %v8817_v33  ;;  %v11726_v16 = vld [vmem:[#allocation54_spill] sm:$0xff]  ;;  %v11734_v30 = vld [vmem:[#allocation121_spill] sm:$0xff] }
 0x4bb   : > { %11692 = vst [vmem:[#allocation102_spill] sm:$0xff] %v8828_v23  ;;  %v3333_v51 = vpop.f32.mrf.mxu0  ;;  %v3526_v27 = vpop.f32.mrf.mxu1  ;;  %3714 = vmatpush2.msra.mxu0 %v8824_v18 }
 0x4bc   : > { %v8845_v0 = vadd.f32 %v3526_v27, %v3333_v51  ;;  %3715 = vmatprep.subr.mxu0 %v8833_v3  ;;  %v11715_v27 = vld [vmem:[#allocation38_spill] sm:$0xff] }
 0x4bd   : > { %v3335_v29 = vpop.f32.mrf.mxu0  ;;  %v3528_v54 = vpop.f32.mrf.mxu1  ;;  %3716 = vmatpush2.msra.mxu0 %v8838_v4 }
 0x4be   : > { %11696 = vst [vmem:[#allocation106_spill] sm:$0xff] %v8845_v0  ;;  %v8857_v38 = vadd.f32 %v3528_v54, %v3335_v29  ;;  %3717 = vmatprep.subr.mxu0 %v8843_v32  ;;  %v11716_v29 = vmov 1.0   ;;  %v11717_v54 = vld [vmem:[#allocation39_spill] sm:$0xff] }
 0x4bf   : > { %v8864_v34 = vpop.f32.mrf.mxu0  ;;  %v8866_v61 = vpop.f32.mrf.mxu1  ;;  %3718 = vmatpush2.msra.mxu0 %v8850_v58  ;;  %v3866_v37 = vmul.f32 %v11717_v54, %v11717_v54 }
 0x4c0   : > { %11699 = vst [vmem:[#allocation109_spill] sm:$0xff] %v8857_v38  ;;  %11701 = vst [vmem:[#allocation111_spill] sm:$0xff] %v8864_v34  ;;  %3719 = vmatprep.subr.mxu0 %v8855_v44  ;;  %v11732_v38 = vld [vmem:[#allocation57_spill] sm:$0xff] }
 0x4c1   : > { %11702 = vst [vmem:[#allocation112_spill] sm:$0xff] %v8866_v61  ;;  %v8870_v8 = vpop.f32.mrf.mxu0  ;;  %v8872_v45 = vpop.f32.mrf.mxu1  ;;  %3720 = vmatpush2.msra.mxu0 %v8862_v56  ;;  %v3837_v23 = vmul.f32 %v11732_v38, %v11732_v38 }
 0x4c2   : > { %11703 = vst [vmem:[#allocation113_spill] sm:$0xff] %v8870_v8  ;;  %11704 = vst [vmem:[#allocation114_spill] sm:$0xff] %v8872_v45  ;;  %3721 = vmatprep.subr.mxu0 %v8697_v49  ;;  %v11736_v49 = vld [vmem:[#allocation70_spill] sm:$0xff] }
 0x4c3   : > { %v8880_v6 = vpop.f32.mrf.mxu0  ;;  %v8882_v41 = vpop.f32.mrf.mxu1  ;;  %3722 = vmatpush2.msra.mxu0 %v8685_v63  ;;  %v3833_v63 = vmul.f32 %v11734_v30, %v11734_v30  ;;  %v3829_v61 = vmul.f32 %v11736_v49, %v11736_v49  ;;  %v11738_v30 = vld [vmem:[#allocation34_spill] sm:$0xff] }
 0x4c4   : > { %11706 = vst [vmem:[#allocation116_spill] sm:$0xff] %v8880_v6  ;;  %11707 = vst [vmem:[#allocation117_spill] sm:$0xff] %v8882_v41  ;;  %3723 = vmatprep.subr.mxu0 %v8877_v19  ;;  %v3825_v56 = vmul.f32 %v11738_v30, %v11738_v30 }
 0x4c5   : > { %v8886_v57 = vpop.f32.mrf.mxu0  ;;  %v8888_v48 = vpop.f32.mrf.mxu1  ;;  %3724 = vmatpush2.msra.mxu0 %v8659_v10  ;;  %v11730_v10 = vld [vmem:[#allocation62_spill] sm:$0xff] }
 0x4c6   : > { %11708 = vst [vmem:[#allocation118_spill] sm:$0xff] %v8886_v57  ;;  %11709 = vst [vmem:[#allocation119_spill] sm:$0xff] %v8888_v48  ;;  %3725 = vmatprep.subr.mxu0 %v8647_v17  ;;  %v11728_v17 = vld [vmem:[#allocation50_spill] sm:$0xff]  ;;  %v3841_v19 = vmul.f32 %v11730_v10, %v11730_v10 }
 0x4c7   : > { %v8896_v47 = vpop.f32.mrf.mxu0  ;;  %v8898_v22 = vpop.f32.mrf.mxu1  ;;  %3726 = vmatpush2.msra.mxu0 %v8635_v25  ;;  %v3849_v25 = vmul.f32 %v11726_v16, %v11726_v16  ;;  %v3845_v0 = vmul.f32 %v11728_v17, %v11728_v17 }
 0x4c8   : > { %11711 = vst [vmem:[#allocation122_spill] sm:$0xff] %v8898_v22  ;;  %3727 = vmatprep.subr.mxu0 %v8893_v36  ;;  %v3858_v36 = vmul.f32 %v11721_v31, %v11721_v31  ;;  %v11725_v31 = vld [vmem:[#allocation53_spill] sm:$0xff] }
 0x4c9   : > { %v8902_v13 = vpop.f32.mrf.mxu0  ;;  %v8904_v1 = vpop.f32.mrf.mxu1  ;;  %3728 = vmatpush2.msra.mxu0 %v8617_v40 }
 0x4ca   : > { %3729 = vmatprep.subr.mxu0 %v11712_v39 }
 0x4cb   : > { %v8912_v42 = vpop.f32.mrf.mxu0  ;;  %v8914_v51 = vpop.f32.mrf.mxu1  ;;  %3730 = vmatpush2.msra.mxu0 %v11715_v27  ;;  %v3862_v27 = vmul.f32 %v11719_v62, %v11719_v62  ;;  %v11723_v62 = vld [vmem:[#allocation44_spill] sm:$0xff] }
 0x4cc   : > { %3937 = vmatprep.subr.mxu0 %v3870_v53  ;;  %3732 = vmatmul.mubr.f32.vlgmr.msra.gmra.mxu0 %v11716_v29  ;;  %v11720_v53 = vld [vmem:[#allocation43_spill] sm:$0xff] }
 0x4cd   : > { %v8922_v39 = vpop.f32.mrf.mxu0  ;;  %v8924_v15 = vpop.f32.mrf.mxu1  ;;  %3938 = vmatpush1.msra.mxu0 %v3869_v26  ;;  %4001 = vmatprep.mubr.f32.mxu0 %v11716_v29  ;;  %v3861_v50 = vmul.f32 %v11720_v53, %v11720_v53  ;;  %v3857_v26 = vmul.f32 %v11722_v14, %v11722_v14  ;;  %v3854_v53 = vmul.f32 %v11723_v62, %v11723_v62  ;;  %v11727_v62 = vld [vmem:[#allocation55_spill] sm:$0xff] }
 0x4ce   : > { %3939 = vmatprep.subr.mxu0 %v3866_v37  ;;  %v3850_v14 = vmul.f32 %v11725_v31, %v11725_v31  ;;  %v3846_v59 = vmul.f32 %v11727_v62, %v11727_v62  ;;  %v11729_v31 = vld [vmem:[#allocation48_spill] sm:$0xff] }
 0x4cf   : > { %v8931_v40 = vpop.f32.mrf.mxu0  ;;  %v8933_v54 = vpop.f32.mrf.mxu1  ;;  %3940 = vmatpush1.msra.mxu0 %v3865_v12  ;;  %v3842_v16 = vmul.f32 %v11729_v31, %v11729_v31  ;;  %v11731_v62 = vld [vmem:[#allocation68_spill] sm:$0xff] }
 0x4d0   : > { %3941 = vmatprep.subr.mxu0 %v3862_v27  ;;  %v3838_v17 = vmul.f32 %v11731_v62, %v11731_v62  ;;  %v11733_v31 = vld [vmem:[#allocation56_spill] sm:$0xff]  ;;  %v11735_v62 = vld [vmem:[#allocation59_spill] sm:$0xff] }
 0x4d1   : > { %v8939_v29 = vpop.f32.mrf.mxu0  ;;  %v8941_v37 = vpop.f32.mrf.mxu1  ;;  %3942 = vmatpush1.msra.mxu0 %v3861_v50  ;;  %v3834_v10 = vmul.f32 %v11733_v31, %v11733_v31  ;;  %v3830_v38 = vmul.f32 %v11735_v62, %v11735_v62  ;;  %v11737_v31 = vld [vmem:[#allocation35_spill] sm:$0xff]  ;;  %v11740_v62 = vld [vmem:[#allocation33_spill] sm:$0xff] }
 0x4d2   : > { %3943 = vmatprep.subr.mxu0 %v3858_v36  ;;  %v3826_v34 = vmul.f32 %v11737_v31, %v11737_v31  ;;  %v3821_v49 = vmul.f32 %v11740_v62, %v11740_v62  ;;  %v11742_v31 = vld [vmem:[#allocation29_spill] sm:$0xff] }
 0x4d3   : > { %v8947_v12 = vpop.f32.mrf.mxu0  ;;  %v8949_v27 = vpop.f32.mrf.mxu1  ;;  %3944 = vmatpush1.msra.mxu0 %v3857_v26  ;;  %v3817_v30 = vmul.f32 %v11742_v31, %v11742_v31 }
 0x4d4   : > { %3945 = vmatprep.subr.mxu0 %v3854_v53 }
 0x4d5   : > { %v8955_v50 = vpop.f32.mrf.mxu0  ;;  %v8957_v36 = vpop.f32.mrf.mxu1  ;;  %3946 = vmatpush1.msra.mxu0 %v3853_v52 }
 0x4d6   : > { %3947 = vmatprep.subr.mxu0 %v3850_v14 }
 0x4d7   : > { %v8963_v26 = vpop.f32.mrf.mxu0  ;;  %v8965_v53 = vpop.f32.mrf.mxu1  ;;  %3948 = vmatpush1.msra.mxu0 %v3849_v25 }
 0x4d8   : > { %3949 = vmatprep.subr.mxu0 %v3846_v59 }
 0x4d9   : > { %v8971_v52 = vpop.f32.mrf.mxu0  ;;  %v8973_v14 = vpop.f32.mrf.mxu1  ;;  %3950 = vmatpush1.msra.mxu0 %v3845_v0 }
 0x4da   : > { %3951 = vmatprep.subr.mxu0 %v3842_v16 }
 0x4db   : > { %v8979_v25 = vpop.f32.mrf.mxu0  ;;  %v8981_v59 = vpop.f32.mrf.mxu1  ;;  %3952 = vmatpush1.msra.mxu0 %v3841_v19 }
 0x4dc   : > { %3953 = vmatprep.subr.mxu0 %v3838_v17 }
 0x4dd   : > { %v8987_v0 = vpop.f32.mrf.mxu0  ;;  %v8989_v16 = vpop.f32.mrf.mxu1  ;;  %3954 = vmatpush1.msra.mxu0 %v3837_v23 }
 0x4de   : > { %3955 = vmatprep.subr.mxu0 %v3834_v10  ;;  %v11739_v10 = vld [vmem:[#allocation32_spill] sm:$0xff] }
 0x4df   : > { %v3377_v19 = vpop.f32.mrf.mxu0  ;;  %v3570_v17 = vpop.f32.mrf.mxu1  ;;  %3956 = vmatpush1.msra.mxu0 %v3833_v63  ;;  %v3822_v23 = vmul.f32 %v11739_v10, %v11739_v10  ;;  %v11741_v63 = vld [vmem:[#allocation30_spill] sm:$0xff]  ;;  %v11744_v10 = vld [vmem:[#allocation84_spill] sm:$0xff] }
 0x4e0   : > { %3957 = vmatprep.subr.mxu0 %v3830_v38  ;;  %v3818_v38 = vmul.f32 %v11741_v63, %v11741_v63  ;;  %v3813_v62 = vmul.f32 %v11744_v10, %v11744_v10  ;;  %v11746_v63 = vld [vmem:[#allocation81_spill] sm:$0xff] }
 0x4e1   : > { %v3379_v44 = vpop.f32.mrf.mxu0  ;;  %v3572_v45 = vpop.f32.mrf.mxu1  ;;  %3958 = vmatpush1.msra.mxu0 %v3829_v61  ;;  %v3809_v31 = vmul.f32 %v11746_v63, %v11746_v63 }
 0x4e2   : > { %3959 = vmatprep.subr.mxu0 %v3826_v34  ;;  %v11743_v34 = vld [vmem:[#allocation26_spill] sm:$0xff] }
 0x4e3   : > { %v3383_v8 = vpop.f32.mrf.mxu0  ;;  %v3576_v41 = vpop.f32.mrf.mxu1  ;;  %3960 = vmatpush1.msra.mxu0 %v3825_v56  ;;  %v3814_v61 = vmul.f32 %v11743_v34, %v11743_v34  ;;  %v11745_v56 = vld [vmem:[#allocation82_spill] sm:$0xff]  ;;  %v3933_v34 = vmul.f32 %v8759_v35, %v8759_v35 }
 0x4e4   : > { %3961 = vmatprep.subr.mxu0 %v3822_v23  ;;  %v3810_v23 = vmul.f32 %v11745_v56, %v11745_v56 }
 0x4e5   : > { %v3385_v6 = vpop.f32.mrf.mxu0  ;;  %v3578_v58 = vpop.f32.mrf.mxu1  ;;  %3962 = vmatpush1.msra.mxu0 %v3821_v49 }
 0x4e6   : > { %3963 = vmatprep.subr.mxu0 %v3818_v38  ;;  %v3934_v38 = vmul.f32 %v8757_v21, %v8757_v21  ;;  %v9023_v56 = vadd.f32 %v3578_v58, %v3385_v6  ;;  %v3926_v6 = vmul.f32 %v8769_v60, %v8769_v60 }
 0x4e7   : > { %v3387_v32 = vpop.f32.mrf.mxu0  ;;  %v3580_v48 = vpop.f32.mrf.mxu1  ;;  %3964 = vmatpush1.msra.mxu0 %v3817_v30 }
 0x4e8   : > { %3965 = vmatprep.subr.mxu0 %v3814_v61  ;;  %v9021_v30 = vadd.f32 %v3580_v48, %v3387_v32  ;;  %11749 = vst [vmem:[#allocation66_spill] sm:$0xff] %v9023_v56 }
 0x4e9   : > { %v3389_v57 = vpop.f32.mrf.mxu0  ;;  %v3582_v22 = vpop.f32.mrf.mxu1  ;;  %3966 = vmatpush1.msra.mxu0 %v3813_v62  ;;  %v9032_v62 = vadd.f32 %v3576_v41, %v3383_v8  ;;  %v9044_v8 = vadd.f32 %v3570_v17, %v3377_v19  ;;  %v3921_v19 = vmul.f32 %v8782_v55, %v8782_v55  ;;  %v9060_v17 = vadd.f32 %v8981_v59, %v8979_v25 }
 0x4ea   : > { %v9015_v49 = vadd.f32 %v3582_v22, %v3389_v57  ;;  %3967 = vmatprep.subr.mxu0 %v3810_v23  ;;  %11748 = vst [vmem:[#allocation64_spill] sm:$0xff] %v9021_v30  ;;  %v3930_v57 = vmul.f32 %v8761_v2, %v8761_v2  ;;  %v3929_v22 = vmul.f32 %v8766_v24, %v8766_v24  ;;  %v11787_v2 = vld [vmem:[#allocation102_spill] sm:$0xff] }
 0x4eb   : > { %v3393_v61 = vpop.f32.mrf.mxu0  ;;  %v3586_v10 = vpop.f32.mrf.mxu1  ;;  %3968 = vmatpush1.msra.mxu0 %v3809_v31  ;;  %11750 = vst [vmem:[#allocation63_spill] sm:$0xff] %v9032_v62  ;;  %v9035_v31 = vadd.f32 %v3572_v45, %v3379_v44  ;;  %11753 = vst [vmem:[#allocation69_spill] sm:$0xff] %v9044_v8  ;;  %v9049_v44 = vadd.f32 %v8989_v16, %v8987_v0  ;;  %v9065_v0 = vadd.f32 %v8973_v14, %v8971_v52 }
 0x4ec   : > { %11747 = vst [vmem:[#allocation123_spill] sm:$0xff] %v9015_v49  ;;  %v9025_v63 = vadd.f32 %v3586_v10, %v3393_v61  ;;  %3738 = vmatprep.subr.mxu1 %v9015_v49  ;;  %3969 = vmatprep.subr.mxu0 %v3934_v38  ;;  %v3925_v10 = vmul.f32 %v8774_v20, %v8774_v20  ;;  %11755 = vst [vmem:[#allocation83_spill] sm:$0xff] %v9060_v17  ;;  %v11791_v20 = vld [vmem:[#allocation51_spill] sm:$0xff] }
 0x4ed   : > { %v3395_v32 = vpop.f32.mrf.mxu0  ;;  %v3588_v48 = vpop.f32.mrf.mxu1  ;;  %3739 = vmatpush1.msra.mxu1 %v9021_v30  ;;  %3970 = vmatpush2.msra.mxu0 %v3933_v34  ;;  %11751 = vst [vmem:[#allocation65_spill] sm:$0xff] %v9035_v31  ;;  %11754 = vst [vmem:[#allocation72_spill] sm:$0xff] %v9049_v44  ;;  %v3922_v34 = vmul.f32 %v8777_v7, %v8777_v7  ;;  %v3917_v25 = vmul.f32 %v8792_v9, %v8792_v9  ;;  %v11792_v9 = vld [vmem:[#allocation106_spill] sm:$0xff] }
 0x4ee   : > { %v9037_v58 = vadd.f32 %v3588_v48, %v3395_v32  ;;  %3740 = vmatprep.subr.mxu1 %v9023_v56  ;;  %3971 = vmatprep.subr.mxu0 %v3930_v57  ;;  %11756 = vst [vmem:[#allocation92_spill] sm:$0xff] %v9065_v0  ;;  %v3918_v57 = vmul.f32 %v8789_v28, %v8789_v28 }
 0x4ef   : > { %v3397_v41 = vpop.f32.mrf.mxu0  ;;  %v3590_v23 = vpop.f32.mrf.mxu1  ;;  %3741 = vmatpush1.msra.mxu1 %v9032_v62  ;;  %3972 = vmatpush2.msra.mxu0 %v3929_v22  ;;  %v9076_v59 = vadd.f32 %v8965_v53, %v8963_v26  ;;  %v9081_v52 = vadd.f32 %v8957_v36, %v8955_v50  ;;  %v3914_v48 = vmul.f32 %v8795_v46, %v8795_v46 }
 0x4f0   : > { %11752 = vst [vmem:[#allocation67_spill] sm:$0xff] %v9037_v58  ;;  %v9051_v45 = vadd.f32 %v3590_v23, %v3397_v41  ;;  %3742 = vmatprep.subr.mxu1 %v9035_v31  ;;  %3973 = vmatprep.subr.mxu0 %v3926_v6  ;;  %v3913_v26 = vmul.f32 %v8800_v11, %v8800_v11 }
 0x4f1   : > { %v3399_v38 = vpop.f32.mrf.mxu0  ;;  %v3592_v61 = vpop.f32.mrf.mxu1  ;;  %3743 = vmatpush1.msra.mxu1 %v9044_v8  ;;  %3974 = vmatpush2.msra.mxu0 %v3925_v10  ;;  %11758 = vst [vmem:[#allocation88_spill] sm:$0xff] %v9076_v59  ;;  %11759 = vst [vmem:[#allocation25_spill] sm:$0xff] %v9081_v52  ;;  %v9092_v53 = vadd.f32 %v8949_v27, %v8947_v12  ;;  %v9097_v50 = vadd.f32 %v8941_v37, %v8939_v29 }
 0x4f2   : > { %v9067_v16 = vadd.f32 %v3592_v61, %v3399_v38  ;;  %3744 = vmatprep.subr.mxu1 %v9049_v44  ;;  %3975 = vmatprep.subr.mxu0 %v3922_v34  ;;  %v3910_v41 = vmul.f32 %v8805_v5, %v8805_v5  ;;  %v3909_v12 = vmul.f32 %v8812_v43, %v8812_v43  ;;  %v11795_v5 = vld [vmem:[#allocation99_spill] sm:$0xff]  ;;  %v11796_v43 = vld [vmem:[#allocation80_spill] sm:$0xff] }
 0x4f3   : > { %v3403_v22 = vpop.f32.mrf.mxu0  ;;  %v3596_v32 = vpop.f32.mrf.mxu1  ;;  %3745 = vmatpush1.msra.mxu1 %v9060_v17  ;;  %3976 = vmatpush2.msra.mxu0 %v3921_v19  ;;  %11760 = vst [vmem:[#allocation27_spill] sm:$0xff] %v9092_v53  ;;  %11761 = vst [vmem:[#allocation28_spill] sm:$0xff] %v9097_v50  ;;  %v9108_v27 = vadd.f32 %v8933_v54, %v8931_v40  ;;  %v9113_v29 = vadd.f32 %v8924_v15, %v8922_v39 }
 0x4f4   : > { %11757 = vst [vmem:[#allocation87_spill] sm:$0xff] %v9067_v16  ;;  %v9083_v14 = vadd.f32 %v3596_v32, %v3403_v22  ;;  %3746 = vmatprep.subr.mxu1 %v9065_v0  ;;  %3977 = vmatprep.subr.mxu0 %v3918_v57  ;;  %v3906_v19 = vmul.f32 %v8817_v33, %v8817_v33  ;;  %v11797_v33 = vld [vmem:[#allocation85_spill] sm:$0xff] }
 0x4f5   : > { %v3405_v6 = vpop.f32.mrf.mxu0  ;;  %v3598_v10 = vpop.f32.mrf.mxu1  ;;  %3747 = vmatpush1.msra.mxu1 %v9076_v59  ;;  %3978 = vmatpush2.msra.mxu0 %v3917_v25  ;;  %11762 = vst [vmem:[#allocation31_spill] sm:$0xff] %v9108_v27  ;;  %11763 = vst [vmem:[#allocation74_spill] sm:$0xff] %v9113_v29  ;;  %v3905_v40 = vmul.f32 %v8824_v18, %v8824_v18  ;;  %v9124_v54 = vadd.f32 %v8914_v51, %v8912_v42  ;;  %v11766_v51 = vld [vmem:[#allocation122_spill] sm:$0xff] }
 0x4f6   : > { %v9099_v36 = vadd.f32 %v3598_v10, %v3405_v6  ;;  %3748 = vmatprep.subr.mxu1 %v9081_v52  ;;  %3979 = vmatprep.subr.mxu0 %v3914_v48  ;;  %v9129_v39 = vadd.f32 %v8904_v1, %v8902_v13  ;;  %v3902_v57 = vmul.f32 %v8833_v3, %v8833_v3  ;;  %v11768_v13 = vld [vmem:[#allocation118_spill] sm:$0xff]  ;;  %v11769_v1 = vld [vmem:[#allocation119_spill] sm:$0xff]  ;;  %v11771_v6 = vld [vmem:[#allocation105_spill] sm:$0xff] }
 0x4f7   : > { %v3407_v23 = vpop.f32.mrf.mxu0  ;;  %v3600_v34 = vpop.f32.mrf.mxu1  ;;  %3749 = vmatpush1.msra.mxu1 %v9092_v53  ;;  %3980 = vmatpush2.msra.mxu0 %v3913_v26  ;;  %11764 = vst [vmem:[#allocation77_spill] sm:$0xff] %v9124_v54  ;;  %v3901_v42 = vmul.f32 %v8838_v4, %v8838_v4  ;;  %v9140_v25 = vadd.f32 %v11766_v51, %v8896_v47  ;;  %v11801_v4 = vld [vmem:[#allocation45_spill] sm:$0xff] }
 0x4f8   : > { %v9115_v37 = vadd.f32 %v3600_v34, %v3407_v23  ;;  %3750 = vmatprep.subr.mxu1 %v9097_v50  ;;  %3981 = vmatprep.subr.mxu0 %v3910_v41  ;;  %11765 = vst [vmem:[#allocation78_spill] sm:$0xff] %v9129_v39  ;;  %v9145_v48 = vadd.f32 %v11769_v1, %v11768_v13  ;;  %v11772_v41 = vld [vmem:[#allocation107_spill] sm:$0xff]  ;;  %v11774_v23 = vld [vmem:[#allocation117_spill] sm:$0xff]  ;;  %v11780_v13 = vld [vmem:[#allocation110_spill] sm:$0xff] }
 0x4f9   : > { %v3409_v38 = vpop.f32.mrf.mxu0  ;;  %v3602_v61 = vpop.f32.mrf.mxu1  ;;  %3751 = vmatpush1.msra.mxu1 %v9108_v27  ;;  %3982 = vmatpush2.msra.mxu0 %v3909_v12  ;;  %11767 = vst [vmem:[#allocation122_spill] sm:$0xff] %v9140_v25  ;;  %v3898_v10 = vmul.f32 %v11771_v6, %v11771_v6  ;;  %v3897_v47 = vmul.f32 %v11772_v41, %v11772_v41  ;;  %v11773_v12 = vld [vmem:[#allocation116_spill] sm:$0xff] }
 0x4fa   : > { %v9131_v15 = vadd.f32 %v3602_v61, %v3409_v38  ;;  %3752 = vmatprep.subr.mxu1 %v9113_v29  ;;  %3983 = vmatprep.subr.mxu0 %v3906_v19  ;;  %11770 = vst [vmem:[#allocation118_spill] sm:$0xff] %v9145_v48  ;;  %v9156_v34 = vadd.f32 %v11774_v23, %v11773_v12  ;;  %v11776_v38 = vld [vmem:[#allocation113_spill] sm:$0xff]  ;;  %v11777_v61 = vld [vmem:[#allocation114_spill] sm:$0xff]  ;;  %v11781_v12 = vld [vmem:[#allocation111_spill] sm:$0xff] }
 0x4fb   : > { %v3413_v22 = vpop.f32.mrf.mxu0  ;;  %v3606_v32 = vpop.f32.mrf.mxu1  ;;  %3753 = vmatpush1.msra.mxu1 %v9124_v54  ;;  %3984 = vmatpush2.msra.mxu0 %v3905_v40  ;;  %v9161_v51 = vadd.f32 %v11777_v61, %v11776_v38  ;;  %v3893_v1 = vmul.f32 %v11780_v13, %v11780_v13  ;;  %v11782_v23 = vld [vmem:[#allocation112_spill] sm:$0xff]  ;;  %v3885_v7 = vmul.f32 %v11791_v20, %v11791_v20  ;;  %v11802_v13 = vld [vmem:[#allocation89_spill] sm:$0xff] }
 0x4fc   : > { %v9147_v26 = vadd.f32 %v3606_v32, %v3413_v22  ;;  %3754 = vmatprep.subr.mxu1 %v9129_v39  ;;  %3985 = vmatprep.subr.mxu0 %v3902_v57  ;;  %11775 = vst [vmem:[#allocation119_spill] sm:$0xff] %v9156_v34  ;;  %v11779_v22 = vld [vmem:[#allocation108_spill] sm:$0xff]  ;;  %v9172_v21 = vadd.f32 %v11782_v23, %v11781_v12  ;;  %v11786_v23 = vld [vmem:[#allocation101_spill] sm:$0xff] }
 0x4fd   : > { %v3415_v19 = vpop.f32.mrf.mxu0  ;;  %v3608_v40 = vpop.f32.mrf.mxu1  ;;  %3755 = vmatpush1.msra.mxu1 %v9140_v25  ;;  %3986 = vmatpush2.msra.mxu0 %v3901_v42  ;;  %11778 = vst [vmem:[#allocation116_spill] sm:$0xff] %v9161_v51  ;;  %v3894_v32 = vmul.f32 %v11779_v22, %v11779_v22  ;;  %v9191_v24 = vadd.f32 %v11787_v2, %v11786_v23  ;;  %v11793_v2 = vld [vmem:[#allocation49_spill] sm:$0xff] }
 0x4fe   : > { %v9163_v57 = vadd.f32 %v3608_v40, %v3415_v19  ;;  %3756 = vmatprep.subr.mxu1 %v9145_v48  ;;  %3987 = vmatprep.subr.mxu0 %v3898_v10  ;;  %11783 = vst [vmem:[#allocation117_spill] sm:$0xff] %v9172_v21  ;;  %v11784_v10 = vld [vmem:[#allocation124_spill] sm:$0xff]  ;;  %v11785_v40 = vld [vmem:[#allocation58_spill] sm:$0xff]  ;;  %v9215_v18 = vadd.f32 %v11797_v33, %v11796_v43 }
 0x4ff   : > { %v9174_v42 = vpop.f32.mrf.mxu0  ;;  %v9176_v35 = vpop.f32.mrf.mxu1  ;;  %3757 = vmatpush1.msra.mxu1 %v9156_v34  ;;  %3988 = vmatpush2.msra.mxu0 %v3897_v47  ;;  %v3890_v19 = vmul.f32 %v11784_v10, %v11784_v10  ;;  %v3889_v38 = vmul.f32 %v11785_v40, %v11785_v40  ;;  %11788 = vst [vmem:[#allocation113_spill] sm:$0xff] %v9191_v24  ;;  %v11789_v47 = vld [vmem:[#allocation109_spill] sm:$0xff]  ;;  %v11804_v33 = vld [vmem:[#allocation38_spill] sm:$0xff]  ;;  %v11805_v40 = vld [vmem:[#allocation96_spill] sm:$0xff] }
 0x500   : > { %3758 = vmatprep.subr.mxu1 %v9161_v51  ;;  %3989 = vmatprep.subr.mxu0 %v3894_v32  ;;  %v11790_v32 = vld [vmem:[#allocation115_spill] sm:$0xff]  ;;  %11798 = vst [vmem:[#allocation114_spill] sm:$0xff] %v9215_v18  ;;  %v3877_v6 = vmul.f32 %v11801_v4, %v11801_v4 }
 0x501   : > { %v9184_v61 = vpop.f32.mrf.mxu0  ;;  %v9186_v12 = vpop.f32.mrf.mxu1  ;;  %3759 = vmatpush1.msra.mxu1 %v9172_v21  ;;  %3990 = vmatpush2.msra.mxu0 %v3893_v1  ;;  %v3886_v60 = vmul.f32 %v11790_v32, %v11790_v32  ;;  %v3882_v1 = vmul.f32 %v11793_v2, %v11793_v2  ;;  %v11806_v32 = vld [vmem:[#allocation75_spill] sm:$0xff] }
 0x502   : > { %3760 = vmatprep.subr.mxu1 %v11789_v47  ;;  %3991 = vmatprep.subr.mxu0 %v3890_v19  ;;  %v11794_v19 = vld [vmem:[#allocation52_spill] sm:$0xff] }
 0x503   : > { %v9198_v55 = vpop.f32.mrf.mxu0  ;;  %v9200_v28 = vpop.f32.mrf.mxu1  ;;  %3761 = vmatpush1.msra.mxu1 %v11792_v9  ;;  %3992 = vmatpush2.msra.mxu0 %v3889_v38  ;;  %v3881_v23 = vmul.f32 %v11794_v19, %v11794_v19  ;;  %v11799_v38 = vld [vmem:[#allocation94_spill] sm:$0xff] }
 0x504   : > { %3762 = vmatprep.subr.mxu1 %v9191_v24  ;;  %3993 = vmatprep.subr.mxu0 %v3886_v60  ;;  %v11800_v60 = vld [vmem:[#allocation120_spill] sm:$0xff] }
 0x505   : > { %v9208_v46 = vpop.f32.mrf.mxu0  ;;  %v9210_v11 = vpop.f32.mrf.mxu1  ;;  %3763 = vmatpush1.msra.mxu1 %v11795_v5  ;;  %3994 = vmatpush2.msra.mxu0 %v3885_v7  ;;  %v3878_v3 = vmul.f32 %v11800_v60, %v11800_v60  ;;  %v11803_v7 = vld [vmem:[#allocation42_spill] sm:$0xff] }
 0x506   : > { %3764 = vmatprep.subr.mxu1 %v11799_v38  ;;  %3995 = vmatprep.subr.mxu0 %v3882_v1  ;;  %v3874_v43 = vmul.f32 %v11803_v7, %v11803_v7  ;;  %v3873_v1 = vmul.f32 %v11804_v33, %v11804_v33  ;;  %v11808_v7 = vmov 1.0  }
 0x507   : > { %v9222_v41 = vpop.f32.mrf.mxu0  ;;  %v9224_v22 = vpop.f32.mrf.mxu1  ;;  %3765 = vmatpush1.msra.mxu1 %v11802_v13  ;;  %3996 = vmatpush2.msra.mxu0 %v3881_v23 }
 0x508   : > { %3766 = vmatprep.subr.mxu1 %v9215_v18  ;;  %3997 = vmatprep.subr.mxu0 %v3878_v3  ;;  %v11807_v3 = vld [vmem:[#allocation127_spill] sm:$0xff] }
 0x509   : > { %v9232_v60 = vpop.f32.mrf.mxu0  ;;  %v9234_v10 = vpop.f32.mrf.mxu1  ;;  %3767 = vmatpush1.msra.mxu1 %v11805_v40  ;;  %3998 = vmatpush2.msra.mxu0 %v3877_v6 }
 0x50a   : > { %3768 = vmatprep.subr.mxu1 %v11806_v32  ;;  %3999 = vmatprep.subr.mxu0 %v3874_v43 }
 0x50b   : > { %v9238_v23 = vpop.f32.mrf.mxu0  ;;  %v3626_v20 = vpop.f32.mrf.mxu1  ;;  %3769 = vmatpush1.msra.mxu1 %v11807_v3  ;;  %4000 = vmatpush2.msra.mxu0 %v3873_v1 }
 0x50c   : > { %4002 = vmatmul.mubr.f32.vlgmr.msra.gmra.mxu0 %v11808_v7 }
 0x50d   : > { %v3435_v2 = vpop.f32.mrf.mxu0  ;;  %v3628_v19 = vpop.f32.mrf.mxu1 }
 0x50f   : > { %v3437_v4 = vpop.f32.mrf.mxu0  ;;  %v3630_v33 = vpop.f32.mrf.mxu1 }
 0x511   : > { %v3439_v18 = vpop.f32.mrf.mxu0  ;;  %v3632_v13 = vpop.f32.mrf.mxu1 }
 0x513   : > { %v3443_v38 = vpop.f32.mrf.mxu0  ;;  %v3636_v40 = vpop.f32.mrf.mxu1 }
 0x515   : > { %v3445_v6 = vpop.f32.mrf.mxu0  ;;  %v3638_v5 = vpop.f32.mrf.mxu1 }
 0x517   : > { %v3447_v32 = vpop.f32.mrf.mxu0  ;;  %v3640_v43 = vpop.f32.mrf.mxu1 }
 0x519   : > { %v3449_v24 = vpop.f32.mrf.mxu0  ;;  %v3642_v9 = vpop.f32.mrf.mxu1 }
 0x51b   : > { %v3453_v47 = vpop.f32.mrf.mxu0  ;;  %v3646_v21 = vpop.f32.mrf.mxu1 }
 0x51d   : > { %v3455_v3 = vpop.f32.mrf.mxu0  ;;  %v3648_v1 = vpop.f32.mrf.mxu1 }
 0x51f   : > { %v3457_v51 = vpop.f32.mrf.mxu0  ;;  %v3650_v34 = vpop.f32.mrf.mxu1 }
 0x520   : > { %v9255_v62 = vadd.f32 %v3650_v34, %v3457_v51  ;;  %v11828_v34 = vld [vmem:[#allocation69_spill] sm:$0xff] }
 0x521   : > { %v3459_v48 = vpop.f32.mrf.mxu0  ;;  %v3652_v25 = vpop.f32.mrf.mxu1  ;;  %v3863_v51 = vmul.f32 %v11828_v34, %v11828_v34 }
 0x522   : > { %v9252_v31 = vadd.f32 %v3652_v25, %v3459_v48  ;;  %11814 = vst [vmem:[#allocation85_spill] sm:$0xff] %v9255_v62  ;;  %v9316_v25 = vadd.f32 %v9176_v35, %v9174_v42  ;;  %v3872_v35 = vmul.f32 %v9015_v49, %v9015_v49  ;;  %v11827_v48 = vld [vmem:[#allocation65_spill] sm:$0xff]  ;;  %v11830_v42 = vld [vmem:[#allocation83_spill] sm:$0xff]  ;;  %v11849_v49 = vld [vmem:[#allocation94_spill] sm:$0xff] }
 0x523   : > { %v3463_v39 = vpop.f32.mrf.mxu0  ;;  %v3656_v54 = vpop.f32.mrf.mxu1 }
 0x524   : > { %v9249_v8 = vadd.f32 %v3656_v54, %v3463_v39  ;;  %11813 = vst [vmem:[#allocation80_spill] sm:$0xff] %v9252_v31  ;;  %v9291_v54 = vadd.f32 %v9234_v10, %v9232_v60  ;;  %v9311_v39 = vadd.f32 %v9186_v12, %v9184_v61  ;;  %v3859_v10 = vmul.f32 %v11830_v42, %v11830_v42  ;;  %v11832_v12 = vld [vmem:[#allocation88_spill] sm:$0xff] }
 0x525   : > { %v3465_v29 = vpop.f32.mrf.mxu0  ;;  %v3658_v27 = vpop.f32.mrf.mxu1  ;;  %v11835_v60 = vld [vmem:[#allocation28_spill] sm:$0xff] }
 0x526   : > { %v9246_v44 = vadd.f32 %v3658_v27, %v3465_v29  ;;  %11812 = vst [vmem:[#allocation102_spill] sm:$0xff] %v9249_v8  ;;  %v9270_v27 = vadd.f32 %v3638_v5, %v3445_v6  ;;  %v9273_v29 = vadd.f32 %v3636_v40, %v3443_v38  ;;  %v9286_v5 = vadd.f32 %v3626_v20, %v9238_v23  ;;  %v11831_v40 = vld [vmem:[#allocation92_spill] sm:$0xff]  ;;  %v11836_v23 = vld [vmem:[#allocation31_spill] sm:$0xff]  ;;  %v11837_v6 = vld [vmem:[#allocation74_spill] sm:$0xff] }
 0x527   : > { %v3467_v50 = vpop.f32.mrf.mxu0  ;;  %v3660_v53 = vpop.f32.mrf.mxu1  ;;  %11825 = vst [vmem:[#allocation138_spill] sm:$0xff] %v9291_v54  ;;  %v9306_v20 = vadd.f32 %v9200_v28, %v9198_v55  ;;  %v3871_v55 = vmul.f32 %v9021_v30, %v9021_v30  ;;  %v3868_v28 = vmul.f32 %v9023_v56, %v9023_v56  ;;  %v3856_v61 = vmul.f32 %v11831_v40, %v11831_v40  ;;  %v11847_v30 = vld [vmem:[#allocation113_spill] sm:$0xff] }
 0x528   : > { %v9244_v17 = vadd.f32 %v3660_v53, %v3467_v50  ;;  %11811 = vst [vmem:[#allocation101_spill] sm:$0xff] %v9246_v44  ;;  %v9264_v53 = vadd.f32 %v3642_v9, %v3449_v24  ;;  %v9267_v50 = vadd.f32 %v3640_v43, %v3447_v32  ;;  %11819 = vst [vmem:[#allocation132_spill] sm:$0xff] %v9270_v27  ;;  %v11833_v32 = vld [vmem:[#allocation25_spill] sm:$0xff] }
 0x529   : > { %v3469_v52 = vpop.f32.mrf.mxu0  ;;  %v3662_v59 = vpop.f32.mrf.mxu1  ;;  %11820 = vst [vmem:[#allocation133_spill] sm:$0xff] %v9273_v29  ;;  %v9279_v24 = vadd.f32 %v3630_v33, %v3437_v4  ;;  %v9282_v9 = vadd.f32 %v3628_v19, %v3435_v2  ;;  %11824 = vst [vmem:[#allocation137_spill] sm:$0xff] %v9286_v5  ;;  %v9301_v4 = vadd.f32 %v9210_v11, %v9208_v46  ;;  %v11826_v46 = vld [vmem:[#allocation63_spill] sm:$0xff] }
 0x52a   : > { %v9242_v0 = vadd.f32 %v3662_v59, %v3469_v52  ;;  %11810 = vst [vmem:[#allocation112_spill] sm:$0xff] %v9244_v17  ;;  %v9258_v59 = vadd.f32 %v3648_v1, %v3455_v3  ;;  %v9261_v52 = vadd.f32 %v3646_v21, %v3453_v47  ;;  %11817 = vst [vmem:[#allocation130_spill] sm:$0xff] %v9264_v53  ;;  %v11834_v19 = vld [vmem:[#allocation27_spill] sm:$0xff]  ;;  %v11838_v1 = vld [vmem:[#allocation77_spill] sm:$0xff] }
 0x52b   : > { %11818 = vst [vmem:[#allocation131_spill] sm:$0xff] %v9267_v50  ;;  %v9276_v21 = vadd.f32 %v3632_v13, %v3439_v18  ;;  %11822 = vst [vmem:[#allocation135_spill] sm:$0xff] %v9279_v24  ;;  %v9296_v18 = vadd.f32 %v9224_v22, %v9222_v41  ;;  %v3867_v11 = vmul.f32 %v11826_v46, %v11826_v46  ;;  %v11829_v22 = vld [vmem:[#allocation72_spill] sm:$0xff] }
 0x52c   : > { %11809 = vst [vmem:[#allocation111_spill] sm:$0xff] %v9242_v0  ;;  %3770 = vmatprep.subr.mxu1 %v9242_v0  ;;  %11815 = vst [vmem:[#allocation128_spill] sm:$0xff] %v9258_v59  ;;  %v3864_v41 = vmul.f32 %v11827_v48, %v11827_v48  ;;  %v3860_v13 = vmul.f32 %v11829_v22, %v11829_v22  ;;  %v3855_v47 = vmul.f32 %v11832_v12, %v11832_v12  ;;  %v11851_v48 = vld [vmem:[#allocation114_spill] sm:$0xff]  ;;  %v11853_v22 = vld [vmem:[#allocation75_spill] sm:$0xff] }
 0x52d   : > { %3771 = vmatpush2.msra.mxu1 %v9244_v17  ;;  %11816 = vst [vmem:[#allocation129_spill] sm:$0xff] %v9261_v52  ;;  %11821 = vst [vmem:[#allocation134_spill] sm:$0xff] %v9276_v21  ;;  %v3852_v2 = vmul.f32 %v11833_v32, %v11833_v32  ;;  %v3851_v38 = vmul.f32 %v11834_v19, %v11834_v19  ;;  %v3848_v33 = vmul.f32 %v11835_v60, %v11835_v60 }
 0x52e   : > { %3772 = vmatprep.subr.mxu1 %v9246_v44  ;;  %11823 = vst [vmem:[#allocation136_spill] sm:$0xff] %v9282_v9  ;;  %v3847_v3 = vmul.f32 %v11836_v23, %v11836_v23  ;;  %v3844_v43 = vmul.f32 %v11837_v6, %v11837_v6 }
 0x52f   : > { %3773 = vmatpush2.msra.mxu1 %v9249_v8 }
 0x530   : > { %3774 = vmatprep.subr.mxu1 %v9252_v31 }
 0x531   : > { %3775 = vmatpush2.msra.mxu1 %v9255_v62 }
 0x532   : > { %3776 = vmatprep.subr.mxu1 %v9258_v59 }
 0x533   : > { %3777 = vmatpush2.msra.mxu1 %v9261_v52 }
 0x534   : > { %3778 = vmatprep.subr.mxu1 %v9264_v53 }
 0x535   : > { %3779 = vmatpush2.msra.mxu1 %v9267_v50 }
 0x536   : > { %3780 = vmatprep.subr.mxu1 %v9270_v27 }
 0x537   : > { %3781 = vmatpush2.msra.mxu1 %v9273_v29 }
 0x538   : > { %3782 = vmatprep.subr.mxu1 %v9276_v21 }
 0x539   : > { %3783 = vmatpush2.msra.mxu1 %v9279_v24 }
 0x53a   : > { %3784 = vmatprep.subr.mxu1 %v9282_v9 }
 0x53b   : > { %3785 = vmatpush2.msra.mxu1 %v9286_v5 }
 0x53c   : > { %3786 = vmatprep.subr.mxu1 %v9291_v54 }
 0x53d   : > { %3787 = vmatpush2.msra.mxu1 %v9296_v18 }
 0x53e   : > { %3788 = vmatprep.subr.mxu1 %v9301_v4 }
 0x53f   : > { %3789 = vmatpush2.msra.mxu1 %v9306_v20 }
 0x540   : > { %3790 = vmatprep.subr.mxu1 %v9311_v39 }
 0x541   : > { %3791 = vmatpush2.msra.mxu1 %v9316_v25 }
 0x542   : > { %3792 = vmatprep.subr.mxu1 %v9163_v57 }
 0x543   : > { %3793 = vmatpush2.msra.mxu1 %v9147_v26 }
 0x544   : > { %3794 = vmatprep.subr.mxu1 %v9131_v15 }
 0x545   : > { %3795 = vmatpush2.msra.mxu1 %v9115_v37 }
 0x546   : > { %3796 = vmatprep.subr.mxu1 %v9099_v36 }
 0x547   : > { %3797 = vmatpush2.msra.mxu1 %v9083_v14 }
 0x548   : > { %3798 = vmatprep.subr.mxu1 %v9067_v16 }
 0x549   : > { %3799 = vmatpush2.msra.mxu1 %v9051_v45 }
 0x54a   : > { %3800 = vmatprep.subr.mxu1 %v9037_v58 }
 0x54b   : > { %3801 = vmatpush2.msra.mxu1 %v9025_v63 }
 0x54c   : > { %4008 = vmatprep.subr.mxu1 %v3872_v35  ;;  %3803 = vmatmul.mubr.f32.vlgmr.msra.gmra.mxu1 %v11808_v7  ;;  %v3843_v35 = vmul.f32 %v11838_v1, %v11838_v1 }
 0x54d   : > { %4009 = vmatpush1.msra.mxu1 %v3871_v55  ;;  %4072 = vmatprep.mubr.f32.mxu1 %v11808_v7  ;;  %v11839_v55 = vld [vmem:[#allocation78_spill] sm:$0xff] }
 0x54e   : > { %4010 = vmatprep.subr.mxu1 %v3868_v28  ;;  %v3840_v28 = vmul.f32 %v11839_v55, %v11839_v55 }
 0x54f   : > { %4011 = vmatpush1.msra.mxu1 %v3867_v11  ;;  %v11840_v11 = vld [vmem:[#allocation122_spill] sm:$0xff] }
 0x550   : > { %4012 = vmatprep.subr.mxu1 %v3864_v41  ;;  %v3839_v41 = vmul.f32 %v11840_v11, %v11840_v11 }
 0x551   : > { %4013 = vmatpush1.msra.mxu1 %v3863_v51  ;;  %v11841_v51 = vld [vmem:[#allocation118_spill] sm:$0xff] }
 0x552   : > { %4014 = vmatprep.subr.mxu1 %v3860_v13  ;;  %v3836_v13 = vmul.f32 %v11841_v51, %v11841_v51 }
 0x553   : > { %4015 = vmatpush1.msra.mxu1 %v3859_v10  ;;  %v11842_v10 = vld [vmem:[#allocation119_spill] sm:$0xff] }
 0x554   : > { %4016 = vmatprep.subr.mxu1 %v3856_v61  ;;  %v3835_v61 = vmul.f32 %v11842_v10, %v11842_v10 }
 0x555   : > { %4017 = vmatpush1.msra.mxu1 %v3855_v47  ;;  %v11843_v47 = vld [vmem:[#allocation116_spill] sm:$0xff] }
 0x556   : > { %4018 = vmatprep.subr.mxu1 %v3852_v2  ;;  %v3832_v2 = vmul.f32 %v11843_v47, %v11843_v47 }
 0x557   : > { %4019 = vmatpush1.msra.mxu1 %v3851_v38  ;;  %v11844_v38 = vld [vmem:[#allocation117_spill] sm:$0xff] }
 0x558   : > { %4020 = vmatprep.subr.mxu1 %v3848_v33  ;;  %v3831_v33 = vmul.f32 %v11844_v38, %v11844_v38 }
 0x559   : > { %4021 = vmatpush1.msra.mxu1 %v3847_v3  ;;  %v11845_v3 = vld [vmem:[#allocation109_spill] sm:$0xff] }
 0x55a   : > { %4022 = vmatprep.subr.mxu1 %v3844_v43  ;;  %v3828_v43 = vmul.f32 %v11845_v3, %v11845_v3 }
 0x55b   : > { %4023 = vmatpush1.msra.mxu1 %v3843_v35  ;;  %v11846_v35 = vld [vmem:[#allocation106_spill] sm:$0xff] }
 0x55c   : > { %4024 = vmatprep.subr.mxu1 %v3840_v28  ;;  %v3827_v28 = vmul.f32 %v11846_v35, %v11846_v35 }
 0x55d   : > { %4025 = vmatpush1.msra.mxu1 %v3839_v41  ;;  %v3824_v41 = vmul.f32 %v11847_v30, %v11847_v30 }
 0x55e   : > { %4026 = vmatprep.subr.mxu1 %v3836_v13  ;;  %v11848_v13 = vld [vmem:[#allocation99_spill] sm:$0xff] }
 0x55f   : > { %4027 = vmatpush1.msra.mxu1 %v3835_v61  ;;  %v3823_v46 = vmul.f32 %v11848_v13, %v11848_v13  ;;  %v3820_v61 = vmul.f32 %v11849_v49, %v11849_v49 }
 0x560   : > { %4028 = vmatprep.subr.mxu1 %v3832_v2  ;;  %v11850_v2 = vld [vmem:[#allocation89_spill] sm:$0xff] }
 0x561   : > { %4029 = vmatpush1.msra.mxu1 %v3831_v33  ;;  %v3819_v56 = vmul.f32 %v11850_v2, %v11850_v2  ;;  %v3816_v33 = vmul.f32 %v11851_v48, %v11851_v48 }
 0x562   : > { %4030 = vmatprep.subr.mxu1 %v3828_v43  ;;  %v11852_v43 = vld [vmem:[#allocation96_spill] sm:$0xff] }
 0x563   : > { %4031 = vmatpush1.msra.mxu1 %v3827_v28  ;;  %v3815_v34 = vmul.f32 %v11852_v43, %v11852_v43  ;;  %v3812_v28 = vmul.f32 %v11853_v22, %v11853_v22 }
 0x564   : > { %4032 = vmatprep.subr.mxu1 %v3824_v41  ;;  %v11854_v41 = vld [vmem:[#allocation127_spill] sm:$0xff] }
 0x565   : > { %4033 = vmatpush1.msra.mxu1 %v3823_v46  ;;  %v3811_v42 = vmul.f32 %v11854_v41, %v11854_v41  ;;  %v3936_v46 = vmul.f32 %v9242_v0, %v9242_v0  ;;  %v6236_v0 = vld [vmem:[#allocation11 + $0x38] sm:$0xff]  }
 0x566   : > { %4034 = vmatprep.subr.mxu1 %v3820_v61  ;;  %v3935_v61 = vmul.f32 %v9244_v17, %v9244_v17  ;;  %v6240_v17 = vld [vmem:[#allocation11 + $0x30] sm:$0xff]  }
 0x567   : > { %4035 = vmatpush1.msra.mxu1 %v3819_v56  ;;  %v3932_v56 = vmul.f32 %v9246_v44, %v9246_v44 }
 0x568   : > { %4036 = vmatprep.subr.mxu1 %v3816_v33  ;;  %v3931_v33 = vmul.f32 %v9249_v8, %v9249_v8 }
 0x569   : > { %4037 = vmatpush1.msra.mxu1 %v3815_v34  ;;  %v3928_v34 = vmul.f32 %v9252_v31, %v9252_v31 }
 0x56a   : > { %4038 = vmatprep.subr.mxu1 %v3812_v28  ;;  %v3927_v28 = vmul.f32 %v9255_v62, %v9255_v62 }
 0x56b   : > { %4039 = vmatpush1.msra.mxu1 %v3811_v42  ;;  %v3924_v42 = vmul.f32 %v9258_v59, %v9258_v59 }
 0x56c   : > { %4040 = vmatprep.subr.mxu1 %v3936_v46  ;;  %v3923_v46 = vmul.f32 %v9261_v52, %v9261_v52 }
 0x56d   : > { %4041 = vmatpush2.msra.mxu1 %v3935_v61  ;;  %v3920_v61 = vmul.f32 %v9264_v53, %v9264_v53 }
 0x56e   : > { %4042 = vmatprep.subr.mxu1 %v3932_v56  ;;  %v3919_v56 = vmul.f32 %v9267_v50, %v9267_v50 }
 0x56f   : > { %4043 = vmatpush2.msra.mxu1 %v3931_v33  ;;  %v3916_v33 = vmul.f32 %v9270_v27, %v9270_v27 }
 0x570   : > { %4044 = vmatprep.subr.mxu1 %v3928_v34  ;;  %v3915_v34 = vmul.f32 %v9273_v29, %v9273_v29 }
 0x571   : > { %4045 = vmatpush2.msra.mxu1 %v3927_v28  ;;  %v3912_v28 = vmul.f32 %v9276_v21, %v9276_v21 }
 0x572   : > { %4046 = vmatprep.subr.mxu1 %v3924_v42  ;;  %v3911_v42 = vmul.f32 %v9279_v24, %v9279_v24 }
 0x573   : > { %4047 = vmatpush2.msra.mxu1 %v3923_v46  ;;  %v3908_v46 = vmul.f32 %v9282_v9, %v9282_v9 }
 0x574   : > { %4048 = vmatprep.subr.mxu1 %v3920_v61  ;;  %v3907_v61 = vmul.f32 %v9286_v5, %v9286_v5 }
 0x575   : > { %4049 = vmatpush2.msra.mxu1 %v3919_v56  ;;  %v3904_v56 = vmul.f32 %v9291_v54, %v9291_v54 }
 0x576   : > { %4050 = vmatprep.subr.mxu1 %v3916_v33  ;;  %v3903_v33 = vmul.f32 %v9296_v18, %v9296_v18 }
 0x577   : > { %4051 = vmatpush2.msra.mxu1 %v3915_v34  ;;  %v3900_v34 = vmul.f32 %v9301_v4, %v9301_v4 }
 0x578   : > { %4052 = vmatprep.subr.mxu1 %v3912_v28  ;;  %v3899_v28 = vmul.f32 %v9306_v20, %v9306_v20 }
 0x579   : > { %4053 = vmatpush2.msra.mxu1 %v3911_v42  ;;  %v3896_v42 = vmul.f32 %v9311_v39, %v9311_v39 }
 0x57a   : > { %4054 = vmatprep.subr.mxu1 %v3908_v46  ;;  %v3895_v46 = vmul.f32 %v9316_v25, %v9316_v25 }
 0x57b   : > { %4055 = vmatpush2.msra.mxu1 %v3907_v61  ;;  %v3892_v61 = vmul.f32 %v9163_v57, %v9163_v57 }
 0x57c   : > { %4056 = vmatprep.subr.mxu1 %v3904_v56  ;;  %v3891_v56 = vmul.f32 %v9147_v26, %v9147_v26 }
 0x57d   : > { %4057 = vmatpush2.msra.mxu1 %v3903_v33  ;;  %v3888_v33 = vmul.f32 %v9131_v15, %v9131_v15 }
 0x57e   : > { %4058 = vmatprep.subr.mxu1 %v3900_v34  ;;  %v3887_v34 = vmul.f32 %v9115_v37, %v9115_v37 }
 0x57f   : > { %4059 = vmatpush2.msra.mxu1 %v3899_v28  ;;  %v3884_v28 = vmul.f32 %v9099_v36, %v9099_v36 }
 0x580   : > { %4060 = vmatprep.subr.mxu1 %v3896_v42  ;;  %v3883_v42 = vmul.f32 %v9083_v14, %v9083_v14 }
 0x581   : > { %4061 = vmatpush2.msra.mxu1 %v3895_v46  ;;  %v3880_v46 = vmul.f32 %v9067_v16, %v9067_v16  ;;  %v6237_v16 = vld [vmem:[#allocation11 + $0xb8] sm:$0xff]  }
 0x582   : > { %4062 = vmatprep.subr.mxu1 %v3892_v61  ;;  %v3879_v61 = vmul.f32 %v9051_v45, %v9051_v45 }
 0x583   : > { %4063 = vmatpush2.msra.mxu1 %v3891_v56  ;;  %v3876_v56 = vmul.f32 %v9037_v58, %v9037_v58  ;;  %v6241_v58 = vld [vmem:[#allocation11 + $0xb0] sm:$0xff]  }
 0x584   : > { %4064 = vmatprep.subr.mxu1 %v3888_v33  ;;  %v3875_v33 = vmul.f32 %v9025_v63, %v9025_v63 }
 0x585   : > { %4065 = vmatpush2.msra.mxu1 %v3887_v34  ;;  %v6234_v34 = vld [vmem:[#allocation11 + $0x78] sm:$0xff]  }
 0x586   : > { %4066 = vmatprep.subr.mxu1 %v3884_v28  ;;  %v6235_v28 = vld [vmem:[#allocation11 + $0xf8] sm:$0xff]   ;;  %5648 = vmatprep.subr.bf16.mxu0 %v6234_v34  ;;  %v6246_v34 = vld [vmem:[#allocation11 + $0x60] sm:$0xff]  }
 0x587   : > { %4067 = vmatpush2.msra.mxu1 %v3883_v42  ;;  %5649 = vmatpush3.bf16.msra.mxu0 %v6236_v0  ;;  %v6238_v42 = vld [vmem:[#allocation11 + $0x70] sm:$0xff]   ;;  %v6248_v0 = vld [vmem:[#allocation11 + $0x20] sm:$0xff]  }
 0x588   : > { %4068 = vmatprep.subr.mxu1 %v3880_v46  ;;  %v6239_v46 = vld [vmem:[#allocation11 + $0xf0] sm:$0xff]   ;;  %5650 = vmatprep.subr.bf16.mxu0 %v6238_v42  ;;  %v6250_v42 = vld [vmem:[#allocation11 + $0x58] sm:$0xff]  }
 0x589   : > { %4069 = vmatpush2.msra.mxu1 %v3879_v61  ;;  %v6242_v61 = vld [vmem:[#allocation11 + $0x68] sm:$0xff]  }
 0x58a   : > { %4070 = vmatprep.subr.mxu1 %v3876_v56  ;;  %v6243_v56 = vld [vmem:[#allocation11 + $0xe8] sm:$0xff]  }
 0x58b   : > { %4071 = vmatpush2.msra.mxu1 %v3875_v33  ;;  %5651 = vmatpush3.bf16.msra.mxu0 %v6240_v17  ;;  %v6244_v33 = vld [vmem:[#allocation11 + $0x28] sm:$0xff]   ;;  %v6252_v17 = vld [vmem:[#allocation11 + $0x18] sm:$0xff]  }
 0x58c   : > { %4073 = vmatmul.mubr.f32.vlgmr.msra.gmra.mxu1 %v11808_v7  ;;  %5760 = vmatprep.subr.bf16.mxu1 %v6235_v28  ;;  %v6245_v7 = vld [vmem:[#allocation11 + $0xa8] sm:$0xff]   ;;  %v6247_v28 = vld [vmem:[#allocation11 + $0xe0] sm:$0xff]   ;;  %v3733_v44 = vpop.f32.mrf.mxu0 }
 0x58d   : > { %5761 = vmatpush3.bf16.msra.mxu1 %v6237_v16  ;;  %5652 = vmatprep.subr.bf16.mxu0 %v6242_v61  ;;  %v6249_v16 = vld [vmem:[#allocation11 + $0xa0] sm:$0xff]   ;;  %v6254_v61 = vld [vmem:[#allocation11 + $0x50] sm:$0xff]  }
 0x58e   : > { %5762 = vmatprep.subr.bf16.mxu1 %v6239_v46  ;;  %v6251_v46 = vld [vmem:[#allocation11 + $0xd8] sm:$0xff]  }
 0x58f   : > { %5653 = vmatpush3.bf16.msra.mxu0 %v6244_v33  ;;  %v6256_v33 = vld [vmem:[#allocation11 + $0x10] sm:$0xff]  }
 0x590   : > { %5654 = vmatprep.subr.bf16.mxu0 %v6246_v34  ;;  %v6258_v34 = vld [vmem:[#allocation11 + $0x48] sm:$0xff]  }
 0x591   : > { %5763 = vmatpush3.bf16.msra.mxu1 %v6241_v58  ;;  %v6253_v58 = vld [vmem:[#allocation11 + $0x98] sm:$0xff]  }
 0x592   : > { %5764 = vmatprep.subr.bf16.mxu1 %v6243_v56  ;;  %v6255_v56 = vld [vmem:[#allocation11 + $0xd0] sm:$0xff]  }
 0x593   : > { %5655 = vmatpush3.bf16.msra.mxu0 %v6248_v0  ;;  %v6260_v0 = vld [vmem:[#allocation11 + $0x8] sm:$0xff]  }
 0x594   : > { %5656 = vmatprep.subr.bf16.mxu0 %v6250_v42  ;;  %v6262_v42 = vld [vmem:[#allocation11 + $0x40] sm:$0xff]  }
 0x595   : > { %5765 = vmatpush3.bf16.msra.mxu1 %v6245_v7  ;;  %v6257_v7 = vld [vmem:[#allocation11 + $0x90] sm:$0xff]  }
 0x596   : > { %5766 = vmatprep.subr.bf16.mxu1 %v6247_v28  ;;  %v6259_v28 = vld [vmem:[#allocation11 + $0xc8] sm:$0xff]  }
 0x597   : > { %5657 = vmatpush3.bf16.msra.mxu0 %v6252_v17  ;;  %v6264_v17 = vld [vmem:[#allocation11] sm:$0xff]  }
 0x598   : > { %5658 = vmatprep.subr.bf16.mxu0 %v6254_v61  ;;  %v3735_v61 = vpop.f32.mrf.mxu0 }
 0x599   : > { %5767 = vmatpush3.bf16.msra.mxu1 %v6249_v16  ;;  %v6261_v16 = vld [vmem:[#allocation11 + $0x88] sm:$0xff]   ;;  %v4080_v31 = vmul.f32 0.00390625, %v3735_v61 }
 0x59a   : > { %5768 = vmatprep.subr.bf16.mxu1 %v6251_v46  ;;  %v6263_v46 = vld [vmem:[#allocation11 + $0xc0] sm:$0xff]  }
 0x59b   : > { %5659 = vmatpush3.bf16.msra.mxu0 %v6256_v33  ;;  %v4088_v52 = vmul.f32 %v4080_v31, %v4080_v31 }
 0x59c   : > { %5660 = vmatprep.subr.bf16.mxu0 %v6258_v34 }
 0x59d   : > { %5769 = vmatpush3.bf16.msra.mxu1 %v6253_v58  ;;  %v6265_v58 = vld [vmem:[#allocation11 + $0x80] sm:$0xff]  }
 0x59e   : > { %5770 = vmatprep.subr.bf16.mxu1 %v6255_v56 }
 0x59f   : > { %5661 = vmatpush3.bf16.msra.mxu0 %v6260_v0 }
 0x5a0   : > { %5662 = vmatprep.subr.bf16.mxu0 %v6262_v42 }
 0x5a1   : > { %5771 = vmatpush3.bf16.msra.mxu1 %v6257_v7  ;;  %v4079_v7 = vmul.f32 0.00390625, %v3733_v44 }
 0x5a2   : > { %5772 = vmatprep.subr.bf16.mxu1 %v6259_v28 }
 0x5a3   : > { %5663 = vmatpush3.bf16.msra.mxu0 %v6264_v17  ;;  %v4087_v34 = vmul.f32 %v4079_v7, %v4079_v7 }
 0x5a5   : > { %5773 = vmatpush3.bf16.msra.mxu1 %v6261_v16 }
 0x5a6   : > { %5774 = vmatprep.subr.bf16.mxu1 %v6263_v46 }
 0x5a9   : > { %5775 = vmatpush3.bf16.msra.mxu1 %v6265_v58 }
 0x5cc   : > { %v4003_v33 = vpop.f32.mrf.mxu0 }
 0x5cd   : > { %v4083_v0 = vmul.f32 0.00390625, %v4003_v33 }
 0x5ce   : > { %v4005_v62 = vpop.f32.mrf.mxu0 }
 0x5cf   : > { %v4084_v53 = vmul.f32 0.00390625, %v4005_v62  ;;  %v4091_v46 = vsub.f32 %v4083_v0, %v4087_v34 }
 0x5d1   : > { %v4092_v29 = vsub.f32 %v4084_v53, %v4088_v52  ;;  %v4095_v44 = vmax.f32 %v4091_v46, 0.0  ;;  %v11855_v53 = vld [vmem:[#allocation23_spill] sm:$0xff]  ;;  %v11858_v46 = vld [vmem:[#allocation21_spill] sm:$0xff] }
 0x5d3   : > { %v4096_v61 = vmax.f32 %v4092_v29, 0.0  ;;  %v4099_v54 = vadd.f32 1e-05, %v4095_v44 }
 0x5d5   : > { %v4100_v33 = vadd.f32 1e-05, %v4096_v61  ;;  %6274 = vrsqrt.f32 %v4099_v54  ;;  %v11856_v54 = vld [vmem:[#allocation24_spill] sm:$0xff]  ;;  %v11862_v61 = vld [vmem:[#allocation19_spill] sm:$0xff] }
 0x5e2   : > { %v6275_v62 = vpop.eup %6274 }
 0x60c   : > { %v3804_v56 = vpop.f32.mrf.mxu1 }
 0x60d   : > { %v4081_v16 = vmul.f32 0.00390625, %v3804_v56 }
 0x60e   : > { %v3806_v8 = vpop.f32.mrf.mxu1 }
 0x60f   : > { %v4082_v28 = vmul.f32 0.00390625, %v3806_v8  ;;  %v4089_v58 = vmul.f32 %v4081_v16, %v4081_v16 }
 0x611   : > { %v4090_v42 = vmul.f32 %v4082_v28, %v4082_v28 }
 0x64c   : > { %v4074_v59 = vpop.f32.mrf.mxu1 }
 0x64d   : > { %v4085_v50 = vmul.f32 0.00390625, %v4074_v59 }
 0x64e   : > { %v4076_v27 = vpop.f32.mrf.mxu1 }
 0x64f   : > { %v4086_v17 = vmul.f32 0.00390625, %v4076_v27  ;;  %v4093_v24 = vsub.f32 %v4085_v50, %v4089_v58  ;;  %v11860_v58 = vld [vmem:[#allocation22_spill] sm:$0xff] }
 0x651   : > { %v4094_v21 = vsub.f32 %v4086_v17, %v4090_v42  ;;  %v4097_v5 = vmax.f32 %v4093_v24, 0.0 }
 0x653   : > { %v4098_v9 = vmax.f32 %v4094_v21, 0.0  ;;  %v4101_v56 = vadd.f32 1e-05, %v4097_v5 }
 0x655   : > { %v4102_v8 = vadd.f32 1e-05, %v4098_v9  ;;  %v3665_v9 = vld [vmem:[%s10718_s5] sm:$0xf] }
 0x657   : > { %6276 = vrsqrt.f32 %v4102_v8 }
 0x658   : > { %6278 = vrsqrt.f32 %v4100_v33 }
 0x659   : > { %6280 = vrsqrt.f32 %v4101_v56 }
 0x664   : > { %v6277_v59 = vpop.eup %6276 }
 0x665   : > { %v6279_v34 = vpop.eup %6278 }
 0x666   : > { %v6281_v27 = vpop.eup %6280  ;;  %v4111_v52 = vcombine.low %v6275_v62, %v6279_v34  ;;  %v11864_v34 = vld [vmem:[#allocation81_spill] sm:$0xff] }
 0x667   : > { %v4112_v0 = vcombine.low %v6281_v27, %v6277_v59 }
 0x668   : > { %v4119_v21 = vrot.slane %v4111_v52, %v11855_v53 }
 0x669   : > { %v4126_v50 = vrot.slane %v4112_v0, %v11855_v53  ;;  %v11865_v0 = vld [vmem:[#allocation82_spill] sm:$0xff] }
 0x66b   : > { %v4127_v29 = vcombine.low %v4119_v21, %v4126_v50 }
 0x66d   : > { %v4134_v24 = vrot.slane %v4127_v29, %v11855_v53 }
 0x66f   : > { %v4136_v5 = vmul.f32 %v4134_v24, %v3665_v9  ;;  %v11872_v24 = vld [vmem:[#allocation29_spill] sm:$0xff]  ;;  %v11873_v9 = vld [vmem:[#allocation30_spill] sm:$0xff] }
 0x671   : > { %v9469_v42 = vrot.slane %v4136_v5, %v11856_v54  ;;  %v9472_v17 = vrot.slane %v4136_v5, %v11858_v46  ;;  %v9475_v44 = vrot.slane %v4136_v5, %v11860_v58  ;;  %v9478_v8 = vrot.slane %v4136_v5, %v11862_v61 }
 0x673   : > { %11857 = vst [vmem:[#allocation92_spill] sm:$0xff] %v9469_v42  ;;  %11859 = vst [vmem:[#allocation88_spill] sm:$0xff] %v9472_v17  ;;  %v9481_v33 = vmul.f32 %v9469_v42, %v4079_v7  ;;  %v9484_v56 = vmul.f32 %v9472_v17, %v4080_v31  ;;  %v9487_v62 = vmul.f32 %v9475_v44, %v4081_v16  ;;  %v11868_v16 = vld [vmem:[#allocation84_spill] sm:$0xff] }
 0x674   : > { %11861 = vst [vmem:[#allocation25_spill] sm:$0xff] %v9475_v44  ;;  %11863 = vst [vmem:[#allocation27_spill] sm:$0xff] %v9478_v8  ;;  %v4161_v59 = vmul.f32 %v9478_v8, %v4082_v28  ;;  %v9492_v27 = vmul.f32 %v9469_v42, %v11864_v34  ;;  %v9496_v52 = vmul.f32 %v9472_v17, %v11865_v0  ;;  %v11869_v28 = vld [vmem:[#allocation26_spill] sm:$0xff]  ;;  %v11876_v0 = vld [vmem:[#allocation33_spill] sm:$0xff] }
 0x675   : > { %v9500_v7 = vmul.f32 %v9475_v44, %v11854_v41  ;;  %v9504_v31 = vmul.f32 %v9478_v8, %v11853_v22  ;;  %v9508_v50 = vmul.f32 %v9469_v42, %v11868_v16  ;;  %v9512_v21 = vmul.f32 %v9472_v17, %v11869_v28  ;;  %v11877_v16 = vld [vmem:[#allocation32_spill] sm:$0xff] }
 0x676   : > { %11866 = vst [vmem:[#allocation28_spill] sm:$0xff] %v9496_v52  ;;  %v9516_v29 = vmul.f32 %v9475_v44, %v11852_v43  ;;  %v9520_v41 = vmul.f32 %v9478_v8, %v11851_v48  ;;  %v9524_v22 = vmul.f32 %v9469_v42, %v11872_v24  ;;  %v9528_v5 = vmul.f32 %v9472_v17, %v11873_v9  ;;  %v11880_v9 = vld [vmem:[#allocation34_spill] sm:$0xff]  ;;  %v11962_v52 = vld [vmem:[#allocation108_spill] sm:$0xff] }
 0x677   : > { %11867 = vst [vmem:[#allocation31_spill] sm:$0xff] %v9504_v31  ;;  %11870 = vst [vmem:[#allocation74_spill] sm:$0xff] %v9512_v21  ;;  %v9532_v34 = vmul.f32 %v9475_v44, %v11850_v2  ;;  %v9536_v43 = vmul.f32 %v9478_v8, %v11849_v49  ;;  %v9540_v48 = vmul.f32 %v9469_v42, %v11876_v0  ;;  %v11933_v31 = vld [vmem:[#allocation40_spill] sm:$0xff]  ;;  %v11937_v21 = vld [vmem:[#allocation65_spill] sm:$0xff] }
 0x678   : > { %11871 = vst [vmem:[#allocation77_spill] sm:$0xff] %v9520_v41  ;;  %11874 = vst [vmem:[#allocation78_spill] sm:$0xff] %v9528_v5  ;;  %v9544_v28 = vmul.f32 %v9472_v17, %v11877_v16  ;;  %v9548_v24 = vmul.f32 %v9475_v44, %v11848_v13  ;;  %v9552_v2 = vmul.f32 %v9478_v8, %v11847_v30  ;;  %v11927_v5 = vld [vmem:[#allocation83_spill] sm:$0xff]  ;;  %v11929_v41 = vld [vmem:[#allocation72_spill] sm:$0xff] }
 0x679   : > { %11875 = vst [vmem:[#allocation122_spill] sm:$0xff] %v9536_v43  ;;  %v9556_v49 = vmul.f32 %v9469_v42, %v11880_v9  ;;  %v11881_v43 = vld [vmem:[#allocation35_spill] sm:$0xff]  ;;  %v9564_v16 = vmul.f32 %v9475_v44, %v11846_v35  ;;  %v9568_v13 = vmul.f32 %v9478_v8, %v11845_v3  ;;  %v9584_v35 = vmul.f32 %v9478_v8, %v11843_v47 }
 0x67a   : > { %11878 = vst [vmem:[#allocation118_spill] sm:$0xff] %v9544_v28  ;;  %11879 = vst [vmem:[#allocation119_spill] sm:$0xff] %v9552_v2  ;;  %v9560_v0 = vmul.f32 %v9472_v17, %v11881_v43  ;;  %v11884_v28 = vld [vmem:[#allocation70_spill] sm:$0xff]  ;;  %v11885_v2 = vld [vmem:[#allocation59_spill] sm:$0xff]  ;;  %v9580_v43 = vmul.f32 %v9475_v44, %v11844_v38  ;;  %v9600_v38 = vmul.f32 %v9478_v8, %v11841_v51 }
 0x67b   : > { %11883 = vst [vmem:[#allocation117_spill] sm:$0xff] %v9568_v13  ;;  %v9572_v30 = vmul.f32 %v9469_v42, %v11884_v28  ;;  %v9576_v9 = vmul.f32 %v9472_v17, %v11885_v2  ;;  %11887 = vst [vmem:[#allocation106_spill] sm:$0xff] %v9584_v35  ;;  %v11889_v13 = vld [vmem:[#allocation56_spill] sm:$0xff]  ;;  %v9596_v2 = vmul.f32 %v9475_v44, %v11842_v10 }
 0x67c   : > { %11882 = vst [vmem:[#allocation116_spill] sm:$0xff] %v9560_v0  ;;  %v11888_v0 = vld [vmem:[#allocation121_spill] sm:$0xff]  ;;  %v9592_v28 = vmul.f32 %v9472_v17, %v11889_v13  ;;  %11892 = vst [vmem:[#allocation94_spill] sm:$0xff] %v9600_v38  ;;  %v11895_v35 = vld [vmem:[#allocation68_spill] sm:$0xff]  ;;  %v9612_v13 = vmul.f32 %v9475_v44, %v11840_v11  ;;  %v9616_v10 = vmul.f32 %v9478_v8, %v11839_v55 }
 0x67d   : > { %11886 = vst [vmem:[#allocation109_spill] sm:$0xff] %v9576_v9  ;;  %v9588_v3 = vmul.f32 %v9469_v42, %v11888_v0  ;;  %11891 = vst [vmem:[#allocation99_spill] sm:$0xff] %v9596_v2  ;;  %v11893_v9 = vld [vmem:[#allocation57_spill] sm:$0xff]  ;;  %v9608_v0 = vmul.f32 %v9472_v17, %v11895_v35  ;;  %v11901_v38 = vld [vmem:[#allocation48_spill] sm:$0xff]  ;;  %v9628_v35 = vmul.f32 %v9475_v44, %v11838_v1 }
 0x67e   : > { %11890 = vst [vmem:[#allocation113_spill] sm:$0xff] %v9592_v28  ;;  %v9604_v47 = vmul.f32 %v9469_v42, %v11893_v9  ;;  %11897 = vst [vmem:[#allocation96_spill] sm:$0xff] %v9612_v13  ;;  %v11899_v28 = vld [vmem:[#allocation62_spill] sm:$0xff]  ;;  %v9624_v9 = vmul.f32 %v9472_v17, %v11901_v38  ;;  %v9632_v11 = vmul.f32 %v9478_v8, %v11837_v6  ;;  %v12016_v13 = vld [vmem:[#allocation101_spill] sm:$0xff] }
 0x67f   : > { %11896 = vst [vmem:[#allocation114_spill] sm:$0xff] %v9608_v0  ;;  %11898 = vst [vmem:[#allocation75_spill] sm:$0xff] %v9616_v10  ;;  %v9620_v51 = vmul.f32 %v9469_v42, %v11899_v28  ;;  %v11905_v0 = vld [vmem:[#allocation50_spill] sm:$0xff]  ;;  %v11907_v10 = vld [vmem:[#allocation55_spill] sm:$0xff]  ;;  %v9644_v38 = vmul.f32 %v9475_v44, %v11836_v23  ;;  %v9648_v1 = vmul.f32 %v9478_v8, %v11835_v60 }
 0x680   : > { %11894 = vst [vmem:[#allocation89_spill] sm:$0xff] %v9604_v47  ;;  %11902 = vst [vmem:[#allocation23_spill] sm:$0xff] %v9624_v9  ;;  %v9636_v55 = vmul.f32 %v9469_v42, %v11905_v0  ;;  %v9640_v28 = vmul.f32 %v9472_v17, %v11907_v10  ;;  %v11911_v9 = vld [vmem:[#allocation54_spill] sm:$0xff]  ;;  %v9660_v10 = vmul.f32 %v9475_v44, %v11834_v19  ;;  %v12019_v47 = vld [vmem:[#allocation125_spill] sm:$0xff] }
 0x681   : > { %11900 = vst [vmem:[#allocation127_spill] sm:$0xff] %v9620_v51  ;;  %11903 = vst [vmem:[#allocation24_spill] sm:$0xff] %v9628_v35  ;;  %v9652_v6 = vmul.f32 %v9469_v42, %v11911_v9  ;;  %v9664_v23 = vmul.f32 %v9478_v8, %v11833_v32  ;;  %v9680_v19 = vmul.f32 %v9478_v8, %v11831_v40  ;;  %v12013_v35 = vld [vmem:[#allocation126_spill] sm:$0xff]  ;;  %v12022_v2 = vld [vmem:[#allocation111_spill] sm:$0xff] }
 0x682   : > { %11904 = vst [vmem:[#allocation21_spill] sm:$0xff] %v9632_v11  ;;  %11906 = vst [vmem:[#allocation22_spill] sm:$0xff] %v9636_v55  ;;  %v11913_v11 = vld [vmem:[#allocation53_spill] sm:$0xff]  ;;  %v9699_v40 = vmul.f32 %v9478_v8, %v11929_v41  ;;  %v12010_v55 = vld [vmem:[#allocation80_spill] sm:$0xff] }
 0x683   : > { %11908 = vst [vmem:[#allocation19_spill] sm:$0xff] %v9640_v28  ;;  %11909 = vst [vmem:[#allocation81_spill] sm:$0xff] %v9644_v38  ;;  %v9656_v0 = vmul.f32 %v9472_v17, %v11913_v11  ;;  %v11917_v28 = vld [vmem:[#allocation47_spill] sm:$0xff]  ;;  %v9676_v11 = vmul.f32 %v9475_v44, %v11832_v12  ;;  %v4166_v12 = vcombine.low %v9481_v33, %v9484_v56  ;;  %v12002_v38 = vld [vmem:[#allocation128_spill] sm:$0xff] }
 0x684   : > { %11910 = vst [vmem:[#allocation82_spill] sm:$0xff] %v9648_v1  ;;  %11912 = vst [vmem:[#allocation84_spill] sm:$0xff] %v9652_v6  ;;  %v9668_v60 = vmul.f32 %v9469_v42, %v11917_v28  ;;  %v11919_v1 = vld [vmem:[#allocation44_spill] sm:$0xff]  ;;  %v9715_v33 = vmul.f32 %v9478_v8, %v11937_v21  ;;  %v11939_v56 = vld [vmem:[#allocation39_spill] sm:$0xff] }
 0x685   : > { %11914 = vst [vmem:[#allocation26_spill] sm:$0xff] %v9656_v0  ;;  %11915 = vst [vmem:[#allocation29_spill] sm:$0xff] %v9660_v10  ;;  %v9672_v9 = vmul.f32 %v9472_v17, %v11919_v1  ;;  %v11923_v0 = vld [vmem:[#allocation46_spill] sm:$0xff]  ;;  %v9692_v1 = vmul.f32 %v9475_v44, %v11927_v5  ;;  %v11999_v6 = vld [vmem:[#allocation76_spill] sm:$0xff] }
 0x686   : > { %11916 = vst [vmem:[#allocation30_spill] sm:$0xff] %v9664_v23  ;;  %11918 = vst [vmem:[#allocation33_spill] sm:$0xff] %v9668_v60  ;;  %v9684_v32 = vmul.f32 %v9469_v42, %v11923_v0  ;;  %v11925_v23 = vld [vmem:[#allocation60_spill] sm:$0xff]  ;;  %v11996_v10 = vld [vmem:[#allocation130_spill] sm:$0xff] }
 0x687   : > { %11920 = vst [vmem:[#allocation32_spill] sm:$0xff] %v9672_v9  ;;  %11921 = vst [vmem:[#allocation34_spill] sm:$0xff] %v9676_v11  ;;  %v9688_v28 = vmul.f32 %v9472_v17, %v11925_v23  ;;  %v4167_v9 = vcombine.low %v9487_v62, %v4161_v59  ;;  %v9707_v23 = vmul.f32 %v9472_v17, %v11933_v31  ;;  %v12015_v51 = vld [vmem:[#allocation102_spill] sm:$0xff] }
 0x688   : > { %11922 = vst [vmem:[#allocation35_spill] sm:$0xff] %v9680_v19  ;;  %11924 = vst [vmem:[#allocation70_spill] sm:$0xff] %v9684_v32  ;;  %v11931_v19 = vld [vmem:[#allocation43_spill] sm:$0xff]  ;;  %v9719_v62 = vmul.f32 %v9472_v17, %v11939_v56  ;;  %v4174_v59 = vrot.slane %v4166_v12, %v11855_v53  ;;  %v9741_v12 = vmul.f32 %v9475_v44, %v9025_v63 }
 0x689   : > { %11926 = vst [vmem:[#allocation59_spill] sm:$0xff] %v9688_v28  ;;  %11928 = vst [vmem:[#allocation121_spill] sm:$0xff] %v9692_v1  ;;  %v9703_v0 = vmul.f32 %v9469_v42, %v11931_v19  ;;  %v11935_v28 = vld [vmem:[#allocation69_spill] sm:$0xff]  ;;  %v4181_v41 = vrot.slane %v4167_v9, %v11855_v53  ;;  %v11941_v19 = vld [vmem:[#allocation66_spill] sm:$0xff]  ;;  %v9761_v63 = vmul.f32 %v9475_v44, %v9083_v14 }
 0x68a   : > { %11930 = vst [vmem:[#allocation56_spill] sm:$0xff] %v9699_v40  ;;  %11934 = vst [vmem:[#allocation68_spill] sm:$0xff] %v9707_v23  ;;  %v9711_v5 = vmul.f32 %v9475_v44, %v11935_v28  ;;  %v9725_v31 = vmul.f32 %v9478_v8, %v11941_v19  ;;  %v11943_v40 = vld [vmem:[#allocation37_spill] sm:$0xff]  ;;  %v11945_v23 = vld [vmem:[#allocation123_spill] sm:$0xff] }
 0x68b   : > { %11932 = vst [vmem:[#allocation57_spill] sm:$0xff] %v9703_v0  ;;  %11938 = vst [vmem:[#allocation48_spill] sm:$0xff] %v9715_v33  ;;  %v9729_v28 = vmul.f32 %v9472_v17, %v11943_v40  ;;  %v9733_v21 = vmul.f32 %v9478_v8, %v11945_v23  ;;  %v11947_v33 = vld [vmem:[#allocation38_spill] sm:$0xff]  ;;  %v11948_v9 = vld [vmem:[#allocation45_spill] sm:$0xff]  ;;  %v9749_v40 = vmul.f32 %v9475_v44, %v9051_v45 }
 0x68c   : > { %11936 = vst [vmem:[#allocation62_spill] sm:$0xff] %v9711_v5  ;;  %11940 = vst [vmem:[#allocation50_spill] sm:$0xff] %v9719_v62  ;;  %v9737_v56 = vmul.f32 %v9469_v42, %v11947_v33  ;;  %v9745_v19 = vmul.f32 %v9469_v42, %v11948_v9  ;;  %v9765_v9 = vmul.f32 %v9478_v8, %v9099_v36  ;;  %v11953_v62 = vld [vmem:[#allocation51_spill] sm:$0xff]  ;;  %v11957_v14 = vld [vmem:[#allocation58_spill] sm:$0xff] }
 0x68d   : > { %11942 = vst [vmem:[#allocation55_spill] sm:$0xff] %v9725_v31  ;;  %11944 = vst [vmem:[#allocation54_spill] sm:$0xff] %v9729_v28  ;;  %v4182_v31 = vcombine.low %v4174_v59, %v4181_v41  ;;  %v11949_v28 = vld [vmem:[#allocation52_spill] sm:$0xff]  ;;  %v9769_v45 = vmul.f32 %v9469_v42, %v11953_v62  ;;  %v11954_v59 = vld [vmem:[#allocation115_spill] sm:$0xff]  ;;  %v4274_v62 = vmul.f32 %v9475_v44, %v9147_v26 }
 0x68e   : > { %11946 = vst [vmem:[#allocation53_spill] sm:$0xff] %v9733_v21  ;;  %v9753_v23 = vmul.f32 %v9469_v42, %v11949_v28  ;;  %v11950_v21 = vld [vmem:[#allocation49_spill] sm:$0xff]  ;;  %11952 = vst [vmem:[#allocation44_spill] sm:$0xff] %v9765_v9  ;;  %v9773_v41 = vmul.f32 %v9472_v17, %v11954_v59  ;;  %v4270_v28 = vmul.f32 %v9475_v44, %v9115_v37  ;;  %v11958_v36 = vld [vmem:[#allocation124_spill] sm:$0xff] }
 0x68f   : > { %v9757_v33 = vmul.f32 %v9472_v17, %v11950_v21  ;;  %v9779_v21 = vmul.f32 %v9478_v8, %v9131_v15  ;;  %v9785_v9 = vmul.f32 %v9472_v17, %v11958_v36  ;;  %v9791_v59 = vmul.f32 %v9478_v8, %v9163_v57  ;;  %v11975_v5 = vld [vmem:[#allocation98_spill] sm:$0xff]  ;;  %v11978_v0 = vld [vmem:[#allocation136_spill] sm:$0xff]  ;;  %v11981_v1 = vld [vmem:[#allocation93_spill] sm:$0xff] }
 0x690   : > { %11955 = vst [vmem:[#allocation46_spill] sm:$0xff] %v9773_v41  ;;  %v11961_v41 = vld [vmem:[#allocation110_spill] sm:$0xff]  ;;  %v9797_v15 = vmul.f32 %v9472_v17, %v11962_v52  ;;  %v4189_v36 = vrot.slane %v4182_v31, %v11855_v53  ;;  %v9804_v26 = vmul.f32 %v9478_v8, %v9311_v39  ;;  %v4282_v52 = vmul.f32 %v9475_v44, %v9306_v20  ;;  %v11969_v53 = vld [vmem:[#allocation104_spill] sm:$0xff] }
 0x691   : > { %11951 = vst [vmem:[#allocation47_spill] sm:$0xff] %v9757_v33  ;;  %11956 = vst [vmem:[#allocation60_spill] sm:$0xff] %v9779_v21  ;;  %v4272_v33 = vmul.f32 %v9469_v42, %v11957_v14  ;;  %v4276_v37 = vmul.f32 %v9469_v42, %v11961_v41  ;;  %v4278_v14 = vmul.f32 %v9475_v44, %v9316_v25  ;;  %v11965_v21 = vld [vmem:[#allocation107_spill] sm:$0xff] }
 0x692   : > { %11959 = vst [vmem:[#allocation83_spill] sm:$0xff] %v9785_v9  ;;  %11960 = vst [vmem:[#allocation72_spill] sm:$0xff] %v9791_v59  ;;  %v3666_v9 = vld [vmem:[#allocation10] sm:$0xf]  ;;  %v4280_v57 = vmul.f32 %v9469_v42, %v11965_v21  ;;  %v11966_v59 = vld [vmem:[#allocation105_spill] sm:$0xff]  ;;  %v9816_v25 = vmul.f32 %v9478_v8, %v9301_v4  ;;  %v4284_v31 = vmul.f32 %v9469_v42, %v11969_v53 }
 0x693   : > { %11963 = vst [vmem:[#allocation43_spill] sm:$0xff] %v9797_v15  ;;  %11964 = vst [vmem:[#allocation40_spill] sm:$0xff] %v9804_v26  ;;  %v9810_v41 = vmul.f32 %v9472_v17, %v11966_v59  ;;  %v11970_v15 = vld [vmem:[#allocation103_spill] sm:$0xff]  ;;  %v4286_v21 = vmul.f32 %v9475_v44, %v9296_v18  ;;  %v11972_v26 = vld [vmem:[#allocation138_spill] sm:$0xff]  ;;  %v9834_v4 = vmul.f32 %v9472_v17, %v11975_v5 }
 0x694   : > { %11968 = vst [vmem:[#allocation65_spill] sm:$0xff] %v9816_v25  ;;  %v9822_v39 = vmul.f32 %v9472_v17, %v11970_v15  ;;  %v9828_v59 = vmul.f32 %v9478_v8, %v11972_v26  ;;  %v11977_v25 = vld [vmem:[#allocation137_spill] sm:$0xff]  ;;  %v9840_v15 = vmul.f32 %v9478_v8, %v11978_v0  ;;  %v9846_v26 = vmul.f32 %v9472_v17, %v11981_v1  ;;  %v11984_v5 = vld [vmem:[#allocation134_spill] sm:$0xff]  ;;  %v11987_v0 = vld [vmem:[#allocation91_spill] sm:$0xff] }
 0x695   : > { %11967 = vst [vmem:[#allocation69_spill] sm:$0xff] %v9810_v41  ;;  %v11974_v41 = vld [vmem:[#allocation100_spill] sm:$0xff]  ;;  %11976 = vst [vmem:[#allocation37_spill] sm:$0xff] %v9834_v4  ;;  %v4290_v53 = vmul.f32 %v9475_v44, %v11977_v25  ;;  %v9852_v4 = vmul.f32 %v9478_v8, %v11984_v5  ;;  %v11986_v25 = vld [vmem:[#allocation90_spill] sm:$0xff] }
 0x696   : > { %11971 = vst [vmem:[#allocation39_spill] sm:$0xff] %v9822_v39  ;;  %11973 = vst [vmem:[#allocation66_spill] sm:$0xff] %v9828_v59  ;;  %v4288_v20 = vmul.f32 %v9469_v42, %v11974_v41  ;;  %v11980_v39 = vld [vmem:[#allocation97_spill] sm:$0xff]  ;;  %v4191_v59 = vsub.f32 %v3666_v9, %v4189_v36  ;;  %v11983_v41 = vld [vmem:[#allocation135_spill] sm:$0xff]  ;;  %v4296_v11 = vmul.f32 %v9469_v42, %v11986_v25 }
 0x697   : > { %11979 = vst [vmem:[#allocation123_spill] sm:$0xff] %v9840_v15  ;;  %v4292_v18 = vmul.f32 %v9469_v42, %v11980_v39  ;;  %11982 = vst [vmem:[#allocation38_spill] sm:$0xff] %v9846_v26  ;;  %v4294_v32 = vmul.f32 %v9475_v44, %v11983_v41  ;;  %v9858_v15 = vmul.f32 %v9472_v17, %v11987_v0  ;;  %v11989_v39 = vld [vmem:[#allocation133_spill] sm:$0xff]  ;;  %v11990_v1 = vld [vmem:[#allocation132_spill] sm:$0xff] }
 0x698   : > { %11985 = vst [vmem:[#allocation45_spill] sm:$0xff] %v9852_v4  ;;  %v4298_v60 = vmul.f32 %v9475_v44, %v11989_v39  ;;  %v9864_v9 = vmul.f32 %v9478_v8, %v11990_v1  ;;  %v11992_v36 = vld [vmem:[#allocation86_spill] sm:$0xff]  ;;  %v11993_v26 = vld [vmem:[#allocation95_spill] sm:$0xff]  ;;  %v9876_v0 = vmul.f32 %v9478_v8, %v11996_v10  ;;  %v9882_v1 = vmul.f32 %v9472_v17, %v11999_v6 }
 0x699   : > { %11988 = vst [vmem:[#allocation52_spill] sm:$0xff] %v9858_v15  ;;  %v4300_v41 = vmul.f32 %v9469_v42, %v11992_v36  ;;  %v9870_v5 = vmul.f32 %v9472_v17, %v11993_v26  ;;  %v11995_v4 = vld [vmem:[#allocation131_spill] sm:$0xff]  ;;  %v9888_v26 = vmul.f32 %v9478_v8, %v12002_v38  ;;  %v9894_v10 = vrot.slane %v4191_v59, %v11860_v58 }
 0x69a   : > { %11991 = vst [vmem:[#allocation49_spill] sm:$0xff] %v9864_v9  ;;  %v4302_v25 = vmul.f32 %v9475_v44, %v11995_v4  ;;  %11997 = vst [vmem:[#allocation115_spill] sm:$0xff] %v9876_v0  ;;  %v11998_v15 = vld [vmem:[#allocation79_spill] sm:$0xff]  ;;  %v12001_v9 = vld [vmem:[#allocation129_spill] sm:$0xff]  ;;  %v9891_v4 = vrot.slane %v4191_v59, %v11856_v54  ;;  %v9906_v38 = vmul.f32 %v9478_v8, %v12010_v55 }
 0x69b   : > { %11994 = vst [vmem:[#allocation51_spill] sm:$0xff] %v9870_v5  ;;  %v4304_v39 = vmul.f32 %v9469_v42, %v11998_v15  ;;  %12000 = vst [vmem:[#allocation58_spill] sm:$0xff] %v9882_v1  ;;  %v4306_v36 = vmul.f32 %v9475_v44, %v12001_v9  ;;  %v12006_v0 = vld [vmem:[#allocation20_spill] sm:$0xff]  ;;  %v12007_v5 = vld [vmem:[#allocation73_spill] sm:$0xff]  ;;  %v9912_v58 = vmul.f32 %v9472_v17, %v12013_v35 }
 0x69c   : > { %12003 = vst [vmem:[#allocation124_spill] sm:$0xff] %v9888_v26  ;;  %12004 = vst [vmem:[#allocation110_spill] sm:$0xff] %v9891_v4  ;;  %v4308_v15 = vmul.f32 %v9469_v42, %v12006_v0  ;;  %v9900_v6 = vmul.f32 %v9472_v17, %v12007_v5  ;;  %v12009_v1 = vld [vmem:[#allocation85_spill] sm:$0xff]  ;;  %v12012_v26 = vld [vmem:[#allocation71_spill] sm:$0xff]  ;;  %v4314_v0 = vmul.f32 %v9475_v44, %v12015_v51 }
 0x69d   : > { %12005 = vst [vmem:[#allocation108_spill] sm:$0xff] %v9894_v10  ;;  %v4310_v9 = vmul.f32 %v9475_v44, %v12009_v1  ;;  %12011 = vst [vmem:[#allocation105_spill] sm:$0xff] %v9906_v38  ;;  %v4312_v54 = vmul.f32 %v9469_v42, %v12012_v26  ;;  %v9918_v5 = vmul.f32 %v9478_v8, %v12016_v13  ;;  %v12021_v38 = vld [vmem:[#allocation112_spill] sm:$0xff] }
 0x69e   : > { %12008 = vst [vmem:[#allocation107_spill] sm:$0xff] %v9900_v6  ;;  %12014 = vst [vmem:[#allocation104_spill] sm:$0xff] %v9912_v58  ;;  %v12018_v6 = vld [vmem:[#allocation61_spill] sm:$0xff]  ;;  %v9924_v55 = vmul.f32 %v9472_v17, %v12019_v47  ;;  %v4318_v26 = vmul.f32 %v9475_v44, %v12021_v38  ;;  %v9930_v35 = vmul.f32 %v9478_v8, %v12022_v2  ;;  %v12044_v17 = vld [vmem:[#allocation127_spill] sm:$0xff] }
 0x69f   : > { %12017 = vst [vmem:[#allocation103_spill] sm:$0xff] %v9918_v5  ;;  %v4316_v1 = vmul.f32 %v9469_v42, %v12018_v6  ;;  %v9934_v51 = vadd.f32 %v9891_v4, %v9737_v56  ;;  %v9938_v13 = vadd.f32 %v9894_v10, %v9741_v12  ;;  %v9942_v6 = vadd.f32 %v9891_v4, %v9745_v19  ;;  %v12045_v44 = vld [vmem:[#allocation24_spill] sm:$0xff]  ;;  %v12046_v42 = vld [vmem:[#allocation22_spill] sm:$0xff]  ;;  %v12050_v58 = vld [vmem:[#allocation33_spill] sm:$0xff] }
 0x6a0   : > { %12020 = vst [vmem:[#allocation138_spill] sm:$0xff] %v9924_v55  ;;  %12023 = vst [vmem:[#allocation100_spill] sm:$0xff] %v9930_v35  ;;  %v9946_v47 = vadd.f32 %v9894_v10, %v9749_v40  ;;  %v9950_v2 = vadd.f32 %v9891_v4, %v9753_v23  ;;  %v9954_v56 = vadd.f32 %v9894_v10, %v9761_v63  ;;  %v12047_v35 = vld [vmem:[#allocation81_spill] sm:$0xff]  ;;  %v12048_v5 = vld [vmem:[#allocation84_spill] sm:$0xff] }
 0x6a1   : > { %12024 = vst [vmem:[#allocation98_spill] sm:$0xff] %v9938_v13  ;;  %12025 = vst [vmem:[#allocation137_spill] sm:$0xff] %v9942_v6  ;;  %v9958_v12 = vadd.f32 %v9891_v4, %v9769_v45  ;;  %v9961_v38 = vadd.f32 %v9894_v10, %v4270_v28  ;;  %v9964_v19 = vadd.f32 %v9891_v4, %v4272_v33  ;;  %v12049_v55 = vld [vmem:[#allocation29_spill] sm:$0xff]  ;;  %v12068_v13 = vld [vmem:[#allocation116_spill] sm:$0xff] }
 0x6a2   : > { %12026 = vst [vmem:[#allocation136_spill] sm:$0xff] %v9946_v47  ;;  %12027 = vst [vmem:[#allocation97_spill] sm:$0xff] %v9950_v2  ;;  %v9967_v40 = vadd.f32 %v9894_v10, %v4274_v62  ;;  %v9970_v23 = vadd.f32 %v9891_v4, %v4276_v37  ;;  %v9973_v8 = vadd.f32 %v9894_v10, %v4278_v14  ;;  %v12069_v6 = vld [vmem:[#allocation109_spill] sm:$0xff] }
 0x6a3   : > { %12028 = vst [vmem:[#allocation93_spill] sm:$0xff] %v9954_v56  ;;  %12029 = vst [vmem:[#allocation135_spill] sm:$0xff] %v9958_v12  ;;  %v9976_v63 = vadd.f32 %v9891_v4, %v4280_v57  ;;  %v9979_v45 = vadd.f32 %v9894_v10, %v4282_v52  ;;  %v9982_v28 = vadd.f32 %v9891_v4, %v4284_v31 }
 0x6a4   : > { %12030 = vst [vmem:[#allocation134_spill] sm:$0xff] %v9961_v38  ;;  %12031 = vst [vmem:[#allocation90_spill] sm:$0xff] %v9964_v19  ;;  %v9985_v33 = vadd.f32 %v9894_v10, %v4286_v21  ;;  %v9988_v62 = vadd.f32 %v9891_v4, %v4288_v20  ;;  %v9991_v37 = vadd.f32 %v9894_v10, %v4290_v53  ;;  %v12065_v19 = vld [vmem:[#allocation118_spill] sm:$0xff] }
 0x6a5   : > { %12032 = vst [vmem:[#allocation91_spill] sm:$0xff] %v9967_v40  ;;  %12033 = vst [vmem:[#allocation133_spill] sm:$0xff] %v9970_v23  ;;  %v9994_v14 = vadd.f32 %v9891_v4, %v4292_v18  ;;  %v9997_v57 = vadd.f32 %v9894_v10, %v4294_v32  ;;  %v10000_v52 = vadd.f32 %v9891_v4, %v4296_v11  ;;  %v12067_v40 = vld [vmem:[#allocation119_spill] sm:$0xff] }
 0x6a6   : > { %v10003_v31 = vadd.f32 %v9894_v10, %v4298_v60  ;;  %v10006_v21 = vadd.f32 %v9891_v4, %v4300_v41  ;;  %v10009_v20 = vadd.f32 %v9894_v10, %v4302_v25  ;;  %v10012_v53 = vadd.f32 %v9891_v4, %v4304_v39 }
 0x6a7   : > { %v10015_v18 = vadd.f32 %v9894_v10, %v4306_v36  ;;  %v10018_v32 = vadd.f32 %v9891_v4, %v4308_v15  ;;  %v10021_v11 = vadd.f32 %v9894_v10, %v4310_v9  ;;  %v10024_v60 = vadd.f32 %v9891_v4, %v4312_v54 }
 0x6a8   : > { %v10027_v41 = vadd.f32 %v9894_v10, %v4314_v0  ;;  %v10030_v25 = vadd.f32 %v9891_v4, %v4316_v1  ;;  %v10033_v39 = vadd.f32 %v9894_v10, %v4318_v26  ;;  %v10036_v36 = vrot.slane %v4191_v59, %v11858_v46  ;;  %v12043_v26 = vld [vmem:[#allocation96_spill] sm:$0xff] }
 0x6a9   : > { %12034 = vst [vmem:[#allocation132_spill] sm:$0xff] %v10015_v18  ;;  %12035 = vst [vmem:[#allocation86_spill] sm:$0xff] %v10018_v32  ;;  %v10039_v15 = vrot.slane %v4191_v59, %v11862_v61  ;;  %v10043_v9 = vadd.f32 %v9891_v4, %v9492_v27  ;;  %v10047_v54 = vadd.f32 %v9894_v10, %v9500_v7  ;;  %v12042_v59 = vld [vmem:[#allocation89_spill] sm:$0xff] }
 0x6aa   : > { %12036 = vst [vmem:[#allocation95_spill] sm:$0xff] %v10021_v11  ;;  %12037 = vst [vmem:[#allocation131_spill] sm:$0xff] %v10024_v60  ;;  %v4345_v0 = vadd.f32 %v9891_v4, %v9508_v50  ;;  %v10053_v1 = vadd.f32 %v9894_v10, %v9516_v29  ;;  %v10057_v46 = vadd.f32 %v9891_v4, %v9524_v22  ;;  %v12056_v60 = vld [vmem:[#allocation57_spill] sm:$0xff]  ;;  %v12058_v11 = vld [vmem:[#allocation62_spill] sm:$0xff] }
 0x6ab   : > { %12038 = vst [vmem:[#allocation130_spill] sm:$0xff] %v10027_v41  ;;  %12039 = vst [vmem:[#allocation79_spill] sm:$0xff] %v10030_v25  ;;  %v10061_v61 = vadd.f32 %v9894_v10, %v9532_v34  ;;  %v10065_v27 = vadd.f32 %v9891_v4, %v9540_v48  ;;  %v10069_v7 = vadd.f32 %v9894_v10, %v9548_v24  ;;  %v12041_v24 = vld [vmem:[#allocation99_spill] sm:$0xff]  ;;  %v12052_v25 = vld [vmem:[#allocation70_spill] sm:$0xff]  ;;  %v4469_v32 = vmax.f32 %v10043_v9, 0.0 }
 0x6ac   : > { %12040 = vst [vmem:[#allocation76_spill] sm:$0xff] %v10033_v39  ;;  %v10073_v50 = vadd.f32 %v9891_v4, %v9556_v49  ;;  %v10077_v29 = vadd.f32 %v9894_v10, %v9564_v16  ;;  %v10081_v22 = vadd.f32 %v9891_v4, %v9572_v30  ;;  %v10085_v34 = vadd.f32 %v9894_v10, %v9580_v43  ;;  %v12051_v39 = vld [vmem:[#allocation34_spill] sm:$0xff]  ;;  %v12054_v41 = vld [vmem:[#allocation121_spill] sm:$0xff] }
 0x6ad   : > { %v10089_v48 = vadd.f32 %v9891_v4, %v9588_v3  ;;  %v10093_v49 = vadd.f32 %v9894_v10, %v12041_v24  ;;  %v10097_v16 = vadd.f32 %v9891_v4, %v12042_v59  ;;  %v10101_v30 = vadd.f32 %v9894_v10, %v12043_v26  ;;  %v12064_v9 = vld [vmem:[#allocation78_spill] sm:$0xff] }
 0x6ae   : > { %v10105_v43 = vadd.f32 %v9891_v4, %v12044_v17  ;;  %v10109_v3 = vadd.f32 %v9894_v10, %v12045_v44  ;;  %v10113_v24 = vadd.f32 %v9891_v4, %v12046_v42  ;;  %v10117_v59 = vadd.f32 %v9894_v10, %v12047_v35 }
 0x6af   : > { %v10121_v26 = vadd.f32 %v9891_v4, %v12048_v5  ;;  %v10125_v17 = vadd.f32 %v9894_v10, %v12049_v55  ;;  %v10129_v44 = vadd.f32 %v9891_v4, %v12050_v58  ;;  %v10133_v42 = vadd.f32 %v9894_v10, %v12051_v39 }
 0x6b0   : > { %v10137_v35 = vadd.f32 %v9891_v4, %v12052_v25  ;;  %v10141_v5 = vadd.f32 %v9894_v10, %v12054_v41  ;;  %v10145_v55 = vadd.f32 %v9891_v4, %v12056_v60  ;;  %v10149_v58 = vadd.f32 %v9894_v10, %v12058_v11  ;;  %v12060_v41 = vld [vmem:[#allocation28_spill] sm:$0xff]  ;;  %v12062_v4 = vld [vmem:[#allocation31_spill] sm:$0xff] }
 0x6b1   : > { %v4471_v39 = vmax.f32 %v10047_v54, 0.0  ;;  %v4473_v18 = vmax.f32 %v4345_v0, 0.0  ;;  %v4475_v25 = vmax.f32 %v10053_v1, 0.0  ;;  %v4344_v11 = vadd.f32 %v10039_v15, %v12062_v4 }
 0x6b2   : > { %12053 = vst [vmem:[#allocation129_spill] sm:$0xff] %v10137_v35  ;;  %12055 = vst [vmem:[#allocation128_spill] sm:$0xff] %v10141_v5  ;;  %v4342_v5 = vadd.f32 %v10036_v36, %v12060_v41  ;;  %v4350_v54 = vadd.f32 %v10036_v36, %v12064_v9  ;;  %v4354_v0 = vadd.f32 %v10036_v36, %v12065_v19  ;;  %v12100_v9 = vld [vmem:[#allocation59_spill] sm:$0xff] }
 0x6b3   : > { %12057 = vst [vmem:[#allocation20_spill] sm:$0xff] %v10145_v55  ;;  %12059 = vst [vmem:[#allocation73_spill] sm:$0xff] %v10149_v58  ;;  %v4597_v35 = vpack.c.bf16 %v4473_v18, %v4469_v32  ;;  %v12061_v58 = vld [vmem:[#allocation74_spill] sm:$0xff]  ;;  %v12063_v55 = vld [vmem:[#allocation77_spill] sm:$0xff]  ;;  %v4472_v23 = vmax.f32 %v4344_v11, 0.0  ;;  %v4599_v12 = vpack.c.bf16 %v4475_v25, %v4471_v39 }
 0x6b4   : > { %v4346_v60 = vadd.f32 %v10036_v36, %v12061_v58  ;;  %v4348_v10 = vadd.f32 %v10039_v15, %v12063_v55  ;;  %v4470_v1 = vmax.f32 %v4342_v5, 0.0  ;;  %v12066_v32 = vld [vmem:[#allocation122_spill] sm:$0xff]  ;;  %v4356_v58 = vadd.f32 %v10039_v15, %v12067_v40 }
 0x6b5   : > { %v4352_v41 = vadd.f32 %v10039_v15, %v12066_v32  ;;  %v4478_v4 = vmax.f32 %v4350_v54, 0.0  ;;  %v4482_v56 = vmax.f32 %v4354_v0, 0.0  ;;  %v4358_v32 = vadd.f32 %v10036_v36, %v12068_v13  ;;  %v12071_v39 = vld [vmem:[#allocation106_spill] sm:$0xff] }
 0x6b6   : > { %v4474_v18 = vmax.f32 %v4346_v60, 0.0  ;;  %v4476_v38 = vmax.f32 %v4348_v10, 0.0  ;;  %v4484_v47 = vmax.f32 %v4356_v58, 0.0  ;;  %v4362_v40 = vadd.f32 %v10036_v36, %v12069_v6  ;;  %v12070_v10 = vld [vmem:[#allocation117_spill] sm:$0xff] }
 0x6b7   : > { %v4480_v2 = vmax.f32 %v4352_v41, 0.0  ;;  %v4602_v60 = vpack.c.bf16 %v4482_v56, %v4478_v4  ;;  %v4360_v11 = vadd.f32 %v10039_v15, %v12070_v10  ;;  %v4364_v25 = vadd.f32 %v10039_v15, %v12071_v39  ;;  %v12072_v10 = vld [vmem:[#allocation132_spill] sm:$0xff]  ;;  %v12084_v4 = vld [vmem:[#allocation114_spill] sm:$0xff] }
 0x6b8   : > { %v4598_v55 = vpack.c.bf16 %v4474_v18, %v4470_v1  ;;  %v4600_v5 = vpack.c.bf16 %v4476_v38, %v4472_v23  ;;  %v12073_v1 = vld [vmem:[#allocation86_spill] sm:$0xff]  ;;  %v12075_v18 = vld [vmem:[#allocation131_spill] sm:$0xff]  ;;  %v12077_v58 = vmax.f32 %v10057_v46, 0.0  ;;  %v12081_v39 = vmax.f32 %v10073_v50, 0.0  ;;  %v12083_v23 = vld [vmem:[#allocation113_spill] sm:$0xff] }
 0x6b9   : > { %v4604_v56 = vpack.c.bf16 %v4484_v47, %v4480_v2  ;;  %v4486_v47 = vmax.f32 %v4358_v32, 0.0  ;;  %v4490_v2 = vmax.f32 %v4362_v40, 0.0  ;;  %v12079_v40 = vmax.f32 %v10061_v61, 0.0  ;;  %v12085_v46 = vld [vmem:[#allocation94_spill] sm:$0xff]  ;;  %v12086_v61 = vld [vmem:[#allocation75_spill] sm:$0xff]  ;;  %v12101_v41 = vld [vmem:[#allocation68_spill] sm:$0xff] }
 0x6ba   : > { %4956 = vmatprep.mubr.bf16.mxu0 %v4598_v55  ;;  %5117 = vmatprep.mubr.bf16.mxu1 %v4600_v5  ;;  %v4492_v55 = vmax.f32 %v4364_v25, 0.0  ;;  %v4366_v6 = vadd.f32 %v10036_v36, %v12083_v23  ;;  %v4370_v13 = vadd.f32 %v10036_v36, %v12084_v4  ;;  %v12091_v38 = vld [vmem:[#allocation26_spill] sm:$0xff] }
 0x6bb   : > { %4957 = vmatmul.mubr.bf16.vlgmr.msra.gmra.mxu0 %v4597_v35  ;;  %5118 = vmatmul.mubr.bf16.vlgmr.msra.gmra.mxu1 %v4599_v12  ;;  %v4488_v35 = vmax.f32 %v4360_v11, 0.0  ;;  %v12080_v11 = vmax.f32 %v10069_v7, 0.0  ;;  %v12082_v12 = vmax.f32 %v10081_v22, 0.0  ;;  %v4372_v7 = vadd.f32 %v10039_v15, %v12086_v61  ;;  %v12088_v22 = vld [vmem:[#allocation19_spill] sm:$0xff] }
 0x6bc   : > { %4964 = vmatprep.mubr.bf16.mxu0 %v4602_v60  ;;  %5125 = vmatprep.mubr.bf16.mxu1 %v4604_v56  ;;  %v12074_v60 = vld [vmem:[#allocation95_spill] sm:$0xff]  ;;  %v12078_v56 = vmax.f32 %v10065_v27, 0.0  ;;  %v4368_v27 = vadd.f32 %v10039_v15, %v12085_v46  ;;  %v4498_v0 = vmax.f32 %v4370_v13, 0.0 }
 0x6bd   : > { %v4603_v25 = vpack.c.bf16 %v12080_v11, %v12079_v40  ;;  %v4605_v5 = vpack.c.bf16 %v12082_v12, %v12081_v39  ;;  %v12087_v40 = vld [vmem:[#allocation23_spill] sm:$0xff]  ;;  %v4378_v39 = vadd.f32 %v10036_v36, %v12088_v22  ;;  %v12089_v12 = vld [vmem:[#allocation21_spill] sm:$0xff]  ;;  %v12090_v11 = vld [vmem:[#allocation82_spill] sm:$0xff]  ;;  %v4500_v19 = vmax.f32 %v4372_v7, 0.0 }
 0x6be   : > { %v4601_v32 = vpack.c.bf16 %v12078_v56, %v12077_v58  ;;  %v4606_v58 = vpack.c.bf16 %v4490_v2, %v4486_v47  ;;  %v4608_v56 = vpack.c.bf16 %v4492_v55, %v4488_v35  ;;  %v4374_v50 = vadd.f32 %v10036_v36, %v12087_v40  ;;  %v12093_v55 = vld [vmem:[#allocation32_spill] sm:$0xff]  ;;  %v12095_v40 = vld [vmem:[#allocation35_spill] sm:$0xff] }
 0x6bf   : > { %v4376_v23 = vadd.f32 %v10039_v15, %v12089_v12  ;;  %v4380_v4 = vadd.f32 %v10039_v15, %v12090_v11  ;;  %v4382_v47 = vadd.f32 %v10036_v36, %v12091_v38  ;;  %v4386_v46 = vadd.f32 %v10036_v36, %v12093_v55 }
 0x6c0   : > { %v4388_v22 = vadd.f32 %v10039_v15, %v12095_v40  ;;  %v12096_v12 = vmax.f32 %v10077_v29, 0.0  ;;  %v12097_v11 = vmax.f32 %v10085_v34, 0.0  ;;  %v4494_v38 = vmax.f32 %v4366_v6, 0.0 }
 0x6c1   : > { %v4496_v55 = vmax.f32 %v4368_v27, 0.0  ;;  %v4502_v40 = vmax.f32 %v4374_v50, 0.0  ;;  %v4506_v29 = vmax.f32 %v4378_v39, 0.0  ;;  %v4504_v2 = vmax.f32 %v4376_v23, 0.0 }
 0x6c2   : > { %v4607_v54 = vpack.c.bf16 %v12097_v11, %v12096_v12  ;;  %v4508_v34 = vmax.f32 %v4380_v4, 0.0  ;;  %v4510_v12 = vmax.f32 %v4382_v47, 0.0  ;;  %v4514_v6 = vmax.f32 %v4386_v46, 0.0 }
 0x6c3   : > { %4965 = vmatmul.mubr.bf16.gmra.mxu0 %v4601_v32  ;;  %5126 = vmatmul.mubr.bf16.gmra.mxu1 %v4603_v25  ;;  %v12094_v32 = vld [vmem:[#allocation30_spill] sm:$0xff]  ;;  %v12098_v25 = vmax.f32 %v10089_v48, 0.0  ;;  %v4516_v11 = vmax.f32 %v4388_v22, 0.0  ;;  %v4610_v48 = vpack.c.bf16 %v4498_v0, %v4494_v38  ;;  %v12103_v27 = vmax.f32 %v10101_v30, 0.0 }
 0x6c4   : > { %4972 = vmatprep.mubr.bf16.mxu0 %v4606_v58  ;;  %v4384_v61 = vadd.f32 %v10039_v15, %v12094_v32  ;;  %5133 = vmatprep.mubr.bf16.mxu1 %v4608_v56  ;;  %v12099_v58 = vmax.f32 %v10097_v16, 0.0  ;;  %v4390_v32 = vadd.f32 %v10036_v36, %v12100_v9  ;;  %v4394_v56 = vadd.f32 %v10036_v36, %v12101_v41 }
 0x6c5   : > { %v12102_v16 = vmax.f32 %v10093_v49, 0.0  ;;  %v4612_v50 = vpack.c.bf16 %v4500_v19, %v4496_v55  ;;  %v12106_v39 = vmax.f32 %v10105_v43, 0.0  ;;  %v12107_v23 = vmax.f32 %v10113_v24, 0.0  ;;  %v12112_v24 = vld [vmem:[#allocation76_spill] sm:$0xff] }
 0x6c6   : > { %v4609_v35 = vpack.c.bf16 %v12099_v58, %v12098_v25  ;;  %v4512_v13 = vmax.f32 %v4384_v61, 0.0  ;;  %v12104_v25 = vld [vmem:[#allocation56_spill] sm:$0xff]  ;;  %v4518_v0 = vmax.f32 %v4390_v32, 0.0  ;;  %v4522_v49 = vmax.f32 %v4394_v56, 0.0  ;;  %v12115_v56 = vld [vmem:[#allocation50_spill] sm:$0xff] }
 0x6c7   : > { %v4611_v7 = vpack.c.bf16 %v12103_v27, %v12102_v16  ;;  %v10283_v9 = vadd.f32 %v10039_v15, %v12104_v25  ;;  %v12105_v58 = vld [vmem:[#allocation48_spill] sm:$0xff]  ;;  %v10293_v4 = vpack.c.bf16 %v12107_v23, %v12106_v39  ;;  %v4614_v30 = vpack.c.bf16 %v4506_v29, %v4502_v40  ;;  %v12117_v29 = vld [vmem:[#allocation137_spill] sm:$0xff]  ;;  %v12124_v25 = vld [vmem:[#allocation47_spill] sm:$0xff] }
 0x6c8   : > { %v10287_v41 = vadd.f32 %v10039_v15, %v12105_v58  ;;  %v4616_v47 = vpack.c.bf16 %v4508_v34, %v4504_v2  ;;  %v12108_v46 = vmax.f32 %v10109_v3, 0.0  ;;  %v12109_v61 = vmax.f32 %v10117_v59, 0.0  ;;  %v12126_v39 = vld [vmem:[#allocation46_spill] sm:$0xff] }
 0x6c9   : > { %v12110_v38 = vmax.f32 %v10121_v26, 0.0  ;;  %v12111_v19 = vmax.f32 %v10129_v44, 0.0  ;;  %v10308_v32 = vpack.c.bf16 %v4514_v6, %v4510_v12  ;;  %v12113_v3 = vmax.f32 %v10125_v17, 0.0 }
 0x6ca   : > { %v10299_v22 = vpack.c.bf16 %v12109_v61, %v12108_v46  ;;  %v12114_v59 = vmax.f32 %v10133_v42, 0.0  ;;  %v10322_v40 = vadd.f32 %v10036_v36, %v12115_v56  ;;  %v12118_v34 = vmax.f32 %v12117_v29, 0.0  ;;  %v12119_v42 = vld [vmem:[#allocation54_spill] sm:$0xff]  ;;  %v12128_v46 = vld [vmem:[#allocation60_spill] sm:$0xff] }
 0x6cb   : > { %4973 = vmatmul.mubr.bf16.gmra.mxu0 %v4605_v5  ;;  %v10305_v43 = vpack.c.bf16 %v12111_v19, %v12110_v38  ;;  %5134 = vmatmul.mubr.bf16.gmra.mxu1 %v4607_v54  ;;  %v10310_v5 = vpack.c.bf16 %v4516_v11, %v4512_v13  ;;  %v12116_v54 = vmax.f32 %v9934_v51, 0.0  ;;  %v10330_v17 = vpack.c.bf16 %v4522_v49, %v4518_v0  ;;  %v12120_v13 = vld [vmem:[#allocation98_spill] sm:$0xff]  ;;  %v12125_v51 = vld [vmem:[#allocation55_spill] sm:$0xff]  ;;  %v12127_v0 = vld [vmem:[#allocation44_spill] sm:$0xff] }
 0x6cc   : > { %4980 = vmatprep.mubr.bf16.mxu0 %v4610_v48  ;;  %v10316_v2 = vpack.c.bf16 %v12114_v59, %v12113_v3  ;;  %5141 = vmatprep.mubr.bf16.mxu1 %v4612_v50  ;;  %v10334_v6 = vadd.f32 %v10036_v36, %v12119_v42  ;;  %v12121_v11 = vmax.f32 %v12120_v13, 0.0  ;;  %v12122_v48 = vld [vmem:[#allocation136_spill] sm:$0xff]  ;;  %v4414_v58 = vadd.f32 %v10036_v36, %v12124_v25  ;;  %v12129_v38 = vld [vmem:[#allocation53_spill] sm:$0xff] }
 0x6cd   : > { %v10328_v12 = vpack.c.bf16 %v12118_v34, %v12116_v54  ;;  %v12123_v16 = vmax.f32 %v12122_v48, 0.0  ;;  %v10346_v50 = vadd.f32 %v10039_v15, %v12125_v51  ;;  %v4418_v23 = vadd.f32 %v10036_v36, %v12126_v39  ;;  %v12130_v59 = vld [vmem:[#allocation97_spill] sm:$0xff]  ;;  %v12132_v54 = vld [vmem:[#allocation135_spill] sm:$0xff] }
 0x6ce   : > { %v4416_v49 = vadd.f32 %v10039_v15, %v12127_v0  ;;  %v4420_v61 = vadd.f32 %v10039_v15, %v12128_v46  ;;  %v10356_v19 = vadd.f32 %v10039_v15, %v12129_v38  ;;  %v4542_v3 = vmax.f32 %v4414_v58, 0.0  ;;  %v12134_v42 = vld [vmem:[#allocation93_spill] sm:$0xff]  ;;  %v12138_v0 = vld [vmem:[#allocation83_spill] sm:$0xff] }
 0x6cf   : > { %v10340_v27 = vpack.c.bf16 %v12123_v16, %v12121_v11  ;;  %v12131_v56 = vmax.f32 %v12130_v59, 0.0  ;;  %v12133_v29 = vmax.f32 %v12132_v54, 0.0  ;;  %v12135_v13 = vmax.f32 %v12134_v42, 0.0  ;;  %v12136_v11 = vld [vmem:[#allocation134_spill] sm:$0xff]  ;;  %v12139_v38 = vld [vmem:[#allocation43_spill] sm:$0xff]  ;;  %v12140_v59 = vld [vmem:[#allocation72_spill] sm:$0xff] }
 0x6d0   : > { %v12137_v48 = vmax.f32 %v12136_v11, 0.0  ;;  %v4546_v25 = vmax.f32 %v4418_v23, 0.0  ;;  %v4544_v51 = vmax.f32 %v4416_v49, 0.0  ;;  %v4548_v39 = vmax.f32 %v4420_v61, 0.0  ;;  %v12142_v42 = vld [vmem:[#allocation90_spill] sm:$0xff]  ;;  %v12144_v11 = vld [vmem:[#allocation133_spill] sm:$0xff] }
 0x6d1   : > { %v10362_v34 = vpack.c.bf16 %v12133_v29, %v12131_v56  ;;  %v4422_v46 = vadd.f32 %v10036_v36, %v12138_v0  ;;  %v4426_v58 = vadd.f32 %v10036_v36, %v12139_v38  ;;  %v4424_v54 = vadd.f32 %v10039_v15, %v12140_v59  ;;  %v12141_v56 = vld [vmem:[#allocation40_spill] sm:$0xff]  ;;  %v12146_v0 = vld [vmem:[#allocation91_spill] sm:$0xff] }
 0x6d2   : > { %v10368_v16 = vpack.c.bf16 %v12137_v48, %v12135_v13  ;;  %v4428_v29 = vadd.f32 %v10039_v15, %v12141_v56  ;;  %v12143_v44 = vmax.f32 %v12142_v42, 0.0  ;;  %v12145_v13 = vmax.f32 %v12144_v11, 0.0  ;;  %v12149_v11 = vld [vmem:[#allocation69_spill] sm:$0xff] }
 0x6d3   : > { %4981 = vmatmul.mubr.bf16.gmra.mxu0 %v4609_v35  ;;  %v10384_v23 = vpack.c.bf16 %v4546_v25, %v4542_v3  ;;  %v10386_v49 = vpack.c.bf16 %v4548_v39, %v4544_v51  ;;  %v4550_v61 = vmax.f32 %v4422_v46, 0.0  ;;  %v12147_v38 = vmax.f32 %v12146_v0, 0.0  ;;  %5142 = vmatmul.mubr.bf16.gmra.mxu1 %v4611_v7  ;;  %v12150_v35 = vld [vmem:[#allocation39_spill] sm:$0xff]  ;;  %v12151_v25 = vld [vmem:[#allocation65_spill] sm:$0xff]  ;;  %v12152_v39 = vld [vmem:[#allocation66_spill] sm:$0xff] }
 0x6d4   : > { %v10382_v48 = vpack.c.bf16 %v12145_v13, %v12143_v44  ;;  %v12148_v26 = vmax.f32 %v9973_v8, 0.0  ;;  %4988 = vmatprep.mubr.bf16.mxu0 %v4614_v30  ;;  %v4554_v56 = vmax.f32 %v4426_v58, 0.0  ;;  %v4552_v42 = vmax.f32 %v4424_v54, 0.0  ;;  %5149 = vmatprep.mubr.bf16.mxu1 %v4616_v47 }
 0x6d5   : > { %v4556_v55 = vmax.f32 %v4428_v29, 0.0  ;;  %v4430_v44 = vadd.f32 %v10036_v36, %v12149_v11  ;;  %v4434_v3 = vadd.f32 %v10036_v36, %v12150_v35  ;;  %v4432_v51 = vadd.f32 %v10039_v15, %v12151_v25  ;;  %v12157_v35 = vld [vmem:[#allocation37_spill] sm:$0xff] }
 0x6d6   : > { %v10392_v59 = vpack.c.bf16 %v12148_v26, %v12147_v38  ;;  %v4436_v8 = vadd.f32 %v10039_v15, %v12152_v39  ;;  %v12153_v26 = vmax.f32 %v9976_v63, 0.0  ;;  %v12154_v7 = vmax.f32 %v9982_v28, 0.0  ;;  %v12158_v28 = vld [vmem:[#allocation38_spill] sm:$0xff] }
 0x6d7   : > { %v10408_v46 = vpack.c.bf16 %v4554_v56, %v4550_v61  ;;  %v10410_v58 = vpack.c.bf16 %v4556_v55, %v4552_v42  ;;  %v4558_v47 = vmax.f32 %v4430_v44, 0.0  ;;  %v12155_v54 = vmax.f32 %v9979_v45, 0.0  ;;  %v12159_v61 = vld [vmem:[#allocation123_spill] sm:$0xff]  ;;  %v12160_v56 = vld [vmem:[#allocation45_spill] sm:$0xff] }
 0x6d8   : > { %v10406_v30 = vpack.c.bf16 %v12154_v7, %v12153_v26  ;;  %v12156_v29 = vmax.f32 %v9985_v33, 0.0  ;;  %v4562_v0 = vmax.f32 %v4434_v3, 0.0  ;;  %v4560_v38 = vmax.f32 %v4432_v51, 0.0 }
 0x6d9   : > { %v4564_v11 = vmax.f32 %v4436_v8, 0.0  ;;  %v4438_v63 = vadd.f32 %v10036_v36, %v12157_v35  ;;  %v4442_v25 = vadd.f32 %v10036_v36, %v12158_v28  ;;  %v4440_v55 = vadd.f32 %v10039_v15, %v12159_v61  ;;  %v12165_v28 = vld [vmem:[#allocation52_spill] sm:$0xff] }
 0x6da   : > { %v10416_v13 = vpack.c.bf16 %v12156_v29, %v12155_v54  ;;  %v4444_v42 = vadd.f32 %v10039_v15, %v12160_v56  ;;  %v12161_v45 = vmax.f32 %v9988_v62, 0.0  ;;  %v12162_v33 = vmax.f32 %v9994_v14, 0.0  ;;  %v12166_v14 = vld [vmem:[#allocation51_spill] sm:$0xff] }
 0x6db   : > { %v10432_v3 = vpack.c.bf16 %v4562_v0, %v4558_v47  ;;  %v10434_v51 = vpack.c.bf16 %v4564_v11, %v4560_v38  ;;  %v4566_v39 = vmax.f32 %v4438_v63, 0.0  ;;  %v12163_v8 = vmax.f32 %v9991_v37, 0.0  ;;  %4989 = vmatmul.mubr.bf16.gmra.mxu0 %v10293_v4  ;;  %v12167_v0 = vld [vmem:[#allocation49_spill] sm:$0xff]  ;;  %v12168_v11 = vld [vmem:[#allocation115_spill] sm:$0xff]  ;;  %5150 = vmatmul.mubr.bf16.gmra.mxu1 %v10299_v22 }
 0x6dc   : > { %v10430_v44 = vpack.c.bf16 %v12162_v33, %v12161_v45  ;;  %v12164_v26 = vmax.f32 %v9997_v57, 0.0  ;;  %v4570_v54 = vmax.f32 %v4442_v25, 0.0  ;;  %v4568_v29 = vmax.f32 %v4440_v55, 0.0  ;;  %4996 = vmatprep.mubr.bf16.mxu0 %v10308_v32  ;;  %5157 = vmatprep.mubr.bf16.mxu1 %v10310_v5  ;;  %v12174_v32 = vld [vmem:[#allocation107_spill] sm:$0xff] }
 0x6dd   : > { %v4572_v35 = vmax.f32 %v4444_v42, 0.0  ;;  %v4446_v62 = vadd.f32 %v10036_v36, %v12165_v28  ;;  %v4450_v47 = vadd.f32 %v10036_v36, %v12166_v14  ;;  %v4448_v38 = vadd.f32 %v10039_v15, %v12167_v0 }
 0x6de   : > { %v10440_v7 = vpack.c.bf16 %v12164_v26, %v12163_v8  ;;  %v4452_v37 = vadd.f32 %v10039_v15, %v12168_v11  ;;  %v12169_v57 = vmax.f32 %v10000_v52, 0.0  ;;  %v12170_v63 = vmax.f32 %v10006_v21, 0.0  ;;  %v12173_v8 = vld [vmem:[#allocation58_spill] sm:$0xff]  ;;  %v12175_v26 = vld [vmem:[#allocation124_spill] sm:$0xff] }
 0x6df   : > { %v10459_v4 = vpack.c.bf16 %v4570_v54, %v4566_v39  ;;  %v10461_v61 = vpack.c.bf16 %v4572_v35, %v4568_v29  ;;  %v4574_v55 = vmax.f32 %v4446_v62, 0.0  ;;  %v12171_v56 = vmax.f32 %v10003_v31, 0.0  ;;  %v12176_v29 = vld [vmem:[#allocation105_spill] sm:$0xff] }
 0x6e0   : > { %v10455_v25 = vpack.c.bf16 %v12170_v63, %v12169_v57  ;;  %v12172_v42 = vmax.f32 %v10009_v20, 0.0  ;;  %v4578_v52 = vmax.f32 %v4450_v47, 0.0  ;;  %v4576_v21 = vmax.f32 %v4448_v38, 0.0  ;;  %v12181_v63 = vld [vmem:[#allocation104_spill] sm:$0xff] }
 0x6e1   : > { %v4580_v33 = vmax.f32 %v4452_v37, 0.0  ;;  %v4454_v22 = vadd.f32 %v10036_v36, %v12173_v8  ;;  %v4458_v39 = vadd.f32 %v10036_v36, %v12174_v32  ;;  %v4456_v54 = vadd.f32 %v10039_v15, %v12175_v26  ;;  %v12188_v26 = vld [vmem:[#allocation130_spill] sm:$0xff] }
 0x6e2   : > { %v10467_v45 = vpack.c.bf16 %v12172_v42, %v12171_v56  ;;  %v4460_v31 = vadd.f32 %v10039_v15, %v12176_v29  ;;  %v12177_v20 = vmax.f32 %v10012_v53, 0.0  ;;  %v12178_v35 = vmax.f32 %v12073_v1, 0.0  ;;  %v12182_v1 = vld [vmem:[#allocation138_spill] sm:$0xff] }
 0x6e3   : > { %v10484_v28 = vpack.c.bf16 %v4578_v52, %v4574_v55  ;;  %v10486_v62 = vpack.c.bf16 %v4580_v33, %v4576_v21  ;;  %v4582_v14 = vmax.f32 %v4454_v22, 0.0  ;;  %v12179_v47 = vmax.f32 %v12072_v10, 0.0  ;;  %v12183_v55 = vld [vmem:[#allocation103_spill] sm:$0xff]  ;;  %v12184_v52 = vld [vmem:[#allocation100_spill] sm:$0xff]  ;;  %4997 = vmatmul.mubr.bf16.gmra.mxu0 %v10305_v43  ;;  %5158 = vmatmul.mubr.bf16.gmra.mxu1 %v10316_v2 }
 0x6e4   : > { %v10482_v5 = vpack.c.bf16 %v12178_v35, %v12177_v20  ;;  %v12180_v0 = vmax.f32 %v12074_v60, 0.0  ;;  %v4586_v11 = vmax.f32 %v4458_v39, 0.0  ;;  %v4584_v37 = vmax.f32 %v4456_v54, 0.0  ;;  %v12186_v60 = vld [vmem:[#allocation79_spill] sm:$0xff]  ;;  %5004 = vmatprep.mubr.bf16.mxu0 %v10330_v17  ;;  %v12202_v2 = vld [vmem:[#allocation64_spill] sm:$0xff] }
 0x6e5   : > { %v4588_v57 = vmax.f32 %v4460_v31, 0.0  ;;  %v4462_v53 = vadd.f32 %v10036_v36, %v12181_v63  ;;  %v4466_v56 = vadd.f32 %v10036_v36, %v12182_v1  ;;  %v4464_v42 = vadd.f32 %v10039_v15, %v12183_v55  ;;  %v12195_v63 = vld [vmem:[#allocation63_spill] sm:$0xff]  ;;  %v12197_v55 = vld [vmem:[#allocation36_spill] sm:$0xff] }
 0x6e6   : > { %v10492_v38 = vpack.c.bf16 %v12180_v0, %v12179_v47  ;;  %v4468_v21 = vadd.f32 %v10039_v15, %v12184_v52  ;;  %v12185_v10 = vmax.f32 %v12075_v18, 0.0  ;;  %v12187_v33 = vmax.f32 %v12186_v60, 0.0  ;;  %v12201_v60 = vld [vmem:[#allocation73_spill] sm:$0xff] }
 0x6e7   : > { %v10508_v22 = vpack.c.bf16 %v4586_v11, %v4582_v14  ;;  %v10510_v32 = vpack.c.bf16 %v4588_v57, %v4584_v37  ;;  %v4590_v39 = vmax.f32 %v4462_v53, 0.0  ;;  %v12189_v54 = vmax.f32 %v12188_v26, 0.0  ;;  %v12193_v11 = vld [vmem:[#allocation41_spill] sm:$0xff]  ;;  %v12194_v37 = vld [vmem:[#allocation92_spill] sm:$0xff] }
 0x6e8   : > { %v10506_v8 = vpack.c.bf16 %v12187_v33, %v12185_v10  ;;  %v12190_v29 = vmax.f32 %v12112_v24, 0.0  ;;  %v12191_v20 = vmax.f32 %v10283_v9, 0.0  ;;  %v12192_v18 = vmax.f32 %v10287_v41, 0.0  ;;  %v12196_v53 = vld [vmem:[#allocation25_spill] sm:$0xff]  ;;  %v12199_v41 = vld [vmem:[#allocation20_spill] sm:$0xff] }
 0x6e9   : > { %v4594_v47 = vmax.f32 %v4466_v56, 0.0  ;;  %v4592_v0 = vmax.f32 %v4464_v42, 0.0  ;;  %v4596_v14 = vmax.f32 %v4468_v21, 0.0  ;;  %v4248_v57 = vmul.f32 %v12194_v37, %v12193_v11  ;;  %v12198_v9 = vld [vmem:[#allocation129_spill] sm:$0xff]  ;;  %v12200_v21 = vld [vmem:[#allocation128_spill] sm:$0xff] }
 0x6ea   : > { %v10516_v31 = vpack.c.bf16 %v12190_v29, %v12189_v54  ;;  %v4624_v35 = vpack.c.bf16 %v12192_v18, %v12191_v20  ;;  %v4250_v1 = vmul.f32 %v12196_v53, %v12195_v63  ;;  %v4252_v24 = vmul.f32 %v12194_v37, %v12197_v55  ;;  %v12203_v29 = vld [vmem:[#allocation42_spill] sm:$0xff]  ;;  %v12204_v20 = vld [vmem:[#allocation88_spill] sm:$0xff]  ;;  %v12208_v63 = vld [vmem:[#allocation87_spill] sm:$0xff] }
 0x6eb   : > { %v4517_v43 = vmax.f32 %v12198_v9, 0.0  ;;  %v4521_v52 = vmax.f32 %v12199_v41, 0.0  ;;  %v10533_v56 = vpack.c.bf16 %v4594_v47, %v4590_v39  ;;  %v10535_v42 = vpack.c.bf16 %v4596_v14, %v4592_v0  ;;  %v12205_v47 = vld [vmem:[#allocation67_spill] sm:$0xff]  ;;  %v12207_v11 = vld [vmem:[#allocation120_spill] sm:$0xff] }
 0x6ec   : > { %5165 = vmatprep.mubr.bf16.mxu1 %v4624_v35  ;;  %v4519_v10 = vmax.f32 %v12200_v21, 0.0  ;;  %v4523_v33 = vmax.f32 %v12201_v60, 0.0  ;;  %v4526_v26 = vmax.f32 %v10322_v40, 0.0  ;;  %v4530_v54 = vmax.f32 %v10334_v6, 0.0  ;;  %v12206_v0 = vld [vmem:[#allocation27_spill] sm:$0xff]  ;;  %v12209_v6 = vld [vmem:[#allocation110_spill] sm:$0xff] }
 0x6ed   : > { %v4254_v17 = vmul.f32 %v12196_v53, %v12202_v2  ;;  %v4257_v18 = vmul.f32 %v12204_v20, %v12203_v29  ;;  %v4528_v35 = vmax.f32 %v10346_v50, 0.0  ;;  %v4532_v39 = vmax.f32 %v10356_v19, 0.0  ;;  %v12210_v9 = vld [vmem:[#allocation108_spill] sm:$0xff] }
 0x6ee   : > { %v4259_v14 = vmul.f32 %v12206_v0, %v12205_v47  ;;  %v4261_v37 = vmul.f32 %v12204_v20, %v12207_v11  ;;  %v4263_v40 = vmul.f32 %v12206_v0, %v12208_v63  ;;  %v4397_v55 = vadd.f32 %v12209_v6, %v4248_v57 }
 0x6ef   : > { %v4399_v53 = vadd.f32 %v12210_v9, %v4250_v1  ;;  %v4401_v41 = vadd.f32 %v12209_v6, %v4252_v24  ;;  %v4403_v21 = vadd.f32 %v12210_v9, %v4254_v17  ;;  %v4621_v50 = vpack.c.bf16 %v4521_v52, %v4517_v43 }
 0x6f0   : > { %v4623_v60 = vpack.c.bf16 %v4523_v33, %v4519_v10  ;;  %v4626_v19 = vpack.c.bf16 %v4530_v54, %v4526_v26  ;;  %v4406_v2 = vadd.f32 %v10036_v36, %v4257_v18  ;;  %v4410_v29 = vadd.f32 %v10036_v36, %v4261_v37 }
 0x6f1   : > { %5005 = vmatmul.mubr.bf16.gmra.mxu0 %v4621_v50  ;;  %v4628_v20 = vpack.c.bf16 %v4532_v39, %v4528_v35  ;;  %v4408_v47 = vadd.f32 %v10039_v15, %v4259_v14  ;;  %v4412_v0 = vadd.f32 %v10039_v15, %v4263_v40  ;;  %v4525_v57 = vmax.f32 %v4397_v55, 0.0 }
 0x6f2   : > { %5166 = vmatmul.mubr.bf16.gmra.mxu1 %v4623_v60  ;;  %5012 = vmatprep.mubr.bf16.mxu0 %v4626_v19  ;;  %v4529_v1 = vmax.f32 %v4401_v41, 0.0  ;;  %v4527_v24 = vmax.f32 %v4399_v53, 0.0  ;;  %v4531_v17 = vmax.f32 %v4403_v21, 0.0  ;;  %v4534_v43 = vmax.f32 %v4406_v2, 0.0 }
 0x6f3   : > { %5173 = vmatprep.mubr.bf16.mxu1 %v4628_v20  ;;  %v4538_v52 = vmax.f32 %v4410_v29, 0.0  ;;  %v4536_v10 = vmax.f32 %v4408_v47, 0.0  ;;  %v4540_v33 = vmax.f32 %v4412_v0, 0.0 }
 0x6f4   : > { %v4625_v26 = vpack.c.bf16 %v4529_v1, %v4525_v57  ;;  %v4627_v54 = vpack.c.bf16 %v4531_v17, %v4527_v24 }
 0x6f5   : > { %v4630_v36 = vpack.c.bf16 %v4538_v52, %v4534_v43  ;;  %v4632_v18 = vpack.c.bf16 %v4540_v33, %v4536_v10 }
 0x6f9   : > { %5013 = vmatmul.mubr.bf16.gmra.mxu0 %v4625_v26 }
 0x6fa   : > { %5174 = vmatmul.mubr.bf16.gmra.mxu1 %v4627_v54  ;;  %5020 = vmatprep.mubr.bf16.mxu0 %v4630_v36 }
 0x6fb   : > { %5181 = vmatprep.mubr.bf16.mxu1 %v4632_v18 }
 0x701   : > { %5021 = vmatmul.mubr.bf16.gmra.mxu0 %v10328_v12 }
 0x702   : > { %5182 = vmatmul.mubr.bf16.gmra.mxu1 %v10340_v27  ;;  %5028 = vmatprep.mubr.bf16.mxu0 %v10384_v23  ;;  %v10594_v27 = vld [vmem:[%s10721_s8] ss:$0 sm:$0xff] }
 0x703   : > { %5189 = vmatprep.mubr.bf16.mxu1 %v10386_v49 }
 0x709   : > { %5029 = vmatmul.mubr.bf16.gmra.mxu0 %v10362_v34 }
 0x70a   : > { %5190 = vmatmul.mubr.bf16.gmra.mxu1 %v10368_v16  ;;  %5036 = vmatprep.mubr.bf16.mxu0 %v10408_v46 }
 0x70b   : > { %5197 = vmatprep.mubr.bf16.mxu1 %v10410_v58 }
 0x711   : > { %5037 = vmatmul.mubr.bf16.gmra.mxu0 %v10382_v48 }
 0x712   : > { %5198 = vmatmul.mubr.bf16.gmra.mxu1 %v10392_v59  ;;  %5044 = vmatprep.mubr.bf16.mxu0 %v10432_v3 }
 0x713   : > { %5205 = vmatprep.mubr.bf16.mxu1 %v10434_v51 }
 0x719   : > { %5045 = vmatmul.mubr.bf16.gmra.mxu0 %v10406_v30 }
 0x71a   : > { %5206 = vmatmul.mubr.bf16.gmra.mxu1 %v10416_v13  ;;  %5052 = vmatprep.mubr.bf16.mxu0 %v10459_v4 }
 0x71b   : > { %5213 = vmatprep.mubr.bf16.mxu1 %v10461_v61 }
 0x721   : > { %5053 = vmatmul.mubr.bf16.gmra.mxu0 %v10430_v44 }
 0x722   : > { %5214 = vmatmul.mubr.bf16.gmra.mxu1 %v10440_v7  ;;  %5060 = vmatprep.mubr.bf16.mxu0 %v10484_v28 }
 0x723   : > { %5221 = vmatprep.mubr.bf16.mxu1 %v10486_v62 }
 0x729   : > { %5061 = vmatmul.mubr.bf16.gmra.mxu0 %v10455_v25 }
 0x72a   : > { %5222 = vmatmul.mubr.bf16.gmra.mxu1 %v10467_v45  ;;  %5068 = vmatprep.mubr.bf16.mxu0 %v10508_v22 }
 0x72b   : > { %5229 = vmatprep.mubr.bf16.mxu1 %v10510_v32 }
 0x731   : > { %5069 = vmatmul.mubr.bf16.gmra.mxu0 %v10482_v5 }
 0x732   : > { %5230 = vmatmul.mubr.bf16.gmra.mxu1 %v10492_v38  ;;  %5076 = vmatprep.mubr.bf16.mxu0 %v10533_v56 }
 0x733   : > { %5237 = vmatprep.mubr.bf16.mxu1 %v10535_v42 }
 0x739   : > { %5077 = vmatmul.mubr.bf16.gmra.mxu0 %v10506_v8 }
 0x73a   : > { %5238 = vmatmul.mubr.bf16.gmra.mxu1 %v10516_v31 }
 0x77b   : > { %v5664_v15 = vpop.f32.mrf.mxu0  ;;  %v5776_v12 = vpop.f32.mrf.mxu1 }
 0x77d   : > { %v5665_v34 = vpop.f32.mrf.mxu0  ;;  %v5777_v48 = vpop.f32.mrf.mxu1 }
 0x77e   : > { %v5666_v16 = vadd.f32 %v5665_v34, %v5664_v15  ;;  %v5778_v59 = vadd.f32 %v5777_v48, %v5776_v12 }
 0x77f   : > { %v5667_v23 = vpop.f32.mrf.mxu0  ;;  %v5779_v30 = vpop.f32.mrf.mxu1 }
 0x780   : > { %v4959_v49 = vadd.f32 %v5666_v16, %v10594_v27 }
 0x781   : > { %v5668_v46 = vpop.f32.mrf.mxu0  ;;  %v5780_v44 = vpop.f32.mrf.mxu1 }
 0x782   : > { %v5120_v58 = vadd.f32 %v5778_v59, %v4959_v49  ;;  %v5669_v13 = vadd.f32 %v5668_v46, %v5667_v23  ;;  %v5781_v7 = vadd.f32 %v5780_v44, %v5779_v30 }
 0x783   : > { %v5670_v3 = vpop.f32.mrf.mxu0  ;;  %v5782_v25 = vpop.f32.mrf.mxu1 }
 0x784   : > { %5246 = vst [vmem:[%s10598_s26] sm:$0xff] %v5120_v58  ;;  %v4962_v51 = vadd.f32 %v5669_v13, %v10594_v27 }
 0x785   : > { %v5671_v4 = vpop.f32.mrf.mxu0  ;;  %v5783_v5 = vpop.f32.mrf.mxu1 }
 0x786   : > { %v5123_v61 = vadd.f32 %v5781_v7, %v4962_v51  ;;  %v5672_v45 = vadd.f32 %v5671_v4, %v5670_v3  ;;  %v5784_v38 = vadd.f32 %v5783_v5, %v5782_v25 }
 0x787   : > { %v5673_v28 = vpop.f32.mrf.mxu0  ;;  %v5785_v8 = vpop.f32.mrf.mxu1 }
 0x788   : > { %5247 = vst [vmem:[%s10598_s26 + $0x8] sm:$0xff] %v5123_v61  ;;  %v4967_v62 = vadd.f32 %v5672_v45, %v10594_v27 }
 0x789   : > { %v5674_v22 = vpop.f32.mrf.mxu0  ;;  %v5786_v56 = vpop.f32.mrf.mxu1 }
 0x78a   : > { %v5128_v32 = vadd.f32 %v5784_v38, %v4967_v62  ;;  %v5675_v31 = vadd.f32 %v5674_v22, %v5673_v28  ;;  %v5787_v39 = vadd.f32 %v5786_v56, %v5785_v8 }
 0x78b   : > { %v5676_v42 = vpop.f32.mrf.mxu0  ;;  %v5788_v14 = vpop.f32.mrf.mxu1 }
 0x78c   : > { %5248 = vst [vmem:[%s10598_s26 + $0x10] sm:$0xff] %v5128_v32  ;;  %v4970_v35 = vadd.f32 %v5675_v31, %v10594_v27 }
 0x78d   : > { %v5677_v11 = vpop.f32.mrf.mxu0  ;;  %v5789_v40 = vpop.f32.mrf.mxu1 }
 0x78e   : > { %v5131_v37 = vadd.f32 %v5787_v39, %v4970_v35  ;;  %v5678_v63 = vadd.f32 %v5677_v11, %v5676_v42  ;;  %v5790_v9 = vadd.f32 %v5789_v40, %v5788_v14 }
 0x78f   : > { %v5679_v6 = vpop.f32.mrf.mxu0  ;;  %v5791_v53 = vpop.f32.mrf.mxu1 }
 0x790   : > { %5249 = vst [vmem:[%s10598_s26 + $0x18] sm:$0xff] %v5131_v37  ;;  %v4975_v55 = vadd.f32 %v5678_v63, %v10594_v27 }
 0x791   : > { %v5680_v41 = vpop.f32.mrf.mxu0  ;;  %v5792_v60 = vpop.f32.mrf.mxu1 }
 0x792   : > { %v5136_v21 = vadd.f32 %v5790_v9, %v4975_v55  ;;  %v5681_v50 = vadd.f32 %v5680_v41, %v5679_v6  ;;  %v5793_v29 = vadd.f32 %v5792_v60, %v5791_v53 }
 0x793   : > { %v5682_v19 = vpop.f32.mrf.mxu0  ;;  %v5794_v20 = vpop.f32.mrf.mxu1 }
 0x794   : > { %5250 = vst [vmem:[%s10598_s26 + $0x20] sm:$0xff] %v5136_v21  ;;  %v4978_v2 = vadd.f32 %v5681_v50, %v10594_v27 }
 0x795   : > { %v5683_v47 = vpop.f32.mrf.mxu0  ;;  %v5795_v1 = vpop.f32.mrf.mxu1 }
 0x796   : > { %v5139_v0 = vadd.f32 %v5793_v29, %v4978_v2  ;;  %v5684_v57 = vadd.f32 %v5683_v47, %v5682_v19  ;;  %v5796_v43 = vadd.f32 %v5795_v1, %v5794_v20 }
 0x797   : > { %v5685_v24 = vpop.f32.mrf.mxu0  ;;  %v5797_v52 = vpop.f32.mrf.mxu1 }
 0x798   : > { %5251 = vst [vmem:[%s10598_s26 + $0x28] sm:$0xff] %v5139_v0  ;;  %v4983_v17 = vadd.f32 %v5684_v57, %v10594_v27 }
 0x799   : > { %v5686_v10 = vpop.f32.mrf.mxu0  ;;  %v5798_v54 = vpop.f32.mrf.mxu1 }
 0x79a   : > { %v5144_v33 = vadd.f32 %v5796_v43, %v4983_v17  ;;  %v5687_v26 = vadd.f32 %v5686_v10, %v5685_v24  ;;  %v5799_v15 = vadd.f32 %v5798_v54, %v5797_v52 }
 0x79b   : > { %v5688_v36 = vpop.f32.mrf.mxu0  ;;  %v5800_v12 = vpop.f32.mrf.mxu1 }
 0x79c   : > { %5252 = vst [vmem:[%s10598_s26 + $0x30] sm:$0xff] %v5144_v33  ;;  %v4986_v18 = vadd.f32 %v5687_v26, %v10594_v27 }
 0x79d   : > { %v5689_v34 = vpop.f32.mrf.mxu0  ;;  %v5801_v23 = vpop.f32.mrf.mxu1 }
 0x79e   : > { %v5147_v16 = vadd.f32 %v5799_v15, %v4986_v18  ;;  %v5690_v48 = vadd.f32 %v5689_v34, %v5688_v36  ;;  %v5802_v30 = vadd.f32 %v5801_v23, %v5800_v12 }
 0x79f   : > { %v5691_v49 = vpop.f32.mrf.mxu0  ;;  %v5803_v46 = vpop.f32.mrf.mxu1 }
 0x7a0   : > { %5253 = vst [vmem:[%s10598_s26 + $0x38] sm:$0xff] %v5147_v16  ;;  %v4991_v59 = vadd.f32 %v5690_v48, %v10594_v27 }
 0x7a1   : > { %v5692_v58 = vpop.f32.mrf.mxu0  ;;  %v5804_v3 = vpop.f32.mrf.mxu1 }
 0x7a2   : > { %v5152_v13 = vadd.f32 %v5802_v30, %v4991_v59  ;;  %v5693_v44 = vadd.f32 %v5692_v58, %v5691_v49  ;;  %v5805_v25 = vadd.f32 %v5804_v3, %v5803_v46 }
 0x7a3   : > { %v5694_v51 = vpop.f32.mrf.mxu0  ;;  %v5806_v4 = vpop.f32.mrf.mxu1 }
 0x7a4   : > { %5254 = vst [vmem:[%s10598_s26 + $0x40] sm:$0xff] %v5152_v13  ;;  %v4994_v7 = vadd.f32 %v5693_v44, %v10594_v27 }
 0x7a5   : > { %v5695_v61 = vpop.f32.mrf.mxu0  ;;  %v5807_v28 = vpop.f32.mrf.mxu1 }
 0x7a6   : > { %v5155_v45 = vadd.f32 %v5805_v25, %v4994_v7  ;;  %v5696_v5 = vadd.f32 %v5695_v61, %v5694_v51  ;;  %v5808_v8 = vadd.f32 %v5807_v28, %v5806_v4 }
 0x7a7   : > { %v5697_v62 = vpop.f32.mrf.mxu0  ;;  %v5809_v22 = vpop.f32.mrf.mxu1 }
 0x7a8   : > { %5255 = vst [vmem:[%s10598_s26 + $0x48] sm:$0xff] %v5155_v45  ;;  %v4999_v38 = vadd.f32 %v5696_v5, %v10594_v27 }
 0x7a9   : > { %v5698_v32 = vpop.f32.mrf.mxu0  ;;  %v5810_v42 = vpop.f32.mrf.mxu1 }
 0x7aa   : > { %v5160_v31 = vadd.f32 %v5808_v8, %v4999_v38  ;;  %v5699_v56 = vadd.f32 %v5698_v32, %v5697_v62  ;;  %v5811_v14 = vadd.f32 %v5810_v42, %v5809_v22 }
 0x7ac   : > { %5256 = vst [vmem:[%s10598_s26 + $0x50] sm:$0xff] %v5160_v31  ;;  %v5002_v39 = vadd.f32 %v5699_v56, %v10594_v27 }
 0x7ae   : > { %v5163_v63 = vadd.f32 %v5811_v14, %v5002_v39 }
 0x7b0   : > { %5257 = vst [vmem:[%s10598_s26 + $0x58] sm:$0xff] %v5163_v63 }
 0x7b1   : > { %v5700_v35 = vpop.f32.mrf.mxu0 }
 0x7b2   : > { %v5812_v11 = vpop.f32.mrf.mxu1 }
 0x7b3   : > { %v5701_v37 = vpop.f32.mrf.mxu0 }
 0x7b4   : > { %v5702_v40 = vadd.f32 %v5701_v37, %v5700_v35  ;;  %v5813_v6 = vpop.f32.mrf.mxu1 }
 0x7b5   : > { %v5703_v55 = vpop.f32.mrf.mxu0  ;;  %v5814_v53 = vadd.f32 %v5813_v6, %v5812_v11 }
 0x7b6   : > { %v5007_v9 = vadd.f32 %v5702_v40, %v10594_v27  ;;  %v5815_v41 = vpop.f32.mrf.mxu1 }
 0x7b7   : > { %v5704_v21 = vpop.f32.mrf.mxu0 }
 0x7b8   : > { %v5168_v50 = vadd.f32 %v5814_v53, %v5007_v9  ;;  %v5705_v60 = vadd.f32 %v5704_v21, %v5703_v55  ;;  %v5816_v19 = vpop.f32.mrf.mxu1 }
 0x7b9   : > { %v5706_v2 = vpop.f32.mrf.mxu0  ;;  %v5817_v20 = vadd.f32 %v5816_v19, %v5815_v41 }
 0x7ba   : > { %5258 = vst [vmem:[%s10598_s26 + $0x60] sm:$0xff] %v5168_v50  ;;  %v5010_v29 = vadd.f32 %v5705_v60, %v10594_v27  ;;  %v5818_v47 = vpop.f32.mrf.mxu1 }
 0x7bb   : > { %v5707_v0 = vpop.f32.mrf.mxu0 }
 0x7bc   : > { %v5171_v57 = vadd.f32 %v5817_v20, %v5010_v29  ;;  %v5708_v1 = vadd.f32 %v5707_v0, %v5706_v2  ;;  %v5819_v24 = vpop.f32.mrf.mxu1 }
 0x7bd   : > { %v5709_v17 = vpop.f32.mrf.mxu0  ;;  %v5820_v52 = vadd.f32 %v5819_v24, %v5818_v47 }
 0x7be   : > { %5259 = vst [vmem:[%s10598_s26 + $0x68] sm:$0xff] %v5171_v57  ;;  %v5015_v43 = vadd.f32 %v5708_v1, %v10594_v27  ;;  %v5821_v10 = vpop.f32.mrf.mxu1 }
 0x7bf   : > { %v5710_v33 = vpop.f32.mrf.mxu0 }
 0x7c0   : > { %v5176_v26 = vadd.f32 %v5820_v52, %v5015_v43  ;;  %v5711_v54 = vadd.f32 %v5710_v33, %v5709_v17  ;;  %v5822_v36 = vpop.f32.mrf.mxu1 }
 0x7c1   : > { %v5712_v18 = vpop.f32.mrf.mxu0  ;;  %v5823_v12 = vadd.f32 %v5822_v36, %v5821_v10 }
 0x7c2   : > { %5260 = vst [vmem:[%s10598_s26 + $0x70] sm:$0xff] %v5176_v26  ;;  %v5018_v15 = vadd.f32 %v5711_v54, %v10594_v27  ;;  %v5824_v34 = vpop.f32.mrf.mxu1 }
 0x7c3   : > { %v5713_v16 = vpop.f32.mrf.mxu0 }
 0x7c4   : > { %v5179_v48 = vadd.f32 %v5823_v12, %v5018_v15  ;;  %v5714_v23 = vadd.f32 %v5713_v16, %v5712_v18  ;;  %v5825_v49 = vpop.f32.mrf.mxu1 }
 0x7c5   : > { %v5715_v59 = vpop.f32.mrf.mxu0  ;;  %v5826_v46 = vadd.f32 %v5825_v49, %v5824_v34 }
 0x7c6   : > { %5261 = vst [vmem:[%s10598_s26 + $0x78] sm:$0xff] %v5179_v48  ;;  %v5023_v30 = vadd.f32 %v5714_v23, %v10594_v27  ;;  %v5827_v58 = vpop.f32.mrf.mxu1 }
 0x7c7   : > { %v5716_v13 = vpop.f32.mrf.mxu0 }
 0x7c8   : > { %v5184_v44 = vadd.f32 %v5826_v46, %v5023_v30  ;;  %v5717_v3 = vadd.f32 %v5716_v13, %v5715_v59  ;;  %v5828_v51 = vpop.f32.mrf.mxu1 }
 0x7c9   : > { %v5718_v7 = vpop.f32.mrf.mxu0  ;;  %v5829_v4 = vadd.f32 %v5828_v51, %v5827_v58 }
 0x7ca   : > { %5262 = vst [vmem:[%s10598_s26 + $0x80] sm:$0xff] %v5184_v44  ;;  %v5026_v25 = vadd.f32 %v5717_v3, %v10594_v27  ;;  %v5830_v61 = vpop.f32.mrf.mxu1 }
 0x7cb   : > { %v5719_v45 = vpop.f32.mrf.mxu0 }
 0x7cc   : > { %v5187_v5 = vadd.f32 %v5829_v4, %v5026_v25  ;;  %v5720_v28 = vadd.f32 %v5719_v45, %v5718_v7  ;;  %v5831_v62 = vpop.f32.mrf.mxu1 }
 0x7cd   : > { %v5721_v38 = vpop.f32.mrf.mxu0  ;;  %v5832_v22 = vadd.f32 %v5831_v62, %v5830_v61 }
 0x7ce   : > { %5263 = vst [vmem:[%s10598_s26 + $0x88] sm:$0xff] %v5187_v5  ;;  %v5031_v8 = vadd.f32 %v5720_v28, %v10594_v27  ;;  %v5833_v32 = vpop.f32.mrf.mxu1 }
 0x7cf   : > { %v5722_v31 = vpop.f32.mrf.mxu0 }
 0x7d0   : > { %v5192_v56 = vadd.f32 %v5832_v22, %v5031_v8  ;;  %v5723_v42 = vadd.f32 %v5722_v31, %v5721_v38  ;;  %v5834_v35 = vpop.f32.mrf.mxu1 }
 0x7d1   : > { %v5724_v39 = vpop.f32.mrf.mxu0  ;;  %v5835_v11 = vadd.f32 %v5834_v35, %v5833_v32 }
 0x7d2   : > { %5264 = vst [vmem:[%s10598_s26 + $0x90] sm:$0xff] %v5192_v56  ;;  %v5034_v14 = vadd.f32 %v5723_v42, %v10594_v27  ;;  %v5836_v37 = vpop.f32.mrf.mxu1 }
 0x7d3   : > { %v5725_v63 = vpop.f32.mrf.mxu0 }
 0x7d4   : > { %v5195_v40 = vadd.f32 %v5835_v11, %v5034_v14  ;;  %v5726_v6 = vadd.f32 %v5725_v63, %v5724_v39  ;;  %v5837_v55 = vpop.f32.mrf.mxu1 }
 0x7d5   : > { %v5727_v9 = vpop.f32.mrf.mxu0  ;;  %v5838_v41 = vadd.f32 %v5837_v55, %v5836_v37 }
 0x7d6   : > { %5265 = vst [vmem:[%s10598_s26 + $0x98] sm:$0xff] %v5195_v40  ;;  %v5039_v53 = vadd.f32 %v5726_v6, %v10594_v27  ;;  %v5839_v21 = vpop.f32.mrf.mxu1 }
 0x7d7   : > { %v5728_v50 = vpop.f32.mrf.mxu0 }
 0x7d8   : > { %v5200_v60 = vadd.f32 %v5838_v41, %v5039_v53  ;;  %v5729_v19 = vadd.f32 %v5728_v50, %v5727_v9  ;;  %v5840_v2 = vpop.f32.mrf.mxu1 }
 0x7d9   : > { %v5730_v29 = vpop.f32.mrf.mxu0  ;;  %v5841_v47 = vadd.f32 %v5840_v2, %v5839_v21 }
 0x7da   : > { %5266 = vst [vmem:[%s10598_s26 + $0xa0] sm:$0xff] %v5200_v60  ;;  %v5042_v20 = vadd.f32 %v5729_v19, %v10594_v27  ;;  %v5842_v0 = vpop.f32.mrf.mxu1 }
 0x7db   : > { %v5731_v57 = vpop.f32.mrf.mxu0 }
 0x7dc   : > { %v5203_v1 = vadd.f32 %v5841_v47, %v5042_v20  ;;  %v5732_v24 = vadd.f32 %v5731_v57, %v5730_v29  ;;  %v5843_v17 = vpop.f32.mrf.mxu1 }
 0x7dd   : > { %v5733_v43 = vpop.f32.mrf.mxu0  ;;  %v5844_v10 = vadd.f32 %v5843_v17, %v5842_v0 }
 0x7de   : > { %5267 = vst [vmem:[%s10598_s26 + $0xa8] sm:$0xff] %v5203_v1  ;;  %v5047_v52 = vadd.f32 %v5732_v24, %v10594_v27  ;;  %v5845_v33 = vpop.f32.mrf.mxu1 }
 0x7df   : > { %v5734_v26 = vpop.f32.mrf.mxu0 }
 0x7e0   : > { %v5208_v54 = vadd.f32 %v5844_v10, %v5047_v52  ;;  %v5735_v36 = vadd.f32 %v5734_v26, %v5733_v43  ;;  %v5846_v18 = vpop.f32.mrf.mxu1 }
 0x7e1   : > { %v5736_v15 = vpop.f32.mrf.mxu0  ;;  %v5847_v34 = vadd.f32 %v5846_v18, %v5845_v33 }
 0x7e2   : > { %5268 = vst [vmem:[%s10598_s26 + $0xb0] sm:$0xff] %v5208_v54  ;;  %v5050_v12 = vadd.f32 %v5735_v36, %v10594_v27  ;;  %v5848_v16 = vpop.f32.mrf.mxu1 }
 0x7e3   : > { %v5737_v48 = vpop.f32.mrf.mxu0 }
 0x7e4   : > { %v5211_v23 = vadd.f32 %v5847_v34, %v5050_v12  ;;  %v5738_v49 = vadd.f32 %v5737_v48, %v5736_v15  ;;  %v5849_v59 = vpop.f32.mrf.mxu1 }
 0x7e5   : > { %v5739_v30 = vpop.f32.mrf.mxu0  ;;  %v5850_v58 = vadd.f32 %v5849_v59, %v5848_v16 }
 0x7e6   : > { %5269 = vst [vmem:[%s10598_s26 + $0xb8] sm:$0xff] %v5211_v23  ;;  %v5055_v46 = vadd.f32 %v5738_v49, %v10594_v27  ;;  %v5851_v13 = vpop.f32.mrf.mxu1 }
 0x7e7   : > { %v5740_v44 = vpop.f32.mrf.mxu0 }
 0x7e8   : > { %v5216_v3 = vadd.f32 %v5850_v58, %v5055_v46  ;;  %v5741_v51 = vadd.f32 %v5740_v44, %v5739_v30  ;;  %v5852_v7 = vpop.f32.mrf.mxu1 }
 0x7e9   : > { %v5742_v25 = vpop.f32.mrf.mxu0  ;;  %v5853_v61 = vadd.f32 %v5852_v7, %v5851_v13 }
 0x7ea   : > { %5270 = vst [vmem:[%s10598_s26 + $0xc0] sm:$0xff] %v5216_v3  ;;  %v5058_v4 = vadd.f32 %v5741_v51, %v10594_v27  ;;  %v5854_v45 = vpop.f32.mrf.mxu1 }
 0x7eb   : > { %v5743_v5 = vpop.f32.mrf.mxu0 }
 0x7ec   : > { %v5219_v28 = vadd.f32 %v5853_v61, %v5058_v4  ;;  %v5744_v62 = vadd.f32 %v5743_v5, %v5742_v25  ;;  %v5855_v38 = vpop.f32.mrf.mxu1 }
 0x7ed   : > { %v5745_v8 = vpop.f32.mrf.mxu0  ;;  %v5856_v32 = vadd.f32 %v5855_v38, %v5854_v45 }
 0x7ee   : > { %5271 = vst [vmem:[%s10598_s26 + $0xc8] sm:$0xff] %v5219_v28  ;;  %v5063_v22 = vadd.f32 %v5744_v62, %v10594_v27  ;;  %v5857_v31 = vpop.f32.mrf.mxu1 }
 0x7ef   : > { %v5746_v56 = vpop.f32.mrf.mxu0 }
 0x7f0   : > { %v5224_v42 = vadd.f32 %v5856_v32, %v5063_v22  ;;  %v5747_v35 = vadd.f32 %v5746_v56, %v5745_v8  ;;  %v5858_v39 = vpop.f32.mrf.mxu1 }
 0x7f1   : > { %v5748_v14 = vpop.f32.mrf.mxu0  ;;  %v5859_v37 = vadd.f32 %v5858_v39, %v5857_v31 }
 0x7f2   : > { %5272 = vst [vmem:[%s10598_s26 + $0xd0] sm:$0xff] %v5224_v42  ;;  %v5066_v11 = vadd.f32 %v5747_v35, %v10594_v27  ;;  %v5860_v63 = vpop.f32.mrf.mxu1 }
 0x7f3   : > { %v5749_v40 = vpop.f32.mrf.mxu0 }
 0x7f4   : > { %v5227_v6 = vadd.f32 %v5859_v37, %v5066_v11  ;;  %v5750_v55 = vadd.f32 %v5749_v40, %v5748_v14  ;;  %v5861_v9 = vpop.f32.mrf.mxu1 }
 0x7f5   : > { %v5751_v53 = vpop.f32.mrf.mxu0  ;;  %v5862_v21 = vadd.f32 %v5861_v9, %v5860_v63 }
 0x7f6   : > { %5273 = vst [vmem:[%s10598_s26 + $0xd8] sm:$0xff] %v5227_v6  ;;  %v5071_v41 = vadd.f32 %v5750_v55, %v10594_v27  ;;  %v5863_v50 = vpop.f32.mrf.mxu1 }
 0x7f7   : > { %v5752_v60 = vpop.f32.mrf.mxu0 }
 0x7f8   : > { %v5232_v19 = vadd.f32 %v5862_v21, %v5071_v41  ;;  %v5753_v2 = vadd.f32 %v5752_v60, %v5751_v53  ;;  %v5864_v29 = vpop.f32.mrf.mxu1 }
 0x7f9   : > { %v5754_v20 = vpop.f32.mrf.mxu0  ;;  %v5865_v0 = vadd.f32 %v5864_v29, %v5863_v50 }
 0x7fa   : > { %5274 = vst [vmem:[%s10598_s26 + $0xe0] sm:$0xff] %v5232_v19  ;;  %v5074_v47 = vadd.f32 %v5753_v2, %v10594_v27  ;;  %v5866_v57 = vpop.f32.mrf.mxu1 }
 0x7fb   : > { %v5755_v1 = vpop.f32.mrf.mxu0 }
 0x7fc   : > { %v5235_v24 = vadd.f32 %v5865_v0, %v5074_v47  ;;  %v5756_v17 = vadd.f32 %v5755_v1, %v5754_v20  ;;  %v5867_v43 = vpop.f32.mrf.mxu1 }
 0x7fd   : > { %v5757_v52 = vpop.f32.mrf.mxu0  ;;  %v5868_v33 = vadd.f32 %v5867_v43, %v5866_v57 }
 0x7fe   : > { %5275 = vst [vmem:[%s10598_s26 + $0xe8] sm:$0xff] %v5235_v24  ;;  %v5079_v10 = vadd.f32 %v5756_v17, %v10594_v27  ;;  %v5869_v26 = vpop.f32.mrf.mxu1 }
 0x7ff   : > { %v5758_v54 = vpop.f32.mrf.mxu0 }
 0x800   : > { %v5240_v36 = vadd.f32 %v5868_v33, %v5079_v10  ;;  %v5759_v18 = vadd.f32 %v5758_v54, %v5757_v52  ;;  %v5870_v15 = vpop.f32.mrf.mxu1 }
 0x801   : > { %v5871_v34 = vadd.f32 %v5870_v15, %v5869_v26 }
 0x802   : > { %5276 = vst [vmem:[%s10598_s26 + $0xf0] sm:$0xff] %v5240_v36  ;;  %v5082_v12 = vadd.f32 %v5759_v18, %v10594_v27 }
 0x804   : > { %v5243_v16 = vadd.f32 %v5871_v34, %v5082_v12 }
 0x806   : > { %5277 = vst [vmem:[%s10598_s26 + $0xf8] sm:$0xff] %v5243_v16 }
 0x807   : > { %6453 = shalt.err (!%p6450_p5)
}
 0x808   : > { %s6454_s24 = scalar_lea.hbm %s10667_s28, 4096  ;;  %s6458_s23 = scalar_lea.hbm %s10722_s9, 8192 }
 0x809   : > { %p6455_p6 = scmp.ne.s32.totalorder %s10667_s28, %s6454_s24  ;;  %p6459_p4 = scmp.lt.s32.totalorder %s10667_s28, %s10722_s9 }
 0x80a   : > { %p6460_p7 = scmp.lt.s32.totalorder %s6458_s23, %s6454_s24 }
 0x80b   : > { %p6456_p10 = pnand %p6455_p6, %p12211_p2 }
 0x80c   : > { %p6461_p13 = por %p6460_p7, %p6459_p4 }
 0x80d   : > { %p6457_p11 = pneg %p6456_p10 }
 0x80f   : > { %p6462_p0 = pnand %p6461_p13, %p6457_p11 }
 0x811   : > { %6465 = shalt.err (!%p6462_p0)
}
 0x812   : > { %s6532_s13 = smov 128   ;;  %s6533_s4 = smov 8  }
 0x813   : > { %5894 = dma.vmem_to_hbm [thread:$0]  (%p12211_p2), %s10669_s1, 4096, %s10667_s28, %s5279_s14, %s6532_s13, %s6532_s13, %s6533_s4  }
 0x814 PF: > { %s5307_s16 = sand.u32 1, %s6504_s30   ;;  %p12212_p8 = scmp.ne.s32.totalorder %s11173_s27, 0 }
 0x815   : > { %p12213_p9 = scmp.ge.s32.totalorder %s6516_s12, 2  ;;  %s5308_s15 = scalar_lea.sflag [#allocation4], %s5307_s16 }
 0x817   : > { %p5917_p12 = pnand %p12213_p9, %p12212_p8 }
 0x819   : > { %p5918_p3 = pneg %p5917_p12 }
 0x81b   : > { %6499 = dma.done.wait (%p5918_p3), %s5308_s15, 4096  }
 0x81c   : > { %6501 = vsyncadd (%p5918_p3), %s5308_s15, 4294963200  ;;  %p25_p1 = scmp.ge.s32.totalorder %s6683_s20, 4   ;;  %s12214_s30 = smov %s6508_s10 }
 0x81d   : > { %s12215_s10 = smov %s6512_s11  ;;  %s12216_s11 = smov %s6695_s19 }
 0x81e   : > { %s12217_s12 = smov %s6683_s20  ;;  %27 = sbr.rel (!%p25_p1) target bundleno = 12 (0xc), region = 121 }
 0x823   :  { %5313 = vsyncpa [#allocation3], 1 }
 0x824   :  { %5315 = vsyncpa [#allocation3 + $0x1], 1 }
 0x825   :  { %5316 = vsyncpa [#allocation6], 1 }
 0x826   :  { %5317 = vsyncpa [#allocation9], 1 }
 0x827   :  { %5318 = vsyncpa [#allocation12], 1 }
 0x828   :  { %5319 = vsyncpa [#allocation4], 1 }
 0x829   :  { %5321 = vsyncpa [#allocation4 + $0x1], 1 }

</bundles_post_ra>
